<compile_context>
chip_gen: v7x
topology: tpu7x:2x2x1
jax: 0.10.0
libtpu: 0.0.40
codegen_flags: <defaults>
</compile_context>

<pallas_src>
import functools

import jax
import jax.numpy as jnp
from jax import lax
from jax.experimental import pallas as pl
from jax.experimental.pallas import tpu as pltpu

_LANE = 128   # batch elements per compute chunk (vreg lane width)


def _make_kernel(lr: float):
    lr = float(lr)
    half_lr = 0.5 * lr

    def kernel(g_ref, m_ref, o_ref, w_ref):
        cpb, p, n, _ = g_ref.shape
        f32 = jnp.float32

        @pl.loop(0, cpb)                 # chunks are independent; loop bounds live ranges
        def _chunk(c):
            def mcol(i):
                return m_ref[c, i].astype(f32)      # (n, LANE) full-tile load

            def gcol(i):
                return g_ref[c, i].astype(f32)

            # ---- Y_j = M_j - lr*G_j + sum_i M_i * t[i,j],  t = lr*S ---------
            # t entries (lower triangle, i >= j) are produced just before the
            # first column that needs them and die as soon as the last column
            # has consumed them -> ~20 live (1,LANE) vregs peak, not 36/64.
            t = {}
            for j in range(p):
                Mj = mcol(j)
                Gj = gcol(j)
                t[(j, j)] = lr * jnp.sum(Mj * Gj, axis=0, keepdims=True)
                for i in range(j + 1, p):
                    t[(i, j)] = half_lr * jnp.sum(
                        mcol(i) * Gj + gcol(i) * Mj, axis=0, keepdims=True)

                acc = (-lr) * Gj
                for i in range(p):
                    tij = t[(i, j)] if i >= j else t[(j, i)]
                    if i == j:
                        acc = acc + Mj * (1.0 + tij)
                    else:
                        acc = acc + mcol(i) * tij
                w_ref[j] = acc                      # stage Y_j in f32 VMEM scratch

            # ---- Retraction: lane-batched modified Gram-Schmidt ------------
            # Equivalent to qf(Y) with diag(R) > 0 (torch.qr + sign fix).
            # TODO(synk): no epsilon guard, matching torch.qr semantics; a
            # rank-deficient Y (never the case for a Stiefel retraction step)
            # would produce inf/nan for the affected lanes only.
            for k in range(p):
                wk = w_ref[k]
                inv = lax.rsqrt(jnp.sum(wk * wk, axis=0, keepdims=True))
                q = wk * inv
                o_ref[c, k] = q.astype(o_ref.dtype)     # full (n, LANE) tile store
                for j2 in range(k + 1, p):
                    wj = w_ref[j2]
                    d = jnp.sum(q * wj, axis=0, keepdims=True)
                    w_ref[j2] = wj - q * d

    return kernel


def _pick_chunks_per_block(nchunks: int) -> int:
    """Chunks (of 128 lanes) per grid step.

    Amortizes the ~0.35us per-grid-step overhead with up to 8 x 128 lanes per
    step, while keeping >= 2 grid steps whenever possible so both v7x
    TensorCores get work under dimension_semantics=("parallel",).
    """
    if nchunks <= 1:
        return 1
    for cand in (8, 6, 4, 3, 2):
        if nchunks % cand == 0 and nchunks // cand >= 2:
            return cand
    return 1


@functools.partial(jax.jit, static_argnums=(3,))
def hand_optimizee_forward(grad, M, state, lr):
    """Pallas equivalent of Hand_Optimizee_Model(lr).forward(grad, M, state)."""
    B, n, p = M.shape
    assert grad.shape == (B, n, p)
    out_dtype = M.dtype

    nchunks = (B + _LANE - 1) // _LANE
    B_pad = nchunks * _LANE
    if B_pad != B:
        pad = B_pad - B
        # Pad M with an orthonormal frame and grad with zeros so padded lanes
        # stay finite; their results are sliced off below.
        eye = jnp.broadcast_to(jnp.eye(n, p, dtype=M.dtype)[None], (pad, n, p))
        M_in = jnp.concatenate([M, eye], axis=0)
        G_in = jnp.concatenate([grad, jnp.zeros((pad, n, p), grad.dtype)], axis=0)
    else:
        M_in, G_in = M, grad

    # Layout plumbing: (B, n, p) -> (nchunks, p, n, 128) so that a column is a
    # lane-dense (n, 128) tile.  If the surrounding program can keep this
    # layout end-to-end these transposes (extra HBM passes) disappear.
    Gt = jnp.transpose(G_in.reshape(nchunks, _LANE, n, p), (0, 3, 2, 1))
    Mt = jnp.transpose(M_in.reshape(nchunks, _LANE, n, p), (0, 3, 2, 1))

    cpb = _pick_chunks_per_block(nchunks)
    grid = (nchunks // cpb,)

    spec = pl.BlockSpec((cpb, p, n, _LANE), lambda b: (b, 0, 0, 0))
    out_t = pl.pallas_call(
        _make_kernel(lr),
        out_shape=jax.ShapeDtypeStruct((nchunks, p, n, _LANE), out_dtype),
        grid=grid,
        in_specs=[spec, spec],
        out_specs=spec,
        scratch_shapes=[pltpu.VMEM((p, n, _LANE), jnp.float32)],   # Y/W workspace
        input_output_aliases={1: 0},            # reuse M's HBM slab for the output
        compiler_params=pltpu.CompilerParams(
            dimension_semantics=("parallel",),
            vmem_limit_bytes=32 * 1024 * 1024,  # tiny usage; stays under v7x 64 MiB
        ),
    )(Gt, Mt)

    M_new = jnp.transpose(out_t, (0, 3, 2, 1)).reshape(B_pad, n, p)[:B]
    return M_new, state                          # state passes through unchanged


def _reference(grad, M, lr):
    """Pure-JAX reference (torch semantics): QR retraction, positive-diag sign fix."""
    A = jnp.einsum("bnp,bnq->bpq", M, grad)
    S = 0.5 * (A + jnp.swapaxes(A, 1, 2))
    U = grad - jnp.einsum("bnp,bpq->bnq", M, S)
    Y = M - lr * U
    Q, R = jnp.linalg.qr(Y)
    diag = jnp.diagonal(R, axis1=-2, axis2=-1)
    sign = jnp.sign(jnp.sign(diag) + 0.5)        # zeros -> +1
    return Q * sign[:, None, :]


if __name__ == "__main__":
    B, n, p = 2, 32, 8
    lr = 0.1

    key = jax.random.PRNGKey(0)
    k1, k2, k3 = jax.random.split(key, 3)

    # M: a point on the Stiefel manifold (orthonormal columns), deterministic.
    M0 = jax.random.normal(k1, (B, n, p), dtype=jnp.float32)
    M, _ = jnp.linalg.qr(M0)
    grad = 0.1 * jax.random.normal(k2, (B, n, p), dtype=jnp.float32)
    state = jax.random.normal(k3, (B, p), dtype=jnp.float32)   # opaque pass-through

    M_new, state_out = hand_optimizee_forward(grad, M, state, lr)
    M_new = jax.block_until_ready(M_new)

    ref = _reference(grad, M, lr)
    assert jnp.allclose(M_new, ref, atol=2e-4, rtol=2e-4), "mismatch vs reference"
    assert jnp.array_equal(state_out, state)
    print("KERNEL_OK")
</pallas_src>

<mosaic_0001>
module attributes {stable_mosaic.version = 11 : i64} {
  func.func @kernel(%arg0: i32, %arg1: memref<1x8x32x128xf32, #tpu.memory_space<vmem>>, %arg2: memref<1x8x32x128xf32, #tpu.memory_space<vmem>>, %arg3: memref<1x8x32x128xf32, #tpu.memory_space<vmem>>, %arg4: memref<8x32x128xf32, #tpu.memory_space<vmem>>) attributes {dimension_semantics = [#tpu.dimension_semantics<parallel>], iteration_bounds = array<i64: 1>, scalar_prefetch = 0 : i64, scratch_operands = 1 : i64, tpu.core_type = #tpu.core_type<tc>, window_params = [{transform_indices = @transform_0, window_bounds = array<i64: 1, 8, 32, 128>}, {transform_indices = @transform_1, window_bounds = array<i64: 1, 8, 32, 128>}, {transform_indices = @transform_2, window_bounds = array<i64: 1, 8, 32, 128>}]} {
    %c0_i32 = arith.constant 0 : i32
    %c1_i32 = arith.constant 1 : i32
    %0 = arith.muli %c0_i32, %c1_i32 : i32
    %c0_i32_0 = arith.constant 0 : i32
    %1 = arith.addi %c0_i32_0, %0 : i32
    %2 = arith.index_cast %1 : i32 to index
    %c0 = arith.constant 0 : index
    %c0_1 = arith.constant 0 : index
    %c0_2 = arith.constant 0 : index
    %3 = vector.load %arg2[%2, %c0, %c0_1, %c0_2] : memref<1x8x32x128xf32, #tpu.memory_space<vmem>>, vector<1x1x32x128xf32>
    %4 = vector.shape_cast %3 : vector<1x1x32x128xf32> to vector<32x128xf32>
    %5 = arith.index_cast %1 : i32 to index
    %c0_3 = arith.constant 0 : index
    %c0_4 = arith.constant 0 : index
    %c0_5 = arith.constant 0 : index
    %6 = vector.load %arg1[%5, %c0_3, %c0_4, %c0_5] : memref<1x8x32x128xf32, #tpu.memory_space<vmem>>, vector<1x1x32x128xf32>
    %7 = vector.shape_cast %6 : vector<1x1x32x128xf32> to vector<32x128xf32>
    %8 = arith.mulf %4, %7 : vector<32x128xf32>
    %cst = arith.constant dense<0.000000e+00> : vector<128xf32>
    %9 = vector.multi_reduction <add>, %8, %cst [0] : vector<32x128xf32> to vector<128xf32>
    %10 = vector.shape_cast %9 : vector<128xf32> to vector<1x128xf32>
    %cst_6 = arith.constant 1.000000e-01 : f32
    %11 = vector.broadcast %cst_6 : f32 to vector<1x128xf32>
    %12 = arith.mulf %11, %10 : vector<1x128xf32>
    %13 = arith.index_cast %1 : i32 to index
    %c1 = arith.constant 1 : index
    %c0_7 = arith.constant 0 : index
    %c0_8 = arith.constant 0 : index
    %14 = vector.load %arg2[%13, %c1, %c0_7, %c0_8] : memref<1x8x32x128xf32, #tpu.memory_space<vmem>>, vector<1x1x32x128xf32>
    %15 = vector.shape_cast %14 : vector<1x1x32x128xf32> to vector<32x128xf32>
    %16 = arith.mulf %15, %7 : vector<32x128xf32>
    %17 = arith.index_cast %1 : i32 to index
    %c1_9 = arith.constant 1 : index
    %c0_10 = arith.constant 0 : index
    %c0_11 = arith.constant 0 : index
    %18 = vector.load %arg1[%17, %c1_9, %c0_10, %c0_11] : memref<1x8x32x128xf32, #tpu.memory_space<vmem>>, vector<1x1x32x128xf32>
    %19 = vector.shape_cast %18 : vector<1x1x32x128xf32> to vector<32x128xf32>
    %20 = arith.mulf %19, %4 : vector<32x128xf32>
    %21 = arith.addf %16, %20 : vector<32x128xf32>
    %cst_12 = arith.constant dense<0.000000e+00> : vector<128xf32>
    %22 = vector.multi_reduction <add>, %21, %cst_12 [0] : vector<32x128xf32> to vector<128xf32>
    %23 = vector.shape_cast %22 : vector<128xf32> to vector<1x128xf32>
    %cst_13 = arith.constant 5.000000e-02 : f32
    %24 = vector.broadcast %cst_13 : f32 to vector<1x128xf32>
    %25 = arith.mulf %24, %23 : vector<1x128xf32>
    %26 = arith.index_cast %1 : i32 to index
    %c2 = arith.constant 2 : index
    %c0_14 = arith.constant 0 : index
    %c0_15 = arith.constant 0 : index
    %27 = vector.load %arg2[%26, %c2, %c0_14, %c0_15] : memref<1x8x32x128xf32, #tpu.memory_space<vmem>>, vector<1x1x32x128xf32>
    %28 = vector.shape_cast %27 : vector<1x1x32x128xf32> to vector<32x128xf32>
    %29 = arith.mulf %28, %7 : vector<32x128xf32>
    %30 = arith.index_cast %1 : i32 to index
    %c2_16 = arith.constant 2 : index
    %c0_17 = arith.constant 0 : index
    %c0_18 = arith.constant 0 : index
    %31 = vector.load %arg1[%30, %c2_16, %c0_17, %c0_18] : memref<1x8x32x128xf32, #tpu.memory_space<vmem>>, vector<1x1x32x128xf32>
    %32 = vector.shape_cast %31 : vector<1x1x32x128xf32> to vector<32x128xf32>
    %33 = arith.mulf %32, %4 : vector<32x128xf32>
    %34 = arith.addf %29, %33 : vector<32x128xf32>
    %cst_19 = arith.constant dense<0.000000e+00> : vector<128xf32>
    %35 = vector.multi_reduction <add>, %34, %cst_19 [0] : vector<32x128xf32> to vector<128xf32>
    %36 = vector.shape_cast %35 : vector<128xf32> to vector<1x128xf32>
    %cst_20 = arith.constant 5.000000e-02 : f32
    %37 = vector.broadcast %cst_20 : f32 to vector<1x128xf32>
    %38 = arith.mulf %37, %36 : vector<1x128xf32>
    %39 = arith.index_cast %1 : i32 to index
    %c3 = arith.constant 3 : index
    %c0_21 = arith.constant 0 : index
    %c0_22 = arith.constant 0 : index
    %40 = vector.load %arg2[%39, %c3, %c0_21, %c0_22] : memref<1x8x32x128xf32, #tpu.memory_space<vmem>>, vector<1x1x32x128xf32>
    %41 = vector.shape_cast %40 : vector<1x1x32x128xf32> to vector<32x128xf32>
    %42 = arith.mulf %41, %7 : vector<32x128xf32>
    %43 = arith.index_cast %1 : i32 to index
    %c3_23 = arith.constant 3 : index
    %c0_24 = arith.constant 0 : index
    %c0_25 = arith.constant 0 : index
    %44 = vector.load %arg1[%43, %c3_23, %c0_24, %c0_25] : memref<1x8x32x128xf32, #tpu.memory_space<vmem>>, vector<1x1x32x128xf32>
    %45 = vector.shape_cast %44 : vector<1x1x32x128xf32> to vector<32x128xf32>
    %46 = arith.mulf %45, %4 : vector<32x128xf32>
    %47 = arith.addf %42, %46 : vector<32x128xf32>
    %cst_26 = arith.constant dense<0.000000e+00> : vector<128xf32>
    %48 = vector.multi_reduction <add>, %47, %cst_26 [0] : vector<32x128xf32> to vector<128xf32>
    %49 = vector.shape_cast %48 : vector<128xf32> to vector<1x128xf32>
    %cst_27 = arith.constant 5.000000e-02 : f32
    %50 = vector.broadcast %cst_27 : f32 to vector<1x128xf32>
    %51 = arith.mulf %50, %49 : vector<1x128xf32>
    %52 = arith.index_cast %1 : i32 to index
    %c4 = arith.constant 4 : index
    %c0_28 = arith.constant 0 : index
    %c0_29 = arith.constant 0 : index
    %53 = vector.load %arg2[%52, %c4, %c0_28, %c0_29] : memref<1x8x32x128xf32, #tpu.memory_space<vmem>>, vector<1x1x32x128xf32>
    %54 = vector.shape_cast %53 : vector<1x1x32x128xf32> to vector<32x128xf32>
    %55 = arith.mulf %54, %7 : vector<32x128xf32>
    %56 = arith.index_cast %1 : i32 to index
    %c4_30 = arith.constant 4 : index
    %c0_31 = arith.constant 0 : index
    %c0_32 = arith.constant 0 : index
    %57 = vector.load %arg1[%56, %c4_30, %c0_31, %c0_32] : memref<1x8x32x128xf32, #tpu.memory_space<vmem>>, vector<1x1x32x128xf32>
    %58 = vector.shape_cast %57 : vector<1x1x32x128xf32> to vector<32x128xf32>
    %59 = arith.mulf %58, %4 : vector<32x128xf32>
    %60 = arith.addf %55, %59 : vector<32x128xf32>
    %cst_33 = arith.constant dense<0.000000e+00> : vector<128xf32>
    %61 = vector.multi_reduction <add>, %60, %cst_33 [0] : vector<32x128xf32> to vector<128xf32>
    %62 = vector.shape_cast %61 : vector<128xf32> to vector<1x128xf32>
    %cst_34 = arith.constant 5.000000e-02 : f32
    %63 = vector.broadcast %cst_34 : f32 to vector<1x128xf32>
    %64 = arith.mulf %63, %62 : vector<1x128xf32>
    %65 = arith.index_cast %1 : i32 to index
    %c5 = arith.constant 5 : index
    %c0_35 = arith.constant 0 : index
    %c0_36 = arith.constant 0 : index
    %66 = vector.load %arg2[%65, %c5, %c0_35, %c0_36] : memref<1x8x32x128xf32, #tpu.memory_space<vmem>>, vector<1x1x32x128xf32>
    %67 = vector.shape_cast %66 : vector<1x1x32x128xf32> to vector<32x128xf32>
    %68 = arith.mulf %67, %7 : vector<32x128xf32>
    %69 = arith.index_cast %1 : i32 to index
    %c5_37 = arith.constant 5 : index
    %c0_38 = arith.constant 0 : index
    %c0_39 = arith.constant 0 : index
    %70 = vector.load %arg1[%69, %c5_37, %c0_38, %c0_39] : memref<1x8x32x128xf32, #tpu.memory_space<vmem>>, vector<1x1x32x128xf32>
    %71 = vector.shape_cast %70 : vector<1x1x32x128xf32> to vector<32x128xf32>
    %72 = arith.mulf %71, %4 : vector<32x128xf32>
    %73 = arith.addf %68, %72 : vector<32x128xf32>
    %cst_40 = arith.constant dense<0.000000e+00> : vector<128xf32>
    %74 = vector.multi_reduction <add>, %73, %cst_40 [0] : vector<32x128xf32> to vector<128xf32>
    %75 = vector.shape_cast %74 : vector<128xf32> to vector<1x128xf32>
    %cst_41 = arith.constant 5.000000e-02 : f32
    %76 = vector.broadcast %cst_41 : f32 to vector<1x128xf32>
    %77 = arith.mulf %76, %75 : vector<1x128xf32>
    %78 = arith.index_cast %1 : i32 to index
    %c6 = arith.constant 6 : index
    %c0_42 = arith.constant 0 : index
    %c0_43 = arith.constant 0 : index
    %79 = vector.load %arg2[%78, %c6, %c0_42, %c0_43] : memref<1x8x32x128xf32, #tpu.memory_space<vmem>>, vector<1x1x32x128xf32>
    %80 = vector.shape_cast %79 : vector<1x1x32x128xf32> to vector<32x128xf32>
    %81 = arith.mulf %80, %7 : vector<32x128xf32>
    %82 = arith.index_cast %1 : i32 to index
    %c6_44 = arith.constant 6 : index
    %c0_45 = arith.constant 0 : index
    %c0_46 = arith.constant 0 : index
    %83 = vector.load %arg1[%82, %c6_44, %c0_45, %c0_46] : memref<1x8x32x128xf32, #tpu.memory_space<vmem>>, vector<1x1x32x128xf32>
    %84 = vector.shape_cast %83 : vector<1x1x32x128xf32> to vector<32x128xf32>
    %85 = arith.mulf %84, %4 : vector<32x128xf32>
    %86 = arith.addf %81, %85 : vector<32x128xf32>
    %cst_47 = arith.constant dense<0.000000e+00> : vector<128xf32>
    %87 = vector.multi_reduction <add>, %86, %cst_47 [0] : vector<32x128xf32> to vector<128xf32>
    %88 = vector.shape_cast %87 : vector<128xf32> to vector<1x128xf32>
    %cst_48 = arith.constant 5.000000e-02 : f32
    %89 = vector.broadcast %cst_48 : f32 to vector<1x128xf32>
    %90 = arith.mulf %89, %88 : vector<1x128xf32>
    %91 = arith.index_cast %1 : i32 to index
    %c7 = arith.constant 7 : index
    %c0_49 = arith.constant 0 : index
    %c0_50 = arith.constant 0 : index
    %92 = vector.load %arg2[%91, %c7, %c0_49, %c0_50] : memref<1x8x32x128xf32, #tpu.memory_space<vmem>>, vector<1x1x32x128xf32>
    %93 = vector.shape_cast %92 : vector<1x1x32x128xf32> to vector<32x128xf32>
    %94 = arith.mulf %93, %7 : vector<32x128xf32>
    %95 = arith.index_cast %1 : i32 to index
    %c7_51 = arith.constant 7 : index
    %c0_52 = arith.constant 0 : index
    %c0_53 = arith.constant 0 : index
    %96 = vector.load %arg1[%95, %c7_51, %c0_52, %c0_53] : memref<1x8x32x128xf32, #tpu.memory_space<vmem>>, vector<1x1x32x128xf32>
    %97 = vector.shape_cast %96 : vector<1x1x32x128xf32> to vector<32x128xf32>
    %98 = arith.mulf %97, %4 : vector<32x128xf32>
    %99 = arith.addf %94, %98 : vector<32x128xf32>
    %cst_54 = arith.constant dense<0.000000e+00> : vector<128xf32>
    %100 = vector.multi_reduction <add>, %99, %cst_54 [0] : vector<32x128xf32> to vector<128xf32>
    %101 = vector.shape_cast %100 : vector<128xf32> to vector<1x128xf32>
    %cst_55 = arith.constant 5.000000e-02 : f32
    %102 = vector.broadcast %cst_55 : f32 to vector<1x128xf32>
    %103 = arith.mulf %102, %101 : vector<1x128xf32>
    %cst_56 = arith.constant -1.000000e-01 : f32
    %104 = vector.broadcast %cst_56 : f32 to vector<32x128xf32>
    %105 = arith.mulf %104, %7 : vector<32x128xf32>
    %cst_57 = arith.constant 1.000000e+00 : f32
    %106 = vector.broadcast %cst_57 : f32 to vector<1x128xf32>
    %107 = arith.addf %106, %12 : vector<1x128xf32>
    %108 = vector.broadcast %107 : vector<1x128xf32> to vector<32x128xf32>
    %109 = arith.mulf %4, %108 : vector<32x128xf32>
    %110 = arith.addf %105, %109 : vector<32x128xf32>
    %111 = arith.index_cast %1 : i32 to index
    %c1_58 = arith.constant 1 : index
    %c0_59 = arith.constant 0 : index
    %c0_60 = arith.constant 0 : index
    %112 = vector.load %arg2[%111, %c1_58, %c0_59, %c0_60] : memref<1x8x32x128xf32, #tpu.memory_space<vmem>>, vector<1x1x32x128xf32>
    %113 = vector.shape_cast %112 : vector<1x1x32x128xf32> to vector<32x128xf32>
    %114 = vector.broadcast %25 : vector<1x128xf32> to vector<32x128xf32>
    %115 = arith.mulf %113, %114 : vector<32x128xf32>
    %116 = arith.addf %110, %115 : vector<32x128xf32>
    %117 = arith.index_cast %1 : i32 to index
    %c2_61 = arith.constant 2 : index
    %c0_62 = arith.constant 0 : index
    %c0_63 = arith.constant 0 : index
    %118 = vector.load %arg2[%117, %c2_61, %c0_62, %c0_63] : memref<1x8x32x128xf32, #tpu.memory_space<vmem>>, vector<1x1x32x128xf32>
    %119 = vector.shape_cast %118 : vector<1x1x32x128xf32> to vector<32x128xf32>
    %120 = vector.broadcast %38 : vector<1x128xf32> to vector<32x128xf32>
    %121 = arith.mulf %119, %120 : vector<32x128xf32>
    %122 = arith.addf %116, %121 : vector<32x128xf32>
    %123 = arith.index_cast %1 : i32 to index
    %c3_64 = arith.constant 3 : index
    %c0_65 = arith.constant 0 : index
    %c0_66 = arith.constant 0 : index
    %124 = vector.load %arg2[%123, %c3_64, %c0_65, %c0_66] : memref<1x8x32x128xf32, #tpu.memory_space<vmem>>, vector<1x1x32x128xf32>
    %125 = vector.shape_cast %124 : vector<1x1x32x128xf32> to vector<32x128xf32>
    %126 = vector.broadcast %51 : vector<1x128xf32> to vector<32x128xf32>
    %127 = arith.mulf %125, %126 : vector<32x128xf32>
    %128 = arith.addf %122, %127 : vector<32x128xf32>
    %129 = arith.index_cast %1 : i32 to index
    %c4_67 = arith.constant 4 : index
    %c0_68 = arith.constant 0 : index
    %c0_69 = arith.constant 0 : index
    %130 = vector.load %arg2[%129, %c4_67, %c0_68, %c0_69] : memref<1x8x32x128xf32, #tpu.memory_space<vmem>>, vector<1x1x32x128xf32>
    %131 = vector.shape_cast %130 : vector<1x1x32x128xf32> to vector<32x128xf32>
    %132 = vector.broadcast %64 : vector<1x128xf32> to vector<32x128xf32>
    %133 = arith.mulf %131, %132 : vector<32x128xf32>
    %134 = arith.addf %128, %133 : vector<32x128xf32>
    %135 = arith.index_cast %1 : i32 to index
    %c5_70 = arith.constant 5 : index
    %c0_71 = arith.constant 0 : index
    %c0_72 = arith.constant 0 : index
    %136 = vector.load %arg2[%135, %c5_70, %c0_71, %c0_72] : memref<1x8x32x128xf32, #tpu.memory_space<vmem>>, vector<1x1x32x128xf32>
    %137 = vector.shape_cast %136 : vector<1x1x32x128xf32> to vector<32x128xf32>
    %138 = vector.broadcast %77 : vector<1x128xf32> to vector<32x128xf32>
    %139 = arith.mulf %137, %138 : vector<32x128xf32>
    %140 = arith.addf %134, %139 : vector<32x128xf32>
    %141 = arith.index_cast %1 : i32 to index
    %c6_73 = arith.constant 6 : index
    %c0_74 = arith.constant 0 : index
    %c0_75 = arith.constant 0 : index
    %142 = vector.load %arg2[%141, %c6_73, %c0_74, %c0_75] : memref<1x8x32x128xf32, #tpu.memory_space<vmem>>, vector<1x1x32x128xf32>
    %143 = vector.shape_cast %142 : vector<1x1x32x128xf32> to vector<32x128xf32>
    %144 = vector.broadcast %90 : vector<1x128xf32> to vector<32x128xf32>
    %145 = arith.mulf %143, %144 : vector<32x128xf32>
    %146 = arith.addf %140, %145 : vector<32x128xf32>
    %147 = arith.index_cast %1 : i32 to index
    %c7_76 = arith.constant 7 : index
    %c0_77 = arith.constant 0 : index
    %c0_78 = arith.constant 0 : index
    %148 = vector.load %arg2[%147, %c7_76, %c0_77, %c0_78] : memref<1x8x32x128xf32, #tpu.memory_space<vmem>>, vector<1x1x32x128xf32>
    %149 = vector.shape_cast %148 : vector<1x1x32x128xf32> to vector<32x128xf32>
    %150 = vector.broadcast %103 : vector<1x128xf32> to vector<32x128xf32>
    %151 = arith.mulf %149, %150 : vector<32x128xf32>
    %152 = arith.addf %146, %151 : vector<32x128xf32>
    %c0_79 = arith.constant 0 : index
    %c0_80 = arith.constant 0 : index
    %c0_81 = arith.constant 0 : index
    %153 = vector.load %arg4[%c0_79, %c0_80, %c0_81] : memref<8x32x128xf32, #tpu.memory_space<vmem>>, vector<1x32x128xf32>
    %154 = vector.shape_cast %153 : vector<1x32x128xf32> to vector<32x128xf32>
    %155 = vector.shape_cast %152 : vector<32x128xf32> to vector<1x32x128xf32>
    tpu.vector_store %arg4[%c0_79, %c0_80, %c0_81], %155 {strides = array<i32>} : memref<8x32x128xf32, #tpu.memory_space<vmem>>, vector<1x32x128xf32>,
    %156 = arith.index_cast %1 : i32 to index
    %c1_82 = arith.constant 1 : index
    %c0_83 = arith.constant 0 : index
    %c0_84 = arith.constant 0 : index
    %157 = vector.load %arg2[%156, %c1_82, %c0_83, %c0_84] : memref<1x8x32x128xf32, #tpu.memory_space<vmem>>, vector<1x1x32x128xf32>
    %158 = vector.shape_cast %157 : vector<1x1x32x128xf32> to vector<32x128xf32>
    %159 = arith.index_cast %1 : i32 to index
    %c1_85 = arith.constant 1 : index
    %c0_86 = arith.constant 0 : index
    %c0_87 = arith.constant 0 : index
    %160 = vector.load %arg1[%159, %c1_85, %c0_86, %c0_87] : memref<1x8x32x128xf32, #tpu.memory_space<vmem>>, vector<1x1x32x128xf32>
    %161 = vector.shape_cast %160 : vector<1x1x32x128xf32> to vector<32x128xf32>
    %162 = arith.mulf %158, %161 : vector<32x128xf32>
    %cst_88 = arith.constant dense<0.000000e+00> : vector<128xf32>
    %163 = vector.multi_reduction <add>, %162, %cst_88 [0] : vector<32x128xf32> to vector<128xf32>
    %164 = vector.shape_cast %163 : vector<128xf32> to vector<1x128xf32>
    %cst_89 = arith.constant 1.000000e-01 : f32
    %165 = vector.broadcast %cst_89 : f32 to vector<1x128xf32>
    %166 = arith.mulf %165, %164 : vector<1x128xf32>
    %167 = arith.index_cast %1 : i32 to index
    %c2_90 = arith.constant 2 : index
    %c0_91 = arith.constant 0 : index
    %c0_92 = arith.constant 0 : index
    %168 = vector.load %arg2[%167, %c2_90, %c0_91, %c0_92] : memref<1x8x32x128xf32, #tpu.memory_space<vmem>>, vector<1x1x32x128xf32>
    %169 = vector.shape_cast %168 : vector<1x1x32x128xf32> to vector<32x128xf32>
    %170 = arith.mulf %169, %161 : vector<32x128xf32>
    %171 = arith.index_cast %1 : i32 to index
    %c2_93 = arith.constant 2 : index
    %c0_94 = arith.constant 0 : index
    %c0_95 = arith.constant 0 : index
    %172 = vector.load %arg1[%171, %c2_93, %c0_94, %c0_95] : memref<1x8x32x128xf32, #tpu.memory_space<vmem>>, vector<1x1x32x128xf32>
    %173 = vector.shape_cast %172 : vector<1x1x32x128xf32> to vector<32x128xf32>
    %174 = arith.mulf %173, %158 : vector<32x128xf32>
    %175 = arith.addf %170, %174 : vector<32x128xf32>
    %cst_96 = arith.constant dense<0.000000e+00> : vector<128xf32>
    %176 = vector.multi_reduction <add>, %175, %cst_96 [0] : vector<32x128xf32> to vector<128xf32>
    %177 = vector.shape_cast %176 : vector<128xf32> to vector<1x128xf32>
    %cst_97 = arith.constant 5.000000e-02 : f32
    %178 = vector.broadcast %cst_97 : f32 to vector<1x128xf32>
    %179 = arith.mulf %178, %177 : vector<1x128xf32>
    %180 = arith.index_cast %1 : i32 to index
    %c3_98 = arith.constant 3 : index
    %c0_99 = arith.constant 0 : index
    %c0_100 = arith.constant 0 : index
    %181 = vector.load %arg2[%180, %c3_98, %c0_99, %c0_100] : memref<1x8x32x128xf32, #tpu.memory_space<vmem>>, vector<1x1x32x128xf32>
    %182 = vector.shape_cast %181 : vector<1x1x32x128xf32> to vector<32x128xf32>
    %183 = arith.mulf %182, %161 : vector<32x128xf32>
    %184 = arith.index_cast %1 : i32 to index
    %c3_101 = arith.constant 3 : index
    %c0_102 = arith.constant 0 : index
    %c0_103 = arith.constant 0 : index
    %185 = vector.load %arg1[%184, %c3_101, %c0_102, %c0_103] : memref<1x8x32x128xf32, #tpu.memory_space<vmem>>, vector<1x1x32x128xf32>
    %186 = vector.shape_cast %185 : vector<1x1x32x128xf32> to vector<32x128xf32>
    %187 = arith.mulf %186, %158 : vector<32x128xf32>
    %188 = arith.addf %183, %187 : vector<32x128xf32>
    %cst_104 = arith.constant dense<0.000000e+00> : vector<128xf32>
    %189 = vector.multi_reduction <add>, %188, %cst_104 [0] : vector<32x128xf32> to vector<128xf32>
    %190 = vector.shape_cast %189 : vector<128xf32> to vector<1x128xf32>
    %cst_105 = arith.constant 5.000000e-02 : f32
    %191 = vector.broadcast %cst_105 : f32 to vector<1x128xf32>
    %192 = arith.mulf %191, %190 : vector<1x128xf32>
    %193 = arith.index_cast %1 : i32 to index
    %c4_106 = arith.constant 4 : index
    %c0_107 = arith.constant 0 : index
    %c0_108 = arith.constant 0 : index
    %194 = vector.load %arg2[%193, %c4_106, %c0_107, %c0_108] : memref<1x8x32x128xf32, #tpu.memory_space<vmem>>, vector<1x1x32x128xf32>
    %195 = vector.shape_cast %194 : vector<1x1x32x128xf32> to vector<32x128xf32>
    %196 = arith.mulf %195, %161 : vector<32x128xf32>
    %197 = arith.index_cast %1 : i32 to index
    %c4_109 = arith.constant 4 : index
    %c0_110 = arith.constant 0 : index
    %c0_111 = arith.constant 0 : index
    %198 = vector.load %arg1[%197, %c4_109, %c0_110, %c0_111] : memref<1x8x32x128xf32, #tpu.memory_space<vmem>>, vector<1x1x32x128xf32>
    %199 = vector.shape_cast %198 : vector<1x1x32x128xf32> to vector<32x128xf32>
    %200 = arith.mulf %199, %158 : vector<32x128xf32>
    %201 = arith.addf %196, %200 : vector<32x128xf32>
    %cst_112 = arith.constant dense<0.000000e+00> : vector<128xf32>
    %202 = vector.multi_reduction <add>, %201, %cst_112 [0] : vector<32x128xf32> to vector<128xf32>
    %203 = vector.shape_cast %202 : vector<128xf32> to vector<1x128xf32>
    %cst_113 = arith.constant 5.000000e-02 : f32
    %204 = vector.broadcast %cst_113 : f32 to vector<1x128xf32>
    %205 = arith.mulf %204, %203 : vector<1x128xf32>
    %206 = arith.index_cast %1 : i32 to index
    %c5_114 = arith.constant 5 : index
    %c0_115 = arith.constant 0 : index
    %c0_116 = arith.constant 0 : index
    %207 = vector.load %arg2[%206, %c5_114, %c0_115, %c0_116] : memref<1x8x32x128xf32, #tpu.memory_space<vmem>>, vector<1x1x32x128xf32>
    %208 = vector.shape_cast %207 : vector<1x1x32x128xf32> to vector<32x128xf32>
    %209 = arith.mulf %208, %161 : vector<32x128xf32>
    %210 = arith.index_cast %1 : i32 to index
    %c5_117 = arith.constant 5 : index
    %c0_118 = arith.constant 0 : index
    %c0_119 = arith.constant 0 : index
    %211 = vector.load %arg1[%210, %c5_117, %c0_118, %c0_119] : memref<1x8x32x128xf32, #tpu.memory_space<vmem>>, vector<1x1x32x128xf32>
    %212 = vector.shape_cast %211 : vector<1x1x32x128xf32> to vector<32x128xf32>
    %213 = arith.mulf %212, %158 : vector<32x128xf32>
    %214 = arith.addf %209, %213 : vector<32x128xf32>
    %cst_120 = arith.constant dense<0.000000e+00> : vector<128xf32>
    %215 = vector.multi_reduction <add>, %214, %cst_120 [0] : vector<32x128xf32> to vector<128xf32>
    %216 = vector.shape_cast %215 : vector<128xf32> to vector<1x128xf32>
    %cst_121 = arith.constant 5.000000e-02 : f32
    %217 = vector.broadcast %cst_121 : f32 to vector<1x128xf32>
    %218 = arith.mulf %217, %216 : vector<1x128xf32>
    %219 = arith.index_cast %1 : i32 to index
    %c6_122 = arith.constant 6 : index
    %c0_123 = arith.constant 0 : index
    %c0_124 = arith.constant 0 : index
    %220 = vector.load %arg2[%219, %c6_122, %c0_123, %c0_124] : memref<1x8x32x128xf32, #tpu.memory_space<vmem>>, vector<1x1x32x128xf32>
    %221 = vector.shape_cast %220 : vector<1x1x32x128xf32> to vector<32x128xf32>
    %222 = arith.mulf %221, %161 : vector<32x128xf32>
    %223 = arith.index_cast %1 : i32 to index
    %c6_125 = arith.constant 6 : index
    %c0_126 = arith.constant 0 : index
    %c0_127 = arith.constant 0 : index
    %224 = vector.load %arg1[%223, %c6_125, %c0_126, %c0_127] : memref<1x8x32x128xf32, #tpu.memory_space<vmem>>, vector<1x1x32x128xf32>
    %225 = vector.shape_cast %224 : vector<1x1x32x128xf32> to vector<32x128xf32>
    %226 = arith.mulf %225, %158 : vector<32x128xf32>
    %227 = arith.addf %222, %226 : vector<32x128xf32>
    %cst_128 = arith.constant dense<0.000000e+00> : vector<128xf32>
    %228 = vector.multi_reduction <add>, %227, %cst_128 [0] : vector<32x128xf32> to vector<128xf32>
    %229 = vector.shape_cast %228 : vector<128xf32> to vector<1x128xf32>
    %cst_129 = arith.constant 5.000000e-02 : f32
    %230 = vector.broadcast %cst_129 : f32 to vector<1x128xf32>
    %231 = arith.mulf %230, %229 : vector<1x128xf32>
    %232 = arith.index_cast %1 : i32 to index
    %c7_130 = arith.constant 7 : index
    %c0_131 = arith.constant 0 : index
    %c0_132 = arith.constant 0 : index
    %233 = vector.load %arg2[%232, %c7_130, %c0_131, %c0_132] : memref<1x8x32x128xf32, #tpu.memory_space<vmem>>, vector<1x1x32x128xf32>
    %234 = vector.shape_cast %233 : vector<1x1x32x128xf32> to vector<32x128xf32>
    %235 = arith.mulf %234, %161 : vector<32x128xf32>
    %236 = arith.index_cast %1 : i32 to index
    %c7_133 = arith.constant 7 : index
    %c0_134 = arith.constant 0 : index
    %c0_135 = arith.constant 0 : index
    %237 = vector.load %arg1[%236, %c7_133, %c0_134, %c0_135] : memref<1x8x32x128xf32, #tpu.memory_space<vmem>>, vector<1x1x32x128xf32>
    %238 = vector.shape_cast %237 : vector<1x1x32x128xf32> to vector<32x128xf32>
    %239 = arith.mulf %238, %158 : vector<32x128xf32>
    %240 = arith.addf %235, %239 : vector<32x128xf32>
    %cst_136 = arith.constant dense<0.000000e+00> : vector<128xf32>
    %241 = vector.multi_reduction <add>, %240, %cst_136 [0] : vector<32x128xf32> to vector<128xf32>
    %242 = vector.shape_cast %241 : vector<128xf32> to vector<1x128xf32>
    %cst_137 = arith.constant 5.000000e-02 : f32
    %243 = vector.broadcast %cst_137 : f32 to vector<1x128xf32>
    %244 = arith.mulf %243, %242 : vector<1x128xf32>
    %cst_138 = arith.constant -1.000000e-01 : f32
    %245 = vector.broadcast %cst_138 : f32 to vector<32x128xf32>
    %246 = arith.mulf %245, %161 : vector<32x128xf32>
    %247 = arith.index_cast %1 : i32 to index
    %c0_139 = arith.constant 0 : index
    %c0_140 = arith.constant 0 : index
    %c0_141 = arith.constant 0 : index
    %248 = vector.load %arg2[%247, %c0_139, %c0_140, %c0_141] : memref<1x8x32x128xf32, #tpu.memory_space<vmem>>, vector<1x1x32x128xf32>
    %249 = vector.shape_cast %248 : vector<1x1x32x128xf32> to vector<32x128xf32>
    %250 = vector.broadcast %25 : vector<1x128xf32> to vector<32x128xf32>
    %251 = arith.mulf %249, %250 : vector<32x128xf32>
    %252 = arith.addf %246, %251 : vector<32x128xf32>
    %cst_142 = arith.constant 1.000000e+00 : f32
    %253 = vector.broadcast %cst_142 : f32 to vector<1x128xf32>
    %254 = arith.addf %253, %166 : vector<1x128xf32>
    %255 = vector.broadcast %254 : vector<1x128xf32> to vector<32x128xf32>
    %256 = arith.mulf %158, %255 : vector<32x128xf32>
    %257 = arith.addf %252, %256 : vector<32x128xf32>
    %258 = arith.index_cast %1 : i32 to index
    %c2_143 = arith.constant 2 : index
    %c0_144 = arith.constant 0 : index
    %c0_145 = arith.constant 0 : index
    %259 = vector.load %arg2[%258, %c2_143, %c0_144, %c0_145] : memref<1x8x32x128xf32, #tpu.memory_space<vmem>>, vector<1x1x32x128xf32>
    %260 = vector.shape_cast %259 : vector<1x1x32x128xf32> to vector<32x128xf32>
    %261 = vector.broadcast %179 : vector<1x128xf32> to vector<32x128xf32>
    %262 = arith.mulf %260, %261 : vector<32x128xf32>
    %263 = arith.addf %257, %262 : vector<32x128xf32>
    %264 = arith.index_cast %1 : i32 to index
    %c3_146 = arith.constant 3 : index
    %c0_147 = arith.constant 0 : index
    %c0_148 = arith.constant 0 : index
    %265 = vector.load %arg2[%264, %c3_146, %c0_147, %c0_148] : memref<1x8x32x128xf32, #tpu.memory_space<vmem>>, vector<1x1x32x128xf32>
    %266 = vector.shape_cast %265 : vector<1x1x32x128xf32> to vector<32x128xf32>
    %267 = vector.broadcast %192 : vector<1x128xf32> to vector<32x128xf32>
    %268 = arith.mulf %266, %267 : vector<32x128xf32>
    %269 = arith.addf %263, %268 : vector<32x128xf32>
    %270 = arith.index_cast %1 : i32 to index
    %c4_149 = arith.constant 4 : index
    %c0_150 = arith.constant 0 : index
    %c0_151 = arith.constant 0 : index
    %271 = vector.load %arg2[%270, %c4_149, %c0_150, %c0_151] : memref<1x8x32x128xf32, #tpu.memory_space<vmem>>, vector<1x1x32x128xf32>
    %272 = vector.shape_cast %271 : vector<1x1x32x128xf32> to vector<32x128xf32>
    %273 = vector.broadcast %205 : vector<1x128xf32> to vector<32x128xf32>
    %274 = arith.mulf %272, %273 : vector<32x128xf32>
    %275 = arith.addf %269, %274 : vector<32x128xf32>
    %276 = arith.index_cast %1 : i32 to index
    %c5_152 = arith.constant 5 : index
    %c0_153 = arith.constant 0 : index
    %c0_154 = arith.constant 0 : index
    %277 = vector.load %arg2[%276, %c5_152, %c0_153, %c0_154] : memref<1x8x32x128xf32, #tpu.memory_space<vmem>>, vector<1x1x32x128xf32>
    %278 = vector.shape_cast %277 : vector<1x1x32x128xf32> to vector<32x128xf32>
    %279 = vector.broadcast %218 : vector<1x128xf32> to vector<32x128xf32>
    %280 = arith.mulf %278, %279 : vector<32x128xf32>
    %281 = arith.addf %275, %280 : vector<32x128xf32>
    %282 = arith.index_cast %1 : i32 to index
    %c6_155 = arith.constant 6 : index
    %c0_156 = arith.constant 0 : index
    %c0_157 = arith.constant 0 : index
    %283 = vector.load %arg2[%282, %c6_155, %c0_156, %c0_157] : memref<1x8x32x128xf32, #tpu.memory_space<vmem>>, vector<1x1x32x128xf32>
    %284 = vector.shape_cast %283 : vector<1x1x32x128xf32> to vector<32x128xf32>
    %285 = vector.broadcast %231 : vector<1x128xf32> to vector<32x128xf32>
    %286 = arith.mulf %284, %285 : vector<32x128xf32>
    %287 = arith.addf %281, %286 : vector<32x128xf32>
    %288 = arith.index_cast %1 : i32 to index
    %c7_158 = arith.constant 7 : index
    %c0_159 = arith.constant 0 : index
    %c0_160 = arith.constant 0 : index
    %289 = vector.load %arg2[%288, %c7_158, %c0_159, %c0_160] : memref<1x8x32x128xf32, #tpu.memory_space<vmem>>, vector<1x1x32x128xf32>
    %290 = vector.shape_cast %289 : vector<1x1x32x128xf32> to vector<32x128xf32>
    %291 = vector.broadcast %244 : vector<1x128xf32> to vector<32x128xf32>
    %292 = arith.mulf %290, %291 : vector<32x128xf32>
    %293 = arith.addf %287, %292 : vector<32x128xf32>
    %c1_161 = arith.constant 1 : index
    %c0_162 = arith.constant 0 : index
    %c0_163 = arith.constant 0 : index
    %294 = vector.load %arg4[%c1_161, %c0_162, %c0_163] : memref<8x32x128xf32, #tpu.memory_space<vmem>>, vector<1x32x128xf32>
    %295 = vector.shape_cast %294 : vector<1x32x128xf32> to vector<32x128xf32>
    %296 = vector.shape_cast %293 : vector<32x128xf32> to vector<1x32x128xf32>
    tpu.vector_store %arg4[%c1_161, %c0_162, %c0_163], %296 {strides = array<i32>} : memref<8x32x128xf32, #tpu.memory_space<vmem>>, vector<1x32x128xf32>,
    %297 = arith.index_cast %1 : i32 to index
    %c2_164 = arith.constant 2 : index
    %c0_165 = arith.constant 0 : index
    %c0_166 = arith.constant 0 : index
    %298 = vector.load %arg2[%297, %c2_164, %c0_165, %c0_166] : memref<1x8x32x128xf32, #tpu.memory_space<vmem>>, vector<1x1x32x128xf32>
    %299 = vector.shape_cast %298 : vector<1x1x32x128xf32> to vector<32x128xf32>
    %300 = arith.index_cast %1 : i32 to index
    %c2_167 = arith.constant 2 : index
    %c0_168 = arith.constant 0 : index
    %c0_169 = arith.constant 0 : index
    %301 = vector.load %arg1[%300, %c2_167, %c0_168, %c0_169] : memref<1x8x32x128xf32, #tpu.memory_space<vmem>>, vector<1x1x32x128xf32>
    %302 = vector.shape_cast %301 : vector<1x1x32x128xf32> to vector<32x128xf32>
    %303 = arith.mulf %299, %302 : vector<32x128xf32>
    %cst_170 = arith.constant dense<0.000000e+00> : vector<128xf32>
    %304 = vector.multi_reduction <add>, %303, %cst_170 [0] : vector<32x128xf32> to vector<128xf32>
    %305 = vector.shape_cast %304 : vector<128xf32> to vector<1x128xf32>
    %cst_171 = arith.constant 1.000000e-01 : f32
    %306 = vector.broadcast %cst_171 : f32 to vector<1x128xf32>
    %307 = arith.mulf %306, %305 : vector<1x128xf32>
    %308 = arith.index_cast %1 : i32 to index
    %c3_172 = arith.constant 3 : index
    %c0_173 = arith.constant 0 : index
    %c0_174 = arith.constant 0 : index
    %309 = vector.load %arg2[%308, %c3_172, %c0_173, %c0_174] : memref<1x8x32x128xf32, #tpu.memory_space<vmem>>, vector<1x1x32x128xf32>
    %310 = vector.shape_cast %309 : vector<1x1x32x128xf32> to vector<32x128xf32>
    %311 = arith.mulf %310, %302 : vector<32x128xf32>
    %312 = arith.index_cast %1 : i32 to index
    %c3_175 = arith.constant 3 : index
    %c0_176 = arith.constant 0 : index
    %c0_177 = arith.constant 0 : index
    %313 = vector.load %arg1[%312, %c3_175, %c0_176, %c0_177] : memref<1x8x32x128xf32, #tpu.memory_space<vmem>>, vector<1x1x32x128xf32>
    %314 = vector.shape_cast %313 : vector<1x1x32x128xf32> to vector<32x128xf32>
    %315 = arith.mulf %314, %299 : vector<32x128xf32>
    %316 = arith.addf %311, %315 : vector<32x128xf32>
    %cst_178 = arith.constant dense<0.000000e+00> : vector<128xf32>
    %317 = vector.multi_reduction <add>, %316, %cst_178 [0] : vector<32x128xf32> to vector<128xf32>
    %318 = vector.shape_cast %317 : vector<128xf32> to vector<1x128xf32>
    %cst_179 = arith.constant 5.000000e-02 : f32
    %319 = vector.broadcast %cst_179 : f32 to vector<1x128xf32>
    %320 = arith.mulf %319, %318 : vector<1x128xf32>
    %321 = arith.index_cast %1 : i32 to index
    %c4_180 = arith.constant 4 : index
    %c0_181 = arith.constant 0 : index
    %c0_182 = arith.constant 0 : index
    %322 = vector.load %arg2[%321, %c4_180, %c0_181, %c0_182] : memref<1x8x32x128xf32, #tpu.memory_space<vmem>>, vector<1x1x32x128xf32>
    %323 = vector.shape_cast %322 : vector<1x1x32x128xf32> to vector<32x128xf32>
    %324 = arith.mulf %323, %302 : vector<32x128xf32>
    %325 = arith.index_cast %1 : i32 to index
    %c4_183 = arith.constant 4 : index
    %c0_184 = arith.constant 0 : index
    %c0_185 = arith.constant 0 : index
    %326 = vector.load %arg1[%325, %c4_183, %c0_184, %c0_185] : memref<1x8x32x128xf32, #tpu.memory_space<vmem>>, vector<1x1x32x128xf32>
    %327 = vector.shape_cast %326 : vector<1x1x32x128xf32> to vector<32x128xf32>
    %328 = arith.mulf %327, %299 : vector<32x128xf32>
    %329 = arith.addf %324, %328 : vector<32x128xf32>
    %cst_186 = arith.constant dense<0.000000e+00> : vector<128xf32>
    %330 = vector.multi_reduction <add>, %329, %cst_186 [0] : vector<32x128xf32> to vector<128xf32>
    %331 = vector.shape_cast %330 : vector<128xf32> to vector<1x128xf32>
    %cst_187 = arith.constant 5.000000e-02 : f32
    %332 = vector.broadcast %cst_187 : f32 to vector<1x128xf32>
    %333 = arith.mulf %332, %331 : vector<1x128xf32>
    %334 = arith.index_cast %1 : i32 to index
    %c5_188 = arith.constant 5 : index
    %c0_189 = arith.constant 0 : index
    %c0_190 = arith.constant 0 : index
    %335 = vector.load %arg2[%334, %c5_188, %c0_189, %c0_190] : memref<1x8x32x128xf32, #tpu.memory_space<vmem>>, vector<1x1x32x128xf32>
    %336 = vector.shape_cast %335 : vector<1x1x32x128xf32> to vector<32x128xf32>
    %337 = arith.mulf %336, %302 : vector<32x128xf32>
    %338 = arith.index_cast %1 : i32 to index
    %c5_191 = arith.constant 5 : index
    %c0_192 = arith.constant 0 : index
    %c0_193 = arith.constant 0 : index
    %339 = vector.load %arg1[%338, %c5_191, %c0_192, %c0_193] : memref<1x8x32x128xf32, #tpu.memory_space<vmem>>, vector<1x1x32x128xf32>
    %340 = vector.shape_cast %339 : vector<1x1x32x128xf32> to vector<32x128xf32>
    %341 = arith.mulf %340, %299 : vector<32x128xf32>
    %342 = arith.addf %337, %341 : vector<32x128xf32>
    %cst_194 = arith.constant dense<0.000000e+00> : vector<128xf32>
    %343 = vector.multi_reduction <add>, %342, %cst_194 [0] : vector<32x128xf32> to vector<128xf32>
    %344 = vector.shape_cast %343 : vector<128xf32> to vector<1x128xf32>
    %cst_195 = arith.constant 5.000000e-02 : f32
    %345 = vector.broadcast %cst_195 : f32 to vector<1x128xf32>
    %346 = arith.mulf %345, %344 : vector<1x128xf32>
    %347 = arith.index_cast %1 : i32 to index
    %c6_196 = arith.constant 6 : index
    %c0_197 = arith.constant 0 : index
    %c0_198 = arith.constant 0 : index
    %348 = vector.load %arg2[%347, %c6_196, %c0_197, %c0_198] : memref<1x8x32x128xf32, #tpu.memory_space<vmem>>, vector<1x1x32x128xf32>
    %349 = vector.shape_cast %348 : vector<1x1x32x128xf32> to vector<32x128xf32>
    %350 = arith.mulf %349, %302 : vector<32x128xf32>
    %351 = arith.index_cast %1 : i32 to index
    %c6_199 = arith.constant 6 : index
    %c0_200 = arith.constant 0 : index
    %c0_201 = arith.constant 0 : index
    %352 = vector.load %arg1[%351, %c6_199, %c0_200, %c0_201] : memref<1x8x32x128xf32, #tpu.memory_space<vmem>>, vector<1x1x32x128xf32>
    %353 = vector.shape_cast %352 : vector<1x1x32x128xf32> to vector<32x128xf32>
    %354 = arith.mulf %353, %299 : vector<32x128xf32>
    %355 = arith.addf %350, %354 : vector<32x128xf32>
    %cst_202 = arith.constant dense<0.000000e+00> : vector<128xf32>
    %356 = vector.multi_reduction <add>, %355, %cst_202 [0] : vector<32x128xf32> to vector<128xf32>
    %357 = vector.shape_cast %356 : vector<128xf32> to vector<1x128xf32>
    %cst_203 = arith.constant 5.000000e-02 : f32
    %358 = vector.broadcast %cst_203 : f32 to vector<1x128xf32>
    %359 = arith.mulf %358, %357 : vector<1x128xf32>
    %360 = arith.index_cast %1 : i32 to index
    %c7_204 = arith.constant 7 : index
    %c0_205 = arith.constant 0 : index
    %c0_206 = arith.constant 0 : index
    %361 = vector.load %arg2[%360, %c7_204, %c0_205, %c0_206] : memref<1x8x32x128xf32, #tpu.memory_space<vmem>>, vector<1x1x32x128xf32>
    %362 = vector.shape_cast %361 : vector<1x1x32x128xf32> to vector<32x128xf32>
    %363 = arith.mulf %362, %302 : vector<32x128xf32>
    %364 = arith.index_cast %1 : i32 to index
    %c7_207 = arith.constant 7 : index
    %c0_208 = arith.constant 0 : index
    %c0_209 = arith.constant 0 : index
    %365 = vector.load %arg1[%364, %c7_207, %c0_208, %c0_209] : memref<1x8x32x128xf32, #tpu.memory_space<vmem>>, vector<1x1x32x128xf32>
    %366 = vector.shape_cast %365 : vector<1x1x32x128xf32> to vector<32x128xf32>
    %367 = arith.mulf %366, %299 : vector<32x128xf32>
    %368 = arith.addf %363, %367 : vector<32x128xf32>
    %cst_210 = arith.constant dense<0.000000e+00> : vector<128xf32>
    %369 = vector.multi_reduction <add>, %368, %cst_210 [0] : vector<32x128xf32> to vector<128xf32>
    %370 = vector.shape_cast %369 : vector<128xf32> to vector<1x128xf32>
    %cst_211 = arith.constant 5.000000e-02 : f32
    %371 = vector.broadcast %cst_211 : f32 to vector<1x128xf32>
    %372 = arith.mulf %371, %370 : vector<1x128xf32>
    %cst_212 = arith.constant -1.000000e-01 : f32
    %373 = vector.broadcast %cst_212 : f32 to vector<32x128xf32>
    %374 = arith.mulf %373, %302 : vector<32x128xf32>
    %375 = arith.index_cast %1 : i32 to index
    %c0_213 = arith.constant 0 : index
    %c0_214 = arith.constant 0 : index
    %c0_215 = arith.constant 0 : index
    %376 = vector.load %arg2[%375, %c0_213, %c0_214, %c0_215] : memref<1x8x32x128xf32, #tpu.memory_space<vmem>>, vector<1x1x32x128xf32>
    %377 = vector.shape_cast %376 : vector<1x1x32x128xf32> to vector<32x128xf32>
    %378 = vector.broadcast %38 : vector<1x128xf32> to vector<32x128xf32>
    %379 = arith.mulf %377, %378 : vector<32x128xf32>
    %380 = arith.addf %374, %379 : vector<32x128xf32>
    %381 = arith.index_cast %1 : i32 to index
    %c1_216 = arith.constant 1 : index
    %c0_217 = arith.constant 0 : index
    %c0_218 = arith.constant 0 : index
    %382 = vector.load %arg2[%381, %c1_216, %c0_217, %c0_218] : memref<1x8x32x128xf32, #tpu.memory_space<vmem>>, vector<1x1x32x128xf32>
    %383 = vector.shape_cast %382 : vector<1x1x32x128xf32> to vector<32x128xf32>
    %384 = vector.broadcast %179 : vector<1x128xf32> to vector<32x128xf32>
    %385 = arith.mulf %383, %384 : vector<32x128xf32>
    %386 = arith.addf %380, %385 : vector<32x128xf32>
    %cst_219 = arith.constant 1.000000e+00 : f32
    %387 = vector.broadcast %cst_219 : f32 to vector<1x128xf32>
    %388 = arith.addf %387, %307 : vector<1x128xf32>
    %389 = vector.broadcast %388 : vector<1x128xf32> to vector<32x128xf32>
    %390 = arith.mulf %299, %389 : vector<32x128xf32>
    %391 = arith.addf %386, %390 : vector<32x128xf32>
    %392 = arith.index_cast %1 : i32 to index
    %c3_220 = arith.constant 3 : index
    %c0_221 = arith.constant 0 : index
    %c0_222 = arith.constant 0 : index
    %393 = vector.load %arg2[%392, %c3_220, %c0_221, %c0_222] : memref<1x8x32x128xf32, #tpu.memory_space<vmem>>, vector<1x1x32x128xf32>
    %394 = vector.shape_cast %393 : vector<1x1x32x128xf32> to vector<32x128xf32>
    %395 = vector.broadcast %320 : vector<1x128xf32> to vector<32x128xf32>
    %396 = arith.mulf %394, %395 : vector<32x128xf32>
    %397 = arith.addf %391, %396 : vector<32x128xf32>
    %398 = arith.index_cast %1 : i32 to index
    %c4_223 = arith.constant 4 : index
    %c0_224 = arith.constant 0 : index
    %c0_225 = arith.constant 0 : index
    %399 = vector.load %arg2[%398, %c4_223, %c0_224, %c0_225] : memref<1x8x32x128xf32, #tpu.memory_space<vmem>>, vector<1x1x32x128xf32>
    %400 = vector.shape_cast %399 : vector<1x1x32x128xf32> to vector<32x128xf32>
    %401 = vector.broadcast %333 : vector<1x128xf32> to vector<32x128xf32>
    %402 = arith.mulf %400, %401 : vector<32x128xf32>
    %403 = arith.addf %397, %402 : vector<32x128xf32>
    %404 = arith.index_cast %1 : i32 to index
    %c5_226 = arith.constant 5 : index
    %c0_227 = arith.constant 0 : index
    %c0_228 = arith.constant 0 : index
    %405 = vector.load %arg2[%404, %c5_226, %c0_227, %c0_228] : memref<1x8x32x128xf32, #tpu.memory_space<vmem>>, vector<1x1x32x128xf32>
    %406 = vector.shape_cast %405 : vector<1x1x32x128xf32> to vector<32x128xf32>
    %407 = vector.broadcast %346 : vector<1x128xf32> to vector<32x128xf32>
    %408 = arith.mulf %406, %407 : vector<32x128xf32>
    %409 = arith.addf %403, %408 : vector<32x128xf32>
    %410 = arith.index_cast %1 : i32 to index
    %c6_229 = arith.constant 6 : index
    %c0_230 = arith.constant 0 : index
    %c0_231 = arith.constant 0 : index
    %411 = vector.load %arg2[%410, %c6_229, %c0_230, %c0_231] : memref<1x8x32x128xf32, #tpu.memory_space<vmem>>, vector<1x1x32x128xf32>
    %412 = vector.shape_cast %411 : vector<1x1x32x128xf32> to vector<32x128xf32>
    %413 = vector.broadcast %359 : vector<1x128xf32> to vector<32x128xf32>
    %414 = arith.mulf %412, %413 : vector<32x128xf32>
    %415 = arith.addf %409, %414 : vector<32x128xf32>
    %416 = arith.index_cast %1 : i32 to index
    %c7_232 = arith.constant 7 : index
    %c0_233 = arith.constant 0 : index
    %c0_234 = arith.constant 0 : index
    %417 = vector.load %arg2[%416, %c7_232, %c0_233, %c0_234] : memref<1x8x32x128xf32, #tpu.memory_space<vmem>>, vector<1x1x32x128xf32>
    %418 = vector.shape_cast %417 : vector<1x1x32x128xf32> to vector<32x128xf32>
    %419 = vector.broadcast %372 : vector<1x128xf32> to vector<32x128xf32>
    %420 = arith.mulf %418, %419 : vector<32x128xf32>
    %421 = arith.addf %415, %420 : vector<32x128xf32>
    %c2_235 = arith.constant 2 : index
    %c0_236 = arith.constant 0 : index
    %c0_237 = arith.constant 0 : index
    %422 = vector.load %arg4[%c2_235, %c0_236, %c0_237] : memref<8x32x128xf32, #tpu.memory_space<vmem>>, vector<1x32x128xf32>
    %423 = vector.shape_cast %422 : vector<1x32x128xf32> to vector<32x128xf32>
    %424 = vector.shape_cast %421 : vector<32x128xf32> to vector<1x32x128xf32>
    tpu.vector_store %arg4[%c2_235, %c0_236, %c0_237], %424 {strides = array<i32>} : memref<8x32x128xf32, #tpu.memory_space<vmem>>, vector<1x32x128xf32>,
    %425 = arith.index_cast %1 : i32 to index
    %c3_238 = arith.constant 3 : index
    %c0_239 = arith.constant 0 : index
    %c0_240 = arith.constant 0 : index
    %426 = vector.load %arg2[%425, %c3_238, %c0_239, %c0_240] : memref<1x8x32x128xf32, #tpu.memory_space<vmem>>, vector<1x1x32x128xf32>
    %427 = vector.shape_cast %426 : vector<1x1x32x128xf32> to vector<32x128xf32>
    %428 = arith.index_cast %1 : i32 to index
    %c3_241 = arith.constant 3 : index
    %c0_242 = arith.constant 0 : index
    %c0_243 = arith.constant 0 : index
    %429 = vector.load %arg1[%428, %c3_241, %c0_242, %c0_243] : memref<1x8x32x128xf32, #tpu.memory_space<vmem>>, vector<1x1x32x128xf32>
    %430 = vector.shape_cast %429 : vector<1x1x32x128xf32> to vector<32x128xf32>
    %431 = arith.mulf %427, %430 : vector<32x128xf32>
    %cst_244 = arith.constant dense<0.000000e+00> : vector<128xf32>
    %432 = vector.multi_reduction <add>, %431, %cst_244 [0] : vector<32x128xf32> to vector<128xf32>
    %433 = vector.shape_cast %432 : vector<128xf32> to vector<1x128xf32>
    %cst_245 = arith.constant 1.000000e-01 : f32
    %434 = vector.broadcast %cst_245 : f32 to vector<1x128xf32>
    %435 = arith.mulf %434, %433 : vector<1x128xf32>
    %436 = arith.index_cast %1 : i32 to index
    %c4_246 = arith.constant 4 : index
    %c0_247 = arith.constant 0 : index
    %c0_248 = arith.constant 0 : index
    %437 = vector.load %arg2[%436, %c4_246, %c0_247, %c0_248] : memref<1x8x32x128xf32, #tpu.memory_space<vmem>>, vector<1x1x32x128xf32>
    %438 = vector.shape_cast %437 : vector<1x1x32x128xf32> to vector<32x128xf32>
    %439 = arith.mulf %438, %430 : vector<32x128xf32>
    %440 = arith.index_cast %1 : i32 to index
    %c4_249 = arith.constant 4 : index
    %c0_250 = arith.constant 0 : index
    %c0_251 = arith.constant 0 : index
    %441 = vector.load %arg1[%440, %c4_249, %c0_250, %c0_251] : memref<1x8x32x128xf32, #tpu.memory_space<vmem>>, vector<1x1x32x128xf32>
    %442 = vector.shape_cast %441 : vector<1x1x32x128xf32> to vector<32x128xf32>
    %443 = arith.mulf %442, %427 : vector<32x128xf32>
    %444 = arith.addf %439, %443 : vector<32x128xf32>
    %cst_252 = arith.constant dense<0.000000e+00> : vector<128xf32>
    %445 = vector.multi_reduction <add>, %444, %cst_252 [0] : vector<32x128xf32> to vector<128xf32>
    %446 = vector.shape_cast %445 : vector<128xf32> to vector<1x128xf32>
    %cst_253 = arith.constant 5.000000e-02 : f32
    %447 = vector.broadcast %cst_253 : f32 to vector<1x128xf32>
    %448 = arith.mulf %447, %446 : vector<1x128xf32>
    %449 = arith.index_cast %1 : i32 to index
    %c5_254 = arith.constant 5 : index
    %c0_255 = arith.constant 0 : index
    %c0_256 = arith.constant 0 : index
    %450 = vector.load %arg2[%449, %c5_254, %c0_255, %c0_256] : memref<1x8x32x128xf32, #tpu.memory_space<vmem>>, vector<1x1x32x128xf32>
    %451 = vector.shape_cast %450 : vector<1x1x32x128xf32> to vector<32x128xf32>
    %452 = arith.mulf %451, %430 : vector<32x128xf32>
    %453 = arith.index_cast %1 : i32 to index
    %c5_257 = arith.constant 5 : index
    %c0_258 = arith.constant 0 : index
    %c0_259 = arith.constant 0 : index
    %454 = vector.load %arg1[%453, %c5_257, %c0_258, %c0_259] : memref<1x8x32x128xf32, #tpu.memory_space<vmem>>, vector<1x1x32x128xf32>
    %455 = vector.shape_cast %454 : vector<1x1x32x128xf32> to vector<32x128xf32>
    %456 = arith.mulf %455, %427 : vector<32x128xf32>
    %457 = arith.addf %452, %456 : vector<32x128xf32>
    %cst_260 = arith.constant dense<0.000000e+00> : vector<128xf32>
    %458 = vector.multi_reduction <add>, %457, %cst_260 [0] : vector<32x128xf32> to vector<128xf32>
    %459 = vector.shape_cast %458 : vector<128xf32> to vector<1x128xf32>
    %cst_261 = arith.constant 5.000000e-02 : f32
    %460 = vector.broadcast %cst_261 : f32 to vector<1x128xf32>
    %461 = arith.mulf %460, %459 : vector<1x128xf32>
    %462 = arith.index_cast %1 : i32 to index
    %c6_262 = arith.constant 6 : index
    %c0_263 = arith.constant 0 : index
    %c0_264 = arith.constant 0 : index
    %463 = vector.load %arg2[%462, %c6_262, %c0_263, %c0_264] : memref<1x8x32x128xf32, #tpu.memory_space<vmem>>, vector<1x1x32x128xf32>
    %464 = vector.shape_cast %463 : vector<1x1x32x128xf32> to vector<32x128xf32>
    %465 = arith.mulf %464, %430 : vector<32x128xf32>
    %466 = arith.index_cast %1 : i32 to index
    %c6_265 = arith.constant 6 : index
    %c0_266 = arith.constant 0 : index
    %c0_267 = arith.constant 0 : index
    %467 = vector.load %arg1[%466, %c6_265, %c0_266, %c0_267] : memref<1x8x32x128xf32, #tpu.memory_space<vmem>>, vector<1x1x32x128xf32>
    %468 = vector.shape_cast %467 : vector<1x1x32x128xf32> to vector<32x128xf32>
    %469 = arith.mulf %468, %427 : vector<32x128xf32>
    %470 = arith.addf %465, %469 : vector<32x128xf32>
    %cst_268 = arith.constant dense<0.000000e+00> : vector<128xf32>
    %471 = vector.multi_reduction <add>, %470, %cst_268 [0] : vector<32x128xf32> to vector<128xf32>
    %472 = vector.shape_cast %471 : vector<128xf32> to vector<1x128xf32>
    %cst_269 = arith.constant 5.000000e-02 : f32
    %473 = vector.broadcast %cst_269 : f32 to vector<1x128xf32>
    %474 = arith.mulf %473, %472 : vector<1x128xf32>
    %475 = arith.index_cast %1 : i32 to index
    %c7_270 = arith.constant 7 : index
    %c0_271 = arith.constant 0 : index
    %c0_272 = arith.constant 0 : index
    %476 = vector.load %arg2[%475, %c7_270, %c0_271, %c0_272] : memref<1x8x32x128xf32, #tpu.memory_space<vmem>>, vector<1x1x32x128xf32>
    %477 = vector.shape_cast %476 : vector<1x1x32x128xf32> to vector<32x128xf32>
    %478 = arith.mulf %477, %430 : vector<32x128xf32>
    %479 = arith.index_cast %1 : i32 to index
    %c7_273 = arith.constant 7 : index
    %c0_274 = arith.constant 0 : index
    %c0_275 = arith.constant 0 : index
    %480 = vector.load %arg1[%479, %c7_273, %c0_274, %c0_275] : memref<1x8x32x128xf32, #tpu.memory_space<vmem>>, vector<1x1x32x128xf32>
    %481 = vector.shape_cast %480 : vector<1x1x32x128xf32> to vector<32x128xf32>
    %482 = arith.mulf %481, %427 : vector<32x128xf32>
    %483 = arith.addf %478, %482 : vector<32x128xf32>
    %cst_276 = arith.constant dense<0.000000e+00> : vector<128xf32>
    %484 = vector.multi_reduction <add>, %483, %cst_276 [0] : vector<32x128xf32> to vector<128xf32>
    %485 = vector.shape_cast %484 : vector<128xf32> to vector<1x128xf32>
    %cst_277 = arith.constant 5.000000e-02 : f32
    %486 = vector.broadcast %cst_277 : f32 to vector<1x128xf32>
    %487 = arith.mulf %486, %485 : vector<1x128xf32>
    %cst_278 = arith.constant -1.000000e-01 : f32
    %488 = vector.broadcast %cst_278 : f32 to vector<32x128xf32>
    %489 = arith.mulf %488, %430 : vector<32x128xf32>
    %490 = arith.index_cast %1 : i32 to index
    %c0_279 = arith.constant 0 : index
    %c0_280 = arith.constant 0 : index
    %c0_281 = arith.constant 0 : index
    %491 = vector.load %arg2[%490, %c0_279, %c0_280, %c0_281] : memref<1x8x32x128xf32, #tpu.memory_space<vmem>>, vector<1x1x32x128xf32>
    %492 = vector.shape_cast %491 : vector<1x1x32x128xf32> to vector<32x128xf32>
    %493 = vector.broadcast %51 : vector<1x128xf32> to vector<32x128xf32>
    %494 = arith.mulf %492, %493 : vector<32x128xf32>
    %495 = arith.addf %489, %494 : vector<32x128xf32>
    %496 = arith.index_cast %1 : i32 to index
    %c1_282 = arith.constant 1 : index
    %c0_283 = arith.constant 0 : index
    %c0_284 = arith.constant 0 : index
    %497 = vector.load %arg2[%496, %c1_282, %c0_283, %c0_284] : memref<1x8x32x128xf32, #tpu.memory_space<vmem>>, vector<1x1x32x128xf32>
    %498 = vector.shape_cast %497 : vector<1x1x32x128xf32> to vector<32x128xf32>
    %499 = vector.broadcast %192 : vector<1x128xf32> to vector<32x128xf32>
    %500 = arith.mulf %498, %499 : vector<32x128xf32>
    %501 = arith.addf %495, %500 : vector<32x128xf32>
    %502 = arith.index_cast %1 : i32 to index
    %c2_285 = arith.constant 2 : index
    %c0_286 = arith.constant 0 : index
    %c0_287 = arith.constant 0 : index
    %503 = vector.load %arg2[%502, %c2_285, %c0_286, %c0_287] : memref<1x8x32x128xf32, #tpu.memory_space<vmem>>, vector<1x1x32x128xf32>
    %504 = vector.shape_cast %503 : vector<1x1x32x128xf32> to vector<32x128xf32>
    %505 = vector.broadcast %320 : vector<1x128xf32> to vector<32x128xf32>
    %506 = arith.mulf %504, %505 : vector<32x128xf32>
    %507 = arith.addf %501, %506 : vector<32x128xf32>
    %cst_288 = arith.constant 1.000000e+00 : f32
    %508 = vector.broadcast %cst_288 : f32 to vector<1x128xf32>
    %509 = arith.addf %508, %435 : vector<1x128xf32>
    %510 = vector.broadcast %509 : vector<1x128xf32> to vector<32x128xf32>
    %511 = arith.mulf %427, %510 : vector<32x128xf32>
    %512 = arith.addf %507, %511 : vector<32x128xf32>
    %513 = arith.index_cast %1 : i32 to index
    %c4_289 = arith.constant 4 : index
    %c0_290 = arith.constant 0 : index
    %c0_291 = arith.constant 0 : index
    %514 = vector.load %arg2[%513, %c4_289, %c0_290, %c0_291] : memref<1x8x32x128xf32, #tpu.memory_space<vmem>>, vector<1x1x32x128xf32>
    %515 = vector.shape_cast %514 : vector<1x1x32x128xf32> to vector<32x128xf32>
    %516 = vector.broadcast %448 : vector<1x128xf32> to vector<32x128xf32>
    %517 = arith.mulf %515, %516 : vector<32x128xf32>
    %518 = arith.addf %512, %517 : vector<32x128xf32>
    %519 = arith.index_cast %1 : i32 to index
    %c5_292 = arith.constant 5 : index
    %c0_293 = arith.constant 0 : index
    %c0_294 = arith.constant 0 : index
    %520 = vector.load %arg2[%519, %c5_292, %c0_293, %c0_294] : memref<1x8x32x128xf32, #tpu.memory_space<vmem>>, vector<1x1x32x128xf32>
    %521 = vector.shape_cast %520 : vector<1x1x32x128xf32> to vector<32x128xf32>
    %522 = vector.broadcast %461 : vector<1x128xf32> to vector<32x128xf32>
    %523 = arith.mulf %521, %522 : vector<32x128xf32>
    %524 = arith.addf %518, %523 : vector<32x128xf32>
    %525 = arith.index_cast %1 : i32 to index
    %c6_295 = arith.constant 6 : index
    %c0_296 = arith.constant 0 : index
    %c0_297 = arith.constant 0 : index
    %526 = vector.load %arg2[%525, %c6_295, %c0_296, %c0_297] : memref<1x8x32x128xf32, #tpu.memory_space<vmem>>, vector<1x1x32x128xf32>
    %527 = vector.shape_cast %526 : vector<1x1x32x128xf32> to vector<32x128xf32>
    %528 = vector.broadcast %474 : vector<1x128xf32> to vector<32x128xf32>
    %529 = arith.mulf %527, %528 : vector<32x128xf32>
    %530 = arith.addf %524, %529 : vector<32x128xf32>
    %531 = arith.index_cast %1 : i32 to index
    %c7_298 = arith.constant 7 : index
    %c0_299 = arith.constant 0 : index
    %c0_300 = arith.constant 0 : index
    %532 = vector.load %arg2[%531, %c7_298, %c0_299, %c0_300] : memref<1x8x32x128xf32, #tpu.memory_space<vmem>>, vector<1x1x32x128xf32>
    %533 = vector.shape_cast %532 : vector<1x1x32x128xf32> to vector<32x128xf32>
    %534 = vector.broadcast %487 : vector<1x128xf32> to vector<32x128xf32>
    %535 = arith.mulf %533, %534 : vector<32x128xf32>
    %536 = arith.addf %530, %535 : vector<32x128xf32>
    %c3_301 = arith.constant 3 : index
    %c0_302 = arith.constant 0 : index
    %c0_303 = arith.constant 0 : index
    %537 = vector.load %arg4[%c3_301, %c0_302, %c0_303] : memref<8x32x128xf32, #tpu.memory_space<vmem>>, vector<1x32x128xf32>
    %538 = vector.shape_cast %537 : vector<1x32x128xf32> to vector<32x128xf32>
    %539 = vector.shape_cast %536 : vector<32x128xf32> to vector<1x32x128xf32>
    tpu.vector_store %arg4[%c3_301, %c0_302, %c0_303], %539 {strides = array<i32>} : memref<8x32x128xf32, #tpu.memory_space<vmem>>, vector<1x32x128xf32>,
    %540 = arith.index_cast %1 : i32 to index
    %c4_304 = arith.constant 4 : index
    %c0_305 = arith.constant 0 : index
    %c0_306 = arith.constant 0 : index
    %541 = vector.load %arg2[%540, %c4_304, %c0_305, %c0_306] : memref<1x8x32x128xf32, #tpu.memory_space<vmem>>, vector<1x1x32x128xf32>
    %542 = vector.shape_cast %541 : vector<1x1x32x128xf32> to vector<32x128xf32>
    %543 = arith.index_cast %1 : i32 to index
    %c4_307 = arith.constant 4 : index
    %c0_308 = arith.constant 0 : index
    %c0_309 = arith.constant 0 : index
    %544 = vector.load %arg1[%543, %c4_307, %c0_308, %c0_309] : memref<1x8x32x128xf32, #tpu.memory_space<vmem>>, vector<1x1x32x128xf32>
    %545 = vector.shape_cast %544 : vector<1x1x32x128xf32> to vector<32x128xf32>
    %546 = arith.mulf %542, %545 : vector<32x128xf32>
    %cst_310 = arith.constant dense<0.000000e+00> : vector<128xf32>
    %547 = vector.multi_reduction <add>, %546, %cst_310 [0] : vector<32x128xf32> to vector<128xf32>
    %548 = vector.shape_cast %547 : vector<128xf32> to vector<1x128xf32>
    %cst_311 = arith.constant 1.000000e-01 : f32
    %549 = vector.broadcast %cst_311 : f32 to vector<1x128xf32>
    %550 = arith.mulf %549, %548 : vector<1x128xf32>
    %551 = arith.index_cast %1 : i32 to index
    %c5_312 = arith.constant 5 : index
    %c0_313 = arith.constant 0 : index
    %c0_314 = arith.constant 0 : index
    %552 = vector.load %arg2[%551, %c5_312, %c0_313, %c0_314] : memref<1x8x32x128xf32, #tpu.memory_space<vmem>>, vector<1x1x32x128xf32>
    %553 = vector.shape_cast %552 : vector<1x1x32x128xf32> to vector<32x128xf32>
    %554 = arith.mulf %553, %545 : vector<32x128xf32>
    %555 = arith.index_cast %1 : i32 to index
    %c5_315 = arith.constant 5 : index
    %c0_316 = arith.constant 0 : index
    %c0_317 = arith.constant 0 : index
    %556 = vector.load %arg1[%555, %c5_315, %c0_316, %c0_317] : memref<1x8x32x128xf32, #tpu.memory_space<vmem>>, vector<1x1x32x128xf32>
    %557 = vector.shape_cast %556 : vector<1x1x32x128xf32> to vector<32x128xf32>
    %558 = arith.mulf %557, %542 : vector<32x128xf32>
    %559 = arith.addf %554, %558 : vector<32x128xf32>
    %cst_318 = arith.constant dense<0.000000e+00> : vector<128xf32>
    %560 = vector.multi_reduction <add>, %559, %cst_318 [0] : vector<32x128xf32> to vector<128xf32>
    %561 = vector.shape_cast %560 : vector<128xf32> to vector<1x128xf32>
    %cst_319 = arith.constant 5.000000e-02 : f32
    %562 = vector.broadcast %cst_319 : f32 to vector<1x128xf32>
    %563 = arith.mulf %562, %561 : vector<1x128xf32>
    %564 = arith.index_cast %1 : i32 to index
    %c6_320 = arith.constant 6 : index
    %c0_321 = arith.constant 0 : index
    %c0_322 = arith.constant 0 : index
    %565 = vector.load %arg2[%564, %c6_320, %c0_321, %c0_322] : memref<1x8x32x128xf32, #tpu.memory_space<vmem>>, vector<1x1x32x128xf32>
    %566 = vector.shape_cast %565 : vector<1x1x32x128xf32> to vector<32x128xf32>
    %567 = arith.mulf %566, %545 : vector<32x128xf32>
    %568 = arith.index_cast %1 : i32 to index
    %c6_323 = arith.constant 6 : index
    %c0_324 = arith.constant 0 : index
    %c0_325 = arith.constant 0 : index
    %569 = vector.load %arg1[%568, %c6_323, %c0_324, %c0_325] : memref<1x8x32x128xf32, #tpu.memory_space<vmem>>, vector<1x1x32x128xf32>
    %570 = vector.shape_cast %569 : vector<1x1x32x128xf32> to vector<32x128xf32>
    %571 = arith.mulf %570, %542 : vector<32x128xf32>
    %572 = arith.addf %567, %571 : vector<32x128xf32>
    %cst_326 = arith.constant dense<0.000000e+00> : vector<128xf32>
    %573 = vector.multi_reduction <add>, %572, %cst_326 [0] : vector<32x128xf32> to vector<128xf32>
    %574 = vector.shape_cast %573 : vector<128xf32> to vector<1x128xf32>
    %cst_327 = arith.constant 5.000000e-02 : f32
    %575 = vector.broadcast %cst_327 : f32 to vector<1x128xf32>
    %576 = arith.mulf %575, %574 : vector<1x128xf32>
    %577 = arith.index_cast %1 : i32 to index
    %c7_328 = arith.constant 7 : index
    %c0_329 = arith.constant 0 : index
    %c0_330 = arith.constant 0 : index
    %578 = vector.load %arg2[%577, %c7_328, %c0_329, %c0_330] : memref<1x8x32x128xf32, #tpu.memory_space<vmem>>, vector<1x1x32x128xf32>
    %579 = vector.shape_cast %578 : vector<1x1x32x128xf32> to vector<32x128xf32>
    %580 = arith.mulf %579, %545 : vector<32x128xf32>
    %581 = arith.index_cast %1 : i32 to index
    %c7_331 = arith.constant 7 : index
    %c0_332 = arith.constant 0 : index
    %c0_333 = arith.constant 0 : index
    %582 = vector.load %arg1[%581, %c7_331, %c0_332, %c0_333] : memref<1x8x32x128xf32, #tpu.memory_space<vmem>>, vector<1x1x32x128xf32>
    %583 = vector.shape_cast %582 : vector<1x1x32x128xf32> to vector<32x128xf32>
    %584 = arith.mulf %583, %542 : vector<32x128xf32>
    %585 = arith.addf %580, %584 : vector<32x128xf32>
    %cst_334 = arith.constant dense<0.000000e+00> : vector<128xf32>
    %586 = vector.multi_reduction <add>, %585, %cst_334 [0] : vector<32x128xf32> to vector<128xf32>
    %587 = vector.shape_cast %586 : vector<128xf32> to vector<1x128xf32>
    %cst_335 = arith.constant 5.000000e-02 : f32
    %588 = vector.broadcast %cst_335 : f32 to vector<1x128xf32>
    %589 = arith.mulf %588, %587 : vector<1x128xf32>
    %cst_336 = arith.constant -1.000000e-01 : f32
    %590 = vector.broadcast %cst_336 : f32 to vector<32x128xf32>
    %591 = arith.mulf %590, %545 : vector<32x128xf32>
    %592 = arith.index_cast %1 : i32 to index
    %c0_337 = arith.constant 0 : index
    %c0_338 = arith.constant 0 : index
    %c0_339 = arith.constant 0 : index
    %593 = vector.load %arg2[%592, %c0_337, %c0_338, %c0_339] : memref<1x8x32x128xf32, #tpu.memory_space<vmem>>, vector<1x1x32x128xf32>
    %594 = vector.shape_cast %593 : vector<1x1x32x128xf32> to vector<32x128xf32>
    %595 = vector.broadcast %64 : vector<1x128xf32> to vector<32x128xf32>
    %596 = arith.mulf %594, %595 : vector<32x128xf32>
    %597 = arith.addf %591, %596 : vector<32x128xf32>
    %598 = arith.index_cast %1 : i32 to index
    %c1_340 = arith.constant 1 : index
    %c0_341 = arith.constant 0 : index
    %c0_342 = arith.constant 0 : index
    %599 = vector.load %arg2[%598, %c1_340, %c0_341, %c0_342] : memref<1x8x32x128xf32, #tpu.memory_space<vmem>>, vector<1x1x32x128xf32>
    %600 = vector.shape_cast %599 : vector<1x1x32x128xf32> to vector<32x128xf32>
    %601 = vector.broadcast %205 : vector<1x128xf32> to vector<32x128xf32>
    %602 = arith.mulf %600, %601 : vector<32x128xf32>
    %603 = arith.addf %597, %602 : vector<32x128xf32>
    %604 = arith.index_cast %1 : i32 to index
    %c2_343 = arith.constant 2 : index
    %c0_344 = arith.constant 0 : index
    %c0_345 = arith.constant 0 : index
    %605 = vector.load %arg2[%604, %c2_343, %c0_344, %c0_345] : memref<1x8x32x128xf32, #tpu.memory_space<vmem>>, vector<1x1x32x128xf32>
    %606 = vector.shape_cast %605 : vector<1x1x32x128xf32> to vector<32x128xf32>
    %607 = vector.broadcast %333 : vector<1x128xf32> to vector<32x128xf32>
    %608 = arith.mulf %606, %607 : vector<32x128xf32>
    %609 = arith.addf %603, %608 : vector<32x128xf32>
    %610 = arith.index_cast %1 : i32 to index
    %c3_346 = arith.constant 3 : index
    %c0_347 = arith.constant 0 : index
    %c0_348 = arith.constant 0 : index
    %611 = vector.load %arg2[%610, %c3_346, %c0_347, %c0_348] : memref<1x8x32x128xf32, #tpu.memory_space<vmem>>, vector<1x1x32x128xf32>
    %612 = vector.shape_cast %611 : vector<1x1x32x128xf32> to vector<32x128xf32>
    %613 = vector.broadcast %448 : vector<1x128xf32> to vector<32x128xf32>
    %614 = arith.mulf %612, %613 : vector<32x128xf32>
    %615 = arith.addf %609, %614 : vector<32x128xf32>
    %cst_349 = arith.constant 1.000000e+00 : f32
    %616 = vector.broadcast %cst_349 : f32 to vector<1x128xf32>
    %617 = arith.addf %616, %550 : vector<1x128xf32>
    %618 = vector.broadcast %617 : vector<1x128xf32> to vector<32x128xf32>
    %619 = arith.mulf %542, %618 : vector<32x128xf32>
    %620 = arith.addf %615, %619 : vector<32x128xf32>
    %621 = arith.index_cast %1 : i32 to index
    %c5_350 = arith.constant 5 : index
    %c0_351 = arith.constant 0 : index
    %c0_352 = arith.constant 0 : index
    %622 = vector.load %arg2[%621, %c5_350, %c0_351, %c0_352] : memref<1x8x32x128xf32, #tpu.memory_space<vmem>>, vector<1x1x32x128xf32>
    %623 = vector.shape_cast %622 : vector<1x1x32x128xf32> to vector<32x128xf32>
    %624 = vector.broadcast %563 : vector<1x128xf32> to vector<32x128xf32>
    %625 = arith.mulf %623, %624 : vector<32x128xf32>
    %626 = arith.addf %620, %625 : vector<32x128xf32>
    %627 = arith.index_cast %1 : i32 to index
    %c6_353 = arith.constant 6 : index
    %c0_354 = arith.constant 0 : index
    %c0_355 = arith.constant 0 : index
    %628 = vector.load %arg2[%627, %c6_353, %c0_354, %c0_355] : memref<1x8x32x128xf32, #tpu.memory_space<vmem>>, vector<1x1x32x128xf32>
    %629 = vector.shape_cast %628 : vector<1x1x32x128xf32> to vector<32x128xf32>
    %630 = vector.broadcast %576 : vector<1x128xf32> to vector<32x128xf32>
    %631 = arith.mulf %629, %630 : vector<32x128xf32>
    %632 = arith.addf %626, %631 : vector<32x128xf32>
    %633 = arith.index_cast %1 : i32 to index
    %c7_356 = arith.constant 7 : index
    %c0_357 = arith.constant 0 : index
    %c0_358 = arith.constant 0 : index
    %634 = vector.load %arg2[%633, %c7_356, %c0_357, %c0_358] : memref<1x8x32x128xf32, #tpu.memory_space<vmem>>, vector<1x1x32x128xf32>
    %635 = vector.shape_cast %634 : vector<1x1x32x128xf32> to vector<32x128xf32>
    %636 = vector.broadcast %589 : vector<1x128xf32> to vector<32x128xf32>
    %637 = arith.mulf %635, %636 : vector<32x128xf32>
    %638 = arith.addf %632, %637 : vector<32x128xf32>
    %c4_359 = arith.constant 4 : index
    %c0_360 = arith.constant 0 : index
    %c0_361 = arith.constant 0 : index
    %639 = vector.load %arg4[%c4_359, %c0_360, %c0_361] : memref<8x32x128xf32, #tpu.memory_space<vmem>>, vector<1x32x128xf32>
    %640 = vector.shape_cast %639 : vector<1x32x128xf32> to vector<32x128xf32>
    %641 = vector.shape_cast %638 : vector<32x128xf32> to vector<1x32x128xf32>
    tpu.vector_store %arg4[%c4_359, %c0_360, %c0_361], %641 {strides = array<i32>} : memref<8x32x128xf32, #tpu.memory_space<vmem>>, vector<1x32x128xf32>,
    %642 = arith.index_cast %1 : i32 to index
    %c5_362 = arith.constant 5 : index
    %c0_363 = arith.constant 0 : index
    %c0_364 = arith.constant 0 : index
    %643 = vector.load %arg2[%642, %c5_362, %c0_363, %c0_364] : memref<1x8x32x128xf32, #tpu.memory_space<vmem>>, vector<1x1x32x128xf32>
    %644 = vector.shape_cast %643 : vector<1x1x32x128xf32> to vector<32x128xf32>
    %645 = arith.index_cast %1 : i32 to index
    %c5_365 = arith.constant 5 : index
    %c0_366 = arith.constant 0 : index
    %c0_367 = arith.constant 0 : index
    %646 = vector.load %arg1[%645, %c5_365, %c0_366, %c0_367] : memref<1x8x32x128xf32, #tpu.memory_space<vmem>>, vector<1x1x32x128xf32>
    %647 = vector.shape_cast %646 : vector<1x1x32x128xf32> to vector<32x128xf32>
    %648 = arith.mulf %644, %647 : vector<32x128xf32>
    %cst_368 = arith.constant dense<0.000000e+00> : vector<128xf32>
    %649 = vector.multi_reduction <add>, %648, %cst_368 [0] : vector<32x128xf32> to vector<128xf32>
    %650 = vector.shape_cast %649 : vector<128xf32> to vector<1x128xf32>
    %cst_369 = arith.constant 1.000000e-01 : f32
    %651 = vector.broadcast %cst_369 : f32 to vector<1x128xf32>
    %652 = arith.mulf %651, %650 : vector<1x128xf32>
    %653 = arith.index_cast %1 : i32 to index
    %c6_370 = arith.constant 6 : index
    %c0_371 = arith.constant 0 : index
    %c0_372 = arith.constant 0 : index
    %654 = vector.load %arg2[%653, %c6_370, %c0_371, %c0_372] : memref<1x8x32x128xf32, #tpu.memory_space<vmem>>, vector<1x1x32x128xf32>
    %655 = vector.shape_cast %654 : vector<1x1x32x128xf32> to vector<32x128xf32>
    %656 = arith.mulf %655, %647 : vector<32x128xf32>
    %657 = arith.index_cast %1 : i32 to index
    %c6_373 = arith.constant 6 : index
    %c0_374 = arith.constant 0 : index
    %c0_375 = arith.constant 0 : index
    %658 = vector.load %arg1[%657, %c6_373, %c0_374, %c0_375] : memref<1x8x32x128xf32, #tpu.memory_space<vmem>>, vector<1x1x32x128xf32>
    %659 = vector.shape_cast %658 : vector<1x1x32x128xf32> to vector<32x128xf32>
    %660 = arith.mulf %659, %644 : vector<32x128xf32>
    %661 = arith.addf %656, %660 : vector<32x128xf32>
    %cst_376 = arith.constant dense<0.000000e+00> : vector<128xf32>
    %662 = vector.multi_reduction <add>, %661, %cst_376 [0] : vector<32x128xf32> to vector<128xf32>
    %663 = vector.shape_cast %662 : vector<128xf32> to vector<1x128xf32>
    %cst_377 = arith.constant 5.000000e-02 : f32
    %664 = vector.broadcast %cst_377 : f32 to vector<1x128xf32>
    %665 = arith.mulf %664, %663 : vector<1x128xf32>
    %666 = arith.index_cast %1 : i32 to index
    %c7_378 = arith.constant 7 : index
    %c0_379 = arith.constant 0 : index
    %c0_380 = arith.constant 0 : index
    %667 = vector.load %arg2[%666, %c7_378, %c0_379, %c0_380] : memref<1x8x32x128xf32, #tpu.memory_space<vmem>>, vector<1x1x32x128xf32>
    %668 = vector.shape_cast %667 : vector<1x1x32x128xf32> to vector<32x128xf32>
    %669 = arith.mulf %668, %647 : vector<32x128xf32>
    %670 = arith.index_cast %1 : i32 to index
    %c7_381 = arith.constant 7 : index
    %c0_382 = arith.constant 0 : index
    %c0_383 = arith.constant 0 : index
    %671 = vector.load %arg1[%670, %c7_381, %c0_382, %c0_383] : memref<1x8x32x128xf32, #tpu.memory_space<vmem>>, vector<1x1x32x128xf32>
    %672 = vector.shape_cast %671 : vector<1x1x32x128xf32> to vector<32x128xf32>
    %673 = arith.mulf %672, %644 : vector<32x128xf32>
    %674 = arith.addf %669, %673 : vector<32x128xf32>
    %cst_384 = arith.constant dense<0.000000e+00> : vector<128xf32>
    %675 = vector.multi_reduction <add>, %674, %cst_384 [0] : vector<32x128xf32> to vector<128xf32>
    %676 = vector.shape_cast %675 : vector<128xf32> to vector<1x128xf32>
    %cst_385 = arith.constant 5.000000e-02 : f32
    %677 = vector.broadcast %cst_385 : f32 to vector<1x128xf32>
    %678 = arith.mulf %677, %676 : vector<1x128xf32>
    %cst_386 = arith.constant -1.000000e-01 : f32
    %679 = vector.broadcast %cst_386 : f32 to vector<32x128xf32>
    %680 = arith.mulf %679, %647 : vector<32x128xf32>
    %681 = arith.index_cast %1 : i32 to index
    %c0_387 = arith.constant 0 : index
    %c0_388 = arith.constant 0 : index
    %c0_389 = arith.constant 0 : index
    %682 = vector.load %arg2[%681, %c0_387, %c0_388, %c0_389] : memref<1x8x32x128xf32, #tpu.memory_space<vmem>>, vector<1x1x32x128xf32>
    %683 = vector.shape_cast %682 : vector<1x1x32x128xf32> to vector<32x128xf32>
    %684 = vector.broadcast %77 : vector<1x128xf32> to vector<32x128xf32>
    %685 = arith.mulf %683, %684 : vector<32x128xf32>
    %686 = arith.addf %680, %685 : vector<32x128xf32>
    %687 = arith.index_cast %1 : i32 to index
    %c1_390 = arith.constant 1 : index
    %c0_391 = arith.constant 0 : index
    %c0_392 = arith.constant 0 : index
    %688 = vector.load %arg2[%687, %c1_390, %c0_391, %c0_392] : memref<1x8x32x128xf32, #tpu.memory_space<vmem>>, vector<1x1x32x128xf32>
    %689 = vector.shape_cast %688 : vector<1x1x32x128xf32> to vector<32x128xf32>
    %690 = vector.broadcast %218 : vector<1x128xf32> to vector<32x128xf32>
    %691 = arith.mulf %689, %690 : vector<32x128xf32>
    %692 = arith.addf %686, %691 : vector<32x128xf32>
    %693 = arith.index_cast %1 : i32 to index
    %c2_393 = arith.constant 2 : index
    %c0_394 = arith.constant 0 : index
    %c0_395 = arith.constant 0 : index
    %694 = vector.load %arg2[%693, %c2_393, %c0_394, %c0_395] : memref<1x8x32x128xf32, #tpu.memory_space<vmem>>, vector<1x1x32x128xf32>
    %695 = vector.shape_cast %694 : vector<1x1x32x128xf32> to vector<32x128xf32>
    %696 = vector.broadcast %346 : vector<1x128xf32> to vector<32x128xf32>
    %697 = arith.mulf %695, %696 : vector<32x128xf32>
    %698 = arith.addf %692, %697 : vector<32x128xf32>
    %699 = arith.index_cast %1 : i32 to index
    %c3_396 = arith.constant 3 : index
    %c0_397 = arith.constant 0 : index
    %c0_398 = arith.constant 0 : index
    %700 = vector.load %arg2[%699, %c3_396, %c0_397, %c0_398] : memref<1x8x32x128xf32, #tpu.memory_space<vmem>>, vector<1x1x32x128xf32>
    %701 = vector.shape_cast %700 : vector<1x1x32x128xf32> to vector<32x128xf32>
    %702 = vector.broadcast %461 : vector<1x128xf32> to vector<32x128xf32>
    %703 = arith.mulf %701, %702 : vector<32x128xf32>
    %704 = arith.addf %698, %703 : vector<32x128xf32>
    %705 = arith.index_cast %1 : i32 to index
    %c4_399 = arith.constant 4 : index
    %c0_400 = arith.constant 0 : index
    %c0_401 = arith.constant 0 : index
    %706 = vector.load %arg2[%705, %c4_399, %c0_400, %c0_401] : memref<1x8x32x128xf32, #tpu.memory_space<vmem>>, vector<1x1x32x128xf32>
    %707 = vector.shape_cast %706 : vector<1x1x32x128xf32> to vector<32x128xf32>
    %708 = vector.broadcast %563 : vector<1x128xf32> to vector<32x128xf32>
    %709 = arith.mulf %707, %708 : vector<32x128xf32>
    %710 = arith.addf %704, %709 : vector<32x128xf32>
    %cst_402 = arith.constant 1.000000e+00 : f32
    %711 = vector.broadcast %cst_402 : f32 to vector<1x128xf32>
    %712 = arith.addf %711, %652 : vector<1x128xf32>
    %713 = vector.broadcast %712 : vector<1x128xf32> to vector<32x128xf32>
    %714 = arith.mulf %644, %713 : vector<32x128xf32>
    %715 = arith.addf %710, %714 : vector<32x128xf32>
    %716 = arith.index_cast %1 : i32 to index
    %c6_403 = arith.constant 6 : index
    %c0_404 = arith.constant 0 : index
    %c0_405 = arith.constant 0 : index
    %717 = vector.load %arg2[%716, %c6_403, %c0_404, %c0_405] : memref<1x8x32x128xf32, #tpu.memory_space<vmem>>, vector<1x1x32x128xf32>
    %718 = vector.shape_cast %717 : vector<1x1x32x128xf32> to vector<32x128xf32>
    %719 = vector.broadcast %665 : vector<1x128xf32> to vector<32x128xf32>
    %720 = arith.mulf %718, %719 : vector<32x128xf32>
    %721 = arith.addf %715, %720 : vector<32x128xf32>
    %722 = arith.index_cast %1 : i32 to index
    %c7_406 = arith.constant 7 : index
    %c0_407 = arith.constant 0 : index
    %c0_408 = arith.constant 0 : index
    %723 = vector.load %arg2[%722, %c7_406, %c0_407, %c0_408] : memref<1x8x32x128xf32, #tpu.memory_space<vmem>>, vector<1x1x32x128xf32>
    %724 = vector.shape_cast %723 : vector<1x1x32x128xf32> to vector<32x128xf32>
    %725 = vector.broadcast %678 : vector<1x128xf32> to vector<32x128xf32>
    %726 = arith.mulf %724, %725 : vector<32x128xf32>
    %727 = arith.addf %721, %726 : vector<32x128xf32>
    %c5_409 = arith.constant 5 : index
    %c0_410 = arith.constant 0 : index
    %c0_411 = arith.constant 0 : index
    %728 = vector.load %arg4[%c5_409, %c0_410, %c0_411] : memref<8x32x128xf32, #tpu.memory_space<vmem>>, vector<1x32x128xf32>
    %729 = vector.shape_cast %728 : vector<1x32x128xf32> to vector<32x128xf32>
    %730 = vector.shape_cast %727 : vector<32x128xf32> to vector<1x32x128xf32>
    tpu.vector_store %arg4[%c5_409, %c0_410, %c0_411], %730 {strides = array<i32>} : memref<8x32x128xf32, #tpu.memory_space<vmem>>, vector<1x32x128xf32>,
    %731 = arith.index_cast %1 : i32 to index
    %c6_412 = arith.constant 6 : index
    %c0_413 = arith.constant 0 : index
    %c0_414 = arith.constant 0 : index
    %732 = vector.load %arg2[%731, %c6_412, %c0_413, %c0_414] : memref<1x8x32x128xf32, #tpu.memory_space<vmem>>, vector<1x1x32x128xf32>
    %733 = vector.shape_cast %732 : vector<1x1x32x128xf32> to vector<32x128xf32>
    %734 = arith.index_cast %1 : i32 to index
    %c6_415 = arith.constant 6 : index
    %c0_416 = arith.constant 0 : index
    %c0_417 = arith.constant 0 : index
    %735 = vector.load %arg1[%734, %c6_415, %c0_416, %c0_417] : memref<1x8x32x128xf32, #tpu.memory_space<vmem>>, vector<1x1x32x128xf32>
    %736 = vector.shape_cast %735 : vector<1x1x32x128xf32> to vector<32x128xf32>
    %737 = arith.mulf %733, %736 : vector<32x128xf32>
    %cst_418 = arith.constant dense<0.000000e+00> : vector<128xf32>
    %738 = vector.multi_reduction <add>, %737, %cst_418 [0] : vector<32x128xf32> to vector<128xf32>
    %739 = vector.shape_cast %738 : vector<128xf32> to vector<1x128xf32>
    %cst_419 = arith.constant 1.000000e-01 : f32
    %740 = vector.broadcast %cst_419 : f32 to vector<1x128xf32>
    %741 = arith.mulf %740, %739 : vector<1x128xf32>
    %742 = arith.index_cast %1 : i32 to index
    %c7_420 = arith.constant 7 : index
    %c0_421 = arith.constant 0 : index
    %c0_422 = arith.constant 0 : index
    %743 = vector.load %arg2[%742, %c7_420, %c0_421, %c0_422] : memref<1x8x32x128xf32, #tpu.memory_space<vmem>>, vector<1x1x32x128xf32>
    %744 = vector.shape_cast %743 : vector<1x1x32x128xf32> to vector<32x128xf32>
    %745 = arith.mulf %744, %736 : vector<32x128xf32>
    %746 = arith.index_cast %1 : i32 to index
    %c7_423 = arith.constant 7 : index
    %c0_424 = arith.constant 0 : index
    %c0_425 = arith.constant 0 : index
    %747 = vector.load %arg1[%746, %c7_423, %c0_424, %c0_425] : memref<1x8x32x128xf32, #tpu.memory_space<vmem>>, vector<1x1x32x128xf32>
    %748 = vector.shape_cast %747 : vector<1x1x32x128xf32> to vector<32x128xf32>
    %749 = arith.mulf %748, %733 : vector<32x128xf32>
    %750 = arith.addf %745, %749 : vector<32x128xf32>
    %cst_426 = arith.constant dense<0.000000e+00> : vector<128xf32>
    %751 = vector.multi_reduction <add>, %750, %cst_426 [0] : vector<32x128xf32> to vector<128xf32>
    %752 = vector.shape_cast %751 : vector<128xf32> to vector<1x128xf32>
    %cst_427 = arith.constant 5.000000e-02 : f32
    %753 = vector.broadcast %cst_427 : f32 to vector<1x128xf32>
    %754 = arith.mulf %753, %752 : vector<1x128xf32>
    %cst_428 = arith.constant -1.000000e-01 : f32
    %755 = vector.broadcast %cst_428 : f32 to vector<32x128xf32>
    %756 = arith.mulf %755, %736 : vector<32x128xf32>
    %757 = arith.index_cast %1 : i32 to index
    %c0_429 = arith.constant 0 : index
    %c0_430 = arith.constant 0 : index
    %c0_431 = arith.constant 0 : index
    %758 = vector.load %arg2[%757, %c0_429, %c0_430, %c0_431] : memref<1x8x32x128xf32, #tpu.memory_space<vmem>>, vector<1x1x32x128xf32>
    %759 = vector.shape_cast %758 : vector<1x1x32x128xf32> to vector<32x128xf32>
    %760 = vector.broadcast %90 : vector<1x128xf32> to vector<32x128xf32>
    %761 = arith.mulf %759, %760 : vector<32x128xf32>
    %762 = arith.addf %756, %761 : vector<32x128xf32>
    %763 = arith.index_cast %1 : i32 to index
    %c1_432 = arith.constant 1 : index
    %c0_433 = arith.constant 0 : index
    %c0_434 = arith.constant 0 : index
    %764 = vector.load %arg2[%763, %c1_432, %c0_433, %c0_434] : memref<1x8x32x128xf32, #tpu.memory_space<vmem>>, vector<1x1x32x128xf32>
    %765 = vector.shape_cast %764 : vector<1x1x32x128xf32> to vector<32x128xf32>
    %766 = vector.broadcast %231 : vector<1x128xf32> to vector<32x128xf32>
    %767 = arith.mulf %765, %766 : vector<32x128xf32>
    %768 = arith.addf %762, %767 : vector<32x128xf32>
    %769 = arith.index_cast %1 : i32 to index
    %c2_435 = arith.constant 2 : index
    %c0_436 = arith.constant 0 : index
    %c0_437 = arith.constant 0 : index
    %770 = vector.load %arg2[%769, %c2_435, %c0_436, %c0_437] : memref<1x8x32x128xf32, #tpu.memory_space<vmem>>, vector<1x1x32x128xf32>
    %771 = vector.shape_cast %770 : vector<1x1x32x128xf32> to vector<32x128xf32>
    %772 = vector.broadcast %359 : vector<1x128xf32> to vector<32x128xf32>
    %773 = arith.mulf %771, %772 : vector<32x128xf32>
    %774 = arith.addf %768, %773 : vector<32x128xf32>
    %775 = arith.index_cast %1 : i32 to index
    %c3_438 = arith.constant 3 : index
    %c0_439 = arith.constant 0 : index
    %c0_440 = arith.constant 0 : index
    %776 = vector.load %arg2[%775, %c3_438, %c0_439, %c0_440] : memref<1x8x32x128xf32, #tpu.memory_space<vmem>>, vector<1x1x32x128xf32>
    %777 = vector.shape_cast %776 : vector<1x1x32x128xf32> to vector<32x128xf32>
    %778 = vector.broadcast %474 : vector<1x128xf32> to vector<32x128xf32>
    %779 = arith.mulf %777, %778 : vector<32x128xf32>
    %780 = arith.addf %774, %779 : vector<32x128xf32>
    %781 = arith.index_cast %1 : i32 to index
    %c4_441 = arith.constant 4 : index
    %c0_442 = arith.constant 0 : index
    %c0_443 = arith.constant 0 : index
    %782 = vector.load %arg2[%781, %c4_441, %c0_442, %c0_443] : memref<1x8x32x128xf32, #tpu.memory_space<vmem>>, vector<1x1x32x128xf32>
    %783 = vector.shape_cast %782 : vector<1x1x32x128xf32> to vector<32x128xf32>
    %784 = vector.broadcast %576 : vector<1x128xf32> to vector<32x128xf32>
    %785 = arith.mulf %783, %784 : vector<32x128xf32>
    %786 = arith.addf %780, %785 : vector<32x128xf32>
    %787 = arith.index_cast %1 : i32 to index
    %c5_444 = arith.constant 5 : index
    %c0_445 = arith.constant 0 : index
    %c0_446 = arith.constant 0 : index
    %788 = vector.load %arg2[%787, %c5_444, %c0_445, %c0_446] : memref<1x8x32x128xf32, #tpu.memory_space<vmem>>, vector<1x1x32x128xf32>
    %789 = vector.shape_cast %788 : vector<1x1x32x128xf32> to vector<32x128xf32>
    %790 = vector.broadcast %665 : vector<1x128xf32> to vector<32x128xf32>
    %791 = arith.mulf %789, %790 : vector<32x128xf32>
    %792 = arith.addf %786, %791 : vector<32x128xf32>
    %cst_447 = arith.constant 1.000000e+00 : f32
    %793 = vector.broadcast %cst_447 : f32 to vector<1x128xf32>
    %794 = arith.addf %793, %741 : vector<1x128xf32>
    %795 = vector.broadcast %794 : vector<1x128xf32> to vector<32x128xf32>
    %796 = arith.mulf %733, %795 : vector<32x128xf32>
    %797 = arith.addf %792, %796 : vector<32x128xf32>
    %798 = arith.index_cast %1 : i32 to index
    %c7_448 = arith.constant 7 : index
    %c0_449 = arith.constant 0 : index
    %c0_450 = arith.constant 0 : index
    %799 = vector.load %arg2[%798, %c7_448, %c0_449, %c0_450] : memref<1x8x32x128xf32, #tpu.memory_space<vmem>>, vector<1x1x32x128xf32>
    %800 = vector.shape_cast %799 : vector<1x1x32x128xf32> to vector<32x128xf32>
    %801 = vector.broadcast %754 : vector<1x128xf32> to vector<32x128xf32>
    %802 = arith.mulf %800, %801 : vector<32x128xf32>
    %803 = arith.addf %797, %802 : vector<32x128xf32>
    %c6_451 = arith.constant 6 : index
    %c0_452 = arith.constant 0 : index
    %c0_453 = arith.constant 0 : index
    %804 = vector.load %arg4[%c6_451, %c0_452, %c0_453] : memref<8x32x128xf32, #tpu.memory_space<vmem>>, vector<1x32x128xf32>
    %805 = vector.shape_cast %804 : vector<1x32x128xf32> to vector<32x128xf32>
    %806 = vector.shape_cast %803 : vector<32x128xf32> to vector<1x32x128xf32>
    tpu.vector_store %arg4[%c6_451, %c0_452, %c0_453], %806 {strides = array<i32>} : memref<8x32x128xf32, #tpu.memory_space<vmem>>, vector<1x32x128xf32>,
    %807 = arith.index_cast %1 : i32 to index
    %c7_454 = arith.constant 7 : index
    %c0_455 = arith.constant 0 : index
    %c0_456 = arith.constant 0 : index
    %808 = vector.load %arg2[%807, %c7_454, %c0_455, %c0_456] : memref<1x8x32x128xf32, #tpu.memory_space<vmem>>, vector<1x1x32x128xf32>
    %809 = vector.shape_cast %808 : vector<1x1x32x128xf32> to vector<32x128xf32>
    %810 = arith.index_cast %1 : i32 to index
    %c7_457 = arith.constant 7 : index
    %c0_458 = arith.constant 0 : index
    %c0_459 = arith.constant 0 : index
    %811 = vector.load %arg1[%810, %c7_457, %c0_458, %c0_459] : memref<1x8x32x128xf32, #tpu.memory_space<vmem>>, vector<1x1x32x128xf32>
    %812 = vector.shape_cast %811 : vector<1x1x32x128xf32> to vector<32x128xf32>
    %813 = arith.mulf %809, %812 : vector<32x128xf32>
    %cst_460 = arith.constant dense<0.000000e+00> : vector<128xf32>
    %814 = vector.multi_reduction <add>, %813, %cst_460 [0] : vector<32x128xf32> to vector<128xf32>
    %815 = vector.shape_cast %814 : vector<128xf32> to vector<1x128xf32>
    %cst_461 = arith.constant 1.000000e-01 : f32
    %816 = vector.broadcast %cst_461 : f32 to vector<1x128xf32>
    %817 = arith.mulf %816, %815 : vector<1x128xf32>
    %cst_462 = arith.constant -1.000000e-01 : f32
    %818 = vector.broadcast %cst_462 : f32 to vector<32x128xf32>
    %819 = arith.mulf %818, %812 : vector<32x128xf32>
    %820 = arith.index_cast %1 : i32 to index
    %c0_463 = arith.constant 0 : index
    %c0_464 = arith.constant 0 : index
    %c0_465 = arith.constant 0 : index
    %821 = vector.load %arg2[%820, %c0_463, %c0_464, %c0_465] : memref<1x8x32x128xf32, #tpu.memory_space<vmem>>, vector<1x1x32x128xf32>
    %822 = vector.shape_cast %821 : vector<1x1x32x128xf32> to vector<32x128xf32>
    %823 = vector.broadcast %103 : vector<1x128xf32> to vector<32x128xf32>
    %824 = arith.mulf %822, %823 : vector<32x128xf32>
    %825 = arith.addf %819, %824 : vector<32x128xf32>
    %826 = arith.index_cast %1 : i32 to index
    %c1_466 = arith.constant 1 : index
    %c0_467 = arith.constant 0 : index
    %c0_468 = arith.constant 0 : index
    %827 = vector.load %arg2[%826, %c1_466, %c0_467, %c0_468] : memref<1x8x32x128xf32, #tpu.memory_space<vmem>>, vector<1x1x32x128xf32>
    %828 = vector.shape_cast %827 : vector<1x1x32x128xf32> to vector<32x128xf32>
    %829 = vector.broadcast %244 : vector<1x128xf32> to vector<32x128xf32>
    %830 = arith.mulf %828, %829 : vector<32x128xf32>
    %831 = arith.addf %825, %830 : vector<32x128xf32>
    %832 = arith.index_cast %1 : i32 to index
    %c2_469 = arith.constant 2 : index
    %c0_470 = arith.constant 0 : index
    %c0_471 = arith.constant 0 : index
    %833 = vector.load %arg2[%832, %c2_469, %c0_470, %c0_471] : memref<1x8x32x128xf32, #tpu.memory_space<vmem>>, vector<1x1x32x128xf32>
    %834 = vector.shape_cast %833 : vector<1x1x32x128xf32> to vector<32x128xf32>
    %835 = vector.broadcast %372 : vector<1x128xf32> to vector<32x128xf32>
    %836 = arith.mulf %834, %835 : vector<32x128xf32>
    %837 = arith.addf %831, %836 : vector<32x128xf32>
    %838 = arith.index_cast %1 : i32 to index
    %c3_472 = arith.constant 3 : index
    %c0_473 = arith.constant 0 : index
    %c0_474 = arith.constant 0 : index
    %839 = vector.load %arg2[%838, %c3_472, %c0_473, %c0_474] : memref<1x8x32x128xf32, #tpu.memory_space<vmem>>, vector<1x1x32x128xf32>
    %840 = vector.shape_cast %839 : vector<1x1x32x128xf32> to vector<32x128xf32>
    %841 = vector.broadcast %487 : vector<1x128xf32> to vector<32x128xf32>
    %842 = arith.mulf %840, %841 : vector<32x128xf32>
    %843 = arith.addf %837, %842 : vector<32x128xf32>
    %844 = arith.index_cast %1 : i32 to index
    %c4_475 = arith.constant 4 : index
    %c0_476 = arith.constant 0 : index
    %c0_477 = arith.constant 0 : index
    %845 = vector.load %arg2[%844, %c4_475, %c0_476, %c0_477] : memref<1x8x32x128xf32, #tpu.memory_space<vmem>>, vector<1x1x32x128xf32>
    %846 = vector.shape_cast %845 : vector<1x1x32x128xf32> to vector<32x128xf32>
    %847 = vector.broadcast %589 : vector<1x128xf32> to vector<32x128xf32>
    %848 = arith.mulf %846, %847 : vector<32x128xf32>
    %849 = arith.addf %843, %848 : vector<32x128xf32>
    %850 = arith.index_cast %1 : i32 to index
    %c5_478 = arith.constant 5 : index
    %c0_479 = arith.constant 0 : index
    %c0_480 = arith.constant 0 : index
    %851 = vector.load %arg2[%850, %c5_478, %c0_479, %c0_480] : memref<1x8x32x128xf32, #tpu.memory_space<vmem>>, vector<1x1x32x128xf32>
    %852 = vector.shape_cast %851 : vector<1x1x32x128xf32> to vector<32x128xf32>
    %853 = vector.broadcast %678 : vector<1x128xf32> to vector<32x128xf32>
    %854 = arith.mulf %852, %853 : vector<32x128xf32>
    %855 = arith.addf %849, %854 : vector<32x128xf32>
    %856 = arith.index_cast %1 : i32 to index
    %c6_481 = arith.constant 6 : index
    %c0_482 = arith.constant 0 : index
    %c0_483 = arith.constant 0 : index
    %857 = vector.load %arg2[%856, %c6_481, %c0_482, %c0_483] : memref<1x8x32x128xf32, #tpu.memory_space<vmem>>, vector<1x1x32x128xf32>
    %858 = vector.shape_cast %857 : vector<1x1x32x128xf32> to vector<32x128xf32>
    %859 = vector.broadcast %754 : vector<1x128xf32> to vector<32x128xf32>
    %860 = arith.mulf %858, %859 : vector<32x128xf32>
    %861 = arith.addf %855, %860 : vector<32x128xf32>
    %cst_484 = arith.constant 1.000000e+00 : f32
    %862 = vector.broadcast %cst_484 : f32 to vector<1x128xf32>
    %863 = arith.addf %862, %817 : vector<1x128xf32>
    %864 = vector.broadcast %863 : vector<1x128xf32> to vector<32x128xf32>
    %865 = arith.mulf %809, %864 : vector<32x128xf32>
    %866 = arith.addf %861, %865 : vector<32x128xf32>
    %c7_485 = arith.constant 7 : index
    %c0_486 = arith.constant 0 : index
    %c0_487 = arith.constant 0 : index
    %867 = vector.load %arg4[%c7_485, %c0_486, %c0_487] : memref<8x32x128xf32, #tpu.memory_space<vmem>>, vector<1x32x128xf32>
    %868 = vector.shape_cast %867 : vector<1x32x128xf32> to vector<32x128xf32>
    %869 = vector.shape_cast %866 : vector<32x128xf32> to vector<1x32x128xf32>
    tpu.vector_store %arg4[%c7_485, %c0_486, %c0_487], %869 {strides = array<i32>} : memref<8x32x128xf32, #tpu.memory_space<vmem>>, vector<1x32x128xf32>,
    %c0_488 = arith.constant 0 : index
    %c0_489 = arith.constant 0 : index
    %c0_490 = arith.constant 0 : index
    %870 = vector.load %arg4[%c0_488, %c0_489, %c0_490] : memref<8x32x128xf32, #tpu.memory_space<vmem>>, vector<1x32x128xf32>
    %871 = vector.shape_cast %870 : vector<1x32x128xf32> to vector<32x128xf32>
    %872 = arith.mulf %871, %871 : vector<32x128xf32>
    %cst_491 = arith.constant dense<0.000000e+00> : vector<128xf32>
    %873 = vector.multi_reduction <add>, %872, %cst_491 [0] : vector<32x128xf32> to vector<128xf32>
    %874 = vector.shape_cast %873 : vector<128xf32> to vector<1x128xf32>
    %875 = math.rsqrt %874 : vector<1x128xf32>
    %876 = vector.broadcast %875 : vector<1x128xf32> to vector<32x128xf32>
    %877 = arith.mulf %871, %876 : vector<32x128xf32>
    %878 = arith.index_cast %1 : i32 to index
    %c0_492 = arith.constant 0 : index
    %c0_493 = arith.constant 0 : index
    %c0_494 = arith.constant 0 : index
    %879 = vector.load %arg3[%878, %c0_492, %c0_493, %c0_494] : memref<1x8x32x128xf32, #tpu.memory_space<vmem>>, vector<1x1x32x128xf32>
    %880 = vector.shape_cast %879 : vector<1x1x32x128xf32> to vector<32x128xf32>
    %881 = vector.shape_cast %877 : vector<32x128xf32> to vector<1x1x32x128xf32>
    tpu.vector_store %arg3[%878, %c0_492, %c0_493, %c0_494], %881 {strides = array<i32>} : memref<1x8x32x128xf32, #tpu.memory_space<vmem>>, vector<1x1x32x128xf32>,
    %c1_495 = arith.constant 1 : index
    %c0_496 = arith.constant 0 : index
    %c0_497 = arith.constant 0 : index
    %882 = vector.load %arg4[%c1_495, %c0_496, %c0_497] : memref<8x32x128xf32, #tpu.memory_space<vmem>>, vector<1x32x128xf32>
    %883 = vector.shape_cast %882 : vector<1x32x128xf32> to vector<32x128xf32>
    %884 = arith.mulf %877, %883 : vector<32x128xf32>
    %cst_498 = arith.constant dense<0.000000e+00> : vector<128xf32>
    %885 = vector.multi_reduction <add>, %884, %cst_498 [0] : vector<32x128xf32> to vector<128xf32>
    %886 = vector.shape_cast %885 : vector<128xf32> to vector<1x128xf32>
    %887 = vector.broadcast %886 : vector<1x128xf32> to vector<32x128xf32>
    %888 = arith.mulf %877, %887 : vector<32x128xf32>
    %889 = arith.subf %883, %888 : vector<32x128xf32>
    %c1_499 = arith.constant 1 : index
    %c0_500 = arith.constant 0 : index
    %c0_501 = arith.constant 0 : index
    %890 = vector.load %arg4[%c1_499, %c0_500, %c0_501] : memref<8x32x128xf32, #tpu.memory_space<vmem>>, vector<1x32x128xf32>
    %891 = vector.shape_cast %890 : vector<1x32x128xf32> to vector<32x128xf32>
    %892 = vector.shape_cast %889 : vector<32x128xf32> to vector<1x32x128xf32>
    tpu.vector_store %arg4[%c1_499, %c0_500, %c0_501], %892 {strides = array<i32>} : memref<8x32x128xf32, #tpu.memory_space<vmem>>, vector<1x32x128xf32>,
    %c2_502 = arith.constant 2 : index
    %c0_503 = arith.constant 0 : index
    %c0_504 = arith.constant 0 : index
    %893 = vector.load %arg4[%c2_502, %c0_503, %c0_504] : memref<8x32x128xf32, #tpu.memory_space<vmem>>, vector<1x32x128xf32>
    %894 = vector.shape_cast %893 : vector<1x32x128xf32> to vector<32x128xf32>
    %895 = arith.mulf %877, %894 : vector<32x128xf32>
    %cst_505 = arith.constant dense<0.000000e+00> : vector<128xf32>
    %896 = vector.multi_reduction <add>, %895, %cst_505 [0] : vector<32x128xf32> to vector<128xf32>
    %897 = vector.shape_cast %896 : vector<128xf32> to vector<1x128xf32>
    %898 = vector.broadcast %897 : vector<1x128xf32> to vector<32x128xf32>
    %899 = arith.mulf %877, %898 : vector<32x128xf32>
    %900 = arith.subf %894, %899 : vector<32x128xf32>
    %c2_506 = arith.constant 2 : index
    %c0_507 = arith.constant 0 : index
    %c0_508 = arith.constant 0 : index
    %901 = vector.load %arg4[%c2_506, %c0_507, %c0_508] : memref<8x32x128xf32, #tpu.memory_space<vmem>>, vector<1x32x128xf32>
    %902 = vector.shape_cast %901 : vector<1x32x128xf32> to vector<32x128xf32>
    %903 = vector.shape_cast %900 : vector<32x128xf32> to vector<1x32x128xf32>
    tpu.vector_store %arg4[%c2_506, %c0_507, %c0_508], %903 {strides = array<i32>} : memref<8x32x128xf32, #tpu.memory_space<vmem>>, vector<1x32x128xf32>,
    %c3_509 = arith.constant 3 : index
    %c0_510 = arith.constant 0 : index
    %c0_511 = arith.constant 0 : index
    %904 = vector.load %arg4[%c3_509, %c0_510, %c0_511] : memref<8x32x128xf32, #tpu.memory_space<vmem>>, vector<1x32x128xf32>
    %905 = vector.shape_cast %904 : vector<1x32x128xf32> to vector<32x128xf32>
    %906 = arith.mulf %877, %905 : vector<32x128xf32>
    %cst_512 = arith.constant dense<0.000000e+00> : vector<128xf32>
    %907 = vector.multi_reduction <add>, %906, %cst_512 [0] : vector<32x128xf32> to vector<128xf32>
    %908 = vector.shape_cast %907 : vector<128xf32> to vector<1x128xf32>
    %909 = vector.broadcast %908 : vector<1x128xf32> to vector<32x128xf32>
    %910 = arith.mulf %877, %909 : vector<32x128xf32>
    %911 = arith.subf %905, %910 : vector<32x128xf32>
    %c3_513 = arith.constant 3 : index
    %c0_514 = arith.constant 0 : index
    %c0_515 = arith.constant 0 : index
    %912 = vector.load %arg4[%c3_513, %c0_514, %c0_515] : memref<8x32x128xf32, #tpu.memory_space<vmem>>, vector<1x32x128xf32>
    %913 = vector.shape_cast %912 : vector<1x32x128xf32> to vector<32x128xf32>
    %914 = vector.shape_cast %911 : vector<32x128xf32> to vector<1x32x128xf32>
    tpu.vector_store %arg4[%c3_513, %c0_514, %c0_515], %914 {strides = array<i32>} : memref<8x32x128xf32, #tpu.memory_space<vmem>>, vector<1x32x128xf32>,
    %c4_516 = arith.constant 4 : index
    %c0_517 = arith.constant 0 : index
    %c0_518 = arith.constant 0 : index
    %915 = vector.load %arg4[%c4_516, %c0_517, %c0_518] : memref<8x32x128xf32, #tpu.memory_space<vmem>>, vector<1x32x128xf32>
    %916 = vector.shape_cast %915 : vector<1x32x128xf32> to vector<32x128xf32>
    %917 = arith.mulf %877, %916 : vector<32x128xf32>
    %cst_519 = arith.constant dense<0.000000e+00> : vector<128xf32>
    %918 = vector.multi_reduction <add>, %917, %cst_519 [0] : vector<32x128xf32> to vector<128xf32>
    %919 = vector.shape_cast %918 : vector<128xf32> to vector<1x128xf32>
    %920 = vector.broadcast %919 : vector<1x128xf32> to vector<32x128xf32>
    %921 = arith.mulf %877, %920 : vector<32x128xf32>
    %922 = arith.subf %916, %921 : vector<32x128xf32>
    %c4_520 = arith.constant 4 : index
    %c0_521 = arith.constant 0 : index
    %c0_522 = arith.constant 0 : index
    %923 = vector.load %arg4[%c4_520, %c0_521, %c0_522] : memref<8x32x128xf32, #tpu.memory_space<vmem>>, vector<1x32x128xf32>
    %924 = vector.shape_cast %923 : vector<1x32x128xf32> to vector<32x128xf32>
    %925 = vector.shape_cast %922 : vector<32x128xf32> to vector<1x32x128xf32>
    tpu.vector_store %arg4[%c4_520, %c0_521, %c0_522], %925 {strides = array<i32>} : memref<8x32x128xf32, #tpu.memory_space<vmem>>, vector<1x32x128xf32>,
    %c5_523 = arith.constant 5 : index
    %c0_524 = arith.constant 0 : index
    %c0_525 = arith.constant 0 : index
    %926 = vector.load %arg4[%c5_523, %c0_524, %c0_525] : memref<8x32x128xf32, #tpu.memory_space<vmem>>, vector<1x32x128xf32>
    %927 = vector.shape_cast %926 : vector<1x32x128xf32> to vector<32x128xf32>
    %928 = arith.mulf %877, %927 : vector<32x128xf32>
    %cst_526 = arith.constant dense<0.000000e+00> : vector<128xf32>
    %929 = vector.multi_reduction <add>, %928, %cst_526 [0] : vector<32x128xf32> to vector<128xf32>
    %930 = vector.shape_cast %929 : vector<128xf32> to vector<1x128xf32>
    %931 = vector.broadcast %930 : vector<1x128xf32> to vector<32x128xf32>
    %932 = arith.mulf %877, %931 : vector<32x128xf32>
    %933 = arith.subf %927, %932 : vector<32x128xf32>
    %c5_527 = arith.constant 5 : index
    %c0_528 = arith.constant 0 : index
    %c0_529 = arith.constant 0 : index
    %934 = vector.load %arg4[%c5_527, %c0_528, %c0_529] : memref<8x32x128xf32, #tpu.memory_space<vmem>>, vector<1x32x128xf32>
    %935 = vector.shape_cast %934 : vector<1x32x128xf32> to vector<32x128xf32>
    %936 = vector.shape_cast %933 : vector<32x128xf32> to vector<1x32x128xf32>
    tpu.vector_store %arg4[%c5_527, %c0_528, %c0_529], %936 {strides = array<i32>} : memref<8x32x128xf32, #tpu.memory_space<vmem>>, vector<1x32x128xf32>,
    %c6_530 = arith.constant 6 : index
    %c0_531 = arith.constant 0 : index
    %c0_532 = arith.constant 0 : index
    %937 = vector.load %arg4[%c6_530, %c0_531, %c0_532] : memref<8x32x128xf32, #tpu.memory_space<vmem>>, vector<1x32x128xf32>
    %938 = vector.shape_cast %937 : vector<1x32x128xf32> to vector<32x128xf32>
    %939 = arith.mulf %877, %938 : vector<32x128xf32>
    %cst_533 = arith.constant dense<0.000000e+00> : vector<128xf32>
    %940 = vector.multi_reduction <add>, %939, %cst_533 [0] : vector<32x128xf32> to vector<128xf32>
    %941 = vector.shape_cast %940 : vector<128xf32> to vector<1x128xf32>
    %942 = vector.broadcast %941 : vector<1x128xf32> to vector<32x128xf32>
    %943 = arith.mulf %877, %942 : vector<32x128xf32>
    %944 = arith.subf %938, %943 : vector<32x128xf32>
    %c6_534 = arith.constant 6 : index
    %c0_535 = arith.constant 0 : index
    %c0_536 = arith.constant 0 : index
    %945 = vector.load %arg4[%c6_534, %c0_535, %c0_536] : memref<8x32x128xf32, #tpu.memory_space<vmem>>, vector<1x32x128xf32>
    %946 = vector.shape_cast %945 : vector<1x32x128xf32> to vector<32x128xf32>
    %947 = vector.shape_cast %944 : vector<32x128xf32> to vector<1x32x128xf32>
    tpu.vector_store %arg4[%c6_534, %c0_535, %c0_536], %947 {strides = array<i32>} : memref<8x32x128xf32, #tpu.memory_space<vmem>>, vector<1x32x128xf32>,
    %c7_537 = arith.constant 7 : index
    %c0_538 = arith.constant 0 : index
    %c0_539 = arith.constant 0 : index
    %948 = vector.load %arg4[%c7_537, %c0_538, %c0_539] : memref<8x32x128xf32, #tpu.memory_space<vmem>>, vector<1x32x128xf32>
    %949 = vector.shape_cast %948 : vector<1x32x128xf32> to vector<32x128xf32>
    %950 = arith.mulf %877, %949 : vector<32x128xf32>
    %cst_540 = arith.constant dense<0.000000e+00> : vector<128xf32>
    %951 = vector.multi_reduction <add>, %950, %cst_540 [0] : vector<32x128xf32> to vector<128xf32>
    %952 = vector.shape_cast %951 : vector<128xf32> to vector<1x128xf32>
    %953 = vector.broadcast %952 : vector<1x128xf32> to vector<32x128xf32>
    %954 = arith.mulf %877, %953 : vector<32x128xf32>
    %955 = arith.subf %949, %954 : vector<32x128xf32>
    %c7_541 = arith.constant 7 : index
    %c0_542 = arith.constant 0 : index
    %c0_543 = arith.constant 0 : index
    %956 = vector.load %arg4[%c7_541, %c0_542, %c0_543] : memref<8x32x128xf32, #tpu.memory_space<vmem>>, vector<1x32x128xf32>
    %957 = vector.shape_cast %956 : vector<1x32x128xf32> to vector<32x128xf32>
    %958 = vector.shape_cast %955 : vector<32x128xf32> to vector<1x32x128xf32>
    tpu.vector_store %arg4[%c7_541, %c0_542, %c0_543], %958 {strides = array<i32>} : memref<8x32x128xf32, #tpu.memory_space<vmem>>, vector<1x32x128xf32>,
    %c1_544 = arith.constant 1 : index
    %c0_545 = arith.constant 0 : index
    %c0_546 = arith.constant 0 : index
    %959 = vector.load %arg4[%c1_544, %c0_545, %c0_546] : memref<8x32x128xf32, #tpu.memory_space<vmem>>, vector<1x32x128xf32>
    %960 = vector.shape_cast %959 : vector<1x32x128xf32> to vector<32x128xf32>
    %961 = arith.mulf %960, %960 : vector<32x128xf32>
    %cst_547 = arith.constant dense<0.000000e+00> : vector<128xf32>
    %962 = vector.multi_reduction <add>, %961, %cst_547 [0] : vector<32x128xf32> to vector<128xf32>
    %963 = vector.shape_cast %962 : vector<128xf32> to vector<1x128xf32>
    %964 = math.rsqrt %963 : vector<1x128xf32>
    %965 = vector.broadcast %964 : vector<1x128xf32> to vector<32x128xf32>
    %966 = arith.mulf %960, %965 : vector<32x128xf32>
    %967 = arith.index_cast %1 : i32 to index
    %c1_548 = arith.constant 1 : index
    %c0_549 = arith.constant 0 : index
    %c0_550 = arith.constant 0 : index
    %968 = vector.load %arg3[%967, %c1_548, %c0_549, %c0_550] : memref<1x8x32x128xf32, #tpu.memory_space<vmem>>, vector<1x1x32x128xf32>
    %969 = vector.shape_cast %968 : vector<1x1x32x128xf32> to vector<32x128xf32>
    %970 = vector.shape_cast %966 : vector<32x128xf32> to vector<1x1x32x128xf32>
    tpu.vector_store %arg3[%967, %c1_548, %c0_549, %c0_550], %970 {strides = array<i32>} : memref<1x8x32x128xf32, #tpu.memory_space<vmem>>, vector<1x1x32x128xf32>,
    %c2_551 = arith.constant 2 : index
    %c0_552 = arith.constant 0 : index
    %c0_553 = arith.constant 0 : index
    %971 = vector.load %arg4[%c2_551, %c0_552, %c0_553] : memref<8x32x128xf32, #tpu.memory_space<vmem>>, vector<1x32x128xf32>
    %972 = vector.shape_cast %971 : vector<1x32x128xf32> to vector<32x128xf32>
    %973 = arith.mulf %966, %972 : vector<32x128xf32>
    %cst_554 = arith.constant dense<0.000000e+00> : vector<128xf32>
    %974 = vector.multi_reduction <add>, %973, %cst_554 [0] : vector<32x128xf32> to vector<128xf32>
    %975 = vector.shape_cast %974 : vector<128xf32> to vector<1x128xf32>
    %976 = vector.broadcast %975 : vector<1x128xf32> to vector<32x128xf32>
    %977 = arith.mulf %966, %976 : vector<32x128xf32>
    %978 = arith.subf %972, %977 : vector<32x128xf32>
    %c2_555 = arith.constant 2 : index
    %c0_556 = arith.constant 0 : index
    %c0_557 = arith.constant 0 : index
    %979 = vector.load %arg4[%c2_555, %c0_556, %c0_557] : memref<8x32x128xf32, #tpu.memory_space<vmem>>, vector<1x32x128xf32>
    %980 = vector.shape_cast %979 : vector<1x32x128xf32> to vector<32x128xf32>
    %981 = vector.shape_cast %978 : vector<32x128xf32> to vector<1x32x128xf32>
    tpu.vector_store %arg4[%c2_555, %c0_556, %c0_557], %981 {strides = array<i32>} : memref<8x32x128xf32, #tpu.memory_space<vmem>>, vector<1x32x128xf32>,
    %c3_558 = arith.constant 3 : index
    %c0_559 = arith.constant 0 : index
    %c0_560 = arith.constant 0 : index
    %982 = vector.load %arg4[%c3_558, %c0_559, %c0_560] : memref<8x32x128xf32, #tpu.memory_space<vmem>>, vector<1x32x128xf32>
    %983 = vector.shape_cast %982 : vector<1x32x128xf32> to vector<32x128xf32>
    %984 = arith.mulf %966, %983 : vector<32x128xf32>
    %cst_561 = arith.constant dense<0.000000e+00> : vector<128xf32>
    %985 = vector.multi_reduction <add>, %984, %cst_561 [0] : vector<32x128xf32> to vector<128xf32>
    %986 = vector.shape_cast %985 : vector<128xf32> to vector<1x128xf32>
    %987 = vector.broadcast %986 : vector<1x128xf32> to vector<32x128xf32>
    %988 = arith.mulf %966, %987 : vector<32x128xf32>
    %989 = arith.subf %983, %988 : vector<32x128xf32>
    %c3_562 = arith.constant 3 : index
    %c0_563 = arith.constant 0 : index
    %c0_564 = arith.constant 0 : index
    %990 = vector.load %arg4[%c3_562, %c0_563, %c0_564] : memref<8x32x128xf32, #tpu.memory_space<vmem>>, vector<1x32x128xf32>
    %991 = vector.shape_cast %990 : vector<1x32x128xf32> to vector<32x128xf32>
    %992 = vector.shape_cast %989 : vector<32x128xf32> to vector<1x32x128xf32>
    tpu.vector_store %arg4[%c3_562, %c0_563, %c0_564], %992 {strides = array<i32>} : memref<8x32x128xf32, #tpu.memory_space<vmem>>, vector<1x32x128xf32>,
    %c4_565 = arith.constant 4 : index
    %c0_566 = arith.constant 0 : index
    %c0_567 = arith.constant 0 : index
    %993 = vector.load %arg4[%c4_565, %c0_566, %c0_567] : memref<8x32x128xf32, #tpu.memory_space<vmem>>, vector<1x32x128xf32>
    %994 = vector.shape_cast %993 : vector<1x32x128xf32> to vector<32x128xf32>
    %995 = arith.mulf %966, %994 : vector<32x128xf32>
    %cst_568 = arith.constant dense<0.000000e+00> : vector<128xf32>
    %996 = vector.multi_reduction <add>, %995, %cst_568 [0] : vector<32x128xf32> to vector<128xf32>
    %997 = vector.shape_cast %996 : vector<128xf32> to vector<1x128xf32>
    %998 = vector.broadcast %997 : vector<1x128xf32> to vector<32x128xf32>
    %999 = arith.mulf %966, %998 : vector<32x128xf32>
    %1000 = arith.subf %994, %999 : vector<32x128xf32>
    %c4_569 = arith.constant 4 : index
    %c0_570 = arith.constant 0 : index
    %c0_571 = arith.constant 0 : index
    %1001 = vector.load %arg4[%c4_569, %c0_570, %c0_571] : memref<8x32x128xf32, #tpu.memory_space<vmem>>, vector<1x32x128xf32>
    %1002 = vector.shape_cast %1001 : vector<1x32x128xf32> to vector<32x128xf32>
    %1003 = vector.shape_cast %1000 : vector<32x128xf32> to vector<1x32x128xf32>
    tpu.vector_store %arg4[%c4_569, %c0_570, %c0_571], %1003 {strides = array<i32>} : memref<8x32x128xf32, #tpu.memory_space<vmem>>, vector<1x32x128xf32>,
    %c5_572 = arith.constant 5 : index
    %c0_573 = arith.constant 0 : index
    %c0_574 = arith.constant 0 : index
    %1004 = vector.load %arg4[%c5_572, %c0_573, %c0_574] : memref<8x32x128xf32, #tpu.memory_space<vmem>>, vector<1x32x128xf32>
    %1005 = vector.shape_cast %1004 : vector<1x32x128xf32> to vector<32x128xf32>
    %1006 = arith.mulf %966, %1005 : vector<32x128xf32>
    %cst_575 = arith.constant dense<0.000000e+00> : vector<128xf32>
    %1007 = vector.multi_reduction <add>, %1006, %cst_575 [0] : vector<32x128xf32> to vector<128xf32>
    %1008 = vector.shape_cast %1007 : vector<128xf32> to vector<1x128xf32>
    %1009 = vector.broadcast %1008 : vector<1x128xf32> to vector<32x128xf32>
    %1010 = arith.mulf %966, %1009 : vector<32x128xf32>
    %1011 = arith.subf %1005, %1010 : vector<32x128xf32>
    %c5_576 = arith.constant 5 : index
    %c0_577 = arith.constant 0 : index
    %c0_578 = arith.constant 0 : index
    %1012 = vector.load %arg4[%c5_576, %c0_577, %c0_578] : memref<8x32x128xf32, #tpu.memory_space<vmem>>, vector<1x32x128xf32>
    %1013 = vector.shape_cast %1012 : vector<1x32x128xf32> to vector<32x128xf32>
    %1014 = vector.shape_cast %1011 : vector<32x128xf32> to vector<1x32x128xf32>
    tpu.vector_store %arg4[%c5_576, %c0_577, %c0_578], %1014 {strides = array<i32>} : memref<8x32x128xf32, #tpu.memory_space<vmem>>, vector<1x32x128xf32>,
    %c6_579 = arith.constant 6 : index
    %c0_580 = arith.constant 0 : index
    %c0_581 = arith.constant 0 : index
    %1015 = vector.load %arg4[%c6_579, %c0_580, %c0_581] : memref<8x32x128xf32, #tpu.memory_space<vmem>>, vector<1x32x128xf32>
    %1016 = vector.shape_cast %1015 : vector<1x32x128xf32> to vector<32x128xf32>
    %1017 = arith.mulf %966, %1016 : vector<32x128xf32>
    %cst_582 = arith.constant dense<0.000000e+00> : vector<128xf32>
    %1018 = vector.multi_reduction <add>, %1017, %cst_582 [0] : vector<32x128xf32> to vector<128xf32>
    %1019 = vector.shape_cast %1018 : vector<128xf32> to vector<1x128xf32>
    %1020 = vector.broadcast %1019 : vector<1x128xf32> to vector<32x128xf32>
    %1021 = arith.mulf %966, %1020 : vector<32x128xf32>
    %1022 = arith.subf %1016, %1021 : vector<32x128xf32>
    %c6_583 = arith.constant 6 : index
    %c0_584 = arith.constant 0 : index
    %c0_585 = arith.constant 0 : index
    %1023 = vector.load %arg4[%c6_583, %c0_584, %c0_585] : memref<8x32x128xf32, #tpu.memory_space<vmem>>, vector<1x32x128xf32>
    %1024 = vector.shape_cast %1023 : vector<1x32x128xf32> to vector<32x128xf32>
    %1025 = vector.shape_cast %1022 : vector<32x128xf32> to vector<1x32x128xf32>
    tpu.vector_store %arg4[%c6_583, %c0_584, %c0_585], %1025 {strides = array<i32>} : memref<8x32x128xf32, #tpu.memory_space<vmem>>, vector<1x32x128xf32>,
    %c7_586 = arith.constant 7 : index
    %c0_587 = arith.constant 0 : index
    %c0_588 = arith.constant 0 : index
    %1026 = vector.load %arg4[%c7_586, %c0_587, %c0_588] : memref<8x32x128xf32, #tpu.memory_space<vmem>>, vector<1x32x128xf32>
    %1027 = vector.shape_cast %1026 : vector<1x32x128xf32> to vector<32x128xf32>
    %1028 = arith.mulf %966, %1027 : vector<32x128xf32>
    %cst_589 = arith.constant dense<0.000000e+00> : vector<128xf32>
    %1029 = vector.multi_reduction <add>, %1028, %cst_589 [0] : vector<32x128xf32> to vector<128xf32>
    %1030 = vector.shape_cast %1029 : vector<128xf32> to vector<1x128xf32>
    %1031 = vector.broadcast %1030 : vector<1x128xf32> to vector<32x128xf32>
    %1032 = arith.mulf %966, %1031 : vector<32x128xf32>
    %1033 = arith.subf %1027, %1032 : vector<32x128xf32>
    %c7_590 = arith.constant 7 : index
    %c0_591 = arith.constant 0 : index
    %c0_592 = arith.constant 0 : index
    %1034 = vector.load %arg4[%c7_590, %c0_591, %c0_592] : memref<8x32x128xf32, #tpu.memory_space<vmem>>, vector<1x32x128xf32>
    %1035 = vector.shape_cast %1034 : vector<1x32x128xf32> to vector<32x128xf32>
    %1036 = vector.shape_cast %1033 : vector<32x128xf32> to vector<1x32x128xf32>
    tpu.vector_store %arg4[%c7_590, %c0_591, %c0_592], %1036 {strides = array<i32>} : memref<8x32x128xf32, #tpu.memory_space<vmem>>, vector<1x32x128xf32>,
    %c2_593 = arith.constant 2 : index
    %c0_594 = arith.constant 0 : index
    %c0_595 = arith.constant 0 : index
    %1037 = vector.load %arg4[%c2_593, %c0_594, %c0_595] : memref<8x32x128xf32, #tpu.memory_space<vmem>>, vector<1x32x128xf32>
    %1038 = vector.shape_cast %1037 : vector<1x32x128xf32> to vector<32x128xf32>
    %1039 = arith.mulf %1038, %1038 : vector<32x128xf32>
    %cst_596 = arith.constant dense<0.000000e+00> : vector<128xf32>
    %1040 = vector.multi_reduction <add>, %1039, %cst_596 [0] : vector<32x128xf32> to vector<128xf32>
    %1041 = vector.shape_cast %1040 : vector<128xf32> to vector<1x128xf32>
    %1042 = math.rsqrt %1041 : vector<1x128xf32>
    %1043 = vector.broadcast %1042 : vector<1x128xf32> to vector<32x128xf32>
    %1044 = arith.mulf %1038, %1043 : vector<32x128xf32>
    %1045 = arith.index_cast %1 : i32 to index
    %c2_597 = arith.constant 2 : index
    %c0_598 = arith.constant 0 : index
    %c0_599 = arith.constant 0 : index
    %1046 = vector.load %arg3[%1045, %c2_597, %c0_598, %c0_599] : memref<1x8x32x128xf32, #tpu.memory_space<vmem>>, vector<1x1x32x128xf32>
    %1047 = vector.shape_cast %1046 : vector<1x1x32x128xf32> to vector<32x128xf32>
    %1048 = vector.shape_cast %1044 : vector<32x128xf32> to vector<1x1x32x128xf32>
    tpu.vector_store %arg3[%1045, %c2_597, %c0_598, %c0_599], %1048 {strides = array<i32>} : memref<1x8x32x128xf32, #tpu.memory_space<vmem>>, vector<1x1x32x128xf32>,
    %c3_600 = arith.constant 3 : index
    %c0_601 = arith.constant 0 : index
    %c0_602 = arith.constant 0 : index
    %1049 = vector.load %arg4[%c3_600, %c0_601, %c0_602] : memref<8x32x128xf32, #tpu.memory_space<vmem>>, vector<1x32x128xf32>
    %1050 = vector.shape_cast %1049 : vector<1x32x128xf32> to vector<32x128xf32>
    %1051 = arith.mulf %1044, %1050 : vector<32x128xf32>
    %cst_603 = arith.constant dense<0.000000e+00> : vector<128xf32>
    %1052 = vector.multi_reduction <add>, %1051, %cst_603 [0] : vector<32x128xf32> to vector<128xf32>
    %1053 = vector.shape_cast %1052 : vector<128xf32> to vector<1x128xf32>
    %1054 = vector.broadcast %1053 : vector<1x128xf32> to vector<32x128xf32>
    %1055 = arith.mulf %1044, %1054 : vector<32x128xf32>
    %1056 = arith.subf %1050, %1055 : vector<32x128xf32>
    %c3_604 = arith.constant 3 : index
    %c0_605 = arith.constant 0 : index
    %c0_606 = arith.constant 0 : index
    %1057 = vector.load %arg4[%c3_604, %c0_605, %c0_606] : memref<8x32x128xf32, #tpu.memory_space<vmem>>, vector<1x32x128xf32>
    %1058 = vector.shape_cast %1057 : vector<1x32x128xf32> to vector<32x128xf32>
    %1059 = vector.shape_cast %1056 : vector<32x128xf32> to vector<1x32x128xf32>
    tpu.vector_store %arg4[%c3_604, %c0_605, %c0_606], %1059 {strides = array<i32>} : memref<8x32x128xf32, #tpu.memory_space<vmem>>, vector<1x32x128xf32>,
    %c4_607 = arith.constant 4 : index
    %c0_608 = arith.constant 0 : index
    %c0_609 = arith.constant 0 : index
    %1060 = vector.load %arg4[%c4_607, %c0_608, %c0_609] : memref<8x32x128xf32, #tpu.memory_space<vmem>>, vector<1x32x128xf32>
    %1061 = vector.shape_cast %1060 : vector<1x32x128xf32> to vector<32x128xf32>
    %1062 = arith.mulf %1044, %1061 : vector<32x128xf32>
    %cst_610 = arith.constant dense<0.000000e+00> : vector<128xf32>
    %1063 = vector.multi_reduction <add>, %1062, %cst_610 [0] : vector<32x128xf32> to vector<128xf32>
    %1064 = vector.shape_cast %1063 : vector<128xf32> to vector<1x128xf32>
    %1065 = vector.broadcast %1064 : vector<1x128xf32> to vector<32x128xf32>
    %1066 = arith.mulf %1044, %1065 : vector<32x128xf32>
    %1067 = arith.subf %1061, %1066 : vector<32x128xf32>
    %c4_611 = arith.constant 4 : index
    %c0_612 = arith.constant 0 : index
    %c0_613 = arith.constant 0 : index
    %1068 = vector.load %arg4[%c4_611, %c0_612, %c0_613] : memref<8x32x128xf32, #tpu.memory_space<vmem>>, vector<1x32x128xf32>
    %1069 = vector.shape_cast %1068 : vector<1x32x128xf32> to vector<32x128xf32>
    %1070 = vector.shape_cast %1067 : vector<32x128xf32> to vector<1x32x128xf32>
    tpu.vector_store %arg4[%c4_611, %c0_612, %c0_613], %1070 {strides = array<i32>} : memref<8x32x128xf32, #tpu.memory_space<vmem>>, vector<1x32x128xf32>,
    %c5_614 = arith.constant 5 : index
    %c0_615 = arith.constant 0 : index
    %c0_616 = arith.constant 0 : index
    %1071 = vector.load %arg4[%c5_614, %c0_615, %c0_616] : memref<8x32x128xf32, #tpu.memory_space<vmem>>, vector<1x32x128xf32>
    %1072 = vector.shape_cast %1071 : vector<1x32x128xf32> to vector<32x128xf32>
    %1073 = arith.mulf %1044, %1072 : vector<32x128xf32>
    %cst_617 = arith.constant dense<0.000000e+00> : vector<128xf32>
    %1074 = vector.multi_reduction <add>, %1073, %cst_617 [0] : vector<32x128xf32> to vector<128xf32>
    %1075 = vector.shape_cast %1074 : vector<128xf32> to vector<1x128xf32>
    %1076 = vector.broadcast %1075 : vector<1x128xf32> to vector<32x128xf32>
    %1077 = arith.mulf %1044, %1076 : vector<32x128xf32>
    %1078 = arith.subf %1072, %1077 : vector<32x128xf32>
    %c5_618 = arith.constant 5 : index
    %c0_619 = arith.constant 0 : index
    %c0_620 = arith.constant 0 : index
    %1079 = vector.load %arg4[%c5_618, %c0_619, %c0_620] : memref<8x32x128xf32, #tpu.memory_space<vmem>>, vector<1x32x128xf32>
    %1080 = vector.shape_cast %1079 : vector<1x32x128xf32> to vector<32x128xf32>
    %1081 = vector.shape_cast %1078 : vector<32x128xf32> to vector<1x32x128xf32>
    tpu.vector_store %arg4[%c5_618, %c0_619, %c0_620], %1081 {strides = array<i32>} : memref<8x32x128xf32, #tpu.memory_space<vmem>>, vector<1x32x128xf32>,
    %c6_621 = arith.constant 6 : index
    %c0_622 = arith.constant 0 : index
    %c0_623 = arith.constant 0 : index
    %1082 = vector.load %arg4[%c6_621, %c0_622, %c0_623] : memref<8x32x128xf32, #tpu.memory_space<vmem>>, vector<1x32x128xf32>
    %1083 = vector.shape_cast %1082 : vector<1x32x128xf32> to vector<32x128xf32>
    %1084 = arith.mulf %1044, %1083 : vector<32x128xf32>
    %cst_624 = arith.constant dense<0.000000e+00> : vector<128xf32>
    %1085 = vector.multi_reduction <add>, %1084, %cst_624 [0] : vector<32x128xf32> to vector<128xf32>
    %1086 = vector.shape_cast %1085 : vector<128xf32> to vector<1x128xf32>
    %1087 = vector.broadcast %1086 : vector<1x128xf32> to vector<32x128xf32>
    %1088 = arith.mulf %1044, %1087 : vector<32x128xf32>
    %1089 = arith.subf %1083, %1088 : vector<32x128xf32>
    %c6_625 = arith.constant 6 : index
    %c0_626 = arith.constant 0 : index
    %c0_627 = arith.constant 0 : index
    %1090 = vector.load %arg4[%c6_625, %c0_626, %c0_627] : memref<8x32x128xf32, #tpu.memory_space<vmem>>, vector<1x32x128xf32>
    %1091 = vector.shape_cast %1090 : vector<1x32x128xf32> to vector<32x128xf32>
    %1092 = vector.shape_cast %1089 : vector<32x128xf32> to vector<1x32x128xf32>
    tpu.vector_store %arg4[%c6_625, %c0_626, %c0_627], %1092 {strides = array<i32>} : memref<8x32x128xf32, #tpu.memory_space<vmem>>, vector<1x32x128xf32>,
    %c7_628 = arith.constant 7 : index
    %c0_629 = arith.constant 0 : index
    %c0_630 = arith.constant 0 : index
    %1093 = vector.load %arg4[%c7_628, %c0_629, %c0_630] : memref<8x32x128xf32, #tpu.memory_space<vmem>>, vector<1x32x128xf32>
    %1094 = vector.shape_cast %1093 : vector<1x32x128xf32> to vector<32x128xf32>
    %1095 = arith.mulf %1044, %1094 : vector<32x128xf32>
    %cst_631 = arith.constant dense<0.000000e+00> : vector<128xf32>
    %1096 = vector.multi_reduction <add>, %1095, %cst_631 [0] : vector<32x128xf32> to vector<128xf32>
    %1097 = vector.shape_cast %1096 : vector<128xf32> to vector<1x128xf32>
    %1098 = vector.broadcast %1097 : vector<1x128xf32> to vector<32x128xf32>
    %1099 = arith.mulf %1044, %1098 : vector<32x128xf32>
    %1100 = arith.subf %1094, %1099 : vector<32x128xf32>
    %c7_632 = arith.constant 7 : index
    %c0_633 = arith.constant 0 : index
    %c0_634 = arith.constant 0 : index
    %1101 = vector.load %arg4[%c7_632, %c0_633, %c0_634] : memref<8x32x128xf32, #tpu.memory_space<vmem>>, vector<1x32x128xf32>
    %1102 = vector.shape_cast %1101 : vector<1x32x128xf32> to vector<32x128xf32>
    %1103 = vector.shape_cast %1100 : vector<32x128xf32> to vector<1x32x128xf32>
    tpu.vector_store %arg4[%c7_632, %c0_633, %c0_634], %1103 {strides = array<i32>} : memref<8x32x128xf32, #tpu.memory_space<vmem>>, vector<1x32x128xf32>,
    %c3_635 = arith.constant 3 : index
    %c0_636 = arith.constant 0 : index
    %c0_637 = arith.constant 0 : index
    %1104 = vector.load %arg4[%c3_635, %c0_636, %c0_637] : memref<8x32x128xf32, #tpu.memory_space<vmem>>, vector<1x32x128xf32>
    %1105 = vector.shape_cast %1104 : vector<1x32x128xf32> to vector<32x128xf32>
    %1106 = arith.mulf %1105, %1105 : vector<32x128xf32>
    %cst_638 = arith.constant dense<0.000000e+00> : vector<128xf32>
    %1107 = vector.multi_reduction <add>, %1106, %cst_638 [0] : vector<32x128xf32> to vector<128xf32>
    %1108 = vector.shape_cast %1107 : vector<128xf32> to vector<1x128xf32>
    %1109 = math.rsqrt %1108 : vector<1x128xf32>
    %1110 = vector.broadcast %1109 : vector<1x128xf32> to vector<32x128xf32>
    %1111 = arith.mulf %1105, %1110 : vector<32x128xf32>
    %1112 = arith.index_cast %1 : i32 to index
    %c3_639 = arith.constant 3 : index
    %c0_640 = arith.constant 0 : index
    %c0_641 = arith.constant 0 : index
    %1113 = vector.load %arg3[%1112, %c3_639, %c0_640, %c0_641] : memref<1x8x32x128xf32, #tpu.memory_space<vmem>>, vector<1x1x32x128xf32>
    %1114 = vector.shape_cast %1113 : vector<1x1x32x128xf32> to vector<32x128xf32>
    %1115 = vector.shape_cast %1111 : vector<32x128xf32> to vector<1x1x32x128xf32>
    tpu.vector_store %arg3[%1112, %c3_639, %c0_640, %c0_641], %1115 {strides = array<i32>} : memref<1x8x32x128xf32, #tpu.memory_space<vmem>>, vector<1x1x32x128xf32>,
    %c4_642 = arith.constant 4 : index
    %c0_643 = arith.constant 0 : index
    %c0_644 = arith.constant 0 : index
    %1116 = vector.load %arg4[%c4_642, %c0_643, %c0_644] : memref<8x32x128xf32, #tpu.memory_space<vmem>>, vector<1x32x128xf32>
    %1117 = vector.shape_cast %1116 : vector<1x32x128xf32> to vector<32x128xf32>
    %1118 = arith.mulf %1111, %1117 : vector<32x128xf32>
    %cst_645 = arith.constant dense<0.000000e+00> : vector<128xf32>
    %1119 = vector.multi_reduction <add>, %1118, %cst_645 [0] : vector<32x128xf32> to vector<128xf32>
    %1120 = vector.shape_cast %1119 : vector<128xf32> to vector<1x128xf32>
    %1121 = vector.broadcast %1120 : vector<1x128xf32> to vector<32x128xf32>
    %1122 = arith.mulf %1111, %1121 : vector<32x128xf32>
    %1123 = arith.subf %1117, %1122 : vector<32x128xf32>
    %c4_646 = arith.constant 4 : index
    %c0_647 = arith.constant 0 : index
    %c0_648 = arith.constant 0 : index
    %1124 = vector.load %arg4[%c4_646, %c0_647, %c0_648] : memref<8x32x128xf32, #tpu.memory_space<vmem>>, vector<1x32x128xf32>
    %1125 = vector.shape_cast %1124 : vector<1x32x128xf32> to vector<32x128xf32>
    %1126 = vector.shape_cast %1123 : vector<32x128xf32> to vector<1x32x128xf32>
    tpu.vector_store %arg4[%c4_646, %c0_647, %c0_648], %1126 {strides = array<i32>} : memref<8x32x128xf32, #tpu.memory_space<vmem>>, vector<1x32x128xf32>,
    %c5_649 = arith.constant 5 : index
    %c0_650 = arith.constant 0 : index
    %c0_651 = arith.constant 0 : index
    %1127 = vector.load %arg4[%c5_649, %c0_650, %c0_651] : memref<8x32x128xf32, #tpu.memory_space<vmem>>, vector<1x32x128xf32>
    %1128 = vector.shape_cast %1127 : vector<1x32x128xf32> to vector<32x128xf32>
    %1129 = arith.mulf %1111, %1128 : vector<32x128xf32>
    %cst_652 = arith.constant dense<0.000000e+00> : vector<128xf32>
    %1130 = vector.multi_reduction <add>, %1129, %cst_652 [0] : vector<32x128xf32> to vector<128xf32>
    %1131 = vector.shape_cast %1130 : vector<128xf32> to vector<1x128xf32>
    %1132 = vector.broadcast %1131 : vector<1x128xf32> to vector<32x128xf32>
    %1133 = arith.mulf %1111, %1132 : vector<32x128xf32>
    %1134 = arith.subf %1128, %1133 : vector<32x128xf32>
    %c5_653 = arith.constant 5 : index
    %c0_654 = arith.constant 0 : index
    %c0_655 = arith.constant 0 : index
    %1135 = vector.load %arg4[%c5_653, %c0_654, %c0_655] : memref<8x32x128xf32, #tpu.memory_space<vmem>>, vector<1x32x128xf32>
    %1136 = vector.shape_cast %1135 : vector<1x32x128xf32> to vector<32x128xf32>
    %1137 = vector.shape_cast %1134 : vector<32x128xf32> to vector<1x32x128xf32>
    tpu.vector_store %arg4[%c5_653, %c0_654, %c0_655], %1137 {strides = array<i32>} : memref<8x32x128xf32, #tpu.memory_space<vmem>>, vector<1x32x128xf32>,
    %c6_656 = arith.constant 6 : index
    %c0_657 = arith.constant 0 : index
    %c0_658 = arith.constant 0 : index
    %1138 = vector.load %arg4[%c6_656, %c0_657, %c0_658] : memref<8x32x128xf32, #tpu.memory_space<vmem>>, vector<1x32x128xf32>
    %1139 = vector.shape_cast %1138 : vector<1x32x128xf32> to vector<32x128xf32>
    %1140 = arith.mulf %1111, %1139 : vector<32x128xf32>
    %cst_659 = arith.constant dense<0.000000e+00> : vector<128xf32>
    %1141 = vector.multi_reduction <add>, %1140, %cst_659 [0] : vector<32x128xf32> to vector<128xf32>
    %1142 = vector.shape_cast %1141 : vector<128xf32> to vector<1x128xf32>
    %1143 = vector.broadcast %1142 : vector<1x128xf32> to vector<32x128xf32>
    %1144 = arith.mulf %1111, %1143 : vector<32x128xf32>
    %1145 = arith.subf %1139, %1144 : vector<32x128xf32>
    %c6_660 = arith.constant 6 : index
    %c0_661 = arith.constant 0 : index
    %c0_662 = arith.constant 0 : index
    %1146 = vector.load %arg4[%c6_660, %c0_661, %c0_662] : memref<8x32x128xf32, #tpu.memory_space<vmem>>, vector<1x32x128xf32>
    %1147 = vector.shape_cast %1146 : vector<1x32x128xf32> to vector<32x128xf32>
    %1148 = vector.shape_cast %1145 : vector<32x128xf32> to vector<1x32x128xf32>
    tpu.vector_store %arg4[%c6_660, %c0_661, %c0_662], %1148 {strides = array<i32>} : memref<8x32x128xf32, #tpu.memory_space<vmem>>, vector<1x32x128xf32>,
    %c7_663 = arith.constant 7 : index
    %c0_664 = arith.constant 0 : index
    %c0_665 = arith.constant 0 : index
    %1149 = vector.load %arg4[%c7_663, %c0_664, %c0_665] : memref<8x32x128xf32, #tpu.memory_space<vmem>>, vector<1x32x128xf32>
    %1150 = vector.shape_cast %1149 : vector<1x32x128xf32> to vector<32x128xf32>
    %1151 = arith.mulf %1111, %1150 : vector<32x128xf32>
    %cst_666 = arith.constant dense<0.000000e+00> : vector<128xf32>
    %1152 = vector.multi_reduction <add>, %1151, %cst_666 [0] : vector<32x128xf32> to vector<128xf32>
    %1153 = vector.shape_cast %1152 : vector<128xf32> to vector<1x128xf32>
    %1154 = vector.broadcast %1153 : vector<1x128xf32> to vector<32x128xf32>
    %1155 = arith.mulf %1111, %1154 : vector<32x128xf32>
    %1156 = arith.subf %1150, %1155 : vector<32x128xf32>
    %c7_667 = arith.constant 7 : index
    %c0_668 = arith.constant 0 : index
    %c0_669 = arith.constant 0 : index
    %1157 = vector.load %arg4[%c7_667, %c0_668, %c0_669] : memref<8x32x128xf32, #tpu.memory_space<vmem>>, vector<1x32x128xf32>
    %1158 = vector.shape_cast %1157 : vector<1x32x128xf32> to vector<32x128xf32>
    %1159 = vector.shape_cast %1156 : vector<32x128xf32> to vector<1x32x128xf32>
    tpu.vector_store %arg4[%c7_667, %c0_668, %c0_669], %1159 {strides = array<i32>} : memref<8x32x128xf32, #tpu.memory_space<vmem>>, vector<1x32x128xf32>,
    %c4_670 = arith.constant 4 : index
    %c0_671 = arith.constant 0 : index
    %c0_672 = arith.constant 0 : index
    %1160 = vector.load %arg4[%c4_670, %c0_671, %c0_672] : memref<8x32x128xf32, #tpu.memory_space<vmem>>, vector<1x32x128xf32>
    %1161 = vector.shape_cast %1160 : vector<1x32x128xf32> to vector<32x128xf32>
    %1162 = arith.mulf %1161, %1161 : vector<32x128xf32>
    %cst_673 = arith.constant dense<0.000000e+00> : vector<128xf32>
    %1163 = vector.multi_reduction <add>, %1162, %cst_673 [0] : vector<32x128xf32> to vector<128xf32>
    %1164 = vector.shape_cast %1163 : vector<128xf32> to vector<1x128xf32>
    %1165 = math.rsqrt %1164 : vector<1x128xf32>
    %1166 = vector.broadcast %1165 : vector<1x128xf32> to vector<32x128xf32>
    %1167 = arith.mulf %1161, %1166 : vector<32x128xf32>
    %1168 = arith.index_cast %1 : i32 to index
    %c4_674 = arith.constant 4 : index
    %c0_675 = arith.constant 0 : index
    %c0_676 = arith.constant 0 : index
    %1169 = vector.load %arg3[%1168, %c4_674, %c0_675, %c0_676] : memref<1x8x32x128xf32, #tpu.memory_space<vmem>>, vector<1x1x32x128xf32>
    %1170 = vector.shape_cast %1169 : vector<1x1x32x128xf32> to vector<32x128xf32>
    %1171 = vector.shape_cast %1167 : vector<32x128xf32> to vector<1x1x32x128xf32>
    tpu.vector_store %arg3[%1168, %c4_674, %c0_675, %c0_676], %1171 {strides = array<i32>} : memref<1x8x32x128xf32, #tpu.memory_space<vmem>>, vector<1x1x32x128xf32>,
    %c5_677 = arith.constant 5 : index
    %c0_678 = arith.constant 0 : index
    %c0_679 = arith.constant 0 : index
    %1172 = vector.load %arg4[%c5_677, %c0_678, %c0_679] : memref<8x32x128xf32, #tpu.memory_space<vmem>>, vector<1x32x128xf32>
    %1173 = vector.shape_cast %1172 : vector<1x32x128xf32> to vector<32x128xf32>
    %1174 = arith.mulf %1167, %1173 : vector<32x128xf32>
    %cst_680 = arith.constant dense<0.000000e+00> : vector<128xf32>
    %1175 = vector.multi_reduction <add>, %1174, %cst_680 [0] : vector<32x128xf32> to vector<128xf32>
    %1176 = vector.shape_cast %1175 : vector<128xf32> to vector<1x128xf32>
    %1177 = vector.broadcast %1176 : vector<1x128xf32> to vector<32x128xf32>
    %1178 = arith.mulf %1167, %1177 : vector<32x128xf32>
    %1179 = arith.subf %1173, %1178 : vector<32x128xf32>
    %c5_681 = arith.constant 5 : index
    %c0_682 = arith.constant 0 : index
    %c0_683 = arith.constant 0 : index
    %1180 = vector.load %arg4[%c5_681, %c0_682, %c0_683] : memref<8x32x128xf32, #tpu.memory_space<vmem>>, vector<1x32x128xf32>
    %1181 = vector.shape_cast %1180 : vector<1x32x128xf32> to vector<32x128xf32>
    %1182 = vector.shape_cast %1179 : vector<32x128xf32> to vector<1x32x128xf32>
    tpu.vector_store %arg4[%c5_681, %c0_682, %c0_683], %1182 {strides = array<i32>} : memref<8x32x128xf32, #tpu.memory_space<vmem>>, vector<1x32x128xf32>,
    %c6_684 = arith.constant 6 : index
    %c0_685 = arith.constant 0 : index
    %c0_686 = arith.constant 0 : index
    %1183 = vector.load %arg4[%c6_684, %c0_685, %c0_686] : memref<8x32x128xf32, #tpu.memory_space<vmem>>, vector<1x32x128xf32>
    %1184 = vector.shape_cast %1183 : vector<1x32x128xf32> to vector<32x128xf32>
    %1185 = arith.mulf %1167, %1184 : vector<32x128xf32>
    %cst_687 = arith.constant dense<0.000000e+00> : vector<128xf32>
    %1186 = vector.multi_reduction <add>, %1185, %cst_687 [0] : vector<32x128xf32> to vector<128xf32>
    %1187 = vector.shape_cast %1186 : vector<128xf32> to vector<1x128xf32>
    %1188 = vector.broadcast %1187 : vector<1x128xf32> to vector<32x128xf32>
    %1189 = arith.mulf %1167, %1188 : vector<32x128xf32>
    %1190 = arith.subf %1184, %1189 : vector<32x128xf32>
    %c6_688 = arith.constant 6 : index
    %c0_689 = arith.constant 0 : index
    %c0_690 = arith.constant 0 : index
    %1191 = vector.load %arg4[%c6_688, %c0_689, %c0_690] : memref<8x32x128xf32, #tpu.memory_space<vmem>>, vector<1x32x128xf32>
    %1192 = vector.shape_cast %1191 : vector<1x32x128xf32> to vector<32x128xf32>
    %1193 = vector.shape_cast %1190 : vector<32x128xf32> to vector<1x32x128xf32>
    tpu.vector_store %arg4[%c6_688, %c0_689, %c0_690], %1193 {strides = array<i32>} : memref<8x32x128xf32, #tpu.memory_space<vmem>>, vector<1x32x128xf32>,
    %c7_691 = arith.constant 7 : index
    %c0_692 = arith.constant 0 : index
    %c0_693 = arith.constant 0 : index
    %1194 = vector.load %arg4[%c7_691, %c0_692, %c0_693] : memref<8x32x128xf32, #tpu.memory_space<vmem>>, vector<1x32x128xf32>
    %1195 = vector.shape_cast %1194 : vector<1x32x128xf32> to vector<32x128xf32>
    %1196 = arith.mulf %1167, %1195 : vector<32x128xf32>
    %cst_694 = arith.constant dense<0.000000e+00> : vector<128xf32>
    %1197 = vector.multi_reduction <add>, %1196, %cst_694 [0] : vector<32x128xf32> to vector<128xf32>
    %1198 = vector.shape_cast %1197 : vector<128xf32> to vector<1x128xf32>
    %1199 = vector.broadcast %1198 : vector<1x128xf32> to vector<32x128xf32>
    %1200 = arith.mulf %1167, %1199 : vector<32x128xf32>
    %1201 = arith.subf %1195, %1200 : vector<32x128xf32>
    %c7_695 = arith.constant 7 : index
    %c0_696 = arith.constant 0 : index
    %c0_697 = arith.constant 0 : index
    %1202 = vector.load %arg4[%c7_695, %c0_696, %c0_697] : memref<8x32x128xf32, #tpu.memory_space<vmem>>, vector<1x32x128xf32>
    %1203 = vector.shape_cast %1202 : vector<1x32x128xf32> to vector<32x128xf32>
    %1204 = vector.shape_cast %1201 : vector<32x128xf32> to vector<1x32x128xf32>
    tpu.vector_store %arg4[%c7_695, %c0_696, %c0_697], %1204 {strides = array<i32>} : memref<8x32x128xf32, #tpu.memory_space<vmem>>, vector<1x32x128xf32>,
    %c5_698 = arith.constant 5 : index
    %c0_699 = arith.constant 0 : index
    %c0_700 = arith.constant 0 : index
    %1205 = vector.load %arg4[%c5_698, %c0_699, %c0_700] : memref<8x32x128xf32, #tpu.memory_space<vmem>>, vector<1x32x128xf32>
    %1206 = vector.shape_cast %1205 : vector<1x32x128xf32> to vector<32x128xf32>
    %1207 = arith.mulf %1206, %1206 : vector<32x128xf32>
    %cst_701 = arith.constant dense<0.000000e+00> : vector<128xf32>
    %1208 = vector.multi_reduction <add>, %1207, %cst_701 [0] : vector<32x128xf32> to vector<128xf32>
    %1209 = vector.shape_cast %1208 : vector<128xf32> to vector<1x128xf32>
    %1210 = math.rsqrt %1209 : vector<1x128xf32>
    %1211 = vector.broadcast %1210 : vector<1x128xf32> to vector<32x128xf32>
    %1212 = arith.mulf %1206, %1211 : vector<32x128xf32>
    %1213 = arith.index_cast %1 : i32 to index
    %c5_702 = arith.constant 5 : index
    %c0_703 = arith.constant 0 : index
    %c0_704 = arith.constant 0 : index
    %1214 = vector.load %arg3[%1213, %c5_702, %c0_703, %c0_704] : memref<1x8x32x128xf32, #tpu.memory_space<vmem>>, vector<1x1x32x128xf32>
    %1215 = vector.shape_cast %1214 : vector<1x1x32x128xf32> to vector<32x128xf32>
    %1216 = vector.shape_cast %1212 : vector<32x128xf32> to vector<1x1x32x128xf32>
    tpu.vector_store %arg3[%1213, %c5_702, %c0_703, %c0_704], %1216 {strides = array<i32>} : memref<1x8x32x128xf32, #tpu.memory_space<vmem>>, vector<1x1x32x128xf32>,
    %c6_705 = arith.constant 6 : index
    %c0_706 = arith.constant 0 : index
    %c0_707 = arith.constant 0 : index
    %1217 = vector.load %arg4[%c6_705, %c0_706, %c0_707] : memref<8x32x128xf32, #tpu.memory_space<vmem>>, vector<1x32x128xf32>
    %1218 = vector.shape_cast %1217 : vector<1x32x128xf32> to vector<32x128xf32>
    %1219 = arith.mulf %1212, %1218 : vector<32x128xf32>
    %cst_708 = arith.constant dense<0.000000e+00> : vector<128xf32>
    %1220 = vector.multi_reduction <add>, %1219, %cst_708 [0] : vector<32x128xf32> to vector<128xf32>
    %1221 = vector.shape_cast %1220 : vector<128xf32> to vector<1x128xf32>
    %1222 = vector.broadcast %1221 : vector<1x128xf32> to vector<32x128xf32>
    %1223 = arith.mulf %1212, %1222 : vector<32x128xf32>
    %1224 = arith.subf %1218, %1223 : vector<32x128xf32>
    %c6_709 = arith.constant 6 : index
    %c0_710 = arith.constant 0 : index
    %c0_711 = arith.constant 0 : index
    %1225 = vector.load %arg4[%c6_709, %c0_710, %c0_711] : memref<8x32x128xf32, #tpu.memory_space<vmem>>, vector<1x32x128xf32>
    %1226 = vector.shape_cast %1225 : vector<1x32x128xf32> to vector<32x128xf32>
    %1227 = vector.shape_cast %1224 : vector<32x128xf32> to vector<1x32x128xf32>
    tpu.vector_store %arg4[%c6_709, %c0_710, %c0_711], %1227 {strides = array<i32>} : memref<8x32x128xf32, #tpu.memory_space<vmem>>, vector<1x32x128xf32>,
    %c7_712 = arith.constant 7 : index
    %c0_713 = arith.constant 0 : index
    %c0_714 = arith.constant 0 : index
    %1228 = vector.load %arg4[%c7_712, %c0_713, %c0_714] : memref<8x32x128xf32, #tpu.memory_space<vmem>>, vector<1x32x128xf32>
    %1229 = vector.shape_cast %1228 : vector<1x32x128xf32> to vector<32x128xf32>
    %1230 = arith.mulf %1212, %1229 : vector<32x128xf32>
    %cst_715 = arith.constant dense<0.000000e+00> : vector<128xf32>
    %1231 = vector.multi_reduction <add>, %1230, %cst_715 [0] : vector<32x128xf32> to vector<128xf32>
    %1232 = vector.shape_cast %1231 : vector<128xf32> to vector<1x128xf32>
    %1233 = vector.broadcast %1232 : vector<1x128xf32> to vector<32x128xf32>
    %1234 = arith.mulf %1212, %1233 : vector<32x128xf32>
    %1235 = arith.subf %1229, %1234 : vector<32x128xf32>
    %c7_716 = arith.constant 7 : index
    %c0_717 = arith.constant 0 : index
    %c0_718 = arith.constant 0 : index
    %1236 = vector.load %arg4[%c7_716, %c0_717, %c0_718] : memref<8x32x128xf32, #tpu.memory_space<vmem>>, vector<1x32x128xf32>
    %1237 = vector.shape_cast %1236 : vector<1x32x128xf32> to vector<32x128xf32>
    %1238 = vector.shape_cast %1235 : vector<32x128xf32> to vector<1x32x128xf32>
    tpu.vector_store %arg4[%c7_716, %c0_717, %c0_718], %1238 {strides = array<i32>} : memref<8x32x128xf32, #tpu.memory_space<vmem>>, vector<1x32x128xf32>,
    %c6_719 = arith.constant 6 : index
    %c0_720 = arith.constant 0 : index
    %c0_721 = arith.constant 0 : index
    %1239 = vector.load %arg4[%c6_719, %c0_720, %c0_721] : memref<8x32x128xf32, #tpu.memory_space<vmem>>, vector<1x32x128xf32>
    %1240 = vector.shape_cast %1239 : vector<1x32x128xf32> to vector<32x128xf32>
    %1241 = arith.mulf %1240, %1240 : vector<32x128xf32>
    %cst_722 = arith.constant dense<0.000000e+00> : vector<128xf32>
    %1242 = vector.multi_reduction <add>, %1241, %cst_722 [0] : vector<32x128xf32> to vector<128xf32>
    %1243 = vector.shape_cast %1242 : vector<128xf32> to vector<1x128xf32>
    %1244 = math.rsqrt %1243 : vector<1x128xf32>
    %1245 = vector.broadcast %1244 : vector<1x128xf32> to vector<32x128xf32>
    %1246 = arith.mulf %1240, %1245 : vector<32x128xf32>
    %1247 = arith.index_cast %1 : i32 to index
    %c6_723 = arith.constant 6 : index
    %c0_724 = arith.constant 0 : index
    %c0_725 = arith.constant 0 : index
    %1248 = vector.load %arg3[%1247, %c6_723, %c0_724, %c0_725] : memref<1x8x32x128xf32, #tpu.memory_space<vmem>>, vector<1x1x32x128xf32>
    %1249 = vector.shape_cast %1248 : vector<1x1x32x128xf32> to vector<32x128xf32>
    %1250 = vector.shape_cast %1246 : vector<32x128xf32> to vector<1x1x32x128xf32>
    tpu.vector_store %arg3[%1247, %c6_723, %c0_724, %c0_725], %1250 {strides = array<i32>} : memref<1x8x32x128xf32, #tpu.memory_space<vmem>>, vector<1x1x32x128xf32>,
    %c7_726 = arith.constant 7 : index
    %c0_727 = arith.constant 0 : index
    %c0_728 = arith.constant 0 : index
    %1251 = vector.load %arg4[%c7_726, %c0_727, %c0_728] : memref<8x32x128xf32, #tpu.memory_space<vmem>>, vector<1x32x128xf32>
    %1252 = vector.shape_cast %1251 : vector<1x32x128xf32> to vector<32x128xf32>
    %1253 = arith.mulf %1246, %1252 : vector<32x128xf32>
    %cst_729 = arith.constant dense<0.000000e+00> : vector<128xf32>
    %1254 = vector.multi_reduction <add>, %1253, %cst_729 [0] : vector<32x128xf32> to vector<128xf32>
    %1255 = vector.shape_cast %1254 : vector<128xf32> to vector<1x128xf32>
    %1256 = vector.broadcast %1255 : vector<1x128xf32> to vector<32x128xf32>
    %1257 = arith.mulf %1246, %1256 : vector<32x128xf32>
    %1258 = arith.subf %1252, %1257 : vector<32x128xf32>
    %c7_730 = arith.constant 7 : index
    %c0_731 = arith.constant 0 : index
    %c0_732 = arith.constant 0 : index
    %1259 = vector.load %arg4[%c7_730, %c0_731, %c0_732] : memref<8x32x128xf32, #tpu.memory_space<vmem>>, vector<1x32x128xf32>
    %1260 = vector.shape_cast %1259 : vector<1x32x128xf32> to vector<32x128xf32>
    %1261 = vector.shape_cast %1258 : vector<32x128xf32> to vector<1x32x128xf32>
    tpu.vector_store %arg4[%c7_730, %c0_731, %c0_732], %1261 {strides = array<i32>} : memref<8x32x128xf32, #tpu.memory_space<vmem>>, vector<1x32x128xf32>,
    %c7_733 = arith.constant 7 : index
    %c0_734 = arith.constant 0 : index
    %c0_735 = arith.constant 0 : index
    %1262 = vector.load %arg4[%c7_733, %c0_734, %c0_735] : memref<8x32x128xf32, #tpu.memory_space<vmem>>, vector<1x32x128xf32>
    %1263 = vector.shape_cast %1262 : vector<1x32x128xf32> to vector<32x128xf32>
    %1264 = arith.mulf %1263, %1263 : vector<32x128xf32>
    %cst_736 = arith.constant dense<0.000000e+00> : vector<128xf32>
    %1265 = vector.multi_reduction <add>, %1264, %cst_736 [0] : vector<32x128xf32> to vector<128xf32>
    %1266 = vector.shape_cast %1265 : vector<128xf32> to vector<1x128xf32>
    %1267 = math.rsqrt %1266 : vector<1x128xf32>
    %1268 = vector.broadcast %1267 : vector<1x128xf32> to vector<32x128xf32>
    %1269 = arith.mulf %1263, %1268 : vector<32x128xf32>
    %1270 = arith.index_cast %1 : i32 to index
    %c7_737 = arith.constant 7 : index
    %c0_738 = arith.constant 0 : index
    %c0_739 = arith.constant 0 : index
    %1271 = vector.load %arg3[%1270, %c7_737, %c0_738, %c0_739] : memref<1x8x32x128xf32, #tpu.memory_space<vmem>>, vector<1x1x32x128xf32>
    %1272 = vector.shape_cast %1271 : vector<1x1x32x128xf32> to vector<32x128xf32>
    %1273 = vector.shape_cast %1269 : vector<32x128xf32> to vector<1x1x32x128xf32>
    tpu.vector_store %arg3[%1270, %c7_737, %c0_738, %c0_739], %1273 {strides = array<i32>} : memref<1x8x32x128xf32, #tpu.memory_space<vmem>>, vector<1x1x32x128xf32>,
    %c1_i32_740 = arith.constant 1 : i32
    return
  }
  func.func @transform_0(%arg0: i32) -> (i32, i32, i32, i32) {
    %c0_i32 = arith.constant 0 : i32
    %c0_i32_0 = arith.constant 0 : i32
    %c0_i32_1 = arith.constant 0 : i32
    %c0_i32_2 = arith.constant 0 : i32
    return %arg0, %c0_i32, %c0_i32_0, %c0_i32_1 : i32, i32, i32, i32
  }
  func.func @transform_1(%arg0: i32) -> (i32, i32, i32, i32) {
    %c0_i32 = arith.constant 0 : i32
    %c0_i32_0 = arith.constant 0 : i32
    %c0_i32_1 = arith.constant 0 : i32
    %c0_i32_2 = arith.constant 0 : i32
    return %arg0, %c0_i32, %c0_i32_0, %c0_i32_1 : i32, i32, i32, i32
  }
  func.func @transform_2(%arg0: i32) -> (i32, i32, i32, i32) {
    %c0_i32 = arith.constant 0 : i32
    %c0_i32_0 = arith.constant 0 : i32
    %c0_i32_1 = arith.constant 0 : i32
    %c0_i32_2 = arith.constant 0 : i32
    return %arg0, %c0_i32, %c0_i32_0, %c0_i32_1 : i32, i32, i32, i32
  }
}

</mosaic_0001>

<bundles_post_ra>
// kernel: hand_optimizee_forward.1
= control target key start
LH: loop header
LB: loop body
LE: loop exit
PB: predicated region body
PF: predicated region fallthrough
CT: control target
= control target key end

     0   :  { %s6161_s1 = inlined_call_operand.vmem [shape: f32[1,8,32,128], index: 1, kind: input, shape index: {}, may-alias: {1,2}]   ;;  %s6162_s0 = inlined_call_operand.vmem [shape: f32[1,8,32,128], index: 0, kind: input, shape index: {}]   ;;  %s6163_s2 = inlined_call_operand.vmem [shape: f32[1,8,32,128], index: 2, kind: output, shape index: {}, may-alias: {1,2}]  }
   0x1   :  { %v3229_v0 = vld [vmem:[%s6161_s1] sm:$0xff]  ;;  %v3234_v1 = vld [vmem:[%s6161_s1 + $0x8] sm:$0xff]  ;;  %v3253_v6 = vld [vmem:[%s6161_s1 + $0x10] sm:$0xff] }
   0x2   :  { %v3239_v2 = vld [vmem:[%s6162_s0] sm:$0xff]  ;;  %v3244_v3 = vld [vmem:[%s6162_s0 + $0x8] sm:$0xff]  ;;  %6389 = vst [vmem:[#allocation3_spill] sm:$0xff] %v3253_v6  ;;  %v3258_v7 = vld [vmem:[%s6162_s0 + $0x10] sm:$0xff] }
   0x3   :  { %v19_v4 = vmul.f32 %v3239_v2, %v3229_v0  ;;  %v20_v5 = vmul.f32 %v3244_v3, %v3234_v1  ;;  %v3263_v8 = vld [vmem:[%s6161_s1 + $0x20] sm:$0xff]  ;;  %v3268_v9 = vld [vmem:[%s6161_s1 + $0x28] sm:$0xff]  ;;  %v3283_v12 = vld [vmem:[%s6161_s1 + $0x18] sm:$0xff]  ;;  %v21_v13 = vmul.f32 %v3258_v7, %v3253_v6 }
   0x4   :  { %v3273_v10 = vld [vmem:[%s6162_s0 + $0x20] sm:$0xff]  ;;  %v3278_v11 = vld [vmem:[%s6162_s0 + $0x28] sm:$0xff]  ;;  %6390 = vst [vmem:[#allocation4_spill] sm:$0xff] %v3283_v12  ;;  %v3290_v15 = vld [vmem:[%s6162_s0 + $0x18] sm:$0xff]  ;;  %v38_v17 = vmul.f32 %v3263_v8, %v3239_v2  ;;  %v39_v18 = vmul.f32 %v3268_v9, %v3244_v3 }
   0x5   :  { %v23_v14 = vadd.f32 %v20_v5, %v19_v4  ;;  %v3295_v16 = vld [vmem:[%s6161_s1 + $0x30] sm:$0xff]  ;;  %v47_v20 = vmul.f32 %v3273_v10, %v3229_v0  ;;  %v48_v21 = vmul.f32 %v3278_v11, %v3234_v1  ;;  %v3313_v22 = vld [vmem:[%s6161_s1 + $0x40] sm:$0xff]  ;;  %v3323_v24 = vld [vmem:[%s6161_s1 + $0x48] sm:$0xff]  ;;  %v22_v26 = vmul.f32 %v3290_v15, %v3283_v12 }
   0x6   :  { %v3304_v19 = vld [vmem:[%s6162_s0 + $0x30] sm:$0xff]  ;;  %6391 = vst [vmem:[#allocation5_spill] sm:$0xff] %v3313_v22  ;;  %v3318_v23 = vld [vmem:[%s6162_s0 + $0x40] sm:$0xff]  ;;  %v3328_v25 = vld [vmem:[%s6162_s0 + $0x48] sm:$0xff]  ;;  %v40_v29 = vmul.f32 %v3295_v16, %v3258_v7  ;;  %v70_v35 = vmul.f32 %v3313_v22, %v3239_v2  ;;  %v71_v37 = vmul.f32 %v3323_v24, %v3244_v3 }
   0x7   :  { %v24_v27 = vadd.f32 %v23_v14, %v21_v13  ;;  %v3335_v28 = vld [vmem:[%s6161_s1 + $0x38] sm:$0xff]  ;;  %v49_v30 = vmul.f32 %v3304_v19, %v3253_v6  ;;  %v51_v32 = vadd.f32 %v47_v20, %v38_v17  ;;  %v52_v33 = vadd.f32 %v48_v21, %v39_v18  ;;  %v3349_v34 = vld [vmem:[%s6161_s1 + $0x50] sm:$0xff]  ;;  %v3367_v40 = vld [vmem:[%s6161_s1 + $0x60] sm:$0xff] }
   0x8   :  { %v3344_v31 = vld [vmem:[%s6162_s0 + $0x38] sm:$0xff]  ;;  %6393 = vst [vmem:[#allocation7_spill] sm:$0xff] %v3349_v34  ;;  %v79_v36 = vmul.f32 %v3318_v23, %v3229_v0  ;;  %v3360_v38 = vld [vmem:[%s6162_s0 + $0x50] sm:$0xff]  ;;  %v80_v39 = vmul.f32 %v3328_v25, %v3234_v1  ;;  %v3372_v41 = vld [vmem:[%s6161_s1 + $0x68] sm:$0xff]  ;;  %v41_v42 = vmul.f32 %v3335_v28, %v3290_v15  ;;  %v72_v49 = vmul.f32 %v3349_v34, %v3258_v7 }
   0x9   :  { %6392 = vst [vmem:[#allocation6_spill] sm:$0xff] %v3344_v31  ;;  %v3379_v43 = vld [vmem:[%s6162_s0 + $0x60] sm:$0xff]  ;;  %v3384_v44 = vld [vmem:[%s6162_s0 + $0x68] sm:$0xff]  ;;  %v25_v46 = vadd.f32 %v24_v27, %v22_v26  ;;  %v50_v47 = vmul.f32 %v3344_v31, %v3283_v12  ;;  %v53_v48 = vadd.f32 %v49_v30, %v40_v29  ;;  %v55_v53 = vadd.f32 %v52_v33, %v51_v32  ;;  %v3413_v54 = vld [vmem:[%s6161_s1 + $0x58] sm:$0xff] }
   0xa   :  { %v3389_v45 = vld [vmem:[%s6161_s1 + $0x80] sm:$0xff]  ;;  %v3398_v50 = vld [vmem:[%s6161_s1 + $0x88] sm:$0xff]  ;;  %6394 = vst [vmem:[#allocation8_spill] sm:$0xff] %v3413_v54  ;;  %v3418_v55 = vld [vmem:[%s6162_s0 + $0x58] sm:$0xff]  ;;  %v81_v56 = vmul.f32 %v3360_v38, %v3253_v6  ;;  %v83_v57 = vadd.f32 %v79_v36, %v70_v35  ;;  %v102_v58 = vmul.f32 %v3367_v40, %v3239_v2  ;;  %v84_v59 = vadd.f32 %v80_v39, %v71_v37 }
   0xb   :  { %v3403_v51 = vld [vmem:[%s6162_s0 + $0x80] sm:$0xff]  ;;  %v3408_v52 = vld [vmem:[%s6162_s0 + $0x88] sm:$0xff]  ;;  %6395 = vst [vmem:[#allocation9_spill] sm:$0xff] %v3418_v55  ;;  %v3427_v60 = vld [vmem:[%s6161_s1 + $0x70] sm:$0xff]  ;;  %v103_v61 = vmul.f32 %v3372_v41, %v3244_v3  ;;  %v111_v62 = vmul.f32 %v3379_v43, %v3229_v0  ;;  %v112_v63 = vmul.f32 %v3384_v44, %v3234_v1  ;;  %v134_v5 = vmul.f32 %v3389_v45, %v3239_v2 }
   0xc   :  { %6396 = vst [vmem:[#allocation10_spill] sm:$0xff] %v3427_v60  ;;  %v3438_v4 = vld [vmem:[%s6162_s0 + $0x70] sm:$0xff]  ;;  %v135_v13 = vmul.f32 %v3398_v50, %v3244_v3  ;;  %v143_v14 = vmul.f32 %v3403_v51, %v3229_v0  ;;  %v144_v17 = vmul.f32 %v3408_v52, %v3234_v1  ;;  %v54_v18 = vadd.f32 %v50_v47, %v41_v42  ;;  %v3465_v29 = vld [vmem:[%s6161_s1 + $0xa0] sm:$0xff]  ;;  %v3472_v36 = vld [vmem:[%s6161_s1 + $0xa8] sm:$0xff] }
   0xd   :  { %6397 = vst [vmem:[#allocation11_spill] sm:$0xff] %v3438_v4  ;;  %v73_v20 = vmul.f32 %v3413_v54, %v3290_v15  ;;  %v82_v21 = vmul.f32 %v3418_v55, %v3283_v12  ;;  %v3455_v26 = vld [vmem:[%s6161_s1 + $0x90] sm:$0xff]  ;;  %6400 = vst [vmem:[#allocation14_spill] sm:$0xff] %v3465_v29  ;;  %v26_v30 = vrot.slane %v25_v46, 4  ;;  %v56_v32 = vadd.f32 %v55_v53, %v53_v48  ;;  %v3477_v37 = vld [vmem:[%s6162_s0 + $0xa0] sm:$0xff] }
   0xe   :  { %6398 = vst [vmem:[#allocation12_spill] sm:$0xff] %v3455_v26  ;;  %v3460_v27 = vld [vmem:[%s6162_s0 + $0x90] sm:$0xff]  ;;  %v85_v33 = vadd.f32 %v81_v56, %v72_v49  ;;  %v104_v35 = vmul.f32 %v3427_v60, %v3258_v7  ;;  %6401 = vst [vmem:[#allocation15_spill] sm:$0xff] %v3472_v36  ;;  %v3482_v39 = vld [vmem:[%s6162_s0 + $0xa8] sm:$0xff]  ;;  %v87_v42 = vadd.f32 %v84_v59, %v83_v57 }
   0xf   :  { %6399 = vst [vmem:[#allocation13_spill] sm:$0xff] %v3460_v27  ;;  %6402 = vst [vmem:[#allocation16_spill] sm:$0xff] %v3477_v37  ;;  %v3487_v47 = vld [vmem:[%s6161_s1 + $0x78] sm:$0xff]  ;;  %v113_v48 = vmul.f32 %v3438_v4, %v3253_v6  ;;  %v115_v49 = vadd.f32 %v111_v62, %v102_v58  ;;  %v116_v53 = vadd.f32 %v112_v63, %v103_v61 }
  0x10   :  { %6403 = vst [vmem:[#allocation17_spill] sm:$0xff] %v3482_v39  ;;  %6404 = vst [vmem:[#allocation18_spill] sm:$0xff] %v3487_v47  ;;  %v3494_v56 = vld [vmem:[%s6162_s0 + $0x78] sm:$0xff]  ;;  %v136_v55 = vmul.f32 %v3455_v26, %v3258_v7  ;;  %v145_v57 = vmul.f32 %v3460_v27, %v3253_v6  ;;  %v147_v59 = vadd.f32 %v143_v14, %v134_v5  ;;  %v3523_v26 = vld [vmem:[%s6161_s1 + $0xb0] sm:$0xff] }
  0x11   :  { %6405 = vst [vmem:[#allocation19_spill] sm:$0xff] %v3494_v56  ;;  %v148_v31 = vadd.f32 %v144_v17, %v135_v13  ;;  %v3503_v60 = vld [vmem:[%s6161_s1 + $0x98] sm:$0xff]  ;;  %v166_v61 = vmul.f32 %v3465_v29, %v3239_v2  ;;  %v167_v62 = vmul.f32 %v3472_v36, %v3244_v3  ;;  %v175_v63 = vmul.f32 %v3477_v37, %v3229_v0  ;;  %v3528_v36 = vld [vmem:[%s6162_s0 + $0xb0] sm:$0xff] }
  0x12   :  { %6406 = vst [vmem:[#allocation20_spill] sm:$0xff] %v3503_v60  ;;  %v3508_v58 = vld [vmem:[%s6162_s0 + $0x98] sm:$0xff]  ;;  %v176_v5 = vmul.f32 %v3482_v39, %v3234_v1  ;;  %v27_v13 = vadd.f32 %v26_v30, %v25_v46  ;;  %v57_v14 = vadd.f32 %v56_v32, %v54_v18  ;;  %v86_v17 = vadd.f32 %v82_v21, %v73_v20 }
  0x13   :  { %6407 = vst [vmem:[#allocation21_spill] sm:$0xff] %v3508_v58  ;;  %v105_v27 = vmul.f32 %v3487_v47, %v3290_v15  ;;  %6408 = vst [vmem:[#allocation22_spill] sm:$0xff] %v3523_v26  ;;  %v88_v37 = vadd.f32 %v87_v42, %v85_v33  ;;  %v114_v39 = vmul.f32 %v3494_v56, %v3283_v12 }
  0x14   :  { %6409 = vst [vmem:[#allocation23_spill] sm:$0xff] %v3528_v36  ;;  %v117_v46 = vadd.f32 %v113_v48, %v104_v35  ;;  %v119_v18 = vadd.f32 %v116_v53, %v115_v49  ;;  %v137_v20 = vmul.f32 %v3503_v60, %v3290_v15  ;;  %v146_v21 = vmul.f32 %v3508_v58, %v3283_v12  ;;  %v3543_v35 = vld [vmem:[%s6161_s1 + $0xb8] sm:$0xff]  ;;  %v3553_v53 = vld [vmem:[%s6161_s1 + $0xc0] sm:$0xff] }
  0x15   :  { %v149_v30 = vadd.f32 %v145_v57, %v136_v55  ;;  %v151_v32 = vadd.f32 %v148_v31, %v147_v59  ;;  %v168_v29 = vmul.f32 %v3523_v26, %v3258_v7  ;;  %v177_v47 = vmul.f32 %v3528_v36, %v3253_v6  ;;  %6410 = vst [vmem:[#allocation24_spill] sm:$0xff] %v3543_v35  ;;  %v3548_v48 = vld [vmem:[%s6162_s0 + $0xb8] sm:$0xff] }
  0x16   :  { %v179_v33 = vadd.f32 %v175_v63, %v166_v61  ;;  %v180_v42 = vadd.f32 %v176_v5, %v167_v62  ;;  %6411 = vst [vmem:[#allocation25_spill] sm:$0xff] %v3548_v48  ;;  %v28_v55 = vrot.slane %v27_v13, 2  ;;  %v58_v31 = vrot.slane %v57_v14, 4  ;;  %6412 = vst [vmem:[#allocation26_spill] sm:$0xff] %v3553_v53  ;;  %v3558_v63 = vld [vmem:[%s6161_s1 + $0xc8] sm:$0xff]  ;;  %v3563_v5 = vld [vmem:[%s6162_s0 + $0xc0] sm:$0xff] }
  0x17   :  { %v118_v49 = vadd.f32 %v114_v39, %v105_v27  ;;  %v89_v57 = vadd.f32 %v88_v37, %v86_v17  ;;  %v120_v59 = vadd.f32 %v119_v18, %v117_v46  ;;  %v150_v61 = vadd.f32 %v146_v21, %v137_v20  ;;  %6413 = vst [vmem:[#allocation27_spill] sm:$0xff] %v3558_v63  ;;  %v3568_v27 = vld [vmem:[%s6162_s0 + $0xc8] sm:$0xff]  ;;  %v3599_v26 = vld [vmem:[%s6161_s1 + $0xd8] sm:$0xff] }
  0x18   :  { %v152_v62 = vadd.f32 %v151_v32, %v149_v30  ;;  %6414 = vst [vmem:[#allocation28_spill] sm:$0xff] %v3563_v5  ;;  %6415 = vst [vmem:[#allocation29_spill] sm:$0xff] %v3568_v27  ;;  %v169_v37 = vmul.f32 %v3543_v35, %v3290_v15  ;;  %v178_v39 = vmul.f32 %v3548_v48, %v3283_v12 }
  0x19   :  { %v181_v17 = vadd.f32 %v177_v47, %v168_v29  ;;  %v183_v46 = vadd.f32 %v180_v42, %v179_v33  ;;  %v198_v18 = vmul.f32 %v3553_v53, %v3239_v2  ;;  %v199_v20 = vmul.f32 %v3558_v63, %v3244_v3  ;;  %v3585_v29 = vld [vmem:[%s6161_s1 + $0xd0] sm:$0xff]  ;;  %6418 = vst [vmem:[#allocation32_spill] sm:$0xff] %v3599_v26 }
  0x1a   :  { %v207_v21 = vmul.f32 %v3563_v5, %v3229_v0  ;;  %v208_v30 = vmul.f32 %v3568_v27, %v3234_v1  ;;  %v59_v32 = vadd.f32 %v58_v31, %v57_v14  ;;  %v90_v36 = vrot.slane %v89_v57, 4  ;;  %6416 = vst [vmem:[#allocation30_spill] sm:$0xff] %v3585_v29  ;;  %v3590_v47 = vld [vmem:[%s6162_s0 + $0xd0] sm:$0xff] }
  0x1b   :  { %v121_v35 = vadd.f32 %v120_v59, %v118_v49  ;;  %6417 = vst [vmem:[#allocation31_spill] sm:$0xff] %v3590_v47  ;;  %v29_v33 = vadd.f32 %v28_v55, %v27_v13  ;;  %v153_v42 = vadd.f32 %v152_v62, %v150_v61  ;;  %v182_v63 = vadd.f32 %v178_v39, %v169_v37  ;;  %v3604_v13 = vld [vmem:[%s6162_s0 + $0xd8] sm:$0xff]  ;;  %v3609_v37 = vld [vmem:[%s6161_s1 + $0xe0] sm:$0xff] }
  0x1c   :  { %v184_v5 = vadd.f32 %v183_v46, %v181_v17  ;;  %v200_v27 = vmul.f32 %v3585_v29, %v3258_v7  ;;  %v209_v14 = vmul.f32 %v3590_v47, %v3253_v6  ;;  %v211_v31 = vadd.f32 %v207_v21, %v198_v18  ;;  %6419 = vst [vmem:[#allocation33_spill] sm:$0xff] %v3604_v13  ;;  %v3618_v46 = vld [vmem:[%s6161_s1 + $0xe8] sm:$0xff] }
  0x1d   :  { %v212_v49 = vadd.f32 %v208_v30, %v199_v20  ;;  %v60_v59 = vrot.slane %v59_v32, 2  ;;  %v91_v53 = vadd.f32 %v90_v36, %v89_v57  ;;  %v122_v48 = vrot.slane %v121_v35, 4  ;;  %6420 = vst [vmem:[#allocation34_spill] sm:$0xff] %v3609_v37  ;;  %6421 = vst [vmem:[#allocation35_spill] sm:$0xff] %v3618_v46 }
  0x1e   :  { %v30_v55 = vrot.slane %v29_v33, 1  ;;  %v154_v61 = vrot.slane %v153_v42, 4  ;;  %v185_v62 = vadd.f32 %v184_v5, %v182_v63  ;;  %v201_v36 = vmul.f32 %v3599_v26, %v3290_v15  ;;  %v3623_v63 = vld [vmem:[%s6162_s0 + $0xe0] sm:$0xff]  ;;  %v3628_v5 = vld [vmem:[%s6162_s0 + $0xe8] sm:$0xff] }
  0x1f   :  { %v210_v57 = vmul.f32 %v3604_v13, %v3283_v12  ;;  %v213_v39 = vadd.f32 %v209_v14, %v200_v27  ;;  %v215_v17 = vadd.f32 %v212_v49, %v211_v31  ;;  %6422 = vst [vmem:[#allocation36_spill] sm:$0xff] %v3623_v63  ;;  %6423 = vst [vmem:[#allocation37_spill] sm:$0xff] %v3628_v5  ;;  %v92_v20 = vrot.slane %v91_v53, 2 }
  0x20   :  { %v61_v18 = vadd.f32 %v60_v59, %v59_v32  ;;  %v123_v21 = vadd.f32 %v122_v48, %v121_v35  ;;  %v31_v27 = vadd.f32 %v30_v55, %v29_v33  ;;  %v155_v30 = vadd.f32 %v154_v61, %v153_v42  ;;  %v3641_v35 = vld [vmem:[%s6161_s1 + $0xf0] sm:$0xff] }
  0x21   :  { %v186_v14 = vrot.slane %v185_v62, 4  ;;  %v230_v31 = vmul.f32 %v3609_v37, %v3239_v2  ;;  %v231_v49 = vmul.f32 %v3618_v46, %v3244_v3  ;;  %v239_v13 = vmul.f32 %v3623_v63, %v3229_v0  ;;  %6424 = vst [vmem:[#allocation38_spill] sm:$0xff] %v3641_v35  ;;  %v3646_v48 = vld [vmem:[%s6162_s0 + $0xf0] sm:$0xff] }
  0x22   :  { %v240_v26 = vmul.f32 %v3628_v5, %v3234_v1  ;;  %v214_v47 = vadd.f32 %v210_v57, %v201_v36  ;;  %v216_v29 = vadd.f32 %v215_v17, %v213_v39  ;;  %6425 = vst [vmem:[#allocation39_spill] sm:$0xff] %v3646_v48  ;;  %v62_v32 = vrot.slane %v61_v18, 1  ;;  %v3651_v36 = vld [vmem:[%s6161_s1 + $0xf8] sm:$0xff] }
  0x23   :  { %v93_v33 = vadd.f32 %v92_v20, %v91_v53  ;;  %v124_v42 = vrot.slane %v123_v21, 2  ;;  %v32_v59 = vmul.f32 0.1, %v31_v27  ;;  %v156_v55 = vrot.slane %v155_v30, 2  ;;  %v3658_v39 = vld [vmem:[%s6162_s0 + $0xf8] sm:$0xff] }
  0x24   :  { %v187_v61 = vadd.f32 %v186_v14, %v185_v62  ;;  %v232_v57 = vmul.f32 %v3641_v35, %v3258_v7  ;;  %v241_v53 = vmul.f32 %v3646_v48, %v3253_v6  ;;  %v243_v17 = vadd.f32 %v239_v13, %v230_v31 }
  0x25   :  { %v244_v20 = vadd.f32 %v240_v26, %v231_v49  ;;  %v217_v27 = vadd.f32 %v216_v29, %v214_v47  ;;  %v63_v62 = vadd.f32 %v62_v32, %v61_v18  ;;  %v94_v14 = vrot.slane %v93_v33, 1 }
  0x26   :  { %v125_v5 = vadd.f32 %v124_v42, %v123_v21  ;;  %v157_v63 = vadd.f32 %v156_v55, %v155_v30  ;;  %v188_v46 = vrot.slane %v187_v61, 2  ;;  %v233_v37 = vmul.f32 %v3651_v36, %v3290_v15 }
  0x27   :  { %v242_v35 = vmul.f32 %v3658_v39, %v3283_v12  ;;  %v245_v58 = vadd.f32 %v241_v53, %v232_v57  ;;  %v247_v60 = vadd.f32 %v244_v20, %v243_v17  ;;  %v261_v56 = vadd.f32 1.0, %v32_v59 }
  0x28   :  { %v218_v4 = vrot.slane %v217_v27, 4  ;;  %v257_v48 = vmul.f32 -0.1, %v3239_v2  ;;  %v95_v13 = vadd.f32 %v94_v14, %v93_v33  ;;  %v126_v26 = vrot.slane %v125_v5, 1 }
  0x29   :  { %v258_v29 = vmul.f32 -0.1, %v3244_v3  ;;  %v259_v47 = vmul.f32 -0.1, %v3258_v7  ;;  %v3669_v18 = vmul.f32 0.05, %v63_v62  ;;  %v189_v30 = vadd.f32 %v188_v46, %v187_v61 }
  0x2a   :  { %v158_v21 = vrot.slane %v157_v63, 1  ;;  %v246_v31 = vadd.f32 %v242_v35, %v233_v37  ;;  %v248_v49 = vadd.f32 %v247_v60, %v245_v58  ;;  %v262_v32 = vmul.f32 %v261_v56, %v3229_v0 }
  0x2b   :  { %v263_v42 = vmul.f32 %v261_v56, %v3234_v1  ;;  %v264_v59 = vmul.f32 %v261_v56, %v3253_v6  ;;  %v219_v55 = vadd.f32 %v218_v4, %v217_v27  ;;  %v260_v2 = vmul.f32 -0.1, %v3290_v15 }
  0x2c   :  { %v265_v33 = vmul.f32 %v261_v56, %v3283_v12  ;;  %v3676_v3 = vmul.f32 0.05, %v95_v13  ;;  %v127_v7 = vadd.f32 %v126_v26, %v125_v5  ;;  %v159_v57 = vadd.f32 %v158_v21, %v157_v63 }
  0x2d   :  { %v190_v53 = vrot.slane %v189_v30, 1  ;;  %v270_v37 = vmul.f32 %v3263_v8, %v3669_v18  ;;  %v271_v60 = vmul.f32 %v3268_v9, %v3669_v18  ;;  %v249_v58 = vadd.f32 %v248_v49, %v246_v31 }
  0x2e   :  { %6426 = vst [vmem:[#allocation40_spill] sm:$0xff] %v3676_v3  ;;  %v266_v46 = vadd.f32 %v262_v32, %v257_v48  ;;  %v267_v35 = vadd.f32 %v263_v42, %v258_v29  ;;  %v268_v61 = vadd.f32 %v264_v59, %v259_v47  ;;  %v220_v4 = vrot.slane %v219_v55, 2 }
  0x2f   :  { %v269_v17 = vadd.f32 %v265_v33, %v260_v2  ;;  %v272_v15 = vmul.f32 %v3295_v16, %v3669_v18  ;;  %v273_v56 = vmul.f32 %v3335_v28, %v3669_v18  ;;  %v3686_v63 = vmul.f32 0.05, %v127_v7 }
  0x30   :  { %v3688_v5 = vmul.f32 0.05, %v159_v57  ;;  %v3690_v20 = vadd.f32 %v190_v53, %v189_v30  ;;  %v250_v27 = vrot.slane %v249_v58, 4  ;;  %v274_v62 = vadd.f32 %v270_v37, %v266_v46 }
  0x31   :  { %6427 = vst [vmem:[#allocation41_spill] sm:$0xff] %v3686_v63  ;;  %v275_v14 = vadd.f32 %v271_v60, %v267_v35  ;;  %v3692_v48 = vadd.f32 %v220_v4, %v219_v55  ;;  %v276_v13 = vadd.f32 %v272_v15, %v268_v61  ;;  %v3694_v26 = vadd.f32 %v273_v56, %v269_v17 }
  0x32   :  { %6428 = vst [vmem:[#allocation42_spill] sm:$0xff] %v3688_v5  ;;  %v278_v29 = vmul.f32 %v3313_v22, %v3676_v3  ;;  %v356_v47 = vmul.f32 %v3313_v22, %v3273_v10  ;;  %v357_v21 = vmul.f32 %v3323_v24, %v3278_v11  ;;  %v364_v30 = vmul.f32 %v3318_v23, %v3263_v8 }
  0x33   :  { %v365_v31 = vmul.f32 %v3328_v25, %v3268_v9  ;;  %v279_v49 = vmul.f32 %v3323_v24, %v3676_v3  ;;  %v280_v32 = vmul.f32 %v3349_v34, %v3676_v3  ;;  %v338_v42 = vmul.f32 %v3273_v10, %v3263_v8 }
  0x34   :  { %v339_v59 = vmul.f32 %v3278_v11, %v3268_v9  ;;  %v386_v55 = vmul.f32 %v3367_v40, %v3273_v10  ;;  %v387_v23 = vmul.f32 %v3372_v41, %v3278_v11  ;;  %v394_v25 = vmul.f32 %v3379_v43, %v3263_v8 }
  0x35   :  { %v395_v24 = vmul.f32 %v3384_v44, %v3268_v9  ;;  %v416_v2 = vmul.f32 %v3389_v45, %v3273_v10  ;;  %v417_v33 = vmul.f32 %v3398_v50, %v3278_v11  ;;  %v424_v7 = vmul.f32 %v3403_v51, %v3263_v8  ;;  %v6429_v51 = vld [vmem:[#allocation10_spill] sm:$0xff] }
  0x36   :  { %v425_v57 = vmul.f32 %v3408_v52, %v3268_v9  ;;  %v358_v53 = vmul.f32 %v3349_v34, %v3304_v19  ;;  %v366_v43 = vmul.f32 %v3360_v38, %v3295_v16  ;;  %v368_v37 = vadd.f32 %v364_v30, %v356_v47  ;;  %v6430_v52 = vld [vmem:[#allocation11_spill] sm:$0xff]  ;;  %v6431_v38 = vld [vmem:[#allocation12_spill] sm:$0xff] }
  0x37   :  { %v369_v44 = vadd.f32 %v365_v31, %v357_v21  ;;  %v251_v60 = vadd.f32 %v250_v27, %v249_v58  ;;  %v281_v46 = vmul.f32 %v3413_v54, %v3676_v3  ;;  %v340_v35 = vmul.f32 %v3304_v19, %v3295_v16  ;;  %v6432_v58 = vld [vmem:[#allocation13_spill] sm:$0xff]  ;;  %v6433_v31 = vld [vmem:[#allocation6_spill] sm:$0xff] }
  0x38   :  { %v342_v61 = vadd.f32 %v339_v59, %v338_v42  ;;  %v388_v4 = vmul.f32 %v6429_v51, %v3304_v19  ;;  %v396_v17 = vmul.f32 %v6430_v52, %v3295_v16  ;;  %v398_v15 = vadd.f32 %v394_v25, %v386_v55  ;;  %v6434_v42 = vld [vmem:[#allocation9_spill] sm:$0xff] }
  0x39   :  { %v399_v56 = vadd.f32 %v395_v24, %v387_v23  ;;  %v418_v47 = vmul.f32 %v6431_v38, %v3304_v19  ;;  %v426_v27 = vmul.f32 %v6432_v58, %v3295_v16  ;;  %v428_v21 = vadd.f32 %v424_v7, %v416_v2  ;;  %v6435_v24 = vld [vmem:[#allocation18_spill] sm:$0xff]  ;;  %v6437_v58 = vld [vmem:[#allocation20_spill] sm:$0xff] }
  0x3a   :  { %v429_v30 = vadd.f32 %v425_v57, %v417_v33  ;;  %v359_v3 = vmul.f32 %v3413_v54, %v6433_v31  ;;  %v367_v59 = vmul.f32 %v6434_v42, %v3335_v28  ;;  %v370_v34 = vadd.f32 %v366_v43, %v358_v53  ;;  %v6436_v33 = vld [vmem:[#allocation19_spill] sm:$0xff]  ;;  %v6439_v42 = vld [vmem:[#allocation14_spill] sm:$0xff] }
  0x3b   :  { %v372_v22 = vadd.f32 %v369_v44, %v368_v37  ;;  %v282_v12 = vadd.f32 %v278_v29, %v274_v62  ;;  %v286_v55 = vmul.f32 %v3367_v40, %v3686_v63  ;;  %v341_v23 = vmul.f32 %v6433_v31, %v3335_v28  ;;  %v6438_v62 = vld [vmem:[#allocation21_spill] sm:$0xff] }
  0x3c   :  { %v343_v25 = vadd.f32 %v342_v61, %v340_v35  ;;  %v389_v2 = vmul.f32 %v6435_v24, %v6433_v31  ;;  %v397_v7 = vmul.f32 %v6436_v33, %v3335_v28  ;;  %v400_v57 = vadd.f32 %v396_v17, %v388_v4  ;;  %v6440_v33 = vld [vmem:[#allocation15_spill] sm:$0xff]  ;;  %v6441_v17 = vld [vmem:[#allocation16_spill] sm:$0xff] }
  0x3d   :  { %v402_v52 = vadd.f32 %v399_v56, %v398_v15  ;;  %v419_v53 = vmul.f32 %v6437_v58, %v6433_v31  ;;  %v427_v29 = vmul.f32 %v6438_v62, %v3335_v28  ;;  %v430_v43 = vadd.f32 %v426_v27, %v418_v47  ;;  %v6442_v56 = vld [vmem:[#allocation17_spill] sm:$0xff] }
  0x3e   :  { %v432_v40 = vadd.f32 %v429_v30, %v428_v21  ;;  %v222_v37 = vrot.slane %v3692_v48, 1  ;;  %v283_v44 = vadd.f32 %v279_v49, %v275_v14  ;;  %v371_v35 = vadd.f32 %v367_v59, %v359_v3 }
  0x3f   :  { %v373_v61 = vadd.f32 %v372_v22, %v370_v34  ;;  %v446_v54 = vmul.f32 %v6439_v42, %v3273_v10  ;;  %v447_v4 = vmul.f32 %v6440_v33, %v3278_v11  ;;  %v454_v15 = vmul.f32 %v6441_v17, %v3263_v8 }
  0x40   :  { %v455_v6 = vmul.f32 %v6442_v56, %v3268_v9  ;;  %v284_v62 = vadd.f32 %v280_v32, %v276_v13  ;;  %v287_v47 = vmul.f32 %v3372_v41, %v3686_v63  ;;  %v401_v27 = vadd.f32 %v397_v7, %v389_v2  ;;  %v6443_v13 = vld [vmem:[#allocation22_spill] sm:$0xff]  ;;  %v6444_v41 = vld [vmem:[#allocation23_spill] sm:$0xff] }
  0x41   :  { %v403_v14 = vadd.f32 %v402_v52, %v400_v57  ;;  %v252_v3 = vrot.slane %v251_v60, 2  ;;  %v344_v22 = vadd.f32 %v343_v25, %v341_v23  ;;  %v431_v34 = vadd.f32 %v427_v29, %v419_v53 }
  0x42   :  { %v433_v49 = vadd.f32 %v432_v40, %v430_v43  ;;  %v285_v21 = vadd.f32 %v281_v46, %v3694_v26  ;;  %v288_v30 = vmul.f32 %v6429_v51, %v3686_v63  ;;  %v289_v59 = vmul.f32 %v6435_v24, %v3686_v63 }
  0x43   :  { %v374_v17 = vadd.f32 %v373_v61, %v371_v35  ;;  %v448_v32 = vmul.f32 %v6443_v13, %v3304_v19  ;;  %v456_v2 = vmul.f32 %v6444_v41, %v3295_v16  ;;  %v458_v7 = vadd.f32 %v454_v15, %v446_v54  ;;  %v6446_v35 = vld [vmem:[#allocation24_spill] sm:$0xff] }
  0x44   :  { %v459_v57 = vadd.f32 %v455_v6, %v447_v4  ;;  %v3783_v23 = vmul.f32 0.05, %v3690_v20  ;;  %v223_v26 = vadd.f32 %v222_v37, %v3692_v48  ;;  %v290_v46 = vadd.f32 %v286_v55, %v282_v12  ;;  %v6447_v6 = vld [vmem:[#allocation25_spill] sm:$0xff] }
  0x45   :  { %v404_v25 = vadd.f32 %v403_v14, %v401_v27  ;;  %v291_v51 = vadd.f32 %v287_v47, %v283_v44  ;;  %v294_v52 = vmul.f32 %v3389_v45, %v3688_v5  ;;  %v345_v53 = vrot.slane %v344_v22, 4 }
  0x46   :  { %6445 = vst [vmem:[#allocation10_spill] sm:$0xff] %v3783_v23  ;;  %v434_v29 = vadd.f32 %v433_v49, %v431_v34  ;;  %v253_v43 = vadd.f32 %v252_v3, %v251_v60  ;;  %v375_v40 = vrot.slane %v374_v17, 4  ;;  %v449_v61 = vmul.f32 %v6446_v35, %v6433_v31  ;;  %v6449_v3 = vld [vmem:[#allocation26_spill] sm:$0xff] }
  0x47   :  { %v457_v54 = vmul.f32 %v6447_v6, %v3335_v28  ;;  %v292_v20 = vadd.f32 %v288_v30, %v284_v62  ;;  %v293_v4 = vadd.f32 %v289_v59, %v285_v21  ;;  %v460_v15 = vadd.f32 %v456_v2, %v448_v32  ;;  %v6450_v21 = vld [vmem:[#allocation27_spill] sm:$0xff]  ;;  %v6451_v30 = vld [vmem:[#allocation28_spill] sm:$0xff]  ;;  %v6452_v59 = vld [vmem:[#allocation29_spill] sm:$0xff] }
  0x48   :  { %v462_v48 = vadd.f32 %v459_v57, %v458_v7  ;;  %v3792_v12 = vmul.f32 0.05, %v223_v26  ;;  %v295_v55 = vmul.f32 %v3398_v50, %v3688_v5  ;;  %v296_v45 = vmul.f32 %v6431_v38, %v3688_v5 }
  0x49   :  { %v405_v60 = vrot.slane %v404_v25, 4  ;;  %v297_v37 = vmul.f32 %v6437_v58, %v3688_v5  ;;  %v298_v44 = vadd.f32 %v294_v52, %v290_v46  ;;  %v346_v56 = vadd.f32 %v345_v53, %v344_v22  ;;  %v3997_v5 = vld [vmem:[%s6161_s1 + $0x90] sm:$0xff] }
  0x4a   :  { %6448 = vst [vmem:[#allocation11_spill] sm:$0xff] %v3792_v12  ;;  %v435_v47 = vrot.slane %v434_v29, 4  ;;  %v254_v27 = vrot.slane %v253_v43, 1  ;;  %v376_v62 = vadd.f32 %v375_v40, %v374_v17  ;;  %v461_v14 = vadd.f32 %v457_v54, %v449_v61  ;;  %6484 = vst [vmem:[#allocation29_spill] sm:$0xff] %v3997_v5 }
  0x4b   :  { %v476_v34 = vmul.f32 %v6449_v3, %v3273_v10  ;;  %v463_v49 = vadd.f32 %v462_v48, %v460_v15  ;;  %v477_v50 = vmul.f32 %v6450_v21, %v3278_v11  ;;  %v484_v38 = vmul.f32 %v6451_v30, %v3263_v8 }
  0x4c   :  { %v485_v32 = vmul.f32 %v6452_v59, %v3268_v9  ;;  %v299_v41 = vadd.f32 %v295_v55, %v291_v51  ;;  %v302_v22 = vmul.f32 %v6439_v42, %v3783_v23  ;;  %v303_v17 = vmul.f32 %v6440_v33, %v3783_v23  ;;  %v6453_v51 = vld [vmem:[#allocation30_spill] sm:$0xff]  ;;  %v6454_v42 = vld [vmem:[#allocation31_spill] sm:$0xff] }
  0x4d   :  { %v406_v2 = vadd.f32 %v405_v60, %v404_v25  ;;  %v300_v7 = vadd.f32 %v296_v45, %v292_v20  ;;  %v301_v57 = vadd.f32 %v297_v37, %v293_v4  ;;  %v347_v26 = vrot.slane %v346_v56, 2 }
  0x4e   :  { %v436_v46 = vadd.f32 %v435_v47, %v434_v29  ;;  %v304_v52 = vmul.f32 %v6443_v13, %v3783_v23  ;;  %v305_v53 = vmul.f32 %v6446_v35, %v3783_v23  ;;  %v377_v40 = vrot.slane %v376_v62, 2 }
  0x4f   :  { %v478_v61 = vmul.f32 %v6453_v51, %v3304_v19  ;;  %v464_v6 = vadd.f32 %v463_v49, %v461_v14  ;;  %v486_v54 = vmul.f32 %v6454_v42, %v3295_v16  ;;  %v488_v33 = vadd.f32 %v484_v38, %v476_v34  ;;  %v6455_v14 = vld [vmem:[#allocation32_spill] sm:$0xff]  ;;  %v6456_v34 = vld [vmem:[#allocation33_spill] sm:$0xff] }
  0x50   :  { %v489_v25 = vadd.f32 %v485_v32, %v477_v50  ;;  %v255_v20 = vadd.f32 %v254_v27, %v253_v43  ;;  %v306_v4 = vadd.f32 %v302_v22, %v298_v44  ;;  %v307_v15 = vadd.f32 %v303_v17, %v299_v41 }
  0x51   :  { %v407_v29 = vrot.slane %v406_v2, 2  ;;  %v310_v48 = vmul.f32 %v6449_v3, %v3792_v12  ;;  %v311_v55 = vmul.f32 %v6450_v21, %v3792_v12  ;;  %v348_v45 = vadd.f32 %v347_v26, %v346_v56 }
  0x52   :  { %v437_v60 = vrot.slane %v436_v46, 2  ;;  %v308_v37 = vadd.f32 %v304_v52, %v300_v7  ;;  %v378_v47 = vadd.f32 %v377_v40, %v376_v62  ;;  %v479_v49 = vmul.f32 %v6455_v14, %v6433_v31 }
  0x53   :  { %v487_v50 = vmul.f32 %v6456_v34, %v3335_v28  ;;  %v309_v43 = vadd.f32 %v305_v53, %v301_v57  ;;  %v465_v44 = vrot.slane %v464_v6, 4  ;;  %v490_v27 = vadd.f32 %v486_v54, %v478_v61  ;;  %v6458_v57 = vld [vmem:[#allocation34_spill] sm:$0xff]  ;;  %v6459_v53 = vld [vmem:[#allocation35_spill] sm:$0xff]  ;;  %v6460_v54 = vld [vmem:[#allocation36_spill] sm:$0xff] }
  0x54   :  { %v492_v30 = vadd.f32 %v489_v25, %v488_v33  ;;  %v3828_v38 = vmul.f32 0.05, %v255_v20  ;;  %v312_v59 = vmul.f32 %v6453_v51, %v3792_v12  ;;  %v313_v56 = vmul.f32 %v6455_v14, %v3792_v12  ;;  %v6461_v25 = vld [vmem:[#allocation37_spill] sm:$0xff] }
  0x55   :  { %v408_v32 = vadd.f32 %v407_v29, %v406_v2  ;;  %v314_v62 = vadd.f32 %v310_v48, %v306_v4  ;;  %v315_v41 = vadd.f32 %v311_v55, %v307_v15  ;;  %v349_v22 = vrot.slane %v348_v45, 1  ;;  %v6462_v48 = vld [vmem:[#allocation38_spill] sm:$0xff] }
  0x56   :  { %6457 = vst [vmem:[#allocation12_spill] sm:$0xff] %v3828_v38  ;;  %v438_v17 = vadd.f32 %v437_v60, %v436_v46  ;;  %v379_v7 = vrot.slane %v378_v47, 1  ;;  %v491_v26 = vadd.f32 %v487_v50, %v479_v49  ;;  %v506_v52 = vmul.f32 %v6458_v57, %v3273_v10  ;;  %v6463_v50 = vld [vmem:[#allocation39_spill] sm:$0xff] }
  0x57   :  { %v507_v40 = vmul.f32 %v6459_v53, %v3278_v11  ;;  %v466_v61 = vadd.f32 %v465_v44, %v464_v6  ;;  %v493_v42 = vadd.f32 %v492_v30, %v490_v27  ;;  %v514_v33 = vmul.f32 %v6460_v54, %v3263_v8 }
  0x58   :  { %v515_v2 = vmul.f32 %v6461_v25, %v3268_v9  ;;  %v316_v20 = vadd.f32 %v312_v59, %v308_v37  ;;  %v317_v4 = vadd.f32 %v313_v56, %v309_v43  ;;  %v318_v46 = vmul.f32 %v6458_v57, %v3828_v38 }
  0x59   :  { %v409_v15 = vrot.slane %v408_v32, 1  ;;  %v319_v29 = vmul.f32 %v6459_v53, %v3828_v38  ;;  %v320_v55 = vmul.f32 %v6462_v48, %v3828_v38  ;;  %v321_v6 = vmul.f32 %v3651_v36, %v3828_v38 }
  0x5a   :  { %v439_v60 = vrot.slane %v438_v17, 1  ;;  %v350_v49 = vadd.f32 %v349_v22, %v348_v45  ;;  %v380_v34 = vadd.f32 %v379_v7, %v378_v47  ;;  %v508_v37 = vmul.f32 %v6462_v48, %v3304_v19 }
  0x5b   :  { %v516_v43 = vmul.f32 %v6463_v50, %v3295_v16  ;;  %v467_v44 = vrot.slane %v466_v61, 2  ;;  %v494_v27 = vadd.f32 %v493_v42, %v491_v26  ;;  %v518_v30 = vadd.f32 %v514_v33, %v506_v52  ;;  %v3886_v42 = vld [vmem:[%s6162_s0 + $0x40] sm:$0xff]  ;;  %v3891_v33 = vld [vmem:[%s6161_s1 + $0x68] sm:$0xff] }
  0x5c   :  { %v519_v59 = vadd.f32 %v515_v2, %v507_v40  ;;  %v410_v56 = vadd.f32 %v409_v15, %v408_v32  ;;  %v509_v54 = vmul.f32 %v3651_v36, %v6433_v31  ;;  %v517_v25 = vmul.f32 %v3658_v39, %v3335_v28  ;;  %v3871_v32 = vld [vmem:[%s6161_s1 + $0x40] sm:$0xff]  ;;  %6470 = vst [vmem:[#allocation21_spill] sm:$0xff] %v3891_v33  ;;  %v3896_v2 = vld [vmem:[%s6162_s0 + $0x68] sm:$0xff] }
  0x5d   :  { %v3858_v12 = vadd.f32 %v318_v46, %v314_v62  ;;  %v3860_v45 = vadd.f32 %v319_v29, %v315_v41  ;;  %v440_v47 = vadd.f32 %v439_v60, %v438_v17  ;;  %v3862_v22 = vadd.f32 %v320_v55, %v316_v20  ;;  %v3876_v39 = vld [vmem:[%s6161_s1 + $0x60] sm:$0xff]  ;;  %6471 = vst [vmem:[#allocation14_spill] sm:$0xff] %v3896_v2  ;;  %v3908_v55 = vld [vmem:[%s6161_s1 + $0x48] sm:$0xff] }
  0x5e   :  { %v3864_v7 = vadd.f32 %v321_v6, %v317_v4  ;;  %v351_v50 = vmul.f32 0.1, %v350_v49  ;;  %v3866_v26 = vmul.f32 0.05, %v380_v34  ;;  %6468 = vst [vmem:[#allocation19_spill] sm:$0xff] %v3876_v39  ;;  %v3881_v62 = vld [vmem:[%s6162_s0 + $0x60] sm:$0xff]  ;;  %v468_v41 = vadd.f32 %v467_v44, %v466_v61 }
  0x5f   :  { %6464 = vst [vmem:[#allocation13_spill] sm:$0xff] %v3858_v12  ;;  %6465 = vst [vmem:[#allocation6_spill] sm:$0xff] %v3860_v45  ;;  %v495_v17 = vrot.slane %v494_v27, 4  ;;  %v520_v52 = vadd.f32 %v516_v43, %v508_v37  ;;  %v522_v40 = vadd.f32 %v519_v59, %v518_v30  ;;  %v3898_v20 = vmul.f32 0.05, %v410_v56  ;;  %v3913_v6 = vld [vmem:[%s6162_s0 + $0x48] sm:$0xff] }
  0x60   :  { %6466 = vst [vmem:[#allocation9_spill] sm:$0xff] %v3862_v22  ;;  %6467 = vst [vmem:[#allocation18_spill] sm:$0xff] %v3864_v7  ;;  %v521_v61 = vadd.f32 %v517_v25, %v509_v54  ;;  %v532_v4 = vmul.f32 -0.1, %v3273_v10  ;;  %v533_v46 = vmul.f32 -0.1, %v3278_v11  ;;  %v636_v60 = vmul.f32 %v3876_v39, %v3886_v42 }
  0x61   :  { %6469 = vst [vmem:[#allocation20_spill] sm:$0xff] %v3881_v62  ;;  %6472 = vst [vmem:[#allocation15_spill] sm:$0xff] %v3898_v20  ;;  %v3902_v15 = vmul.f32 0.05, %v440_v47  ;;  %v534_v29 = vmul.f32 -0.1, %v3304_v19  ;;  %v644_v10 = vmul.f32 %v3881_v62, %v3871_v32  ;;  %v540_v19 = vmul.f32 %v3669_v18, %v3229_v0 }
  0x62   :  { %v535_v11 = vmul.f32 -0.1, %v6433_v31  ;;  %v3925_v49 = vld [vmem:[%s6161_s1 + $0x70] sm:$0xff]  ;;  %v637_v34 = vmul.f32 %v3891_v33, %v3913_v6  ;;  %v645_v43 = vmul.f32 %v3896_v2, %v3908_v55  ;;  %v3939_v0 = vld [vmem:[%s6161_s1 + $0x80] sm:$0xff]  ;;  %v469_v31 = vrot.slane %v468_v41, 1  ;;  %v3948_v56 = vld [vmem:[%s6161_s1 + $0x88] sm:$0xff] }
  0x63   :  { %6473 = vst [vmem:[#allocation16_spill] sm:$0xff] %v3902_v15  ;;  %6474 = vst [vmem:[#allocation17_spill] sm:$0xff] %v3925_v49  ;;  %v3932_v37 = vld [vmem:[%s6162_s0 + $0x70] sm:$0xff]  ;;  %v3941_v44 = vadd.f32 %v495_v17, %v494_v27  ;;  %v523_v30 = vadd.f32 %v522_v40, %v520_v52  ;;  %v541_v59 = vmul.f32 %v3669_v18, %v3234_v1  ;;  %v3953_v54 = vld [vmem:[%s6162_s0 + $0x80] sm:$0xff]  ;;  %v548_v2 = vadd.f32 1.0, %v351_v50 }
  0x64   :  { %6475 = vst [vmem:[#allocation22_spill] sm:$0xff] %v3932_v37  ;;  %6476 = vst [vmem:[#allocation23_spill] sm:$0xff] %v3939_v0  ;;  %v3958_v25 = vld [vmem:[%s6162_s0 + $0x88] sm:$0xff]  ;;  %v6480_v27 = vld [vmem:[#allocation3_spill] sm:$0xff]  ;;  %v618_v7 = vmul.f32 %v3886_v42, %v3871_v32  ;;  %v619_v22 = vmul.f32 %v3913_v6, %v3908_v55  ;;  %v648_v12 = vadd.f32 %v644_v10, %v636_v60 }
  0x65   :  { %6477 = vst [vmem:[#allocation24_spill] sm:$0xff] %v3948_v56  ;;  %6478 = vst [vmem:[#allocation25_spill] sm:$0xff] %v3953_v54  ;;  %v542_v47 = vmul.f32 %v3669_v18, %v6480_v27  ;;  %v6481_v17 = vld [vmem:[#allocation4_spill] sm:$0xff]  ;;  %v3967_v52 = vld [vmem:[%s6161_s1 + $0x50] sm:$0xff]  ;;  %v666_v38 = vmul.f32 %v3939_v0, %v3886_v42  ;;  %v649_v23 = vadd.f32 %v645_v43, %v637_v34 }
  0x66   :  { %6479 = vst [vmem:[#allocation26_spill] sm:$0xff] %v3958_v25  ;;  %v543_v1 = vmul.f32 %v3669_v18, %v6481_v17  ;;  %v3972_v40 = vld [vmem:[%s6162_s0 + $0x50] sm:$0xff]  ;;  %v3981_v18 = vld [vmem:[%s6161_s1 + $0x78] sm:$0xff]  ;;  %v646_v45 = vmul.f32 %v3932_v37, %v3967_v52  ;;  %v667_v63 = vmul.f32 %v3948_v56, %v3913_v6  ;;  %v675_v33 = vmul.f32 %v3958_v25, %v3908_v55 }
  0x67   :  { %6482 = vst [vmem:[#allocation27_spill] sm:$0xff] %v3981_v18  ;;  %v638_v27 = vmul.f32 %v3925_v49, %v3972_v40  ;;  %v3988_v17 = vld [vmem:[%s6162_s0 + $0x78] sm:$0xff]  ;;  %v674_v49 = vmul.f32 %v3953_v54, %v3871_v32  ;;  %v524_v37 = vadd.f32 %v523_v30, %v521_v61  ;;  %v544_v60 = vadd.f32 %v540_v19, %v532_v4  ;;  %v4018_v56 = vld [vmem:[%s6162_s0 + $0x90] sm:$0xff] }
  0x68   :  { %6483 = vst [vmem:[#allocation28_spill] sm:$0xff] %v3988_v17  ;;  %v545_v10 = vadd.f32 %v541_v59, %v533_v46  ;;  %v4008_v34 = vld [vmem:[%s6161_s1 + $0x58] sm:$0xff]  ;;  %6485 = vst [vmem:[#allocation30_spill] sm:$0xff] %v4018_v56  ;;  %v620_v61 = vmul.f32 %v3972_v40, %v3967_v52  ;;  %v622_v4 = vadd.f32 %v619_v22, %v618_v7  ;;  %v497_v30 = vrot.slane %v3941_v44, 2  ;;  %v4037_v22 = vld [vmem:[%s6161_s1 + $0xa0] sm:$0xff] }
  0x69   :  { %v4013_v43 = vld [vmem:[%s6162_s0 + $0x58] sm:$0xff]  ;;  %v647_v46 = vmul.f32 %v3988_v17, %v4008_v34  ;;  %v470_v19 = vadd.f32 %v469_v31, %v468_v41  ;;  %v650_v59 = vadd.f32 %v646_v45, %v638_v27  ;;  %v668_v54 = vmul.f32 %v3997_v5, %v3972_v40  ;;  %6487 = vst [vmem:[#allocation32_spill] sm:$0xff] %v4037_v22  ;;  %v4044_v45 = vld [vmem:[%s6161_s1 + $0xa8] sm:$0xff]  ;;  %v4049_v27 = vld [vmem:[%s6162_s0 + $0xa0] sm:$0xff] }
  0x6a   :  { %v639_v50 = vmul.f32 %v3981_v18, %v4013_v43  ;;  %v4030_v25 = vld [vmem:[%s6161_s1 + $0x98] sm:$0xff]  ;;  %v652_v7 = vadd.f32 %v649_v23, %v648_v12  ;;  %v676_v41 = vmul.f32 %v4018_v56, %v3967_v52  ;;  %v678_v31 = vadd.f32 %v674_v49, %v666_v38  ;;  %6488 = vst [vmem:[#allocation33_spill] sm:$0xff] %v4044_v45  ;;  %v4054_v17 = vld [vmem:[%s6162_s0 + $0xa8] sm:$0xff] }
  0x6b   :  { %6486 = vst [vmem:[#allocation31_spill] sm:$0xff] %v4030_v25  ;;  %v679_v18 = vadd.f32 %v675_v33, %v667_v63  ;;  %6489 = vst [vmem:[#allocation34_spill] sm:$0xff] %v4049_v27  ;;  %v525_v23 = vrot.slane %v524_v37, 4  ;;  %v546_v12 = vadd.f32 %v542_v47, %v534_v29  ;;  %v547_v56 = vadd.f32 %v543_v1, %v535_v11  ;;  %v4060_v38 = vld [vmem:[%s6162_s0 + $0x98] sm:$0xff] }
  0x6c   :  { %6490 = vst [vmem:[#allocation35_spill] sm:$0xff] %v4054_v17  ;;  %v549_v63 = vmul.f32 %v3263_v8, %v548_v2  ;;  %6491 = vst [vmem:[#allocation36_spill] sm:$0xff] %v4060_v38  ;;  %v621_v33 = vmul.f32 %v4013_v43, %v4008_v34  ;;  %v623_v49 = vadd.f32 %v622_v4, %v620_v61 }
  0x6d   :  { %v651_v5 = vadd.f32 %v647_v46, %v639_v50  ;;  %v669_v39 = vmul.f32 %v4030_v25, %v4013_v43  ;;  %v696_v0 = vmul.f32 %v4037_v22, %v3886_v42  ;;  %v697_v29 = vmul.f32 %v4044_v45, %v3913_v6  ;;  %v4079_v50 = vld [vmem:[%s6161_s1 + $0xb0] sm:$0xff] }
  0x6e   :  { %v704_v8 = vmul.f32 %v4049_v27, %v3871_v32  ;;  %v705_v11 = vmul.f32 %v4054_v17, %v3908_v55  ;;  %v653_v47 = vadd.f32 %v652_v7, %v650_v59  ;;  %v677_v1 = vmul.f32 %v4060_v38, %v4008_v34  ;;  %6492 = vst [vmem:[#allocation37_spill] sm:$0xff] %v4079_v50  ;;  %v4084_v46 = vld [vmem:[%s6162_s0 + $0xb0] sm:$0xff] }
  0x6f   :  { %v680_v61 = vadd.f32 %v676_v41, %v668_v54  ;;  %v682_v4 = vadd.f32 %v679_v18, %v678_v31  ;;  %6493 = vst [vmem:[#allocation38_spill] sm:$0xff] %v4084_v46  ;;  %v498_v25 = vadd.f32 %v497_v30, %v3941_v44  ;;  %v550_v17 = vmul.f32 %v3268_v9, %v548_v2  ;;  %v6495_v31 = vld [vmem:[#allocation5_spill] sm:$0xff] }
  0x70   :  { %v551_v59 = vmul.f32 %v3295_v16, %v548_v2  ;;  %v552_v7 = vmul.f32 %v3335_v28, %v548_v2  ;;  %v4090_v54 = vmul.f32 0.05, %v470_v19  ;;  %v526_v18 = vadd.f32 %v525_v23, %v524_v37  ;;  %v4101_v28 = vld [vmem:[%s6161_s1 + $0xb8] sm:$0xff] }
  0x71   :  { %v553_v41 = vadd.f32 %v549_v63, %v544_v60  ;;  %v557_v38 = vmul.f32 %v6495_v31, %v3866_v26  ;;  %v698_v27 = vmul.f32 %v4079_v50, %v3972_v40  ;;  %v706_v45 = vmul.f32 %v4084_v46, %v3967_v52  ;;  %6496 = vst [vmem:[#allocation3_spill] sm:$0xff] %v4101_v28  ;;  %v4106_v2 = vld [vmem:[%s6162_s0 + $0xb8] sm:$0xff]  ;;  %v6499_v63 = vld [vmem:[#allocation7_spill] sm:$0xff] }
  0x72   :  { %6494 = vst [vmem:[#allocation39_spill] sm:$0xff] %v4090_v54  ;;  %v708_v44 = vadd.f32 %v704_v8, %v696_v0  ;;  %v709_v30 = vadd.f32 %v705_v11, %v697_v29  ;;  %v624_v9 = vadd.f32 %v623_v49, %v621_v33  ;;  %v654_v22 = vadd.f32 %v653_v47, %v651_v5  ;;  %v4111_v5 = vld [vmem:[%s6161_s1 + $0xc0] sm:$0xff]  ;;  %v6500_v49 = vld [vmem:[#allocation8_spill] sm:$0xff] }
  0x73   :  { %v681_v16 = vadd.f32 %v677_v1, %v669_v39  ;;  %v683_v62 = vadd.f32 %v682_v4, %v680_v61  ;;  %6497 = vst [vmem:[#allocation4_spill] sm:$0xff] %v4106_v2  ;;  %v499_v37 = vrot.slane %v498_v25, 1  ;;  %v554_v60 = vadd.f32 %v550_v17, %v545_v10  ;;  %6498 = vst [vmem:[#allocation5_spill] sm:$0xff] %v4111_v5  ;;  %v3183_v39 = vld [vmem:[%s6161_s1 + $0x48] sm:$0xff]  ;;  %v4129_v10 = vld [vmem:[%s6162_s0 + $0xc0] sm:$0xff] }
  0x74   :  { %v555_v19 = vadd.f32 %v551_v59, %v546_v12  ;;  %v556_v23 = vadd.f32 %v552_v7, %v547_v56  ;;  %v558_v0 = vmul.f32 %v3183_v39, %v3866_v26  ;;  %v559_v33 = vmul.f32 %v6499_v63, %v3866_v26  ;;  %v4124_v56 = vld [vmem:[%s6161_s1 + $0xc8] sm:$0xff]  ;;  %6502 = vst [vmem:[#allocation8_spill] sm:$0xff] %v4129_v10 }
  0x75   :  { %v560_v29 = vmul.f32 %v6500_v49, %v3866_v26  ;;  %v561_v17 = vadd.f32 %v557_v38, %v553_v41  ;;  %6501 = vst [vmem:[#allocation7_spill] sm:$0xff] %v4124_v56  ;;  %v4134_v12 = vld [vmem:[%s6162_s0 + $0xc8] sm:$0xff]  ;;  %v699_v8 = vmul.f32 %v4101_v28, %v4013_v43  ;;  %v707_v38 = vmul.f32 %v4106_v2, %v4008_v34 }
  0x76   :  { %6503 = vst [vmem:[#allocation43_spill] sm:$0xff] %v4134_v12  ;;  %v710_v11 = vadd.f32 %v706_v45, %v698_v27  ;;  %v712_v47 = vadd.f32 %v709_v30, %v708_v44  ;;  %v527_v1 = vrot.slane %v526_v18, 2  ;;  %v625_v61 = vrot.slane %v624_v9, 4  ;;  %v3184_v45 = vld [vmem:[%s6161_s1 + $0x60] sm:$0xff]  ;;  %v3185_v27 = vld [vmem:[%s6161_s1 + $0x68] sm:$0xff]  ;;  %v4159_v30 = vld [vmem:[%s6161_s1 + $0xd0] sm:$0xff] }
  0x77   :  { %v655_v4 = vrot.slane %v654_v22, 4  ;;  %v684_v59 = vadd.f32 %v683_v62, %v681_v16  ;;  %v726_v7 = vmul.f32 %v4111_v5, %v3886_v42  ;;  %v727_v41 = vmul.f32 %v4124_v56, %v3913_v6 }
  0x78   :  { %v734_v31 = vmul.f32 %v4129_v10, %v3871_v32  ;;  %v735_v39 = vmul.f32 %v4134_v12, %v3908_v55  ;;  %v500_v63 = vadd.f32 %v499_v37, %v498_v25  ;;  %v562_v49 = vadd.f32 %v558_v0, %v554_v60  ;;  %v4164_v25 = vld [vmem:[%s6162_s0 + $0xd0] sm:$0xff] }
  0x79   :  { %v565_v62 = vmul.f32 %v3184_v45, %v3898_v20  ;;  %v566_v44 = vmul.f32 %v3185_v27, %v3898_v20  ;;  %v563_v16 = vadd.f32 %v559_v33, %v555_v19  ;;  %v564_v37 = vadd.f32 %v560_v29, %v556_v23  ;;  %v4169_v27 = vld [vmem:[%s6161_s1 + $0xd8] sm:$0xff] }
  0x7a   :  { %v711_v60 = vadd.f32 %v707_v38, %v699_v8  ;;  %v713_v0 = vadd.f32 %v712_v47, %v710_v11  ;;  %v528_v45 = vadd.f32 %v527_v1, %v526_v18  ;;  %v626_v2 = vadd.f32 %v625_v61, %v624_v9  ;;  %v4186_v29 = vld [vmem:[%s6162_s0 + $0xd8] sm:$0xff]  ;;  %v3187_v38 = vld [vmem:[%s6161_s1 + $0x80] sm:$0xff]  ;;  %v3188_v47 = vld [vmem:[%s6161_s1 + $0x88] sm:$0xff] }
  0x7b   :  { %v656_v12 = vadd.f32 %v655_v4, %v654_v22  ;;  %v685_v10 = vrot.slane %v684_v59, 4  ;;  %v728_v56 = vmul.f32 %v4159_v30, %v3972_v40  ;;  %v736_v5 = vmul.f32 %v4164_v25, %v3967_v52  ;;  %v3186_v22 = vld [vmem:[%s6161_s1 + $0x70] sm:$0xff]  ;;  %6505 = vst [vmem:[#allocation45_spill] sm:$0xff] %v4186_v29 }
  0x7c   :  { %v738_v28 = vadd.f32 %v734_v31, %v726_v7  ;;  %v739_v19 = vadd.f32 %v735_v39, %v727_v41  ;;  %v4175_v23 = vmul.f32 0.05, %v500_v63  ;;  %v567_v18 = vmul.f32 %v3186_v22, %v3898_v20  ;;  %v3190_v22 = vld [vmem:[%s6161_s1 + $0xa0] sm:$0xff] }
  0x7d   :  { %v568_v9 = vmul.f32 %v6435_v24, %v3898_v20  ;;  %v569_v33 = vadd.f32 %v565_v62, %v561_v17  ;;  %v570_v8 = vadd.f32 %v566_v44, %v562_v49  ;;  %v573_v11 = vmul.f32 %v3187_v38, %v3902_v15  ;;  %v3189_v44 = vld [vmem:[%s6161_s1 + $0x90] sm:$0xff] }
  0x7e   :  { %6504 = vst [vmem:[#allocation44_spill] sm:$0xff] %v4175_v23  ;;  %v574_v1 = vmul.f32 %v3188_v47, %v3902_v15  ;;  %v714_v24 = vadd.f32 %v713_v0, %v711_v60  ;;  %v529_v17 = vrot.slane %v528_v45, 1  ;;  %v627_v61 = vrot.slane %v626_v2, 2 }
  0x7f   :  { %v686_v4 = vadd.f32 %v685_v10, %v684_v59  ;;  %v729_v7 = vmul.f32 %v4169_v27, %v4013_v43  ;;  %v657_v41 = vrot.slane %v656_v12, 2  ;;  %v737_v31 = vmul.f32 %v4186_v29, %v4008_v34 }
  0x80   :  { %v740_v39 = vadd.f32 %v736_v5, %v728_v56  ;;  %v742_v63 = vadd.f32 %v739_v19, %v738_v28  ;;  %v571_v49 = vadd.f32 %v567_v18, %v563_v16  ;;  %v572_v62 = vadd.f32 %v568_v9, %v564_v37  ;;  %v4213_v56 = vld [vmem:[%s6161_s1 + $0xe0] sm:$0xff]  ;;  %v3191_v37 = vld [vmem:[%s6161_s1 + $0xa8] sm:$0xff] }
  0x81   :  { %v575_v60 = vmul.f32 %v3189_v44, %v3902_v15  ;;  %v576_v10 = vmul.f32 %v6437_v58, %v3902_v15  ;;  %v577_v59 = vadd.f32 %v573_v11, %v569_v33  ;;  %v578_v0 = vadd.f32 %v574_v1, %v570_v8  ;;  %v4224_v9 = vld [vmem:[%s6161_s1 + $0xe8] sm:$0xff]  ;;  %v4229_v33 = vld [vmem:[%s6162_s0 + $0xe0] sm:$0xff] }
  0x82   :  { %v581_v5 = vmul.f32 %v3190_v22, %v4090_v54  ;;  %v715_v28 = vrot.slane %v714_v24, 4  ;;  %v530_v16 = vadd.f32 %v529_v17, %v528_v45  ;;  %v582_v58 = vmul.f32 %v3191_v37, %v4090_v54  ;;  %v4234_v45 = vld [vmem:[%s6162_s0 + $0xe8] sm:$0xff]  ;;  %v4243_v37 = vld [vmem:[%s6161_s1 + $0xf0] sm:$0xff] }
  0x83   :  { %v583_v19 = vmul.f32 %v6443_v13, %v4090_v54  ;;  %v687_v18 = vrot.slane %v686_v4, 2  ;;  %6506 = vst [vmem:[#allocation46_spill] sm:$0xff] %v4234_v45  ;;  %v628_v8 = vadd.f32 %v627_v61, %v626_v2  ;;  %v658_v38 = vadd.f32 %v657_v41, %v656_v12  ;;  %6507 = vst [vmem:[#allocation47_spill] sm:$0xff] %v4243_v37 }
  0x84   :  { %v741_v11 = vadd.f32 %v737_v31, %v729_v7  ;;  %v743_v13 = vadd.f32 %v742_v63, %v740_v39  ;;  %v579_v47 = vadd.f32 %v575_v60, %v571_v49  ;;  %v580_v1 = vadd.f32 %v576_v10, %v572_v62  ;;  %v4256_v31 = vld [vmem:[%s6162_s0 + $0xf0] sm:$0xff] }
  0x85   :  { %v584_v17 = vmul.f32 %v6446_v35, %v4090_v54  ;;  %v756_v44 = vmul.f32 %v4213_v56, %v3886_v42  ;;  %v716_v22 = vadd.f32 %v715_v28, %v714_v24  ;;  %v757_v2 = vmul.f32 %v4224_v9, %v3913_v6  ;;  %6508 = vst [vmem:[#allocation48_spill] sm:$0xff] %v4256_v31 }
  0x86   :  { %v764_v12 = vmul.f32 %v4229_v33, %v3871_v32  ;;  %v765_v61 = vmul.f32 %v4234_v45, %v3908_v55  ;;  %v585_v7 = vadd.f32 %v581_v5, %v577_v59  ;;  %v586_v35 = vadd.f32 %v582_v58, %v578_v0  ;;  %v4269_v0 = vld [vmem:[%s6161_s1 + $0xf8] sm:$0xff] }
  0x87   :  { %v589_v41 = vmul.f32 %v6449_v3, %v4175_v23  ;;  %v688_v24 = vadd.f32 %v687_v18, %v686_v4  ;;  %v4258_v39 = vmul.f32 0.05, %v530_v16  ;;  %v629_v63 = vrot.slane %v628_v8, 1  ;;  %6510 = vst [vmem:[#allocation50_spill] sm:$0xff] %v4269_v0  ;;  %v4274_v5 = vld [vmem:[%s6162_s0 + $0xf8] sm:$0xff] }
  0x88   :  { %v659_v49 = vrot.slane %v658_v38, 1  ;;  %v744_v62 = vadd.f32 %v743_v13, %v741_v11  ;;  %v587_v60 = vadd.f32 %v583_v19, %v579_v47  ;;  %v590_v10 = vmul.f32 %v6450_v21, %v4175_v23  ;;  %6511 = vst [vmem:[#allocation51_spill] sm:$0xff] %v4274_v5 }
  0x89   :  { %6509 = vst [vmem:[#allocation49_spill] sm:$0xff] %v4258_v39  ;;  %v591_v59 = vmul.f32 %v6453_v51, %v4175_v23  ;;  %v758_v3 = vmul.f32 %v4243_v37, %v3972_v40  ;;  %v717_v4 = vrot.slane %v716_v22, 2  ;;  %v766_v21 = vmul.f32 %v4256_v31, %v3967_v52 }
  0x8a   :  { %v768_v28 = vadd.f32 %v764_v12, %v756_v44  ;;  %v769_v16 = vadd.f32 %v765_v61, %v757_v2  ;;  %v588_v51 = vadd.f32 %v584_v17, %v580_v1  ;;  %v592_v58 = vmul.f32 %v6455_v14, %v4175_v23 }
  0x8b   :  { %v593_v19 = vadd.f32 %v589_v41, %v585_v7  ;;  %v689_v18 = vrot.slane %v688_v24, 1  ;;  %v597_v11 = vmul.f32 %v6458_v57, %v4258_v39  ;;  %v630_v13 = vadd.f32 %v629_v63, %v628_v8  ;;  %v4297_v8 = vld [vmem:[%s6161_s1] sm:$0xff] }
  0x8c   :  { %v660_v47 = vadd.f32 %v659_v49, %v658_v38  ;;  %v745_v54 = vrot.slane %v744_v62, 4  ;;  %v4282_v15 = vadd.f32 %v590_v10, %v586_v35  ;;  %v4284_v20 = vadd.f32 %v591_v59, %v587_v60  ;;  %6515 = vst [vmem:[#allocation55_spill] sm:$0xff] %v4297_v8 }
  0x8d   :  { %v759_v44 = vmul.f32 %v4269_v0, %v4013_v43  ;;  %v767_v1 = vmul.f32 %v4274_v5, %v4008_v34  ;;  %v4292_v14 = vmul.f32 %v6459_v53, %v4258_v39  ;;  %v718_v17 = vadd.f32 %v717_v4, %v716_v22  ;;  %v4312_v22 = vld [vmem:[%s6161_s1 + $0x8] sm:$0xff] }
  0x8e   :  { %6512 = vst [vmem:[#allocation52_spill] sm:$0xff] %v4282_v15  ;;  %6513 = vst [vmem:[#allocation53_spill] sm:$0xff] %v4284_v20  ;;  %v770_v2 = vadd.f32 %v766_v21, %v758_v3  ;;  %v772_v57 = vadd.f32 %v769_v16, %v768_v28  ;;  %v4299_v38 = vadd.f32 %v592_v58, %v588_v51  ;;  %v631_v35 = vmul.f32 0.1, %v630_v13  ;;  %v4341_v21 = vld [vmem:[%s6161_s1 + $0x20] sm:$0xff]  ;;  %v6526_v28 = vld [vmem:[#allocation20_spill] sm:$0xff] }
  0x8f   :  { %6514 = vst [vmem:[#allocation54_spill] sm:$0xff] %v4292_v14  ;;  %v4303_v12 = vmul.f32 %v6462_v48, %v4258_v39  ;;  %v4307_v61 = vmul.f32 %v3651_v36, %v4258_v39  ;;  %v690_v53 = vadd.f32 %v689_v18, %v688_v24  ;;  %6519 = vst [vmem:[#allocation59_spill] sm:$0xff] %v4312_v22  ;;  %v4316_v41 = vmul.f32 0.05, %v660_v47  ;;  %v4323_v36 = vld [vmem:[%s6161_s1 + $0x10] sm:$0xff]  ;;  %v6522_v24 = vld [vmem:[#allocation40_spill] sm:$0xff] }
  0x90   :  { %6516 = vst [vmem:[#allocation56_spill] sm:$0xff] %v4299_v38  ;;  %v4314_v7 = vadd.f32 %v597_v11, %v593_v19  ;;  %v746_v63 = vadd.f32 %v745_v54, %v744_v62  ;;  %v771_v49 = vadd.f32 %v767_v1, %v759_v44  ;;  %v782_v48 = vmul.f32 -0.1, %v3886_v42  ;;  %6521 = vst [vmem:[#allocation61_spill] sm:$0xff] %v4323_v36  ;;  %v4331_v54 = vld [vmem:[%s6161_s1 + $0x18] sm:$0xff]  ;;  %v6527_v16 = vld [vmem:[#allocation23_spill] sm:$0xff] }
  0x91   :  { %6517 = vst [vmem:[#allocation57_spill] sm:$0xff] %v4303_v12  ;;  %6518 = vst [vmem:[#allocation58_spill] sm:$0xff] %v4307_v61  ;;  %v783_v60 = vmul.f32 -0.1, %v3913_v6  ;;  %v790_v10 = vmul.f32 %v4297_v8, %v6522_v24  ;;  %v719_v59 = vrot.slane %v718_v17, 1  ;;  %v773_v3 = vadd.f32 %v772_v57, %v770_v2  ;;  %v6528_v51 = vld [vmem:[#allocation19_spill] sm:$0xff] }
  0x92   :  { %6520 = vst [vmem:[#allocation60_spill] sm:$0xff] %v4314_v7  ;;  %v784_v4 = vmul.f32 -0.1, %v3972_v40  ;;  %6523 = vst [vmem:[#allocation40_spill] sm:$0xff] %v4331_v54  ;;  %v791_v42 = vmul.f32 %v4312_v22, %v6522_v24  ;;  %v4335_v6 = vmul.f32 0.05, %v690_v53  ;;  %v890_v40 = vmul.f32 %v6527_v16, %v6526_v28 }
  0x93   :  { %v785_v62 = vmul.f32 -0.1, %v4013_v43  ;;  %6525 = vst [vmem:[#allocation63_spill] sm:$0xff] %v4341_v21  ;;  %v6529_v58 = vld [vmem:[#allocation25_spill] sm:$0xff]  ;;  %v747_v18 = vrot.slane %v746_v63, 2  ;;  %v792_v11 = vmul.f32 %v4323_v36, %v6522_v24  ;;  %v6530_v13 = vld [vmem:[#allocation14_spill] sm:$0xff]  ;;  %v793_v57 = vmul.f32 %v4331_v54, %v6522_v24 }
  0x94   :  { %6524 = vst [vmem:[#allocation62_spill] sm:$0xff] %v4335_v6  ;;  %v898_v19 = vmul.f32 %v6529_v58, %v6528_v51  ;;  %v6531_v47 = vld [vmem:[#allocation24_spill] sm:$0xff]  ;;  %v6532_v1 = vld [vmem:[#allocation21_spill] sm:$0xff]  ;;  %v6533_v43 = vld [vmem:[#allocation26_spill] sm:$0xff]  ;;  %v794_v53 = vadd.f32 %v790_v10, %v782_v48  ;;  %v872_v7 = vmul.f32 %v6526_v28, %v6528_v51  ;;  %v720_v39 = vadd.f32 %v719_v59, %v718_v17 }
  0x95   :  { %v891_v44 = vmul.f32 %v6531_v47, %v6530_v13  ;;  %v899_v2 = vmul.f32 %v6533_v43, %v6532_v1  ;;  %v873_v23 = vmul.f32 %v6530_v13, %v6532_v1  ;;  %v774_v58 = vadd.f32 %v773_v3, %v771_v49  ;;  %v4364_v43 = vld [vmem:[%s6161_s1 + $0x28] sm:$0xff]  ;;  %v6535_v8 = vld [vmem:[#allocation22_spill] sm:$0xff]  ;;  %v6536_v24 = vld [vmem:[#allocation29_spill] sm:$0xff] }
  0x96   :  { %v795_v22 = vadd.f32 %v791_v42, %v783_v60  ;;  %v802_v36 = vmul.f32 %v4341_v21, %v3866_v26  ;;  %6534 = vst [vmem:[#allocation20_spill] sm:$0xff] %v4364_v43  ;;  %v892_v48 = vmul.f32 %v6536_v24, %v6535_v8  ;;  %v6537_v10 = vld [vmem:[#allocation17_spill] sm:$0xff]  ;;  %v6538_v54 = vld [vmem:[#allocation30_spill] sm:$0xff]  ;;  %v902_v38 = vadd.f32 %v898_v19, %v890_v40  ;;  %v6539_v12 = vld [vmem:[#allocation32_spill] sm:$0xff] }
  0x97   :  { %v900_v61 = vmul.f32 %v6538_v54, %v6537_v10  ;;  %v920_v17 = vmul.f32 %v6539_v12, %v6526_v28  ;;  %v903_v49 = vadd.f32 %v899_v2, %v891_v44  ;;  %v6540_v60 = vld [vmem:[#allocation33_spill] sm:$0xff]  ;;  %v6541_v3 = vld [vmem:[#allocation34_spill] sm:$0xff]  ;;  %v6542_v21 = vld [vmem:[#allocation35_spill] sm:$0xff]  ;;  %v748_v14 = vadd.f32 %v747_v18, %v746_v63 }
  0x98   :  { %v921_v59 = vmul.f32 %v6540_v60, %v6530_v13  ;;  %v928_v42 = vmul.f32 %v6541_v3, %v6528_v51  ;;  %v929_v20 = vmul.f32 %v6542_v21, %v6532_v1  ;;  %v796_v15 = vadd.f32 %v792_v11, %v784_v4  ;;  %v4383_v19 = vld [vmem:[%s6161_s1 + $0x30] sm:$0xff]  ;;  %v4388_v44 = vld [vmem:[%s6161_s1 + $0x38] sm:$0xff]  ;;  %v6545_v63 = vld [vmem:[#allocation28_spill] sm:$0xff] }
  0x99   :  { %v874_v5 = vmul.f32 %v6535_v8, %v6537_v10  ;;  %v876_v54 = vadd.f32 %v873_v23, %v872_v7  ;;  %v797_v40 = vadd.f32 %v793_v57, %v785_v62  ;;  %6543 = vst [vmem:[#allocation23_spill] sm:$0xff] %v4383_v19  ;;  %6544 = vst [vmem:[#allocation14_spill] sm:$0xff] %v4388_v44  ;;  %v6546_v4 = vld [vmem:[#allocation31_spill] sm:$0xff]  ;;  %v6548_v21 = vld [vmem:[#allocation36_spill] sm:$0xff]  ;;  %v4396_v7 = vmul.f32 0.05, %v720_v39 }
  0x9a   :  { %v803_v2 = vmul.f32 %v4364_v43, %v3866_v26  ;;  %v893_v18 = vmul.f32 %v6546_v4, %v6545_v63  ;;  %v6547_v11 = vld [vmem:[#allocation27_spill] sm:$0xff]  ;;  %v775_v62 = vrot.slane %v774_v58, 4  ;;  %v904_v57 = vadd.f32 %v900_v61, %v892_v48 }
  0x9b   :  { %v901_v23 = vmul.f32 %v6548_v21, %v6547_v11  ;;  %6549 = vst [vmem:[#allocation22_spill] sm:$0xff] %v4396_v7  ;;  %v922_v3 = vmul.f32 %v4079_v50, %v6535_v8  ;;  %v906_v0 = vadd.f32 %v903_v49, %v902_v38  ;;  %v930_v60 = vmul.f32 %v4084_v46, %v6537_v10  ;;  %v6550_v38 = vld [vmem:[#allocation3_spill] sm:$0xff]  ;;  %v6551_v46 = vld [vmem:[#allocation5_spill] sm:$0xff] }
  0x9c   :  { %v932_v12 = vadd.f32 %v928_v42, %v920_v17  ;;  %v933_v31 = vadd.f32 %v929_v20, %v921_v59  ;;  %v804_v43 = vmul.f32 %v4383_v19, %v3866_v26  ;;  %v805_v37 = vmul.f32 %v4388_v44, %v3866_v26  ;;  %v6552_v20 = vld [vmem:[#allocation7_spill] sm:$0xff]  ;;  %v6553_v42 = vld [vmem:[#allocation8_spill] sm:$0xff] }
  0x9d   :  { %v875_v39 = vmul.f32 %v6545_v63, %v6547_v11  ;;  %v877_v21 = vadd.f32 %v876_v54, %v874_v5  ;;  %v749_v61 = vrot.slane %v748_v14, 1  ;;  %v810_v48 = vadd.f32 1.0, %v631_v35  ;;  %v6554_v26 = vld [vmem:[#allocation43_spill] sm:$0xff]  ;;  %v6555_v5 = vld [vmem:[#allocation4_spill] sm:$0xff] }
  0x9e   :  { %v905_v7 = vadd.f32 %v901_v23, %v893_v18  ;;  %v923_v49 = vmul.f32 %v6550_v38, %v6545_v63  ;;  %v950_v17 = vmul.f32 %v6551_v46, %v6526_v28  ;;  %v951_v59 = vmul.f32 %v6552_v20, %v6530_v13 }
  0x9f   :  { %v958_v19 = vmul.f32 %v6553_v42, %v6528_v51  ;;  %v959_v44 = vmul.f32 %v6554_v26, %v6532_v1  ;;  %v907_v50 = vadd.f32 %v906_v0, %v904_v57  ;;  %v931_v35 = vmul.f32 %v6555_v5, %v6547_v11 }
  0xa0   :  { %v934_v54 = vadd.f32 %v930_v60, %v922_v3  ;;  %v936_v18 = vadd.f32 %v933_v31, %v932_v12  ;;  %v776_v23 = vadd.f32 %v775_v62, %v774_v58  ;;  %v806_v38 = vadd.f32 %v802_v36, %v794_v53 }
  0xa1   :  { %v807_v4 = vadd.f32 %v803_v2, %v795_v22  ;;  %v878_v24 = vadd.f32 %v877_v21, %v875_v39  ;;  %v750_v46 = vadd.f32 %v749_v61, %v748_v14  ;;  %v808_v47 = vadd.f32 %v804_v43, %v796_v15 }
  0xa2   :  { %v809_v45 = vadd.f32 %v805_v37, %v797_v40  ;;  %v811_v20 = vmul.f32 %v3871_v32, %v810_v48  ;;  %v952_v42 = vmul.f32 %v4159_v30, %v6535_v8  ;;  %v960_v0 = vmul.f32 %v4164_v25, %v6537_v10 }
  0xa3   :  { %v962_v57 = vadd.f32 %v958_v19, %v950_v17  ;;  %v963_v26 = vadd.f32 %v959_v44, %v951_v59  ;;  %v812_v60 = vmul.f32 %v3908_v55, %v810_v48  ;;  %v908_v31 = vadd.f32 %v907_v50, %v905_v7 }
  0xa4   :  { %v935_v12 = vadd.f32 %v931_v35, %v923_v49  ;;  %v937_v36 = vadd.f32 %v936_v18, %v934_v54  ;;  %v777_v22 = vrot.slane %v776_v23, 2  ;;  %v813_v14 = vmul.f32 %v3967_v52, %v810_v48 }
  0xa5   :  { %v814_v15 = vmul.f32 %v4008_v34, %v810_v48  ;;  %v879_v37 = vrot.slane %v878_v24, 4  ;;  %v819_v21 = vmul.f32 %v6528_v51, %v4316_v41  ;;  %v820_v58 = vmul.f32 %v6532_v1, %v4316_v41 }
  0xa6   :  { %v953_v43 = vmul.f32 %v4169_v27, %v6545_v63  ;;  %v961_v50 = vmul.f32 %v4186_v29, %v6547_v11  ;;  %v4436_v53 = vmul.f32 0.05, %v750_v46  ;;  %v821_v3 = vmul.f32 %v6537_v10, %v4316_v41  ;;  %v6565_v29 = vld [vmem:[#allocation33_spill] sm:$0xff] }
  0xa7   :  { %v964_v40 = vadd.f32 %v960_v0, %v952_v42  ;;  %v966_v19 = vadd.f32 %v963_v26, %v962_v57  ;;  %v815_v44 = vadd.f32 %v811_v20, %v806_v38  ;;  %v816_v2 = vadd.f32 %v812_v60, %v807_v4  ;;  %v6558_v0 = vld [vmem:[#allocation24_spill] sm:$0xff] }
  0xa8   :  { %6556 = vst [vmem:[#allocation28_spill] sm:$0xff] %v4436_v53  ;;  %v909_v7 = vrot.slane %v908_v31, 4  ;;  %v938_v62 = vadd.f32 %v937_v36, %v935_v12  ;;  %v778_v39 = vadd.f32 %v777_v22, %v776_v23  ;;  %v817_v61 = vadd.f32 %v813_v14, %v808_v47  ;;  %v6559_v36 = vld [vmem:[#allocation29_spill] sm:$0xff]  ;;  %v6560_v14 = vld [vmem:[#allocation31_spill] sm:$0xff] }
  0xa9   :  { %v818_v48 = vadd.f32 %v814_v15, %v809_v45  ;;  %v880_v49 = vadd.f32 %v879_v37, %v878_v24  ;;  %v822_v17 = vmul.f32 %v6547_v11, %v4316_v41  ;;  %v827_v46 = vmul.f32 %v6527_v16, %v4335_v6  ;;  %v6557_v45 = vld [vmem:[#allocation46_spill] sm:$0xff]  ;;  %v6561_v37 = vld [vmem:[#allocation47_spill] sm:$0xff] }
  0xaa   :  { %v965_v59 = vadd.f32 %v961_v50, %v953_v43  ;;  %v980_v35 = vmul.f32 %v4213_v56, %v6526_v28  ;;  %v967_v42 = vadd.f32 %v966_v19, %v964_v40  ;;  %v981_v4 = vmul.f32 %v4224_v9, %v6530_v13  ;;  %v6563_v19 = vld [vmem:[#allocation22_spill] sm:$0xff] }
  0xab   :  { %v988_v38 = vmul.f32 %v4229_v33, %v6528_v51  ;;  %v989_v47 = vmul.f32 %v6557_v45, %v6532_v1  ;;  %v823_v24 = vadd.f32 %v819_v21, %v815_v44  ;;  %v824_v20 = vadd.f32 %v820_v58, %v816_v2  ;;  %v6564_v44 = vld [vmem:[#allocation32_spill] sm:$0xff] }
  0xac   :  { %v910_v26 = vadd.f32 %v909_v7, %v908_v31  ;;  %v939_v54 = vrot.slane %v938_v62, 4  ;;  %v779_v18 = vrot.slane %v778_v39, 1  ;;  %v825_v23 = vadd.f32 %v821_v3, %v817_v61  ;;  %v6562_v31 = vld [vmem:[#allocation48_spill] sm:$0xff] }
  0xad   :  { %v828_v57 = vmul.f32 %v6558_v0, %v4335_v6  ;;  %v881_v60 = vrot.slane %v880_v49, 2  ;;  %v826_v12 = vadd.f32 %v822_v17, %v818_v48  ;;  %v829_v22 = vmul.f32 %v6559_v36, %v4335_v6 }
  0xae   :  { %v830_v15 = vmul.f32 %v6560_v14, %v4335_v6  ;;  %v982_v43 = vmul.f32 %v6561_v37, %v6535_v8  ;;  %v968_v21 = vadd.f32 %v967_v42, %v965_v59  ;;  %v990_v58 = vmul.f32 %v6562_v31, %v6537_v10  ;;  %v6566_v59 = vld [vmem:[#allocation37_spill] sm:$0xff]  ;;  %v6573_v31 = vld [vmem:[#allocation54_spill] sm:$0xff] }
  0xaf   :  { %v992_v50 = vadd.f32 %v988_v38, %v980_v35  ;;  %v993_v3 = vadd.f32 %v989_v47, %v981_v4  ;;  %v831_v40 = vadd.f32 %v827_v46, %v823_v24  ;;  %v835_v2 = vmul.f32 %v6564_v44, %v6563_v19  ;;  %v6567_v35 = vld [vmem:[#allocation50_spill] sm:$0xff]  ;;  %v6568_v38 = vld [vmem:[#allocation51_spill] sm:$0xff] }
  0xb0   :  { %v911_v7 = vrot.slane %v910_v26, 2  ;;  %v940_v61 = vadd.f32 %v939_v54, %v938_v62  ;;  %v780_v48 = vadd.f32 %v779_v18, %v778_v39  ;;  %v832_v17 = vadd.f32 %v828_v57, %v824_v20  ;;  %v6569_v39 = vld [vmem:[#allocation3_spill] sm:$0xff]  ;;  %v6570_v57 = vld [vmem:[#allocation5_spill] sm:$0xff] }
  0xb1   :  { %v836_v6 = vmul.f32 %v6565_v29, %v6563_v19  ;;  %v882_v1 = vadd.f32 %v881_v60, %v880_v49  ;;  %v833_v51 = vadd.f32 %v829_v22, %v825_v23  ;;  %v834_v45 = vadd.f32 %v830_v15, %v826_v12  ;;  %v6571_v12 = vld [vmem:[#allocation7_spill] sm:$0xff] }
  0xb2   :  { %v837_v42 = vmul.f32 %v6566_v59, %v6563_v19  ;;  %v983_v4 = vmul.f32 %v6567_v35, %v6545_v63  ;;  %v969_v46 = vrot.slane %v968_v21, 4  ;;  %v991_v47 = vmul.f32 %v6568_v38, %v6547_v11  ;;  %v6572_v35 = vld [vmem:[#allocation52_spill] sm:$0xff] }
  0xb3   :  { %v994_v24 = vadd.f32 %v990_v58, %v982_v43  ;;  %v996_v62 = vadd.f32 %v993_v3, %v992_v50  ;;  %v838_v20 = vmul.f32 %v6569_v39, %v6563_v19  ;;  %v839_v54 = vadd.f32 %v835_v2, %v831_v40  ;;  %v6575_v43 = vld [vmem:[#allocation53_spill] sm:$0xff] }
  0xb4   :  { %v912_v18 = vadd.f32 %v911_v7, %v910_v26  ;;  %v941_v49 = vrot.slane %v940_v61, 2  ;;  %v840_v23 = vadd.f32 %v836_v6, %v832_v17  ;;  %v843_v60 = vmul.f32 %v6570_v57, %v4436_v53  ;;  %v6576_v58 = vld [vmem:[#allocation57_spill] sm:$0xff] }
  0xb5   :  { %v844_v22 = vmul.f32 %v6571_v12, %v4436_v53  ;;  %v883_v15 = vrot.slane %v882_v1, 1  ;;  %v4480_v10 = vadd.f32 %v6573_v31, %v6572_v35  ;;  %v4484_v50 = vadd.f32 %v6576_v58, %v6575_v43  ;;  %v6579_v35 = vld [vmem:[#allocation56_spill] sm:$0xff] }
  0xb6   :  { %v4486_v3 = vmul.f32 0.05, %v780_v48  ;;  %v841_v26 = vadd.f32 %v837_v42, %v833_v51  ;;  %v845_v6 = vmul.f32 %v4159_v30, %v4436_v53  ;;  %v970_v40 = vadd.f32 %v969_v46, %v968_v21 }
  0xb7   :  { %6574 = vst [vmem:[#allocation4_spill] sm:$0xff] %v4480_v10  ;;  %6577 = vst [vmem:[#allocation24_spill] sm:$0xff] %v4484_v50  ;;  %v995_v2 = vadd.f32 %v991_v47, %v983_v4  ;;  %v997_v7 = vadd.f32 %v996_v62, %v994_v24  ;;  %v842_v17 = vadd.f32 %v838_v20, %v834_v45  ;;  %v913_v38 = vrot.slane %v912_v18, 1  ;;  %v6580_v10 = vld [vmem:[#allocation58_spill] sm:$0xff]  ;;  %v6582_v4 = vld [vmem:[#allocation41_spill] sm:$0xff] }
  0xb8   :  { %6578 = vst [vmem:[#allocation29_spill] sm:$0xff] %v4486_v3  ;;  %v846_v19 = vmul.f32 %v4169_v27, %v4436_v53  ;;  %v942_v31 = vadd.f32 %v941_v49, %v940_v61  ;;  %v4494_v11 = vadd.f32 %v6580_v10, %v6579_v35  ;;  %v4496_v43 = vadd.f32 %v843_v60, %v839_v54  ;;  %v6583_v45 = vld [vmem:[#allocation55_spill] sm:$0xff]  ;;  %v6587_v60 = vld [vmem:[#allocation61_spill] sm:$0xff]  ;;  %v6594_v50 = vld [vmem:[#allocation20_spill] sm:$0xff] }
  0xb9   :  { %v4498_v48 = vadd.f32 %v844_v22, %v840_v23  ;;  %v884_v51 = vadd.f32 %v883_v15, %v882_v1  ;;  %v1006_v42 = vmul.f32 -0.1, %v6526_v28  ;;  %v1007_v21 = vmul.f32 -0.1, %v6530_v13  ;;  %v6584_v47 = vld [vmem:[#allocation59_spill] sm:$0xff]  ;;  %v6588_v15 = vld [vmem:[#allocation40_spill] sm:$0xff] }
  0xba   :  { %6581 = vst [vmem:[#allocation31_spill] sm:$0xff] %v4494_v11  ;;  %v1014_v46 = vmul.f32 %v6583_v45, %v6582_v4  ;;  %v1015_v24 = vmul.f32 %v6584_v47, %v6582_v4  ;;  %v4506_v61 = vadd.f32 %v845_v6, %v841_v26  ;;  %v4510_v10 = vmul.f32 %v4213_v56, %v4486_v3  ;;  %v6598_v53 = vld [vmem:[#allocation35_spill] sm:$0xff] }
  0xbb   :  { %v971_v62 = vrot.slane %v970_v40, 2  ;;  %v998_v20 = vadd.f32 %v997_v7, %v995_v2  ;;  %v4512_v54 = vadd.f32 %v846_v19, %v842_v17  ;;  %v4516_v28 = vmul.f32 %v4224_v9, %v4486_v3 }
  0xbc   :  { %6585 = vst [vmem:[#allocation47_spill] sm:$0xff] %v4506_v61  ;;  %v914_v13 = vadd.f32 %v913_v38, %v912_v18  ;;  %v943_v1 = vrot.slane %v942_v31, 1  ;;  %v1008_v49 = vmul.f32 -0.1, %v6535_v8  ;;  %v1009_v23 = vmul.f32 -0.1, %v6545_v63 }
  0xbd   :  { %6586 = vst [vmem:[#allocation32_spill] sm:$0xff] %v4512_v54  ;;  %v1016_v22 = vmul.f32 %v6587_v60, %v6582_v4  ;;  %v1017_v58 = vmul.f32 %v6588_v15, %v6582_v4  ;;  %v4526_v19 = vmul.f32 %v6561_v37, %v4486_v3  ;;  %v885_v26 = vmul.f32 0.1, %v884_v51  ;;  %v6590_v18 = vld [vmem:[#allocation25_spill] sm:$0xff]  ;;  %v6591_v63 = vld [vmem:[#allocation26_spill] sm:$0xff]  ;;  %v6592_v61 = vld [vmem:[#allocation15_spill] sm:$0xff] }
  0xbe   :  { %v1018_v6 = vadd.f32 %v1014_v46, %v1006_v42  ;;  %v1019_v2 = vadd.f32 %v1015_v24, %v1007_v21  ;;  %v972_v7 = vadd.f32 %v971_v62, %v970_v40  ;;  %v999_v38 = vrot.slane %v998_v20, 4  ;;  %v6593_v4 = vld [vmem:[#allocation63_spill] sm:$0xff]  ;;  %v6596_v46 = vld [vmem:[#allocation14_spill] sm:$0xff] }
  0xbf   :  { %6589 = vst [vmem:[#allocation33_spill] sm:$0xff] %v4526_v19  ;;  %v1100_v8 = vmul.f32 %v6590_v18, %v6527_v16  ;;  %v1101_v17 = vmul.f32 %v6591_v63, %v6558_v0  ;;  %v4532_v35 = vmul.f32 0.05, %v914_v13  ;;  %v944_v54 = vadd.f32 %v943_v1, %v942_v31  ;;  %v6595_v40 = vld [vmem:[#allocation23_spill] sm:$0xff]  ;;  %v6597_v13 = vld [vmem:[#allocation34_spill] sm:$0xff] }
  0xc0   :  { %v1026_v11 = vmul.f32 %v6593_v4, %v6592_v61  ;;  %v1027_v19 = vmul.f32 %v6594_v50, %v6592_v61  ;;  %v1020_v51 = vadd.f32 %v1016_v22, %v1008_v49  ;;  %v1021_v42 = vadd.f32 %v1017_v58, %v1009_v23  ;;  %v6599_v22 = vld [vmem:[#allocation30_spill] sm:$0xff] }
  0xc1   :  { %v1028_v21 = vmul.f32 %v6595_v40, %v6592_v61  ;;  %v1029_v24 = vmul.f32 %v6596_v46, %v6592_v61  ;;  %v1118_v62 = vmul.f32 %v6564_v44, %v6590_v18  ;;  %v1119_v31 = vmul.f32 %v6565_v29, %v6591_v63 }
  0xc2   :  { %v1126_v1 = vmul.f32 %v6597_v13, %v6527_v16  ;;  %v1127_v50 = vmul.f32 %v6598_v53, %v6558_v0  ;;  %v973_v49 = vrot.slane %v972_v7, 1  ;;  %v1000_v23 = vadd.f32 %v999_v38, %v998_v20  ;;  %v6601_v38 = vld [vmem:[#allocation38_spill] sm:$0xff] }
  0xc3   :  { %v1102_v58 = vmul.f32 %v6599_v22, %v6559_v36  ;;  %v1104_v40 = vadd.f32 %v1101_v17, %v1100_v8  ;;  %v4552_v4 = vmul.f32 0.05, %v944_v54  ;;  %v1030_v61 = vadd.f32 %v1026_v11, %v1018_v6 }
  0xc4   :  { %v1031_v46 = vadd.f32 %v1027_v19, %v1019_v2  ;;  %v1038_v15 = vmul.f32 %v3871_v32, %v4316_v41  ;;  %v1032_v60 = vadd.f32 %v1028_v21, %v1020_v51  ;;  %v1033_v47 = vadd.f32 %v1029_v24, %v1021_v42  ;;  %v6602_v32 = vld [vmem:[#allocation36_spill] sm:$0xff]  ;;  %v6604_v21 = vld [vmem:[#allocation43_spill] sm:$0xff] }
  0xc5   :  { %6600 = vst [vmem:[#allocation37_spill] sm:$0xff] %v4552_v4  ;;  %v1039_v13 = vmul.f32 %v3908_v55, %v4316_v41  ;;  %v1040_v53 = vmul.f32 %v3967_v52, %v4316_v41  ;;  %v1120_v20 = vmul.f32 %v6566_v59, %v6599_v22  ;;  %v1128_v54 = vmul.f32 %v6601_v38, %v6559_v36  ;;  %v6603_v51 = vld [vmem:[#allocation8_spill] sm:$0xff] }
  0xc6   :  { %v1130_v8 = vadd.f32 %v1126_v1, %v1118_v62  ;;  %v1131_v11 = vadd.f32 %v1127_v50, %v1119_v31  ;;  %v974_v19 = vadd.f32 %v973_v49, %v972_v7  ;;  %v1001_v6 = vrot.slane %v1000_v23, 2 }
  0xc7   :  { %v1103_v2 = vmul.f32 %v6602_v32, %v6560_v14  ;;  %v1105_v17 = vadd.f32 %v1104_v40, %v1102_v58  ;;  %v1148_v55 = vmul.f32 %v6570_v57, %v6590_v18  ;;  %v1149_v52 = vmul.f32 %v6571_v12, %v6591_v63 }
  0xc8   :  { %v1156_v42 = vmul.f32 %v6603_v51, %v6527_v16  ;;  %v1157_v24 = vmul.f32 %v6604_v21, %v6558_v0  ;;  %v1041_v50 = vmul.f32 %v4008_v34, %v4316_v41  ;;  %v1042_v7 = vadd.f32 %v1038_v15, %v1030_v61 }
  0xc9   :  { %v1043_v62 = vadd.f32 %v1039_v13, %v1031_v46  ;;  %v1046_v31 = vadd.f32 1.0, %v885_v26  ;;  %v1121_v40 = vmul.f32 %v6569_v39, %v6602_v32  ;;  %v1129_v1 = vmul.f32 %v6555_v5, %v6560_v14 }
  0xca   :  { %v1132_v49 = vadd.f32 %v1128_v54, %v1120_v20  ;;  %v1134_v58 = vadd.f32 %v1131_v11, %v1130_v8  ;;  %v1002_v38 = vadd.f32 %v1001_v6, %v1000_v23  ;;  %v1044_v45 = vadd.f32 %v1040_v53, %v1032_v60  ;;  %v6605_v23 = vld [vmem:[#allocation46_spill] sm:$0xff]  ;;  %v6606_v53 = vld [vmem:[#allocation19_spill] sm:$0xff]  ;;  %v6608_v6 = vld [vmem:[#allocation17_spill] sm:$0xff] }
  0xcb   :  { %v1055_v51 = vmul.f32 %v6527_v16, %v4532_v35  ;;  %v1150_v21 = vmul.f32 %v4159_v30, %v6599_v22  ;;  %v1106_v34 = vadd.f32 %v1105_v17, %v1103_v2  ;;  %v1158_v41 = vmul.f32 %v4164_v25, %v6559_v36  ;;  %v6607_v25 = vld [vmem:[#allocation21_spill] sm:$0xff]  ;;  %v6609_v17 = vld [vmem:[#allocation27_spill] sm:$0xff] }
  0xcc   :  { %v1160_v15 = vadd.f32 %v1156_v42, %v1148_v55  ;;  %v1161_v26 = vadd.f32 %v1157_v24, %v1149_v52  ;;  %v1178_v46 = vmul.f32 %v4213_v56, %v6590_v18  ;;  %v1179_v5 = vmul.f32 %v4224_v9, %v6591_v63  ;;  %v6611_v24 = vld [vmem:[#allocation48_spill] sm:$0xff] }
  0xcd   :  { %v1186_v60 = vmul.f32 %v4229_v33, %v6527_v16  ;;  %v1187_v61 = vmul.f32 %v6605_v23, %v6558_v0  ;;  %v1045_v13 = vadd.f32 %v1041_v50, %v1033_v47  ;;  %v1047_v20 = vmul.f32 %v6606_v53, %v1046_v31  ;;  %v6610_v33 = vld [vmem:[#allocation45_spill] sm:$0xff] }
  0xce   :  { %v1133_v54 = vadd.f32 %v1129_v1, %v1121_v40  ;;  %v1135_v8 = vadd.f32 %v1134_v58, %v1132_v49  ;;  %v1048_v11 = vmul.f32 %v6607_v25, %v1046_v31  ;;  %v1049_v2 = vmul.f32 %v6608_v6, %v1046_v31 }
  0xcf   :  { %v1050_v18 = vmul.f32 %v6609_v17, %v1046_v31  ;;  %v1151_v63 = vmul.f32 %v4169_v27, %v6602_v32  ;;  %v1107_v55 = vrot.slane %v1106_v34, 4  ;;  %v1159_v16 = vmul.f32 %v6610_v33, %v6560_v14 }
  0xd0   :  { %v1162_v52 = vadd.f32 %v1158_v41, %v1150_v21  ;;  %v1164_v42 = vadd.f32 %v1161_v26, %v1160_v15  ;;  %v1180_v47 = vmul.f32 %v6561_v37, %v6599_v22  ;;  %v1188_v50 = vmul.f32 %v6611_v24, %v6559_v36 }
  0xd1   :  { %v1190_v40 = vadd.f32 %v1186_v60, %v1178_v46  ;;  %v1191_v1 = vadd.f32 %v1187_v61, %v1179_v5  ;;  %v1003_v49 = vrot.slane %v1002_v38, 1  ;;  %v1056_v31 = vmul.f32 %v6558_v0, %v4532_v35  ;;  %v6612_v46 = vld [vmem:[#allocation50_spill] sm:$0xff]  ;;  %v6613_v60 = vld [vmem:[#allocation51_spill] sm:$0xff] }
  0xd2   :  { %v1057_v58 = vmul.f32 %v6559_v36, %v4532_v35  ;;  %v1136_v23 = vadd.f32 %v1135_v8, %v1133_v54  ;;  %v1051_v53 = vadd.f32 %v1047_v20, %v1042_v7  ;;  %v1052_v25 = vadd.f32 %v1048_v11, %v1043_v62 }
  0xd3   :  { %v1053_v21 = vadd.f32 %v1049_v2, %v1044_v45  ;;  %v1058_v41 = vmul.f32 %v6560_v14, %v4532_v35  ;;  %v1054_v22 = vadd.f32 %v1050_v18, %v1045_v13  ;;  %v1108_v15 = vadd.f32 %v1107_v55, %v1106_v34 }
  0xd4   :  { %v1163_v26 = vadd.f32 %v1159_v16, %v1151_v63  ;;  %v1165_v6 = vadd.f32 %v1164_v42, %v1162_v52  ;;  %v1181_v5 = vmul.f32 %v6612_v46, %v6602_v32  ;;  %v1189_v0 = vmul.f32 %v6613_v60, %v6560_v14 }
  0xd5   :  { %v1192_v61 = vadd.f32 %v1188_v50, %v1180_v47  ;;  %v1194_v17 = vadd.f32 %v1191_v1, %v1190_v40  ;;  %v4618_v36 = vmul.f32 %v6612_v46, %v4486_v3  ;;  %v4620_v45 = vmul.f32 0.05, %v974_v19  ;;  %v6619_v50 = vld [vmem:[#allocation42_spill] sm:$0xff]  ;;  %v6620_v40 = vld [vmem:[#allocation55_spill] sm:$0xff] }
  0xd6   :  { %v1004_v7 = vadd.f32 %v1003_v49, %v1002_v38  ;;  %v1137_v62 = vrot.slane %v1136_v23, 4  ;;  %v1059_v13 = vadd.f32 %v1055_v51, %v1051_v53  ;;  %v1060_v34 = vadd.f32 %v1056_v31, %v1052_v25  ;;  %v6621_v31 = vld [vmem:[#allocation59_spill] sm:$0xff] }
  0xd7   :  { %6614 = vst [vmem:[#allocation3_spill] sm:$0xff] %v4618_v36  ;;  %6615 = vst [vmem:[#allocation5_spill] sm:$0xff] %v4620_v45  ;;  %v1063_v20 = vmul.f32 %v6564_v44, %v4552_v4  ;;  %v1064_v54 = vmul.f32 %v6565_v29, %v4552_v4  ;;  %v1061_v8 = vadd.f32 %v1057_v58, %v1053_v21  ;;  %v1109_v11 = vrot.slane %v1108_v15, 2 }
  0xd8   :  { %v1065_v14 = vmul.f32 %v6566_v59, %v4552_v4  ;;  %v1166_v2 = vadd.f32 %v1165_v6, %v1163_v26  ;;  %v1062_v18 = vadd.f32 %v1058_v41, %v1054_v22  ;;  %v1066_v19 = vmul.f32 %v6569_v39, %v4552_v4  ;;  %v6622_v26 = vld [vmem:[#allocation61_spill] sm:$0xff] }
  0xd9   :  { %v1193_v38 = vadd.f32 %v1189_v0, %v1181_v5  ;;  %v1195_v63 = vadd.f32 %v1194_v17, %v1192_v61  ;;  %v4632_v51 = vadd.f32 %v4510_v10, %v4496_v43  ;;  %v4636_v44 = vadd.f32 %v4516_v28, %v4498_v48  ;;  %v3192_v28 = vld [vmem:[%s6162_s0 + $0x80] sm:$0xff]  ;;  %v6623_v0 = vld [vmem:[#allocation40_spill] sm:$0xff] }
  0xda   :  { %v4638_v29 = vmul.f32 0.05, %v1004_v7  ;;  %v1138_v55 = vadd.f32 %v1137_v62, %v1136_v23  ;;  %v1067_v59 = vadd.f32 %v1063_v20, %v1059_v13  ;;  %v1068_v33 = vadd.f32 %v1064_v54, %v1060_v34  ;;  %v6625_v62 = vld [vmem:[#allocation63_spill] sm:$0xff]  ;;  %v6626_v34 = vld [vmem:[#allocation20_spill] sm:$0xff] }
  0xdb   :  { %6616 = vst [vmem:[#allocation7_spill] sm:$0xff] %v4632_v51  ;;  %6617 = vst [vmem:[#allocation52_spill] sm:$0xff] %v4636_v44  ;;  %v1071_v16 = vmul.f32 %v6570_v57, %v4620_v45  ;;  %v1072_v39 = vmul.f32 %v6571_v12, %v4620_v45  ;;  %v1069_v52 = vadd.f32 %v1065_v14, %v1061_v8  ;;  %v1167_v42 = vrot.slane %v1166_v2, 4 }
  0xdc   :  { %6618 = vst [vmem:[#allocation54_spill] sm:$0xff] %v4638_v29  ;;  %v1073_v43 = vmul.f32 %v4159_v30, %v4620_v45  ;;  %v1110_v10 = vadd.f32 %v1109_v11, %v1108_v15  ;;  %v1070_v47 = vadd.f32 %v1066_v19, %v1062_v18  ;;  %v1196_v48 = vadd.f32 %v1195_v63, %v1193_v38  ;;  %v3193_v30 = vld [vmem:[%s6162_s0 + $0x88] sm:$0xff]  ;;  %v4685_v11 = vld [vmem:[%s6161_s1 + $0x40] sm:$0xff] }
  0xdd   :  { %v1204_v24 = vmul.f32 -0.1, %v3192_v28  ;;  %v1212_v1 = vmul.f32 %v6620_v40, %v6619_v50  ;;  %v1074_v57 = vmul.f32 %v4169_v27, %v4620_v45  ;;  %v1139_v12 = vrot.slane %v1138_v55, 2  ;;  %v3194_v27 = vld [vmem:[%s6162_s0 + $0x90] sm:$0xff]  ;;  %v4733_v40 = vld [vmem:[%s6161_s1 + $0xa8] sm:$0xff] }
  0xde   :  { %v1205_v49 = vmul.f32 -0.1, %v3193_v30  ;;  %v1213_v58 = vmul.f32 %v6621_v31, %v6619_v50  ;;  %v1075_v23 = vadd.f32 %v1071_v16, %v1067_v59  ;;  %v1076_v53 = vadd.f32 %v1072_v39, %v1068_v33  ;;  %v4709_v59 = vld [vmem:[%s6162_s0 + $0xe8] sm:$0xff]  ;;  %6632 = vst [vmem:[#allocation58_spill] sm:$0xff] %v4733_v40 }
  0xdf   :  { %v1079_v25 = vmul.f32 %v4213_v56, %v4638_v29  ;;  %v1080_v21 = vmul.f32 %v4224_v9, %v4638_v29  ;;  %v1111_v41 = vrot.slane %v1110_v10, 1  ;;  %v1168_v22 = vadd.f32 %v1167_v42, %v1166_v2  ;;  %v6624_v9 = vld [vmem:[#allocation16_spill] sm:$0xff]  ;;  %v4690_v2 = vld [vmem:[%s6161_s1 + $0xe0] sm:$0xff]  ;;  %v4721_v42 = vld [vmem:[%s6161_s1 + $0x50] sm:$0xff] }
  0xe0   :  { %v1206_v15 = vmul.f32 -0.1, %v3194_v27  ;;  %v1214_v6 = vmul.f32 %v6622_v26, %v6619_v50  ;;  %v1197_v5 = vrot.slane %v1196_v48, 4  ;;  %v1207_v60 = vmul.f32 -0.1, %v6602_v32  ;;  %v4767_v27 = vld [vmem:[%s6162_s0 + $0xf0] sm:$0xff] }
  0xe1   :  { %v1215_v61 = vmul.f32 %v6623_v0, %v6619_v50  ;;  %v1216_v56 = vadd.f32 %v1212_v1, %v1204_v24  ;;  %v1140_v17 = vadd.f32 %v1139_v12, %v1138_v55  ;;  %v1217_v7 = vadd.f32 %v1213_v58, %v1205_v49  ;;  %v4704_v55 = vld [vmem:[%s6162_s0 + $0xe0] sm:$0xff] }
  0xe2   :  { %v1224_v13 = vmul.f32 %v6625_v62, %v6624_v9  ;;  %v1225_v20 = vmul.f32 %v6626_v34, %v6624_v9  ;;  %v1077_v54 = vadd.f32 %v1073_v43, %v1069_v52  ;;  %v4674_v8 = vadd.f32 %v1074_v57, %v1070_v47  ;;  %v4716_v43 = vld [vmem:[%s6161_s1 + $0x48] sm:$0xff]  ;;  %v4726_v47 = vld [vmem:[%s6161_s1 + $0xa0] sm:$0xff] }
  0xe3   :  { %v1081_v14 = vmul.f32 %v6561_v37, %v4638_v29  ;;  %v4680_v32 = vmul.f32 %v6612_v46, %v4638_v29  ;;  %v4692_v18 = vadd.f32 %v1079_v25, %v1075_v23  ;;  %v1169_v19 = vrot.slane %v1168_v22, 2  ;;  %v6628_v37 = vld [vmem:[#allocation23_spill] sm:$0xff]  ;;  %v4699_v46 = vld [vmem:[%s6161_s1 + $0xe8] sm:$0xff]  ;;  %6630 = vst [vmem:[#allocation56_spill] sm:$0xff] %v4726_v47 }
  0xe4   :  { %v1218_v38 = vadd.f32 %v1214_v6, %v1206_v15  ;;  %v1226_v63 = vmul.f32 %v6628_v37, %v6624_v9  ;;  %v4711_v33 = vadd.f32 %v1080_v21, %v1076_v53  ;;  %v1112_v16 = vadd.f32 %v1111_v41, %v1110_v10  ;;  %v6631_v10 = vld [vmem:[#allocation14_spill] sm:$0xff]  ;;  %v4738_v1 = vld [vmem:[%s6162_s0 + $0xa0] sm:$0xff]  ;;  %v4743_v57 = vld [vmem:[%s6162_s0 + $0xa8] sm:$0xff] }
  0xe5   :  { %6627 = vst [vmem:[#allocation53_spill] sm:$0xff] %v4692_v18  ;;  %v1198_v39 = vadd.f32 %v1197_v5, %v1196_v48  ;;  %v1219_v52 = vadd.f32 %v1215_v61, %v1207_v60  ;;  %v1141_v28 = vrot.slane %v1140_v17, 1  ;;  %v1227_v48 = vmul.f32 %v6631_v10, %v6624_v9  ;;  %v6633_v53 = vld [vmem:[#allocation62_spill] sm:$0xff]  ;;  %v4762_v41 = vld [vmem:[%s6161_s1 + $0xf0] sm:$0xff]  ;;  %v4795_v62 = vld [vmem:[%s6161_s1 + $0xc0] sm:$0xff] }
  0xe6   :  { %6629 = vst [vmem:[#allocation57_spill] sm:$0xff] %v4711_v33  ;;  %v1228_v24 = vadd.f32 %v1224_v13, %v1216_v56  ;;  %v1229_v50 = vadd.f32 %v1225_v20, %v1217_v7  ;;  %v1350_v12 = vmul.f32 %v4690_v2, %v4738_v1  ;;  %v1351_v30 = vmul.f32 %v4699_v46, %v4743_v57  ;;  %v4785_v7 = vld [vmem:[%s6161_s1 + $0xb0] sm:$0xff]  ;;  %v4805_v13 = vld [vmem:[%s6162_s0 + $0xc0] sm:$0xff]  ;;  %v4810_v34 = vld [vmem:[%s6162_s0 + $0xc8] sm:$0xff] }
  0xe7   :  { %v1358_v49 = vmul.f32 %v4704_v55, %v4726_v47  ;;  %v1359_v31 = vmul.f32 %v4709_v59, %v4733_v40  ;;  %v4753_v58 = vadd.f32 %v1169_v19, %v1168_v22  ;;  %v1230_v23 = vadd.f32 %v1226_v63, %v1218_v38  ;;  %v4772_v22 = vld [vmem:[%s6161_s1 + $0x58] sm:$0xff]  ;;  %6636 = vst [vmem:[#allocation26_spill] sm:$0xff] %v4785_v7  ;;  %v4790_v9 = vld [vmem:[%s6162_s0 + $0xb0] sm:$0xff] }
  0xe8   :  { %v1236_v25 = vmul.f32 %v4685_v11, %v6633_v53  ;;  %v1237_v21 = vmul.f32 %v4716_v43, %v6633_v53  ;;  %v1199_v15 = vrot.slane %v1198_v39, 2  ;;  %6634 = vst [vmem:[#allocation41_spill] sm:$0xff] %v4772_v22  ;;  %v1238_v26 = vmul.f32 %v4721_v42, %v6633_v53  ;;  %6637 = vst [vmem:[#allocation15_spill] sm:$0xff] %v4795_v62 }
  0xe9   :  { %v1302_v6 = vmul.f32 %v4738_v1, %v4726_v47  ;;  %v1303_v5 = vmul.f32 %v4743_v57, %v4733_v40  ;;  %v4780_v60 = vadd.f32 %v1081_v14, %v1077_v54  ;;  %v1113_v0 = vmul.f32 0.1, %v1112_v16 }
  0xea   :  { %v1142_v61 = vadd.f32 %v1141_v28, %v1140_v17  ;;  %v1231_v56 = vadd.f32 %v1227_v48, %v1219_v52  ;;  %v4800_v17 = vld [vmem:[%s6161_s1 + $0xc8] sm:$0xff]  ;;  %v1352_v20 = vmul.f32 %v4762_v41, %v4790_v9  ;;  %v1360_v54 = vmul.f32 %v4767_v27, %v4785_v7  ;;  %v4822_v52 = vld [vmem:[%s6161_s1 + $0xf8] sm:$0xff] }
  0xeb   :  { %6635 = vst [vmem:[#allocation25_spill] sm:$0xff] %v4780_v60  ;;  %6638 = vst [vmem:[#allocation34_spill] sm:$0xff] %v4800_v17  ;;  %v1362_v14 = vadd.f32 %v1358_v49, %v1350_v12  ;;  %v1363_v19 = vadd.f32 %v1359_v31, %v1351_v30  ;;  %v1171_v38 = vrot.slane %v4753_v58, 1  ;;  %v1239_v37 = vmul.f32 %v4772_v22, %v6633_v53  ;;  %v4827_v28 = vld [vmem:[%s6162_s0 + $0xf8] sm:$0xff]  ;;  %v4832_v12 = vld [vmem:[%s6161_s1 + $0x60] sm:$0xff] }
  0xec   :  { %v1240_v63 = vadd.f32 %v1236_v25, %v1228_v24  ;;  %v1241_v16 = vadd.f32 %v1237_v21, %v1229_v50  ;;  %v1200_v10 = vadd.f32 %v1199_v15, %v1198_v39  ;;  %v1242_v48 = vadd.f32 %v1238_v26, %v1230_v23  ;;  %6639 = vst [vmem:[#allocation35_spill] sm:$0xff] %v4832_v12  ;;  %v4837_v24 = vld [vmem:[%s6161_s1 + $0x68] sm:$0xff]  ;;  %v4842_v50 = vld [vmem:[%s6161_s1 + $0x70] sm:$0xff]  ;;  %v4849_v49 = vld [vmem:[%s6161_s1 + $0x78] sm:$0xff] }
  0xed   :  { %6640 = vst [vmem:[#allocation30_spill] sm:$0xff] %v4837_v24  ;;  %6641 = vst [vmem:[#allocation38_spill] sm:$0xff] %v4842_v50  ;;  %v1304_v30 = vmul.f32 %v4790_v9, %v4785_v7  ;;  %v1306_v39 = vadd.f32 %v1303_v5, %v1302_v6  ;;  %v4854_v31 = vld [vmem:[%s6161_s1 + $0xb8] sm:$0xff]  ;;  %v1320_v53 = vmul.f32 %v4795_v62, %v4738_v1  ;;  %v4872_v26 = vld [vmem:[%s6161_s1 + $0xd0] sm:$0xff]  ;;  %v1256_v45 = vadd.f32 1.0, %v1113_v0 }
  0xee   :  { %6642 = vst [vmem:[#allocation36_spill] sm:$0xff] %v4849_v49  ;;  %6643 = vst [vmem:[#allocation8_spill] sm:$0xff] %v4854_v31  ;;  %v4859_v23 = vld [vmem:[%s6162_s0 + $0xb8] sm:$0xff]  ;;  %v1321_v25 = vmul.f32 %v4800_v17, %v4743_v57  ;;  %v1328_v21 = vmul.f32 %v4805_v13, %v4726_v47  ;;  %v1329_v15 = vmul.f32 %v4810_v34, %v4733_v40  ;;  %v4877_v6 = vld [vmem:[%s6162_s0 + $0xd0] sm:$0xff] }
  0xef   :  { %6644 = vst [vmem:[#allocation43_spill] sm:$0xff] %v4872_v26  ;;  %v1353_v5 = vmul.f32 %v4822_v52, %v4859_v23  ;;  %v1361_v36 = vmul.f32 %v4827_v28, %v4854_v31  ;;  %v1364_v44 = vadd.f32 %v1360_v54, %v1352_v20  ;;  %v1366_v51 = vadd.f32 %v1363_v19, %v1362_v14  ;;  %v4902_v0 = vld [vmem:[%s6161_s1 + $0xd8] sm:$0xff] }
  0xf0   :  { %v1243_v60 = vadd.f32 %v1239_v37, %v1231_v56  ;;  %v1248_v33 = vmul.f32 %v4832_v12, %v4532_v35  ;;  %v1249_v18 = vmul.f32 %v4837_v24, %v4532_v35  ;;  %v1250_v40 = vmul.f32 %v4842_v50, %v4532_v35  ;;  %v3195_v50 = vld [vmem:[%s6161_s1 + $0x80] sm:$0xff] }
  0xf1   :  { %v1251_v47 = vmul.f32 %v4849_v49, %v4532_v35  ;;  %v1305_v29 = vmul.f32 %v4859_v23, %v4854_v31  ;;  %v1307_v3 = vadd.f32 %v1306_v39, %v1304_v30  ;;  %v4893_v20 = vmul.f32 0.05, %v1142_v61 }
  0xf2   :  { %v1201_v56 = vrot.slane %v1200_v10, 1  ;;  %v1322_v54 = vmul.f32 %v4872_v26, %v4790_v9  ;;  %v1330_v14 = vmul.f32 %v4877_v6, %v4785_v7  ;;  %v1332_v19 = vadd.f32 %v1328_v21, %v1320_v53  ;;  %v4911_v7 = vld [vmem:[%s6162_s0 + $0xd8] sm:$0xff] }
  0xf3   :  { %6645 = vst [vmem:[#allocation46_spill] sm:$0xff] %v4893_v20  ;;  %v1333_v35 = vadd.f32 %v1329_v15, %v1321_v25  ;;  %v1365_v37 = vadd.f32 %v1361_v36, %v1353_v5  ;;  %v1367_v49 = vadd.f32 %v1366_v51, %v1364_v44  ;;  %v1172_v30 = vadd.f32 %v1171_v38, %v4753_v58  ;;  %v3196_v36 = vld [vmem:[%s6161_s1 + $0x88] sm:$0xff]  ;;  %v3198_v38 = vld [vmem:[%s6161_s1 + $0x98] sm:$0xff] }
  0xf4   :  { %v1252_v61 = vadd.f32 %v1248_v33, %v1240_v63  ;;  %v1253_v39 = vadd.f32 %v1249_v18, %v1241_v16  ;;  %v1257_v24 = vmul.f32 %v3195_v50, %v1256_v45  ;;  %v1254_v12 = vadd.f32 %v1250_v40, %v1242_v48  ;;  %v3197_v18 = vld [vmem:[%s6161_s1 + $0x90] sm:$0xff]  ;;  %v3200_v25 = vld [vmem:[%s6161_s1 + $0xa8] sm:$0xff] }
  0xf5   :  { %v1255_v4 = vadd.f32 %v1251_v47, %v1243_v60  ;;  %v1258_v51 = vmul.f32 %v3196_v36, %v1256_v45  ;;  %v1308_v44 = vadd.f32 %v1307_v3, %v1305_v29  ;;  %v1202_v33 = vadd.f32 %v1201_v56, %v1200_v10  ;;  %v3202_v56 = vld [vmem:[%s6161_s1 + $0xb8] sm:$0xff] }
  0xf6   :  { %v1259_v58 = vmul.f32 %v3197_v18, %v1256_v45  ;;  %v1260_v63 = vmul.f32 %v3198_v38, %v1256_v45  ;;  %v1323_v47 = vmul.f32 %v4902_v0, %v4859_v23  ;;  %v1331_v40 = vmul.f32 %v4911_v7, %v4854_v31  ;;  %v3199_v45 = vld [vmem:[%s6161_s1 + $0xa0] sm:$0xff] }
  0xf7   :  { %v1334_v60 = vadd.f32 %v1330_v14, %v1322_v54  ;;  %v1336_v16 = vadd.f32 %v1333_v35, %v1332_v19  ;;  %v1368_v3 = vadd.f32 %v1367_v49, %v1365_v37  ;;  %v4928_v29 = vadd.f32 %v4680_v32, %v4674_v8  ;;  %v3201_v8 = vld [vmem:[%s6161_s1 + $0xb0] sm:$0xff] }
  0xf8   :  { %v4930_v10 = vmul.f32 0.05, %v1172_v30  ;;  %v1261_v48 = vadd.f32 %v1257_v24, %v1252_v61  ;;  %v1265_v50 = vmul.f32 %v3199_v45, %v4893_v20  ;;  %v1262_v53 = vadd.f32 %v1258_v51, %v1253_v39  ;;  %v3203_v61 = vld [vmem:[%s6161_s1 + $0xc0] sm:$0xff]  ;;  %v4986_v45 = vld [vmem:[%s6161_s1 + $0x8] sm:$0xff] }
  0xf9   :  { %6646 = vst [vmem:[#allocation19_spill] sm:$0xff] %v4928_v29  ;;  %v1266_v49 = vmul.f32 %v3200_v25, %v4893_v20  ;;  %v1267_v32 = vmul.f32 %v3201_v8, %v4893_v20  ;;  %v1309_v24 = vrot.slane %v1308_v44, 4  ;;  %v4944_v21 = vmul.f32 0.05, %v1202_v33 }
  0xfa   :  { %6647 = vst [vmem:[#allocation21_spill] sm:$0xff] %v4930_v10  ;;  %v1263_v15 = vadd.f32 %v1259_v58, %v1254_v12  ;;  %v1264_v5 = vadd.f32 %v1260_v63, %v1255_v4  ;;  %v1268_v54 = vmul.f32 %v3202_v56, %v4893_v20  ;;  %v1335_v14 = vadd.f32 %v1331_v40, %v1323_v47  ;;  %v3204_v4 = vld [vmem:[%s6161_s1 + $0xc8] sm:$0xff] }
  0xfb   :  { %v1337_v19 = vadd.f32 %v1336_v16, %v1334_v60  ;;  %v1369_v35 = vrot.slane %v1368_v3, 4  ;;  %v1496_v37 = vmul.f32 %v4690_v2, %v4805_v13  ;;  %v1269_v30 = vadd.f32 %v1265_v50, %v1261_v48  ;;  %v4981_v48 = vld [vmem:[%s6161_s1] sm:$0xff] }
  0xfc   :  { %v1273_v12 = vmul.f32 %v3203_v61, %v4930_v10  ;;  %v4960_v39 = vmul.f32 %v3204_v4, %v4930_v10  ;;  %v1497_v36 = vmul.f32 %v4699_v46, %v4810_v34  ;;  %v4964_v51 = vadd.f32 %v1266_v49, %v1262_v53  ;;  %v3205_v53 = vld [vmem:[%s6161_s1 + $0xd0] sm:$0xff] }
  0xfd   :  { %v1310_v33 = vadd.f32 %v1309_v24, %v1308_v44  ;;  %v1498_v18 = vmul.f32 %v4762_v41, %v4877_v6  ;;  %v1504_v58 = vmul.f32 %v4704_v55, %v4795_v62  ;;  %v1499_v38 = vmul.f32 %v4822_v52, %v4911_v7 }
  0xfe   :  { %v1505_v63 = vmul.f32 %v4709_v59, %v4800_v17  ;;  %v1506_v47 = vmul.f32 %v4767_v27, %v4872_v26  ;;  %v1507_v40 = vmul.f32 %v4827_v28, %v4902_v0  ;;  %v1271_v60 = vadd.f32 %v1267_v32, %v1263_v15 }
  0xff   :  { %v1338_v44 = vadd.f32 %v1337_v19, %v1335_v14  ;;  %v1370_v16 = vadd.f32 %v1369_v35, %v1368_v3  ;;  %v1508_v50 = vadd.f32 %v1504_v58, %v1496_v37  ;;  %v1275_v25 = vmul.f32 %v3205_v53, %v4930_v10  ;;  %v4996_v3 = vld [vmem:[%s6161_s1 + $0x10] sm:$0xff]  ;;  %v5003_v19 = vld [vmem:[%s6161_s1 + $0x18] sm:$0xff]  ;;  %v3208_v53 = vld [vmem:[%s6161_s1 + $0xe8] sm:$0xff] }
 0x100   :  { %v1376_v49 = vmul.f32 -0.1, %v4738_v1  ;;  %v1509_v8 = vadd.f32 %v1505_v63, %v1497_v36  ;;  %v1510_v32 = vadd.f32 %v1506_v47, %v1498_v18  ;;  %v1272_v24 = vadd.f32 %v1268_v54, %v1264_v5  ;;  %v6648_v35 = vld [vmem:[#allocation10_spill] sm:$0xff]  ;;  %v5017_v18 = vld [vmem:[%s6161_s1 + $0x20] sm:$0xff] }
 0x101   :  { %v1311_v15 = vrot.slane %v1310_v33, 2  ;;  %v1377_v56 = vmul.f32 -0.1, %v4743_v57  ;;  %v1378_v14 = vmul.f32 -0.1, %v4790_v9  ;;  %v1384_v1 = vmul.f32 %v4981_v48, %v6648_v35 }
 0x102   :  { %v1385_v37 = vmul.f32 %v4986_v45, %v6648_v35  ;;  %v1511_v61 = vadd.f32 %v1507_v40, %v1499_v38  ;;  %v1512_v4 = vadd.f32 %v1509_v8, %v1508_v50  ;;  %v1339_v36 = vrot.slane %v1338_v44, 4  ;;  %v3207_v40 = vld [vmem:[%s6161_s1 + $0xe0] sm:$0xff] }
 0x103   :  { %v1371_v5 = vrot.slane %v1370_v16, 2  ;;  %v1379_v54 = vmul.f32 -0.1, %v4859_v23  ;;  %v1386_v57 = vmul.f32 %v4996_v3, %v6648_v35  ;;  %v1387_v9 = vmul.f32 %v5003_v19, %v6648_v35  ;;  %v3206_v23 = vld [vmem:[%s6161_s1 + $0xd8] sm:$0xff] }
 0x104   :  { %v1478_v58 = vmul.f32 %v4805_v13, %v4795_v62  ;;  %v1479_v38 = vmul.f32 %v4810_v34, %v4800_v17  ;;  %v1513_v63 = vadd.f32 %v1512_v4, %v1510_v32  ;;  %v1276_v47 = vmul.f32 %v3206_v23, %v4930_v10  ;;  %v5038_v23 = vld [vmem:[%s6161_s1 + $0x28] sm:$0xff]  ;;  %v5043_v10 = vld [vmem:[%s6161_s1 + $0x30] sm:$0xff] }
 0x105   :  { %v1281_v50 = vmul.f32 %v3207_v40, %v4944_v21  ;;  %v1282_v8 = vmul.f32 %v3208_v53, %v4944_v21  ;;  %v1312_v35 = vadd.f32 %v1311_v15, %v1310_v33  ;;  %v1277_v32 = vadd.f32 %v1273_v12, %v1269_v30  ;;  %v5048_v40 = vld [vmem:[%s6161_s1 + $0x38] sm:$0xff] }
 0x106   :  { %v1388_v4 = vadd.f32 %v1384_v1, %v1376_v49  ;;  %v1389_v29 = vadd.f32 %v1385_v37, %v1377_v56  ;;  %v1514_v53 = vadd.f32 %v1513_v63, %v1511_v61  ;;  %v1340_v33 = vadd.f32 %v1339_v36, %v1338_v44  ;;  %v6649_v49 = vld [vmem:[#allocation39_spill] sm:$0xff]  ;;  %v3209_v61 = vld [vmem:[%s6161_s1 + $0xf0] sm:$0xff] }
 0x107   :  { %v1372_v30 = vadd.f32 %v1371_v5, %v1370_v16  ;;  %v1390_v12 = vadd.f32 %v1386_v57, %v1378_v14  ;;  %v1396_v15 = vmul.f32 %v5017_v18, %v6649_v49  ;;  %v1391_v56 = vadd.f32 %v1387_v9, %v1379_v54 }
 0x108   :  { %v1480_v1 = vmul.f32 %v4877_v6, %v4872_v26  ;;  %v1482_v37 = vadd.f32 %v1479_v38, %v1478_v58  ;;  %v1515_v20 = vrot.slane %v1514_v53, 4  ;;  %v1313_v17 = vrot.slane %v1312_v35, 1  ;;  %v6653_v38 = vld [vmem:[#allocation22_spill] sm:$0xff] }
 0x109   :  { %v1397_v62 = vmul.f32 %v5038_v23, %v6649_v49  ;;  %v1398_v31 = vmul.f32 %v5043_v10, %v6649_v49  ;;  %v1399_v44 = vmul.f32 %v5048_v40, %v6649_v49  ;;  %v1278_v16 = vadd.f32 %v4960_v39, %v4964_v51 }
 0x10a   :  { %v5062_v14 = vadd.f32 %v1275_v25, %v1271_v60  ;;  %v5068_v36 = vmul.f32 %v3209_v61, %v4944_v21  ;;  %v1516_v5 = vadd.f32 %v1515_v20, %v1514_v53  ;;  %v5070_v54 = vadd.f32 %v1276_v47, %v1272_v24  ;;  %v3210_v53 = vld [vmem:[%s6161_s1 + $0xf8] sm:$0xff]  ;;  %v6658_v61 = vld [vmem:[#allocation37_spill] sm:$0xff] }
 0x10b   :  { %v1341_v57 = vrot.slane %v1340_v33, 2  ;;  %v1373_v9 = vrot.slane %v1372_v30, 1  ;;  %v1400_v58 = vadd.f32 %v1396_v15, %v1388_v4  ;;  %v1408_v63 = vmul.f32 %v4685_v11, %v6653_v38 }
 0x10c   :  { %6650 = vst [vmem:[#allocation17_spill] sm:$0xff] %v5062_v14  ;;  %6651 = vst [vmem:[#allocation27_spill] sm:$0xff] %v5068_v36  ;;  %v1481_v39 = vmul.f32 %v4911_v7, %v4902_v0  ;;  %v1483_v51 = vadd.f32 %v1482_v37, %v1480_v1  ;;  %v1517_v60 = vrot.slane %v1516_v5, 2  ;;  %v1314_v25 = vadd.f32 %v1313_v17, %v1312_v35 }
 0x10d   :  { %6652 = vst [vmem:[#allocation45_spill] sm:$0xff] %v5070_v54  ;;  %v1401_v49 = vadd.f32 %v1397_v62, %v1389_v29  ;;  %v1402_v14 = vadd.f32 %v1398_v31, %v1390_v12  ;;  %v1403_v26 = vadd.f32 %v1399_v44, %v1391_v56  ;;  %v1409_v20 = vmul.f32 %v4716_v43, %v6653_v38 }
 0x10e   :  { %v1410_v24 = vmul.f32 %v4721_v42, %v6653_v38  ;;  %v1411_v47 = vmul.f32 %v4772_v22, %v6653_v38  ;;  %v1518_v4 = vadd.f32 %v1517_v60, %v1516_v5  ;;  %v5086_v15 = vmul.f32 %v3210_v53, %v4944_v21 }
 0x10f   :  { %v5088_v62 = vadd.f32 %v1281_v50, %v1277_v32  ;;  %v5090_v17 = vadd.f32 %v1341_v57, %v1340_v33  ;;  %v1374_v31 = vadd.f32 %v1373_v9, %v1372_v30  ;;  %v1484_v29 = vadd.f32 %v1483_v51, %v1481_v39  ;;  %v6659_v50 = vld [vmem:[#allocation35_spill] sm:$0xff] }
 0x110   :  { %6654 = vst [vmem:[#allocation48_spill] sm:$0xff] %v5086_v15  ;;  %v1519_v35 = vrot.slane %v1518_v4, 1  ;;  %v1628_v12 = vmul.f32 %v4704_v55, %v4690_v2  ;;  %v1629_v56 = vmul.f32 %v4709_v59, %v4699_v46  ;;  %v5096_v1 = vadd.f32 %v1282_v8, %v1278_v16  ;;  %v6660_v16 = vld [vmem:[#allocation30_spill] sm:$0xff]  ;;  %v6665_v8 = vld [vmem:[#allocation49_spill] sm:$0xff] }
 0x111   :  { %6655 = vst [vmem:[#allocation50_spill] sm:$0xff] %v5088_v62  ;;  %v5098_v37 = vmul.f32 0.1, %v1314_v25  ;;  %v5100_v44 = vadd.f32 %v1408_v63, %v1400_v58  ;;  %v5104_v32 = vmul.f32 %v6659_v50, %v6658_v61  ;;  %v5106_v33 = vadd.f32 %v1409_v20, %v1401_v49  ;;  %v6662_v20 = vld [vmem:[#allocation38_spill] sm:$0xff]  ;;  %v6666_v62 = vld [vmem:[#allocation29_spill] sm:$0xff] }
 0x112   :  { %6656 = vst [vmem:[#allocation51_spill] sm:$0xff] %v5096_v1  ;;  %v5108_v30 = vadd.f32 %v1410_v24, %v1402_v14  ;;  %v5110_v5 = vadd.f32 %v1411_v47, %v1403_v26  ;;  %v1630_v57 = vmul.f32 %v4767_v27, %v4762_v41  ;;  %v5117_v9 = vmul.f32 %v6660_v16, %v6658_v61 }
 0x113   :  { %6657 = vst [vmem:[#allocation42_spill] sm:$0xff] %v5098_v37  ;;  %v1631_v58 = vmul.f32 %v4827_v28, %v4822_v52  ;;  %v1632_v38 = vadd.f32 %v1629_v56, %v1628_v12  ;;  %v5121_v63 = vmul.f32 0.05, %v1374_v31  ;;  %v1485_v39 = vrot.slane %v1484_v29, 4  ;;  %v6663_v31 = vld [vmem:[#allocation12_spill] sm:$0xff] }
 0x114   :  { %v1520_v14 = vadd.f32 %v1519_v35, %v1518_v4  ;;  %v5124_v26 = vmul.f32 -0.1, %v4805_v13  ;;  %v5127_v51 = vmul.f32 -0.1, %v4810_v34  ;;  %v1642_v25 = vmul.f32 -0.1, %v4704_v55 }
 0x115   :  { %6661 = vst [vmem:[#allocation55_spill] sm:$0xff] %v5121_v63  ;;  %v1633_v60 = vadd.f32 %v1632_v38, %v1630_v57  ;;  %v1643_v49 = vmul.f32 -0.1, %v4709_v59  ;;  %v5133_v24 = vmul.f32 %v6662_v20, %v6658_v61  ;;  %v5136_v47 = vmul.f32 -0.1, %v4877_v6  ;;  %v6664_v6 = vld [vmem:[#allocation11_spill] sm:$0xff] }
 0x116   :  { %v1644_v4 = vmul.f32 -0.1, %v4767_v27  ;;  %v1645_v13 = vmul.f32 -0.1, %v4827_v28  ;;  %v1650_v34 = vmul.f32 %v4981_v48, %v6663_v31  ;;  %v1651_v55 = vmul.f32 %v4986_v45, %v6663_v31  ;;  %v6672_v37 = vld [vmem:[#allocation8_spill] sm:$0xff] }
 0x117   :  { %v1634_v53 = vadd.f32 %v1633_v60, %v1631_v58  ;;  %v1652_v59 = vmul.f32 %v4996_v3, %v6663_v31  ;;  %v5146_v35 = vadd.f32 %v1485_v39, %v1484_v29  ;;  %v5148_v12 = vmul.f32 0.05, %v1520_v14 }
 0x118   :  { %v5152_v56 = vmul.f32 %v4981_v48, %v6664_v6  ;;  %v5156_v27 = vmul.f32 %v4986_v45, %v6664_v6  ;;  %v1653_v57 = vmul.f32 %v5003_v19, %v6663_v31  ;;  %v1654_v58 = vadd.f32 %v1650_v34, %v1642_v25 }
 0x119   :  { %v1635_v28 = vrot.slane %v1634_v53, 4  ;;  %v1655_v38 = vadd.f32 %v1651_v55, %v1643_v49  ;;  %v1656_v60 = vadd.f32 %v1652_v59, %v1644_v4  ;;  %v1662_v29 = vmul.f32 %v5017_v18, %v6665_v8 }
 0x11a   :  { %v1663_v39 = vmul.f32 %v5038_v23, %v6665_v8  ;;  %v1664_v48 = vmul.f32 %v5043_v10, %v6665_v8  ;;  %v1657_v1 = vadd.f32 %v1653_v57, %v1645_v13  ;;  %v1665_v45 = vmul.f32 %v5048_v40, %v6665_v8  ;;  %v6667_v8 = vld [vmem:[#allocation54_spill] sm:$0xff] }
 0x11b   :  { %v1636_v14 = vadd.f32 %v1635_v28, %v1634_v53  ;;  %v1674_v31 = vmul.f32 %v4685_v11, %v6666_v62  ;;  %v1666_v25 = vadd.f32 %v1662_v29, %v1654_v58  ;;  %v1675_v34 = vmul.f32 %v4716_v43, %v6666_v62 }
 0x11c   :  { %v1667_v49 = vadd.f32 %v1663_v39, %v1655_v38  ;;  %v1668_v4 = vadd.f32 %v1664_v48, %v1656_v60  ;;  %v1669_v59 = vadd.f32 %v1665_v45, %v1657_v1  ;;  %v1676_v15 = vmul.f32 %v4721_v42, %v6666_v62  ;;  %v5183_v38 = vld [vmem:[%s6161_s1 + $0x80] sm:$0xff]  ;;  %v5195_v48 = vld [vmem:[%s6161_s1 + $0x90] sm:$0xff]  ;;  %v6668_v45 = vld [vmem:[#allocation36_spill] sm:$0xff] }
 0x11d   :  { %v1637_v55 = vrot.slane %v1636_v14, 2  ;;  %v1677_v13 = vmul.f32 %v4772_v22, %v6666_v62  ;;  %v1678_v53 = vadd.f32 %v1674_v31, %v1666_v25  ;;  %v1686_v57 = vmul.f32 %v6659_v50, %v6667_v8  ;;  %v5190_v62 = vld [vmem:[%s6161_s1 + $0x88] sm:$0xff] }
 0x11e   :  { %v1679_v28 = vadd.f32 %v1675_v34, %v1667_v49  ;;  %v1687_v58 = vmul.f32 %v6660_v16, %v6667_v8  ;;  %v1680_v60 = vadd.f32 %v1676_v15, %v1668_v4  ;;  %v1688_v39 = vmul.f32 %v6662_v20, %v6667_v8  ;;  %v5204_v49 = vld [vmem:[%s6161_s1 + $0x98] sm:$0xff] }
 0x11f   :  { %v1638_v1 = vadd.f32 %v1637_v55, %v1636_v14  ;;  %v1681_v29 = vadd.f32 %v1677_v13, %v1669_v59  ;;  %v1689_v31 = vmul.f32 %v6668_v45, %v6667_v8  ;;  %v1690_v25 = vadd.f32 %v1686_v57, %v1678_v53  ;;  %v6669_v8 = vld [vmem:[#allocation56_spill] sm:$0xff]  ;;  %v6670_v20 = vld [vmem:[#allocation58_spill] sm:$0xff] }
 0x120   :  { %v1691_v14 = vadd.f32 %v1687_v58, %v1679_v28  ;;  %v1698_v15 = vmul.f32 %v5183_v38, %v4944_v21  ;;  %v1692_v34 = vadd.f32 %v1688_v39, %v1680_v60  ;;  %v1699_v55 = vmul.f32 %v5190_v62, %v4944_v21  ;;  %v6671_v16 = vld [vmem:[#allocation26_spill] sm:$0xff] }
 0x121   :  { %v1639_v4 = vrot.slane %v1638_v1, 1  ;;  %v1700_v59 = vmul.f32 %v5195_v48, %v4944_v21  ;;  %v1693_v13 = vadd.f32 %v1689_v31, %v1681_v29  ;;  %v1701_v53 = vmul.f32 %v5204_v49, %v4944_v21 }
 0x122   :  { %v1702_v28 = vadd.f32 %v1698_v15, %v1690_v25  ;;  %v1710_v57 = vmul.f32 %v6669_v8, %v5121_v63  ;;  %v1703_v54 = vadd.f32 %v1699_v55, %v1691_v14  ;;  %v1711_v60 = vmul.f32 %v6670_v20, %v5121_v63  ;;  %v6673_v25 = vld [vmem:[#allocation15_spill] sm:$0xff] }
 0x123   :  { %v1640_v58 = vadd.f32 %v1639_v4, %v1638_v1  ;;  %v1704_v36 = vadd.f32 %v1700_v59, %v1692_v34  ;;  %v1705_v39 = vadd.f32 %v1701_v53, %v1693_v13  ;;  %v1712_v50 = vmul.f32 %v6671_v16, %v5121_v63  ;;  %v6674_v1 = vld [vmem:[#allocation34_spill] sm:$0xff]  ;;  %v6675_v55 = vld [vmem:[#allocation43_spill] sm:$0xff] }
 0x124   :  { %v1713_v29 = vmul.f32 %v6672_v37, %v5121_v63  ;;  %v1714_v31 = vadd.f32 %v1710_v57, %v1702_v28  ;;  %v1715_v21 = vadd.f32 %v1711_v60, %v1703_v54  ;;  %v1722_v15 = vmul.f32 %v6673_v25, %v5148_v12  ;;  %v6676_v28 = vld [vmem:[#allocation13_spill] sm:$0xff]  ;;  %v6677_v60 = vld [vmem:[#allocation6_spill] sm:$0xff] }
 0x125   :  { %v1641_v22 = vmul.f32 0.1, %v1640_v58  ;;  %v1723_v14 = vmul.f32 %v6674_v1, %v5148_v12  ;;  %v1716_v4 = vadd.f32 %v1712_v50, %v1704_v36  ;;  %v1724_v59 = vmul.f32 %v6675_v55, %v5148_v12  ;;  %v6678_v1 = vld [vmem:[#allocation9_spill] sm:$0xff] }
 0x126   :  { %v1717_v34 = vadd.f32 %v1713_v29, %v1705_v39  ;;  %v1725_v13 = vmul.f32 %v4902_v0, %v5148_v12  ;;  %v1726_v53 = vadd.f32 %v1722_v15, %v1714_v31  ;;  %v1748_v54 = vmul.f32 %v6676_v28, %v6676_v28  ;;  %v6679_v15 = vld [vmem:[#allocation18_spill] sm:$0xff] }
 0x127   :  { %v1727_v16 = vadd.f32 %v1723_v14, %v1715_v21  ;;  %v1730_v63 = vadd.f32 1.0, %v1641_v22  ;;  %v1728_v57 = vadd.f32 %v1724_v59, %v1716_v4  ;;  %v1749_v25 = vmul.f32 %v6677_v60, %v6677_v60 }
 0x128   :  { %v1729_v58 = vadd.f32 %v1725_v13, %v1717_v34  ;;  %v1750_v36 = vmul.f32 %v6678_v1, %v6678_v1  ;;  %v1487_v22 = vrot.slane %v5146_v35, 2  ;;  %v1532_v21 = vmul.f32 %v4996_v3, %v6664_v6 }
 0x129   :  { %v1731_v50 = vmul.f32 %v4690_v2, %v1730_v63  ;;  %v1732_v39 = vmul.f32 %v4699_v46, %v1730_v63  ;;  %v1733_v29 = vmul.f32 %v4762_v41, %v1730_v63  ;;  %v1734_v31 = vmul.f32 %v4822_v52, %v1730_v63 }
 0x12a   :  { %v1751_v14 = vmul.f32 %v6679_v15, %v6679_v15  ;;  %v1752_v4 = vadd.f32 %v1749_v25, %v1748_v54  ;;  %v1423_v63 = vmul.f32 %v6668_v45, %v6658_v61  ;;  %v1525_v60 = vmul.f32 -0.1, %v4911_v7 }
 0x12b   :  { %v5243_v34 = vadd.f32 %v1731_v50, %v1726_v53  ;;  %v5245_v59 = vadd.f32 %v1732_v39, %v1727_v16  ;;  %v5247_v13 = vadd.f32 %v1733_v29, %v1728_v57  ;;  %v5249_v1 = vadd.f32 %v1734_v31, %v1729_v58  ;;  %v6680_v53 = vld [vmem:[#allocation46_spill] sm:$0xff]  ;;  %v6681_v57 = vld [vmem:[#allocation44_spill] sm:$0xff] }
 0x12c   :  { %v1533_v3 = vmul.f32 %v5003_v19, %v6664_v6  ;;  %v1753_v28 = vadd.f32 %v1752_v4, %v1750_v36  ;;  %v1424_v25 = vadd.f32 %v5104_v32, %v5100_v44  ;;  %v1432_v16 = vmul.f32 %v5183_v38, %v6680_v53 }
 0x12d   :  { %v1534_v54 = vadd.f32 %v5152_v56, %v5124_v26  ;;  %v1542_v58 = vmul.f32 %v5017_v18, %v6681_v57  ;;  %v1488_v61 = vadd.f32 %v1487_v22, %v5146_v35  ;;  %v1535_v7 = vadd.f32 %v5156_v27, %v5127_v51 }
 0x12e   :  { %v1543_v19 = vmul.f32 %v5038_v23, %v6681_v57  ;;  %v1754_v6 = vadd.f32 %v1753_v28, %v1751_v14  ;;  %v1425_v44 = vadd.f32 %v5117_v9, %v5106_v33  ;;  %v1426_v32 = vadd.f32 %v5133_v24, %v5108_v30  ;;  %v6683_v24 = vld [vmem:[#allocation28_spill] sm:$0xff]  ;;  %v6685_v14 = vld [vmem:[#allocation42_spill] sm:$0xff] }
 0x12f   :  { %v1536_v26 = vadd.f32 %v1532_v21, %v5136_v47  ;;  %v1544_v18 = vmul.f32 %v5043_v10, %v6681_v57  ;;  %v1433_v35 = vmul.f32 %v5190_v62, %v6680_v53  ;;  %v1537_v56 = vadd.f32 %v1533_v3, %v1525_v60  ;;  %v6687_v3 = vld [vmem:[#allocation35_spill] sm:$0xff] }
 0x130   :  { %v1545_v51 = vmul.f32 %v5048_v40, %v6681_v57  ;;  %v1755_v23 = vrot.slane %v1754_v6, 4  ;;  %v6682_v27 = vrot.slane %v5090_v17, 1  ;;  %v1427_v9 = vadd.f32 %v1423_v63, %v5110_v5  ;;  %v6686_v63 = vld [vmem:[#allocation5_spill] sm:$0xff] }
 0x131   :  { %v1546_v30 = vadd.f32 %v1542_v58, %v1534_v54  ;;  %v1554_v47 = vmul.f32 %v4685_v11, %v6683_v24  ;;  %v1489_v28 = vrot.slane %v1488_v61, 1  ;;  %v1547_v10 = vadd.f32 %v1543_v19, %v1535_v7  ;;  %v6684_v11 = vld [vmem:[#allocation41_spill] sm:$0xff] }
 0x132   :  { %v1344_v33 = vadd.f32 %v6682_v27, %v5090_v17  ;;  %v1555_v36 = vmul.f32 %v4716_v43, %v6683_v24  ;;  %v1756_v60 = vadd.f32 %v1755_v23, %v1754_v6  ;;  %v1434_v40 = vmul.f32 %v5195_v48, %v6680_v53  ;;  %v6689_v6 = vld [vmem:[#allocation38_spill] sm:$0xff]  ;;  %v6690_v27 = vld [vmem:[#allocation21_spill] sm:$0xff] }
 0x133   :  { %v1435_v50 = vmul.f32 %v5204_v49, %v6680_v53  ;;  %v1548_v39 = vadd.f32 %v1544_v18, %v1536_v26  ;;  %v1556_v17 = vmul.f32 %v4721_v42, %v6683_v24  ;;  %v1436_v5 = vadd.f32 %v1432_v16, %v1424_v25  ;;  %v6688_v53 = vld [vmem:[#allocation30_spill] sm:$0xff] }
 0x134   :  { %v1549_v29 = vadd.f32 %v1545_v51, %v1537_v56  ;;  %v1557_v31 = vmul.f32 %v6684_v11, %v6683_v24  ;;  %v1757_v22 = vrot.slane %v1756_v60, 2  ;;  %v1437_v21 = vadd.f32 %v1433_v35, %v1425_v44 }
 0x135   :  { %v1440_v43 = vadd.f32 1.0, %v6685_v14  ;;  %v1558_v4 = vadd.f32 %v1554_v47, %v1546_v30  ;;  %v1566_v54 = vmul.f32 %v6687_v3, %v6686_v63  ;;  %v1490_v57 = vadd.f32 %v1489_v28, %v1488_v61 }
 0x136   :  { %v1559_v58 = vadd.f32 %v1555_v36, %v1547_v10  ;;  %v1567_v7 = vmul.f32 %v6688_v53, %v6686_v63  ;;  %v1758_v19 = vadd.f32 %v1757_v22, %v1756_v60  ;;  %v1345_v42 = vmul.f32 0.05, %v1344_v33  ;;  %v6694_v53 = vld [vmem:[#allocation55_spill] sm:$0xff] }
 0x137   :  { %v1438_v25 = vadd.f32 %v1434_v40, %v1426_v32  ;;  %v1560_v16 = vadd.f32 %v1556_v17, %v1548_v39  ;;  %v1568_v26 = vmul.f32 %v6689_v6, %v6686_v63  ;;  %v1439_v18 = vadd.f32 %v1435_v50, %v1427_v9  ;;  %v6691_v9 = vld [vmem:[#allocation26_spill] sm:$0xff]  ;;  %v6695_v6 = vld [vmem:[#allocation17_spill] sm:$0xff] }
 0x138   :  { %v1561_v44 = vadd.f32 %v1557_v31, %v1549_v29  ;;  %v1569_v35 = vmul.f32 %v6668_v45, %v6686_v63  ;;  %v1759_v56 = vrot.slane %v1758_v19, 1  ;;  %v1441_v51 = vmul.f32 %v6669_v8, %v1440_v43  ;;  %v6692_v45 = vld [vmem:[#allocation15_spill] sm:$0xff]  ;;  %v6693_v29 = vld [vmem:[#allocation34_spill] sm:$0xff] }
 0x139   :  { %v1442_v61 = vmul.f32 %v6670_v20, %v1440_v43  ;;  %v1570_v23 = vadd.f32 %v1566_v54, %v1558_v4  ;;  %v1578_v30 = vmul.f32 %v5183_v38, %v6690_v27  ;;  %v1491_v33 = vmul.f32 0.1, %v1490_v57 }
 0x13a   :  { %v1571_v32 = vadd.f32 %v1567_v7, %v1559_v58  ;;  %v1579_v24 = vmul.f32 %v5190_v62, %v6690_v27  ;;  %v1760_v47 = vadd.f32 %v1759_v56, %v1758_v19  ;;  %v1443_v28 = vmul.f32 %v6691_v9, %v1440_v43 }
 0x13b   :  { %v1444_v10 = vmul.f32 %v6672_v37, %v1440_v43  ;;  %v1449_v36 = vmul.f32 %v6692_v45, %v1345_v42  ;;  %v1572_v60 = vadd.f32 %v1568_v26, %v1560_v16  ;;  %v1573_v40 = vadd.f32 %v1569_v35, %v1561_v44  ;;  %v6696_v26 = vld [vmem:[#allocation27_spill] sm:$0xff]  ;;  %v6697_v44 = vld [vmem:[#allocation45_spill] sm:$0xff] }
 0x13c   :  { %v1580_v50 = vmul.f32 %v5195_v48, %v6690_v27  ;;  %v1581_v38 = vmul.f32 %v5204_v49, %v6690_v27  ;;  %3167 = vrsqrt.f32 %v1760_v47  ;;  %v1445_v39 = vadd.f32 %v1441_v51, %v1436_v5 }
 0x13d   :  { %v1446_v17 = vadd.f32 %v1442_v61, %v1437_v21  ;;  %v1450_v62 = vmul.f32 %v6693_v29, %v1345_v42  ;;  %v1582_v11 = vadd.f32 %v1578_v30, %v1570_v23  ;;  %v1583_v31 = vadd.f32 %v1579_v24, %v1571_v32 }
 0x13e   :  { %v1590_v22 = vmul.f32 %v6669_v8, %v1345_v42  ;;  %v1591_v14 = vmul.f32 %v6670_v20, %v1345_v42  ;;  %v1598_v43 = vadd.f32 1.0, %v1491_v33  ;;  %v1447_v4 = vadd.f32 %v1443_v28, %v1438_v25 }
 0x13f   :  { %v1448_v63 = vadd.f32 %v1444_v10, %v1439_v18  ;;  %v1451_v3 = vmul.f32 %v6675_v55, %v1345_v42  ;;  %v1452_v48 = vmul.f32 %v4902_v0, %v1345_v42  ;;  %v1584_v54 = vadd.f32 %v1580_v50, %v1572_v60 }
 0x140   :  { %v1585_v49 = vadd.f32 %v1581_v38, %v1573_v40  ;;  %v1592_v5 = vmul.f32 %v6691_v9, %v1345_v42  ;;  %v1593_v21 = vmul.f32 %v6672_v37, %v1345_v42  ;;  %v1453_v57 = vadd.f32 %v1449_v36, %v1445_v39  ;;  %v6698_v37 = vld [vmem:[#allocation48_spill] sm:$0xff]  ;;  %v6700_v36 = vld [vmem:[#allocation6_spill] sm:$0xff]  ;;  %v6701_v40 = vld [vmem:[#allocation9_spill] sm:$0xff] }
 0x141   :  { %v1454_v58 = vadd.f32 %v1450_v62, %v1446_v17  ;;  %v1457_v8 = vmul.f32 %v4690_v2, %v6694_v53  ;;  %v1458_v20 = vmul.f32 %v4699_v46, %v6694_v53  ;;  %v1594_v7 = vadd.f32 %v1590_v22, %v1582_v11  ;;  %v6705_v62 = vld [vmem:[#allocation24_spill] sm:$0xff] }
 0x142   :  { %v1595_v19 = vadd.f32 %v1591_v14, %v1583_v31  ;;  %v1599_v25 = vmul.f32 %v6692_v45, %v1598_v43  ;;  %v1600_v16 = vmul.f32 %v6693_v29, %v1598_v43  ;;  %v5333_v18 = vadd.f32 %v6696_v26, %v6695_v6 }
 0x143   :  { %v5337_v42 = vadd.f32 %v6698_v37, %v6697_v44  ;;  %v1455_v35 = vadd.f32 %v1451_v3, %v1447_v4  ;;  %v1456_v56 = vadd.f32 %v1452_v48, %v1448_v63  ;;  %v1596_v51 = vadd.f32 %v1592_v5, %v1584_v54  ;;  %v6708_v3 = vld [vmem:[#allocation53_spill] sm:$0xff] }
 0x144   :  { %v1597_v61 = vadd.f32 %v1593_v21, %v1585_v49  ;;  %v1601_v23 = vmul.f32 %v6675_v55, %v1598_v43  ;;  %v1602_v27 = vmul.f32 %v4902_v0, %v1598_v43  ;;  %v1459_v30 = vmul.f32 %v4762_v41, %v6694_v53  ;;  %v6699_v0 = vld [vmem:[#allocation13_spill] sm:$0xff]  ;;  %v6707_v43 = vld [vmem:[#allocation31_spill] sm:$0xff] }
 0x145   :  { %v1460_v33 = vmul.f32 %v4822_v52, %v6694_v53  ;;  %v5345_v32 = vadd.f32 %v1457_v8, %v1453_v57  ;;  %v5347_v24 = vadd.f32 %v1458_v20, %v1454_v58  ;;  %v1603_v9 = vadd.f32 %v1599_v25, %v1594_v7  ;;  %v6709_v54 = vld [vmem:[#allocation57_spill] sm:$0xff]  ;;  %v6711_v53 = vld [vmem:[#allocation50_spill] sm:$0xff]  ;;  %v6712_v20 = vld [vmem:[#allocation51_spill] sm:$0xff] }
 0x146   :  { %v3168_v47 = vpop.eup %3167  ;;  %v1604_v28 = vadd.f32 %v1600_v16, %v1595_v19  ;;  %v1607_v10 = vmul.f32 %v4690_v2, %v5148_v12  ;;  %v1608_v55 = vmul.f32 %v4699_v46, %v5148_v12  ;;  %v1605_v39 = vadd.f32 %v1601_v23, %v1596_v51  ;;  %v6710_v5 = vld [vmem:[#allocation25_spill] sm:$0xff]  ;;  %v6713_v25 = vld [vmem:[#allocation19_spill] sm:$0xff] }
 0x147   :  { %v5354_v45 = vmul.f32 %v3168_v47, %v6699_v0  ;;  %v5357_v60 = vmul.f32 %v3168_v47, %v6700_v36  ;;  %v5360_v50 = vmul.f32 %v3168_v47, %v6701_v40  ;;  %v5363_v38 = vmul.f32 %v3168_v47, %v6679_v15  ;;  %v6714_v51 = vld [vmem:[#allocation47_spill] sm:$0xff] }
 0x148   :  { %v1606_v17 = vadd.f32 %v1602_v27, %v1597_v61  ;;  %v1609_v2 = vmul.f32 %v4762_v41, %v5148_v12  ;;  %v1610_v46 = vmul.f32 %v4822_v52, %v5148_v12  ;;  %v5369_v29 = vadd.f32 %v1459_v30, %v1455_v35  ;;  %v6703_v41 = vld [vmem:[#allocation60_spill] sm:$0xff]  ;;  %v6715_v61 = vld [vmem:[#allocation33_spill] sm:$0xff] }
 0x149   :  { %1766 = vst [vmem:[%s6163_s2] sm:$0xff] %v5354_v45  ;;  %1767 = vst [vmem:[%s6163_s2 + $0x8] sm:$0xff] %v5357_v60  ;;  %v1774_v52 = vmul.f32 %v5354_v45, %v6703_v41  ;;  %v6704_v12 = vld [vmem:[#allocation4_spill] sm:$0xff]  ;;  %v1776_v11 = vmul.f32 %v5360_v50, %v6705_v62  ;;  %v5393_v31 = vadd.f32 %v1460_v33, %v1456_v56 }
 0x14a   :  { %6702 = vst [vmem:[#allocation59_spill] sm:$0xff] %v5369_v29  ;;  %1768 = vst [vmem:[%s6163_s2 + $0x10] sm:$0xff] %v5360_v50  ;;  %v1775_v15 = vmul.f32 %v5357_v60, %v6704_v12  ;;  %v5395_v22 = vadd.f32 %v1607_v10, %v1603_v9  ;;  %v5397_v14 = vadd.f32 %v1608_v55, %v1604_v28 }
 0x14b   :  { %1769 = vst [vmem:[%s6163_s2 + $0x18] sm:$0xff] %v5363_v38  ;;  %6706 = vst [vmem:[#allocation61_spill] sm:$0xff] %v5393_v31  ;;  %v1777_v4 = vmul.f32 %v5363_v38, %v6707_v43  ;;  %v1832_v48 = vmul.f32 %v5354_v45, %v6708_v3  ;;  %v1833_v49 = vmul.f32 %v5357_v60, %v6709_v54 }
 0x14c   :  { %v1778_v63 = vadd.f32 %v1775_v15, %v1774_v52  ;;  %v1834_v21 = vmul.f32 %v5360_v50, %v6710_v5  ;;  %v5407_v57 = vadd.f32 %v1609_v2, %v1605_v39  ;;  %v5409_v58 = vadd.f32 %v1610_v46, %v1606_v17  ;;  %v6716_v39 = vld [vmem:[#allocation7_spill] sm:$0xff] }
 0x14d   :  { %v1861_v8 = vmul.f32 %v5354_v45, %v6711_v53  ;;  %v1862_v7 = vmul.f32 %v5357_v60, %v6712_v20  ;;  %v1835_v16 = vmul.f32 %v5363_v38, %v6713_v25  ;;  %v1836_v6 = vadd.f32 %v1833_v49, %v1832_v48  ;;  %v6717_v48 = vld [vmem:[#allocation52_spill] sm:$0xff] }
 0x14e   :  { %v1779_v19 = vadd.f32 %v1778_v63, %v1776_v11  ;;  %v1863_v26 = vmul.f32 %v5360_v50, %v5333_v18  ;;  %v1864_v44 = vmul.f32 %v5363_v38, %v5337_v42  ;;  %v1890_v35 = vmul.f32 %v5354_v45, %v5345_v32 }
 0x14f   :  { %v1865_v37 = vadd.f32 %v1862_v7, %v1861_v8  ;;  %v1891_v56 = vmul.f32 %v5357_v60, %v5347_v24  ;;  %v5427_v23 = vadd.f32 %v6715_v61, %v6714_v51  ;;  %v1837_v30 = vadd.f32 %v1836_v6, %v1834_v21 }
 0x150   :  { %v1780_v27 = vadd.f32 %v1779_v19, %v1777_v4  ;;  %v1892_v33 = vmul.f32 %v5360_v50, %v5369_v29  ;;  %v1893_v9 = vmul.f32 %v5363_v38, %v5393_v31  ;;  %v1919_v10 = vmul.f32 %v5354_v45, %v5395_v22 }
 0x151   :  { %v1866_v47 = vadd.f32 %v1865_v37, %v1863_v26  ;;  %v1894_v28 = vadd.f32 %v1891_v56, %v1890_v35  ;;  %v1838_v0 = vadd.f32 %v1837_v30, %v1835_v16  ;;  %v1920_v36 = vmul.f32 %v5357_v60, %v5397_v14  ;;  %v6719_v37 = vld [vmem:[#allocation3_spill] sm:$0xff] }
 0x152   :  { %v1781_v55 = vrot.slane %v1780_v27, 4  ;;  %v1921_v40 = vmul.f32 %v5360_v50, %v5407_v57  ;;  %v1803_v17 = vmul.f32 %v5354_v45, %v6716_v39  ;;  %v1922_v52 = vmul.f32 %v5363_v38, %v5409_v58 }
 0x153   :  { %v1867_v2 = vadd.f32 %v1866_v47, %v1864_v44  ;;  %v1895_v46 = vadd.f32 %v1894_v28, %v1892_v33  ;;  %v1839_v11 = vrot.slane %v1838_v0, 4  ;;  %v1923_v4 = vadd.f32 %v1920_v36, %v1919_v10  ;;  %v6718_v44 = vld [vmem:[#allocation32_spill] sm:$0xff] }
 0x154   :  { %v1782_v15 = vadd.f32 %v1781_v55, %v1780_v27  ;;  %v1948_v63 = vmul.f32 %v5354_v45, %v5243_v34  ;;  %v1804_v49 = vmul.f32 %v5357_v60, %v6717_v48  ;;  %v1949_v7 = vmul.f32 %v5357_v60, %v5245_v59 }
 0x155   :  { %v1868_v21 = vrot.slane %v1867_v2, 4  ;;  %v1896_v8 = vadd.f32 %v1895_v46, %v1893_v9  ;;  %v1840_v16 = vadd.f32 %v1839_v11, %v1838_v0  ;;  %v1924_v6 = vadd.f32 %v1923_v4, %v1921_v40 }
 0x156   :  { %v1783_v19 = vrot.slane %v1782_v15, 2  ;;  %v1950_v26 = vmul.f32 %v5360_v50, %v5247_v13  ;;  %v5453_v35 = vadd.f32 %v6719_v37, %v6718_v44  ;;  %v1951_v61 = vmul.f32 %v5363_v38, %v5249_v1 }
 0x157   :  { %v1869_v56 = vadd.f32 %v1868_v21, %v1867_v2  ;;  %v1897_v51 = vrot.slane %v1896_v8, 4  ;;  %v1841_v30 = vrot.slane %v1840_v16, 2  ;;  %v1925_v33 = vadd.f32 %v1924_v6, %v1922_v52 }
 0x158   :  { %v1784_v27 = vadd.f32 %v1783_v19, %v1782_v15  ;;  %v1952_v47 = vadd.f32 %v1949_v7, %v1948_v63  ;;  %v1805_v9 = vmul.f32 %v5360_v50, %v5427_v23  ;;  %v1807_v28 = vadd.f32 %v1804_v49, %v1803_v17 }
 0x159   :  { %v1870_v10 = vrot.slane %v1869_v56, 2  ;;  %v1898_v55 = vadd.f32 %v1897_v51, %v1896_v8  ;;  %v1842_v36 = vadd.f32 %v1841_v30, %v1840_v16  ;;  %v1926_v2 = vrot.slane %v1925_v33, 4 }
 0x15a   :  { %v1785_v0 = vrot.slane %v1784_v27, 1  ;;  %v1953_v40 = vadd.f32 %v1952_v47, %v1950_v26  ;;  %v1806_v21 = vmul.f32 %v5363_v38, %v5453_v35  ;;  %v1808_v19 = vadd.f32 %v1807_v28, %v1805_v9 }
 0x15b   :  { %v1871_v46 = vadd.f32 %v1870_v10, %v1869_v56  ;;  %v1899_v11 = vrot.slane %v1898_v55, 2  ;;  %v1843_v52 = vrot.slane %v1842_v36, 1  ;;  %v1927_v16 = vadd.f32 %v1926_v2, %v1925_v33 }
 0x15c   :  { %v1786_v4 = vadd.f32 %v1785_v0, %v1784_v27  ;;  %v1954_v15 = vadd.f32 %v1953_v40, %v1951_v61  ;;  %v1809_v56 = vadd.f32 %v1808_v19, %v1806_v21 }
 0x15d   :  { %v1872_v63 = vrot.slane %v1871_v46, 1  ;;  %v1900_v7 = vadd.f32 %v1899_v11, %v1898_v55  ;;  %v1844_v61 = vadd.f32 %v1843_v52, %v1842_v36  ;;  %v1928_v47 = vrot.slane %v1927_v16, 2 }
 0x15e   :  { %v1787_v6 = vmul.f32 %v1786_v4, %v5354_v45  ;;  %v1788_v17 = vmul.f32 %v1786_v4, %v5357_v60  ;;  %v1789_v49 = vmul.f32 %v1786_v4, %v5360_v50  ;;  %v1790_v8 = vmul.f32 %v1786_v4, %v5363_v38 }
 0x15f   :  { %v1873_v27 = vadd.f32 %v1872_v63, %v1871_v46  ;;  %v1901_v30 = vrot.slane %v1900_v7, 1  ;;  %v1955_v9 = vrot.slane %v1954_v15, 4  ;;  %v5491_v28 = vmul.f32 %v1844_v61, %v5363_v38 }
 0x160   :  { %v5466_v26 = vsub.f32 %v6703_v41, %v1787_v6  ;;  %v5469_v44 = vsub.f32 %v6704_v12, %v1788_v17  ;;  %v5472_v37 = vsub.f32 %v6705_v62, %v1789_v49  ;;  %v5475_v51 = vsub.f32 %v6707_v43, %v1790_v8 }
 0x161   :  { %v5482_v12 = vmul.f32 %v1844_v61, %v5354_v45  ;;  %v5485_v62 = vmul.f32 %v1844_v61, %v5357_v60  ;;  %v5488_v43 = vmul.f32 %v1844_v61, %v5360_v50  ;;  %v5494_v10 = vmul.f32 %v1873_v27, %v5354_v45 }
 0x162   :  { %v1977_v33 = vmul.f32 %v5466_v26, %v5466_v26  ;;  %v1978_v41 = vmul.f32 %v5469_v44, %v5469_v44  ;;  %v5497_v55 = vmul.f32 %v1873_v27, %v5357_v60  ;;  %v5500_v0 = vmul.f32 %v1873_v27, %v5360_v50 }
 0x163   :  { %v5503_v36 = vmul.f32 %v1873_v27, %v5363_v38  ;;  %v1979_v40 = vmul.f32 %v5472_v37, %v5472_v37  ;;  %v1810_v46 = vrot.slane %v1809_v56, 4  ;;  %v1902_v11 = vadd.f32 %v1901_v30, %v1900_v7 }
 0x164   :  { %v1929_v2 = vadd.f32 %v1928_v47, %v1927_v16  ;;  %v1956_v4 = vadd.f32 %v1955_v9, %v1954_v15  ;;  %v1980_v21 = vmul.f32 %v5475_v51, %v5475_v51  ;;  %v1981_v19 = vadd.f32 %v1978_v41, %v1977_v33 }
 0x165   :  { %v1903_v52 = vmul.f32 %v1902_v11, %v5354_v45  ;;  %v1904_v63 = vmul.f32 %v1902_v11, %v5357_v60  ;;  %v1905_v6 = vmul.f32 %v1902_v11, %v5360_v50  ;;  %v1906_v17 = vmul.f32 %v1902_v11, %v5363_v38 }
 0x166   :  { %v1930_v49 = vrot.slane %v1929_v2, 1  ;;  %v1957_v8 = vrot.slane %v1956_v4, 2  ;;  %v1982_v61 = vadd.f32 %v1981_v19, %v1979_v40  ;;  %v1811_v27 = vadd.f32 %v1810_v46, %v1809_v56 }
 0x168   :  { %v1931_v31 = vadd.f32 %v1930_v49, %v1929_v2  ;;  %v1958_v7 = vadd.f32 %v1957_v8, %v1956_v4  ;;  %v1983_v16 = vadd.f32 %v1982_v61, %v1980_v21  ;;  %v1812_v33 = vrot.slane %v1811_v27, 2 }
 0x16a   :  { %v1932_v15 = vmul.f32 %v1931_v31, %v5354_v45  ;;  %v1933_v30 = vmul.f32 %v1931_v31, %v5357_v60  ;;  %v1934_v47 = vmul.f32 %v1931_v31, %v5360_v50  ;;  %v1935_v9 = vmul.f32 %v1931_v31, %v5363_v38 }
 0x16b   :  { %v1959_v41 = vrot.slane %v1958_v7, 1  ;;  %v1984_v29 = vrot.slane %v1983_v16, 4  ;;  %v1813_v49 = vadd.f32 %v1812_v33, %v1811_v27 }
 0x16c   :  { %v5518_v11 = vsub.f32 %v5395_v22, %v1932_v15  ;;  %v5521_v40 = vsub.f32 %v5397_v14, %v1933_v30  ;;  %v5524_v56 = vsub.f32 %v5407_v57, %v1934_v47  ;;  %v5527_v46 = vsub.f32 %v5409_v58, %v1935_v9 }
 0x16d   :  { %v1960_v2 = vadd.f32 %v1959_v41, %v1958_v7  ;;  %v1985_v4 = vadd.f32 %v1984_v29, %v1983_v16  ;;  %v1814_v7 = vrot.slane %v1813_v49, 1 }
 0x16f   :  { %v1961_v21 = vmul.f32 %v1960_v2, %v5354_v45  ;;  %v1962_v31 = vmul.f32 %v1960_v2, %v5357_v60  ;;  %v1963_v19 = vmul.f32 %v1960_v2, %v5360_v50  ;;  %v1964_v22 = vmul.f32 %v1960_v2, %v5363_v38 }
 0x170   :  { %v1986_v8 = vrot.slane %v1985_v4, 2  ;;  %v1815_v30 = vadd.f32 %v1814_v7, %v1813_v49 }
 0x171   :  { %v5534_v14 = vsub.f32 %v5243_v34, %v1961_v21  ;;  %v5537_v57 = vsub.f32 %v5245_v59, %v1962_v31  ;;  %v5540_v58 = vsub.f32 %v5247_v13, %v1963_v19  ;;  %v5543_v29 = vsub.f32 %v5249_v1, %v1964_v22 }
 0x172   :  { %v1987_v61 = vadd.f32 %v1986_v8, %v1985_v4  ;;  %v1816_v27 = vmul.f32 %v1815_v30, %v5354_v45  ;;  %v1817_v34 = vmul.f32 %v1815_v30, %v5357_v60  ;;  %v1818_v47 = vmul.f32 %v1815_v30, %v5360_v50 }
 0x173   :  { %v1819_v59 = vmul.f32 %v1815_v30, %v5363_v38  ;;  %v5563_v45 = vsub.f32 %v6708_v3, %v5482_v12  ;;  %v5567_v60 = vsub.f32 %v6709_v54, %v5485_v62  ;;  %v5571_v50 = vsub.f32 %v6710_v5, %v5488_v43 }
 0x174   :  { %v1988_v16 = vrot.slane %v1987_v61, 1  ;;  %v5550_v13 = vsub.f32 %v6716_v39, %v1816_v27  ;;  %v5553_v1 = vsub.f32 %v6717_v48, %v1817_v34  ;;  %v5556_v9 = vsub.f32 %v5427_v23, %v1818_v47 }
 0x175   :  { %v5559_v33 = vsub.f32 %v5453_v35, %v1819_v59  ;;  %v5575_v38 = vsub.f32 %v6713_v25, %v5491_v28  ;;  %v5579_v39 = vsub.f32 %v6711_v53, %v5494_v10  ;;  %v5583_v3 = vsub.f32 %v6712_v20, %v5497_v55 }
 0x176   :  { %v1989_v15 = vadd.f32 %v1988_v16, %v1987_v61  ;;  %v5587_v54 = vsub.f32 %v5333_v18, %v5500_v0  ;;  %v5591_v5 = vsub.f32 %v5337_v42, %v5503_v36  ;;  %v5606_v35 = vsub.f32 %v5345_v32, %v1903_v52  ;;  %v6720_v42 = vld [vmem:[#allocation59_spill] sm:$0xff] }
 0x177   :  { %v5609_v18 = vsub.f32 %v5347_v24, %v1904_v63  ;;  %v5612_v12 = vsub.f32 %v6720_v42, %v1905_v6 }
 0x178   :  { %3169 = vrsqrt.f32 %v1989_v15 }
 0x182   :  { %v3170_v23 = vpop.eup %3169 }
 0x183   :  { %v5594_v25 = vmul.f32 %v3170_v23, %v5466_v26  ;;  %v5597_v48 = vmul.f32 %v3170_v23, %v5469_v44  ;;  %v5600_v53 = vmul.f32 %v3170_v23, %v5472_v37  ;;  %v5603_v20 = vmul.f32 %v3170_v23, %v5475_v51  ;;  %v6721_v26 = vld [vmem:[#allocation61_spill] sm:$0xff] }
 0x184   :  { %v5615_v62 = vsub.f32 %v6721_v26, %v1906_v17 }
 0x185   :  { %3139 = vst [vmem:[%s6163_s2 + $0x20] sm:$0xff] %v5594_v25  ;;  %3140 = vst [vmem:[%s6163_s2 + $0x28] sm:$0xff] %v5597_v48  ;;  %v2004_v32 = vmul.f32 %v5594_v25, %v5550_v13  ;;  %v2005_v24 = vmul.f32 %v5597_v48, %v5553_v1  ;;  %v2006_v44 = vmul.f32 %v5600_v53, %v5556_v9 }
 0x186   :  { %3141 = vst [vmem:[%s6163_s2 + $0x30] sm:$0xff] %v5600_v53  ;;  %3142 = vst [vmem:[%s6163_s2 + $0x38] sm:$0xff] %v5603_v20  ;;  %v2007_v37 = vmul.f32 %v5603_v20, %v5559_v33  ;;  %v2033_v51 = vmul.f32 %v5594_v25, %v5563_v45  ;;  %v2034_v43 = vmul.f32 %v5597_v48, %v5567_v60 }
 0x187   :  { %v2035_v28 = vmul.f32 %v5600_v53, %v5571_v50  ;;  %v2036_v10 = vmul.f32 %v5603_v20, %v5575_v38  ;;  %v2008_v55 = vadd.f32 %v2005_v24, %v2004_v32  ;;  %v2062_v0 = vmul.f32 %v5594_v25, %v5579_v39 }
 0x188   :  { %v2063_v36 = vmul.f32 %v5597_v48, %v5583_v3  ;;  %v2064_v52 = vmul.f32 %v5600_v53, %v5587_v54  ;;  %v2037_v63 = vadd.f32 %v2034_v43, %v2033_v51  ;;  %v2065_v6 = vmul.f32 %v5603_v20, %v5591_v5 }
 0x189   :  { %v2091_v17 = vmul.f32 %v5594_v25, %v5606_v35  ;;  %v2092_v41 = vmul.f32 %v5597_v48, %v5609_v18  ;;  %v2009_v2 = vadd.f32 %v2008_v55, %v2006_v44  ;;  %v2093_v21 = vmul.f32 %v5600_v53, %v5612_v12 }
 0x18a   :  { %v2066_v4 = vadd.f32 %v2063_v36, %v2062_v0  ;;  %v2094_v31 = vmul.f32 %v5603_v20, %v5615_v62  ;;  %v2038_v19 = vadd.f32 %v2037_v63, %v2035_v28  ;;  %v2120_v49 = vmul.f32 %v5594_v25, %v5518_v11 }
 0x18b   :  { %v2095_v22 = vadd.f32 %v2092_v41, %v2091_v17  ;;  %v2121_v8 = vmul.f32 %v5597_v48, %v5521_v40  ;;  %v2010_v61 = vadd.f32 %v2009_v2, %v2007_v37  ;;  %v2122_v16 = vmul.f32 %v5600_v53, %v5524_v56 }
 0x18c   :  { %v2067_v7 = vadd.f32 %v2066_v4, %v2064_v52  ;;  %v2123_v15 = vmul.f32 %v5603_v20, %v5527_v46  ;;  %v2039_v30 = vadd.f32 %v2038_v19, %v2036_v10  ;;  %v2149_v47 = vmul.f32 %v5594_v25, %v5534_v14 }
 0x18d   :  { %v2096_v27 = vadd.f32 %v2095_v22, %v2093_v21  ;;  %v2124_v34 = vadd.f32 %v2121_v8, %v2120_v49  ;;  %v2011_v59 = vrot.slane %v2010_v61, 4  ;;  %v2150_v42 = vmul.f32 %v5597_v48, %v5537_v57 }
 0x18e   :  { %v2068_v23 = vadd.f32 %v2067_v7, %v2065_v6  ;;  %v2151_v26 = vmul.f32 %v5600_v53, %v5540_v58  ;;  %v2040_v32 = vrot.slane %v2039_v30, 4  ;;  %v2152_v37 = vmul.f32 %v5603_v20, %v5543_v29 }
 0x18f   :  { %v2097_v24 = vadd.f32 %v2096_v27, %v2094_v31  ;;  %v2125_v44 = vadd.f32 %v2124_v34, %v2122_v16  ;;  %v2012_v51 = vadd.f32 %v2011_v59, %v2010_v61  ;;  %v2153_v28 = vadd.f32 %v2150_v42, %v2149_v47 }
 0x190   :  { %v2069_v43 = vrot.slane %v2068_v23, 4  ;;  %v2041_v10 = vadd.f32 %v2040_v32, %v2039_v30 }
 0x191   :  { %v2098_v55 = vrot.slane %v2097_v24, 4  ;;  %v2126_v0 = vadd.f32 %v2125_v44, %v2123_v15  ;;  %v2013_v36 = vrot.slane %v2012_v51, 2  ;;  %v2154_v63 = vadd.f32 %v2153_v28, %v2151_v26 }
 0x192   :  { %v2070_v52 = vadd.f32 %v2069_v43, %v2068_v23  ;;  %v2042_v6 = vrot.slane %v2041_v10, 2 }
 0x193   :  { %v2099_v17 = vadd.f32 %v2098_v55, %v2097_v24  ;;  %v2127_v41 = vrot.slane %v2126_v0, 4  ;;  %v2014_v2 = vadd.f32 %v2013_v36, %v2012_v51  ;;  %v2155_v21 = vadd.f32 %v2154_v63, %v2152_v37 }
 0x194   :  { %v2071_v4 = vrot.slane %v2070_v52, 2  ;;  %v2043_v31 = vadd.f32 %v2042_v6, %v2041_v10 }
 0x195   :  { %v2100_v19 = vrot.slane %v2099_v17, 2  ;;  %v2128_v22 = vadd.f32 %v2127_v41, %v2126_v0  ;;  %v2015_v49 = vrot.slane %v2014_v2, 1  ;;  %v2156_v61 = vrot.slane %v2155_v21, 4 }
 0x196   :  { %v2072_v8 = vadd.f32 %v2071_v4, %v2070_v52  ;;  %v2044_v7 = vrot.slane %v2043_v31, 1 }
 0x197   :  { %v2101_v16 = vadd.f32 %v2100_v19, %v2099_v17  ;;  %v2129_v30 = vrot.slane %v2128_v22, 2  ;;  %v2016_v27 = vadd.f32 %v2015_v49, %v2014_v2  ;;  %v2157_v23 = vadd.f32 %v2156_v61, %v2155_v21 }
 0x198   :  { %v2073_v15 = vrot.slane %v2072_v8, 1  ;;  %v2045_v34 = vadd.f32 %v2044_v7, %v2043_v31 }
 0x199   :  { %v2102_v47 = vrot.slane %v2101_v16, 1  ;;  %v2130_v59 = vadd.f32 %v2129_v30, %v2128_v22  ;;  %v2017_v42 = vmul.f32 %v2016_v27, %v5594_v25  ;;  %v2018_v26 = vmul.f32 %v2016_v27, %v5597_v48 }
 0x19a   :  { %v2019_v32 = vmul.f32 %v2016_v27, %v5600_v53  ;;  %v2020_v24 = vmul.f32 %v2016_v27, %v5603_v20  ;;  %v2046_v44 = vmul.f32 %v2045_v34, %v5594_v25  ;;  %v2047_v37 = vmul.f32 %v2045_v34, %v5597_v48 }
 0x19b   :  { %v2048_v51 = vmul.f32 %v2045_v34, %v5600_v53  ;;  %v2049_v43 = vmul.f32 %v2045_v34, %v5603_v20  ;;  %v5690_v28 = vsub.f32 %v5550_v13, %v2017_v42  ;;  %v5693_v10 = vsub.f32 %v5553_v1, %v2018_v26 }
 0x19c   :  { %v5696_v55 = vsub.f32 %v5556_v9, %v2019_v32  ;;  %v5699_v0 = vsub.f32 %v5559_v33, %v2020_v24  ;;  %v5702_v36 = vsub.f32 %v5563_v45, %v2046_v44  ;;  %v5705_v52 = vsub.f32 %v5567_v60, %v2047_v37 }
 0x19d   :  { %v5708_v63 = vsub.f32 %v5571_v50, %v2048_v51  ;;  %v5711_v13 = vsub.f32 %v5575_v38, %v2049_v43  ;;  %v2074_v1 = vadd.f32 %v2073_v15, %v2072_v8  ;;  %v2103_v6 = vadd.f32 %v2102_v47, %v2101_v16 }
 0x19e   :  { %v2131_v17 = vrot.slane %v2130_v59, 1  ;;  %v2158_v9 = vrot.slane %v2157_v23, 2  ;;  %v2178_v33 = vmul.f32 %v5690_v28, %v5690_v28  ;;  %v2179_v45 = vmul.f32 %v5693_v10, %v5693_v10 }
 0x19f   :  { %v2180_v60 = vmul.f32 %v5696_v55, %v5696_v55  ;;  %v2075_v41 = vmul.f32 %v2074_v1, %v5594_v25  ;;  %v2076_v50 = vmul.f32 %v2074_v1, %v5597_v48  ;;  %v2077_v38 = vmul.f32 %v2074_v1, %v5600_v53 }
 0x1a0   :  { %v2078_v2 = vmul.f32 %v2074_v1, %v5603_v20  ;;  %v2104_v4 = vmul.f32 %v2103_v6, %v5594_v25  ;;  %v2105_v21 = vmul.f32 %v2103_v6, %v5597_v48  ;;  %v2106_v31 = vmul.f32 %v2103_v6, %v5600_v53 }
 0x1a1   :  { %v2107_v19 = vmul.f32 %v2103_v6, %v5603_v20  ;;  %v5728_v22 = vsub.f32 %v5579_v39, %v2075_v41  ;;  %v5731_v49 = vsub.f32 %v5583_v3, %v2076_v50  ;;  %v5734_v8 = vsub.f32 %v5587_v54, %v2077_v38 }
 0x1a2   :  { %v5737_v61 = vsub.f32 %v5591_v5, %v2078_v2  ;;  %v5740_v7 = vsub.f32 %v5606_v35, %v2104_v4  ;;  %v5743_v16 = vsub.f32 %v5609_v18, %v2105_v21  ;;  %v5746_v30 = vsub.f32 %v5612_v12, %v2106_v31 }
 0x1a3   :  { %v5749_v39 = vsub.f32 %v5615_v62, %v2107_v19  ;;  %v2132_v3 = vadd.f32 %v2131_v17, %v2130_v59  ;;  %v2159_v27 = vadd.f32 %v2158_v9, %v2157_v23  ;;  %v2182_v15 = vadd.f32 %v2179_v45, %v2178_v33 }
 0x1a4   :  { %v2181_v54 = vmul.f32 %v5699_v0, %v5699_v0 }
 0x1a5   :  { %v2133_v5 = vmul.f32 %v2132_v3, %v5594_v25  ;;  %v2134_v35 = vmul.f32 %v2132_v3, %v5597_v48  ;;  %v2135_v34 = vmul.f32 %v2132_v3, %v5600_v53  ;;  %v2136_v18 = vmul.f32 %v2132_v3, %v5603_v20 }
 0x1a6   :  { %v2160_v47 = vrot.slane %v2159_v27, 1  ;;  %v2183_v12 = vadd.f32 %v2182_v15, %v2180_v60 }
 0x1a7   :  { %v5758_v42 = vsub.f32 %v5518_v11, %v2133_v5  ;;  %v5761_v62 = vsub.f32 %v5521_v40, %v2134_v35  ;;  %v5764_v59 = vsub.f32 %v5524_v56, %v2135_v34  ;;  %v5767_v23 = vsub.f32 %v5527_v46, %v2136_v18 }
 0x1a8   :  { %v2161_v26 = vadd.f32 %v2160_v47, %v2159_v27  ;;  %v2184_v32 = vadd.f32 %v2183_v12, %v2181_v54 }
 0x1aa   :  { %v2162_v24 = vmul.f32 %v2161_v26, %v5594_v25  ;;  %v2163_v44 = vmul.f32 %v2161_v26, %v5597_v48  ;;  %v2164_v37 = vmul.f32 %v2161_v26, %v5600_v53  ;;  %v2165_v11 = vmul.f32 %v2161_v26, %v5603_v20 }
 0x1ab   :  { %v2185_v51 = vrot.slane %v2184_v32, 4 }
 0x1ac   :  { %v5774_v40 = vsub.f32 %v5534_v14, %v2162_v24  ;;  %v5777_v56 = vsub.f32 %v5537_v57, %v2163_v44  ;;  %v5780_v46 = vsub.f32 %v5540_v58, %v2164_v37  ;;  %v5783_v43 = vsub.f32 %v5543_v29, %v2165_v11 }
 0x1ad   :  { %v2186_v25 = vadd.f32 %v2185_v51, %v2184_v32 }
 0x1af   :  { %v2187_v1 = vrot.slane %v2186_v25, 2 }
 0x1b1   :  { %v2188_v48 = vadd.f32 %v2187_v1, %v2186_v25 }
 0x1b3   :  { %v2189_v6 = vrot.slane %v2188_v48, 1 }
 0x1b5   :  { %v2190_v53 = vadd.f32 %v2189_v6, %v2188_v48 }
 0x1b7   :  { %3171 = vrsqrt.f32 %v2190_v53 }
 0x1c1   :  { %v3172_v20 = vpop.eup %3171 }
 0x1c2   :  { %v5786_v17 = vmul.f32 %v3172_v20, %v5690_v28  ;;  %v5789_v14 = vmul.f32 %v3172_v20, %v5693_v10  ;;  %v5792_v57 = vmul.f32 %v3172_v20, %v5696_v55  ;;  %v5795_v58 = vmul.f32 %v3172_v20, %v5699_v0 }
 0x1c4   :  { %3143 = vst [vmem:[%s6163_s2 + $0x40] sm:$0xff] %v5786_v17  ;;  %3144 = vst [vmem:[%s6163_s2 + $0x48] sm:$0xff] %v5789_v14  ;;  %v2205_v29 = vmul.f32 %v5786_v17, %v5702_v36  ;;  %v2206_v28 = vmul.f32 %v5789_v14, %v5705_v52  ;;  %v2207_v10 = vmul.f32 %v5792_v57, %v5708_v63 }
 0x1c5   :  { %3145 = vst [vmem:[%s6163_s2 + $0x50] sm:$0xff] %v5792_v57  ;;  %3146 = vst [vmem:[%s6163_s2 + $0x58] sm:$0xff] %v5795_v58  ;;  %v2208_v55 = vmul.f32 %v5795_v58, %v5711_v13  ;;  %v2234_v0 = vmul.f32 %v5786_v17, %v5728_v22  ;;  %v2235_v9 = vmul.f32 %v5789_v14, %v5731_v49 }
 0x1c6   :  { %v2236_v33 = vmul.f32 %v5792_v57, %v5734_v8  ;;  %v2237_v45 = vmul.f32 %v5795_v58, %v5737_v61  ;;  %v2209_v60 = vadd.f32 %v2206_v28, %v2205_v29  ;;  %v2263_v41 = vmul.f32 %v5786_v17, %v5740_v7 }
 0x1c7   :  { %v2264_v50 = vmul.f32 %v5789_v14, %v5743_v16  ;;  %v2265_v38 = vmul.f32 %v5792_v57, %v5746_v30  ;;  %v2238_v2 = vadd.f32 %v2235_v9, %v2234_v0  ;;  %v2266_v4 = vmul.f32 %v5795_v58, %v5749_v39 }
 0x1c8   :  { %v2292_v21 = vmul.f32 %v5786_v17, %v5758_v42  ;;  %v2293_v31 = vmul.f32 %v5789_v14, %v5761_v62  ;;  %v2210_v19 = vadd.f32 %v2209_v60, %v2207_v10  ;;  %v2294_v27 = vmul.f32 %v5792_v57, %v5764_v59 }
 0x1c9   :  { %v2267_v3 = vadd.f32 %v2264_v50, %v2263_v41  ;;  %v2295_v15 = vmul.f32 %v5795_v58, %v5767_v23  ;;  %v2239_v54 = vadd.f32 %v2238_v2, %v2236_v33  ;;  %v2321_v35 = vmul.f32 %v5786_v17, %v5774_v40 }
 0x1ca   :  { %v2296_v5 = vadd.f32 %v2293_v31, %v2292_v21  ;;  %v2322_v34 = vmul.f32 %v5789_v14, %v5777_v56  ;;  %v2211_v18 = vadd.f32 %v2210_v19, %v2208_v55  ;;  %v2323_v12 = vmul.f32 %v5792_v57, %v5780_v46 }
 0x1cb   :  { %v2268_v47 = vadd.f32 %v2267_v3, %v2265_v38  ;;  %v2324_v26 = vmul.f32 %v5795_v58, %v5783_v43  ;;  %v2240_v32 = vadd.f32 %v2239_v54, %v2237_v45 }
 0x1cc   :  { %v2297_v24 = vadd.f32 %v2296_v5, %v2294_v27  ;;  %v2325_v44 = vadd.f32 %v2322_v34, %v2321_v35  ;;  %v2212_v37 = vrot.slane %v2211_v18, 4 }
 0x1cd   :  { %v2269_v11 = vadd.f32 %v2268_v47, %v2266_v4  ;;  %v2241_v51 = vrot.slane %v2240_v32, 4 }
 0x1ce   :  { %v2298_v25 = vadd.f32 %v2297_v24, %v2295_v15  ;;  %v2326_v1 = vadd.f32 %v2325_v44, %v2323_v12  ;;  %v2213_v48 = vadd.f32 %v2212_v37, %v2211_v18 }
 0x1cf   :  { %v2270_v6 = vrot.slane %v2269_v11, 4  ;;  %v2242_v53 = vadd.f32 %v2241_v51, %v2240_v32 }
 0x1d0   :  { %v2299_v20 = vrot.slane %v2298_v25, 4  ;;  %v2327_v29 = vadd.f32 %v2326_v1, %v2324_v26  ;;  %v2214_v28 = vrot.slane %v2213_v48, 2 }
 0x1d1   :  { %v2271_v10 = vadd.f32 %v2270_v6, %v2269_v11  ;;  %v2243_v55 = vrot.slane %v2242_v53, 2 }
 0x1d2   :  { %v2300_v0 = vadd.f32 %v2299_v20, %v2298_v25  ;;  %v2328_v9 = vrot.slane %v2327_v29, 4  ;;  %v2215_v33 = vadd.f32 %v2214_v28, %v2213_v48 }
 0x1d3   :  { %v2272_v60 = vrot.slane %v2271_v10, 2  ;;  %v2244_v45 = vadd.f32 %v2243_v55, %v2242_v53 }
 0x1d4   :  { %v2301_v41 = vrot.slane %v2300_v0, 2  ;;  %v2329_v50 = vadd.f32 %v2328_v9, %v2327_v29  ;;  %v2216_v38 = vrot.slane %v2215_v33, 1 }
 0x1d5   :  { %v2273_v2 = vadd.f32 %v2272_v60, %v2271_v10  ;;  %v2245_v4 = vrot.slane %v2244_v45, 1 }
 0x1d6   :  { %v2302_v21 = vadd.f32 %v2301_v41, %v2300_v0  ;;  %v2330_v31 = vrot.slane %v2329_v50, 2  ;;  %v2217_v19 = vadd.f32 %v2216_v38, %v2215_v33 }
 0x1d7   :  { %v2246_v3 = vadd.f32 %v2245_v4, %v2244_v45  ;;  %v2274_v27 = vrot.slane %v2273_v2, 1 }
 0x1d8   :  { %v2303_v15 = vrot.slane %v2302_v21, 1  ;;  %v2331_v54 = vadd.f32 %v2330_v31, %v2329_v50  ;;  %v2218_v5 = vmul.f32 %v2217_v19, %v5786_v17  ;;  %v2219_v35 = vmul.f32 %v2217_v19, %v5789_v14 }
 0x1d9   :  { %v2220_v34 = vmul.f32 %v2217_v19, %v5792_v57  ;;  %v2221_v18 = vmul.f32 %v2217_v19, %v5795_v58  ;;  %v2247_v47 = vmul.f32 %v2246_v3, %v5786_v17  ;;  %v2248_v12 = vmul.f32 %v2246_v3, %v5789_v14 }
 0x1da   :  { %v2249_v26 = vmul.f32 %v2246_v3, %v5792_v57  ;;  %v2250_v32 = vmul.f32 %v2246_v3, %v5795_v58  ;;  %v2222_v24 = vsub.f32 %v5702_v36, %v2218_v5  ;;  %v2223_v44 = vsub.f32 %v5705_v52, %v2219_v35 }
 0x1db   :  { %v2224_v37 = vsub.f32 %v5708_v63, %v2220_v34  ;;  %v2225_v11 = vsub.f32 %v5711_v13, %v2221_v18  ;;  %v5866_v51 = vsub.f32 %v5728_v22, %v2247_v47  ;;  %v5869_v25 = vsub.f32 %v5731_v49, %v2248_v12 }
 0x1dc   :  { %v5872_v1 = vsub.f32 %v5734_v8, %v2249_v26  ;;  %v5875_v48 = vsub.f32 %v5737_v61, %v2250_v32  ;;  %v2275_v6 = vadd.f32 %v2274_v27, %v2273_v2  ;;  %v2304_v36 = vadd.f32 %v2303_v15, %v2302_v21 }
 0x1dd   :  { %v2332_v53 = vrot.slane %v2331_v54, 1  ;;  %v2350_v52 = vmul.f32 %v2222_v24, %v2222_v24  ;;  %v2351_v20 = vmul.f32 %v2223_v44, %v2223_v44  ;;  %v2352_v63 = vmul.f32 %v2224_v37, %v2224_v37 }
 0x1de   :  { %v2276_v13 = vmul.f32 %v2275_v6, %v5786_v17  ;;  %v2277_v22 = vmul.f32 %v2275_v6, %v5789_v14  ;;  %v2278_v29 = vmul.f32 %v2275_v6, %v5792_v57  ;;  %v2279_v49 = vmul.f32 %v2275_v6, %v5795_v58 }
 0x1df   :  { %v2305_v8 = vmul.f32 %v2304_v36, %v5786_v17  ;;  %v2306_v28 = vmul.f32 %v2304_v36, %v5789_v14  ;;  %v2307_v61 = vmul.f32 %v2304_v36, %v5792_v57  ;;  %v2308_v10 = vmul.f32 %v2304_v36, %v5795_v58 }
 0x1e0   :  { %v5886_v55 = vsub.f32 %v5740_v7, %v2276_v13  ;;  %v5889_v0 = vsub.f32 %v5743_v16, %v2277_v22  ;;  %v5892_v9 = vsub.f32 %v5746_v30, %v2278_v29  ;;  %v5895_v33 = vsub.f32 %v5749_v39, %v2279_v49 }
 0x1e1   :  { %v5898_v60 = vsub.f32 %v5758_v42, %v2305_v8  ;;  %v5901_v45 = vsub.f32 %v5761_v62, %v2306_v28  ;;  %v5904_v41 = vsub.f32 %v5764_v59, %v2307_v61  ;;  %v5907_v7 = vsub.f32 %v5767_v23, %v2308_v10 }
 0x1e2   :  { %v2333_v16 = vadd.f32 %v2332_v53, %v2331_v54  ;;  %v2354_v50 = vadd.f32 %v2351_v20, %v2350_v52  ;;  %v2353_v38 = vmul.f32 %v2225_v11, %v2225_v11 }
 0x1e4   :  { %v2334_v30 = vmul.f32 %v2333_v16, %v5786_v17  ;;  %v2335_v39 = vmul.f32 %v2333_v16, %v5789_v14  ;;  %v2336_v2 = vmul.f32 %v2333_v16, %v5792_v57  ;;  %v2337_v42 = vmul.f32 %v2333_v16, %v5795_v58 }
 0x1e5   :  { %v2355_v4 = vadd.f32 %v2354_v50, %v2352_v63 }
 0x1e6   :  { %v5914_v62 = vsub.f32 %v5774_v40, %v2334_v30  ;;  %v5917_v59 = vsub.f32 %v5777_v56, %v2335_v39  ;;  %v5920_v23 = vsub.f32 %v5780_v46, %v2336_v2  ;;  %v5923_v21 = vsub.f32 %v5783_v43, %v2337_v42 }
 0x1e7   :  { %v2356_v17 = vadd.f32 %v2355_v4, %v2353_v38 }
 0x1e9   :  { %v2357_v31 = vrot.slane %v2356_v17, 4 }
 0x1eb   :  { %v2358_v14 = vadd.f32 %v2357_v31, %v2356_v17 }
 0x1ed   :  { %v2359_v19 = vrot.slane %v2358_v14, 2 }
 0x1ef   :  { %v2360_v57 = vadd.f32 %v2359_v19, %v2358_v14 }
 0x1f1   :  { %v2361_v3 = vrot.slane %v2360_v57, 1 }
 0x1f3   :  { %v2362_v58 = vadd.f32 %v2361_v3, %v2360_v57 }
 0x1f5   :  { %3173 = vrsqrt.f32 %v2362_v58 }
 0x1ff   :  { %v3174_v27 = vpop.eup %3173 }
 0x200   :  { %v5925_v40 = vmul.f32 %v3174_v27, %v2222_v24  ;;  %v5927_v15 = vmul.f32 %v3174_v27, %v2223_v44  ;;  %v5929_v56 = vmul.f32 %v3174_v27, %v2224_v37  ;;  %v5931_v46 = vmul.f32 %v3174_v27, %v2225_v11 }
 0x202   :  { %3147 = vst [vmem:[%s6163_s2 + $0x60] sm:$0xff] %v5925_v40  ;;  %3148 = vst [vmem:[%s6163_s2 + $0x68] sm:$0xff] %v5927_v15  ;;  %v2377_v43 = vmul.f32 %v5925_v40, %v5866_v51  ;;  %v2378_v54 = vmul.f32 %v5927_v15, %v5869_v25  ;;  %v2379_v5 = vmul.f32 %v5929_v56, %v5872_v1 }
 0x203   :  { %3149 = vst [vmem:[%s6163_s2 + $0x70] sm:$0xff] %v5929_v56  ;;  %3150 = vst [vmem:[%s6163_s2 + $0x78] sm:$0xff] %v5931_v46  ;;  %v2380_v35 = vmul.f32 %v5931_v46, %v5875_v48  ;;  %v2406_v34 = vmul.f32 %v5925_v40, %v5886_v55  ;;  %v2407_v18 = vmul.f32 %v5927_v15, %v5889_v0 }
 0x204   :  { %v2408_v47 = vmul.f32 %v5929_v56, %v5892_v9  ;;  %v2409_v12 = vmul.f32 %v5931_v46, %v5895_v33  ;;  %v2381_v26 = vadd.f32 %v2378_v54, %v2377_v43  ;;  %v2435_v32 = vmul.f32 %v5925_v40, %v5898_v60 }
 0x205   :  { %v2436_v24 = vmul.f32 %v5927_v15, %v5901_v45  ;;  %v2437_v44 = vmul.f32 %v5929_v56, %v5904_v41  ;;  %v2410_v37 = vadd.f32 %v2407_v18, %v2406_v34  ;;  %v2438_v11 = vmul.f32 %v5931_v46, %v5907_v7 }
 0x206   :  { %v2464_v6 = vmul.f32 %v5925_v40, %v5914_v62  ;;  %v2465_v36 = vmul.f32 %v5927_v15, %v5917_v59  ;;  %v2382_v53 = vadd.f32 %v2381_v26, %v2379_v5  ;;  %v2466_v20 = vmul.f32 %v5929_v56, %v5920_v23 }
 0x207   :  { %v2439_v52 = vadd.f32 %v2436_v24, %v2435_v32  ;;  %v2467_v63 = vmul.f32 %v5931_v46, %v5923_v21  ;;  %v2411_v13 = vadd.f32 %v2410_v37, %v2408_v47 }
 0x208   :  { %v2468_v22 = vadd.f32 %v2465_v36, %v2464_v6  ;;  %v2383_v29 = vadd.f32 %v2382_v53, %v2380_v35 }
 0x209   :  { %v2440_v49 = vadd.f32 %v2439_v52, %v2437_v44  ;;  %v2412_v8 = vadd.f32 %v2411_v13, %v2409_v12 }
 0x20a   :  { %v2469_v28 = vadd.f32 %v2468_v22, %v2466_v20  ;;  %v2384_v61 = vrot.slane %v2383_v29, 4 }
 0x20b   :  { %v2441_v10 = vadd.f32 %v2440_v49, %v2438_v11  ;;  %v2413_v16 = vrot.slane %v2412_v8, 4 }
 0x20c   :  { %v2470_v50 = vadd.f32 %v2469_v28, %v2467_v63  ;;  %v2385_v38 = vadd.f32 %v2384_v61, %v2383_v29 }
 0x20d   :  { %v2442_v30 = vrot.slane %v2441_v10, 4  ;;  %v2414_v39 = vadd.f32 %v2413_v16, %v2412_v8 }
 0x20e   :  { %v2471_v2 = vrot.slane %v2470_v50, 4  ;;  %v2386_v42 = vrot.slane %v2385_v38, 2 }
 0x20f   :  { %v2443_v4 = vadd.f32 %v2442_v30, %v2441_v10  ;;  %v2415_v17 = vrot.slane %v2414_v39, 2 }
 0x210   :  { %v2472_v31 = vadd.f32 %v2471_v2, %v2470_v50  ;;  %v2387_v14 = vadd.f32 %v2386_v42, %v2385_v38 }
 0x211   :  { %v2444_v19 = vrot.slane %v2443_v4, 2  ;;  %v2416_v57 = vadd.f32 %v2415_v17, %v2414_v39 }
 0x212   :  { %v2473_v3 = vrot.slane %v2472_v31, 2  ;;  %v2388_v58 = vrot.slane %v2387_v14, 1 }
 0x213   :  { %v2445_v27 = vadd.f32 %v2444_v19, %v2443_v4  ;;  %v2417_v43 = vrot.slane %v2416_v57, 1 }
 0x214   :  { %v2474_v54 = vadd.f32 %v2473_v3, %v2472_v31  ;;  %v2389_v5 = vadd.f32 %v2388_v58, %v2387_v14 }
 0x215   :  { %v2418_v35 = vadd.f32 %v2417_v43, %v2416_v57  ;;  %v2446_v34 = vrot.slane %v2445_v27, 1 }
 0x216   :  { %v2475_v18 = vrot.slane %v2474_v54, 1  ;;  %v2390_v47 = vmul.f32 %v2389_v5, %v5925_v40  ;;  %v2391_v12 = vmul.f32 %v2389_v5, %v5927_v15  ;;  %v2392_v26 = vmul.f32 %v2389_v5, %v5929_v56 }
 0x217   :  { %v2393_v32 = vmul.f32 %v2389_v5, %v5931_v46  ;;  %v2419_v24 = vmul.f32 %v2418_v35, %v5925_v40  ;;  %v2420_v44 = vmul.f32 %v2418_v35, %v5927_v15  ;;  %v2421_v37 = vmul.f32 %v2418_v35, %v5929_v56 }
 0x218   :  { %v2422_v11 = vmul.f32 %v2418_v35, %v5931_v46  ;;  %v2394_v6 = vsub.f32 %v5866_v51, %v2390_v47  ;;  %v2395_v36 = vsub.f32 %v5869_v25, %v2391_v12  ;;  %v2396_v53 = vsub.f32 %v5872_v1, %v2392_v26 }
 0x219   :  { %v2397_v52 = vsub.f32 %v5875_v48, %v2393_v32  ;;  %v5994_v20 = vsub.f32 %v5886_v55, %v2419_v24  ;;  %v5997_v63 = vsub.f32 %v5889_v0, %v2420_v44  ;;  %v6000_v13 = vsub.f32 %v5892_v9, %v2421_v37 }
 0x21a   :  { %v6003_v22 = vsub.f32 %v5895_v33, %v2422_v11  ;;  %v2447_v29 = vadd.f32 %v2446_v34, %v2445_v27  ;;  %v2476_v51 = vadd.f32 %v2475_v18, %v2474_v54  ;;  %v2493_v49 = vmul.f32 %v2394_v6, %v2394_v6 }
 0x21b   :  { %v2494_v25 = vmul.f32 %v2395_v36, %v2395_v36  ;;  %v2495_v8 = vmul.f32 %v2396_v53, %v2396_v53 }
 0x21c   :  { %v2448_v1 = vmul.f32 %v2447_v29, %v5925_v40  ;;  %v2449_v48 = vmul.f32 %v2447_v29, %v5927_v15  ;;  %v2450_v55 = vmul.f32 %v2447_v29, %v5929_v56  ;;  %v2451_v0 = vmul.f32 %v2447_v29, %v5931_v46 }
 0x21d   :  { %v2477_v28 = vmul.f32 %v2476_v51, %v5925_v40  ;;  %v2478_v9 = vmul.f32 %v2476_v51, %v5927_v15  ;;  %v2479_v33 = vmul.f32 %v2476_v51, %v5929_v56  ;;  %v2480_v61 = vmul.f32 %v2476_v51, %v5931_v46 }
 0x21e   :  { %v6014_v10 = vsub.f32 %v5898_v60, %v2448_v1  ;;  %v6017_v16 = vsub.f32 %v5901_v45, %v2449_v48  ;;  %v6020_v50 = vsub.f32 %v5904_v41, %v2450_v55  ;;  %v6023_v38 = vsub.f32 %v5907_v7, %v2451_v0 }
 0x21f   :  { %v6026_v40 = vsub.f32 %v5914_v62, %v2477_v28  ;;  %v6029_v15 = vsub.f32 %v5917_v59, %v2478_v9  ;;  %v6032_v56 = vsub.f32 %v5920_v23, %v2479_v33  ;;  %v6035_v60 = vsub.f32 %v5923_v21, %v2480_v61 }
 0x220   :  { %v2496_v45 = vmul.f32 %v2397_v52, %v2397_v52  ;;  %v2497_v46 = vadd.f32 %v2494_v25, %v2493_v49 }
 0x222   :  { %v2498_v30 = vadd.f32 %v2497_v46, %v2495_v8 }
 0x224   :  { %v2499_v41 = vadd.f32 %v2498_v30, %v2496_v45 }
 0x226   :  { %v2500_v39 = vrot.slane %v2499_v41, 4 }
 0x228   :  { %v2501_v2 = vadd.f32 %v2500_v39, %v2499_v41 }
 0x22a   :  { %v2502_v7 = vrot.slane %v2501_v2, 2 }
 0x22c   :  { %v2503_v42 = vadd.f32 %v2502_v7, %v2501_v2 }
 0x22e   :  { %v2504_v4 = vrot.slane %v2503_v42, 1 }
 0x230   :  { %v2505_v62 = vadd.f32 %v2504_v4, %v2503_v42 }
 0x232   :  { %3175 = vrsqrt.f32 %v2505_v62 }
 0x23c   :  { %v3176_v17 = vpop.eup %3175 }
 0x23d   :  { %v6037_v59 = vmul.f32 %v3176_v17, %v2394_v6  ;;  %v6039_v31 = vmul.f32 %v3176_v17, %v2395_v36  ;;  %v6041_v23 = vmul.f32 %v3176_v17, %v2396_v53  ;;  %v6043_v21 = vmul.f32 %v3176_v17, %v2397_v52 }
 0x23f   :  { %3151 = vst [vmem:[%s6163_s2 + $0x80] sm:$0xff] %v6037_v59  ;;  %3152 = vst [vmem:[%s6163_s2 + $0x88] sm:$0xff] %v6039_v31  ;;  %v2520_v14 = vmul.f32 %v6037_v59, %v5994_v20  ;;  %v2521_v19 = vmul.f32 %v6039_v31, %v5997_v63  ;;  %v2522_v57 = vmul.f32 %v6041_v23, %v6000_v13 }
 0x240   :  { %3153 = vst [vmem:[%s6163_s2 + $0x90] sm:$0xff] %v6041_v23  ;;  %3154 = vst [vmem:[%s6163_s2 + $0x98] sm:$0xff] %v6043_v21  ;;  %v2523_v3 = vmul.f32 %v6043_v21, %v6003_v22  ;;  %v2549_v58 = vmul.f32 %v6037_v59, %v6014_v10  ;;  %v2550_v27 = vmul.f32 %v6039_v31, %v6017_v16 }
 0x241   :  { %v2551_v43 = vmul.f32 %v6041_v23, %v6020_v50  ;;  %v2552_v54 = vmul.f32 %v6043_v21, %v6023_v38  ;;  %v2524_v5 = vadd.f32 %v2521_v19, %v2520_v14  ;;  %v2578_v35 = vmul.f32 %v6037_v59, %v6026_v40 }
 0x242   :  { %v2579_v34 = vmul.f32 %v6039_v31, %v6029_v15  ;;  %v2580_v18 = vmul.f32 %v6041_v23, %v6032_v56  ;;  %v2553_v47 = vadd.f32 %v2550_v27, %v2549_v58  ;;  %v2581_v12 = vmul.f32 %v6043_v21, %v6035_v60 }
 0x243   :  { %v2525_v26 = vadd.f32 %v2524_v5, %v2522_v57 }
 0x244   :  { %v2582_v32 = vadd.f32 %v2579_v34, %v2578_v35  ;;  %v2554_v24 = vadd.f32 %v2553_v47, %v2551_v43 }
 0x245   :  { %v2526_v44 = vadd.f32 %v2525_v26, %v2523_v3 }
 0x246   :  { %v2583_v37 = vadd.f32 %v2582_v32, %v2580_v18  ;;  %v2555_v11 = vadd.f32 %v2554_v24, %v2552_v54 }
 0x247   :  { %v2527_v6 = vrot.slane %v2526_v44, 4 }
 0x248   :  { %v2584_v36 = vadd.f32 %v2583_v37, %v2581_v12  ;;  %v2556_v53 = vrot.slane %v2555_v11, 4 }
 0x249   :  { %v2528_v52 = vadd.f32 %v2527_v6, %v2526_v44 }
 0x24a   :  { %v2585_v29 = vrot.slane %v2584_v36, 4  ;;  %v2557_v51 = vadd.f32 %v2556_v53, %v2555_v11 }
 0x24b   :  { %v2529_v49 = vrot.slane %v2528_v52, 2 }
 0x24c   :  { %v2586_v25 = vadd.f32 %v2585_v29, %v2584_v36  ;;  %v2558_v8 = vrot.slane %v2557_v51, 2 }
 0x24d   :  { %v2530_v1 = vadd.f32 %v2529_v49, %v2528_v52 }
 0x24e   :  { %v2587_v48 = vrot.slane %v2586_v25, 2  ;;  %v2559_v55 = vadd.f32 %v2558_v8, %v2557_v51 }
 0x24f   :  { %v2531_v0 = vrot.slane %v2530_v1, 1 }
 0x250   :  { %v2588_v28 = vadd.f32 %v2587_v48, %v2586_v25  ;;  %v2560_v9 = vrot.slane %v2559_v55, 1 }
 0x251   :  { %v2532_v33 = vadd.f32 %v2531_v0, %v2530_v1 }
 0x252   :  { %v2561_v61 = vadd.f32 %v2560_v9, %v2559_v55  ;;  %v2589_v45 = vrot.slane %v2588_v28, 1 }
 0x253   :  { %v2533_v46 = vmul.f32 %v2532_v33, %v6037_v59  ;;  %v2534_v30 = vmul.f32 %v2532_v33, %v6039_v31  ;;  %v2535_v41 = vmul.f32 %v2532_v33, %v6041_v23  ;;  %v2536_v39 = vmul.f32 %v2532_v33, %v6043_v21 }
 0x254   :  { %v2562_v2 = vmul.f32 %v2561_v61, %v6037_v59  ;;  %v2563_v7 = vmul.f32 %v2561_v61, %v6039_v31  ;;  %v2564_v42 = vmul.f32 %v2561_v61, %v6041_v23  ;;  %v2565_v4 = vmul.f32 %v2561_v61, %v6043_v21 }
 0x255   :  { %v2537_v62 = vsub.f32 %v5994_v20, %v2533_v46  ;;  %v2538_v17 = vsub.f32 %v5997_v63, %v2534_v30  ;;  %v2539_v14 = vsub.f32 %v6000_v13, %v2535_v41  ;;  %v2540_v19 = vsub.f32 %v6003_v22, %v2536_v39 }
 0x256   :  { %v6098_v57 = vsub.f32 %v6014_v10, %v2562_v2  ;;  %v6101_v3 = vsub.f32 %v6017_v16, %v2563_v7  ;;  %v6104_v58 = vsub.f32 %v6020_v50, %v2564_v42  ;;  %v6107_v27 = vsub.f32 %v6023_v38, %v2565_v4 }
 0x257   :  { %v2590_v43 = vadd.f32 %v2589_v45, %v2588_v28  ;;  %v2607_v20 = vmul.f32 %v2537_v62, %v2537_v62  ;;  %v2608_v54 = vmul.f32 %v2538_v17, %v2538_v17  ;;  %v2609_v63 = vmul.f32 %v2539_v14, %v2539_v14 }
 0x258   :  { %v2610_v16 = vmul.f32 %v2540_v19, %v2540_v19 }
 0x259   :  { %v2591_v13 = vmul.f32 %v2590_v43, %v6037_v59  ;;  %v2592_v22 = vmul.f32 %v2590_v43, %v6039_v31  ;;  %v2593_v10 = vmul.f32 %v2590_v43, %v6041_v23  ;;  %v2594_v5 = vmul.f32 %v2590_v43, %v6043_v21 }
 0x25a   :  { %v2611_v35 = vadd.f32 %v2608_v54, %v2607_v20 }
 0x25b   :  { %v2595_v50 = vsub.f32 %v6026_v40, %v2591_v13  ;;  %v2596_v34 = vsub.f32 %v6029_v15, %v2592_v22  ;;  %v2597_v38 = vsub.f32 %v6032_v56, %v2593_v10  ;;  %v2598_v18 = vsub.f32 %v6035_v60, %v2594_v5 }
 0x25c   :  { %v2612_v47 = vadd.f32 %v2611_v35, %v2609_v63 }
 0x25e   :  { %v2613_v12 = vadd.f32 %v2612_v47, %v2610_v16 }
 0x260   :  { %v2614_v26 = vrot.slane %v2613_v12, 4 }
 0x262   :  { %v2615_v59 = vadd.f32 %v2614_v26, %v2613_v12 }
 0x264   :  { %v2616_v32 = vrot.slane %v2615_v59, 2 }
 0x266   :  { %v2617_v31 = vadd.f32 %v2616_v32, %v2615_v59 }
 0x268   :  { %v2618_v24 = vrot.slane %v2617_v31, 1 }
 0x26a   :  { %v2619_v23 = vadd.f32 %v2618_v24, %v2617_v31 }
 0x26c   :  { %3177 = vrsqrt.f32 %v2619_v23 }
 0x276   :  { %v3178_v21 = vpop.eup %3177 }
 0x277   :  { %v2621_v44 = vmul.f32 %v3178_v21, %v2537_v62  ;;  %v2622_v37 = vmul.f32 %v3178_v21, %v2538_v17  ;;  %v2623_v11 = vmul.f32 %v3178_v21, %v2539_v14  ;;  %v2624_v40 = vmul.f32 %v3178_v21, %v2540_v19 }
 0x279   :  { %3155 = vst [vmem:[%s6163_s2 + $0xa0] sm:$0xff] %v2621_v44  ;;  %3156 = vst [vmem:[%s6163_s2 + $0xa8] sm:$0xff] %v2622_v37  ;;  %v2634_v15 = vmul.f32 %v2621_v44, %v6098_v57  ;;  %v2635_v56 = vmul.f32 %v2622_v37, %v6101_v3  ;;  %v2636_v60 = vmul.f32 %v2623_v11, %v6104_v58 }
 0x27a   :  { %3157 = vst [vmem:[%s6163_s2 + $0xb0] sm:$0xff] %v2623_v11  ;;  %3158 = vst [vmem:[%s6163_s2 + $0xb8] sm:$0xff] %v2624_v40  ;;  %v2637_v6 = vmul.f32 %v2624_v40, %v6107_v27  ;;  %v2663_v36 = vmul.f32 %v2621_v44, %v2595_v50  ;;  %v2664_v53 = vmul.f32 %v2622_v37, %v2596_v34 }
 0x27b   :  { %v2665_v52 = vmul.f32 %v2623_v11, %v2597_v38  ;;  %v2666_v29 = vmul.f32 %v2624_v40, %v2598_v18  ;;  %v2638_v51 = vadd.f32 %v2635_v56, %v2634_v15 }
 0x27c   :  { %v2667_v49 = vadd.f32 %v2664_v53, %v2663_v36 }
 0x27d   :  { %v2639_v25 = vadd.f32 %v2638_v51, %v2636_v60 }
 0x27e   :  { %v2668_v8 = vadd.f32 %v2667_v49, %v2665_v52 }
 0x27f   :  { %v2640_v1 = vadd.f32 %v2639_v25, %v2637_v6 }
 0x280   :  { %v2669_v48 = vadd.f32 %v2668_v8, %v2666_v29 }
 0x281   :  { %v2641_v55 = vrot.slane %v2640_v1, 4 }
 0x282   :  { %v2670_v0 = vrot.slane %v2669_v48, 4 }
 0x283   :  { %v2642_v28 = vadd.f32 %v2641_v55, %v2640_v1 }
 0x284   :  { %v2671_v9 = vadd.f32 %v2670_v0, %v2669_v48 }
 0x285   :  { %v2643_v33 = vrot.slane %v2642_v28, 2 }
 0x286   :  { %v2672_v61 = vrot.slane %v2671_v9, 2 }
 0x287   :  { %v2644_v45 = vadd.f32 %v2643_v33, %v2642_v28 }
 0x288   :  { %v2673_v46 = vadd.f32 %v2672_v61, %v2671_v9 }
 0x289   :  { %v2645_v30 = vrot.slane %v2644_v45, 1 }
 0x28a   :  { %v2674_v41 = vrot.slane %v2673_v46, 1 }
 0x28b   :  { %v2646_v39 = vadd.f32 %v2645_v30, %v2644_v45 }
 0x28c   :  { %v2675_v2 = vadd.f32 %v2674_v41, %v2673_v46 }
 0x28d   :  { %v2647_v7 = vmul.f32 %v2646_v39, %v2621_v44  ;;  %v2648_v42 = vmul.f32 %v2646_v39, %v2622_v37  ;;  %v2649_v4 = vmul.f32 %v2646_v39, %v2623_v11  ;;  %v2650_v62 = vmul.f32 %v2646_v39, %v2624_v40 }
 0x28e   :  { %v2676_v17 = vmul.f32 %v2675_v2, %v2621_v44  ;;  %v2677_v14 = vmul.f32 %v2675_v2, %v2622_v37  ;;  %v2678_v19 = vmul.f32 %v2675_v2, %v2623_v11  ;;  %v2679_v43 = vmul.f32 %v2675_v2, %v2624_v40 }
 0x28f   :  { %v2651_v20 = vsub.f32 %v6098_v57, %v2647_v7  ;;  %v2652_v54 = vsub.f32 %v6101_v3, %v2648_v42  ;;  %v2653_v63 = vsub.f32 %v6104_v58, %v2649_v4  ;;  %v2654_v13 = vsub.f32 %v6107_v27, %v2650_v62 }
 0x290   :  { %v2680_v22 = vsub.f32 %v2595_v50, %v2676_v17  ;;  %v2681_v10 = vsub.f32 %v2596_v34, %v2677_v14  ;;  %v2682_v5 = vsub.f32 %v2597_v38, %v2678_v19  ;;  %v2683_v16 = vsub.f32 %v2598_v18, %v2679_v43 }
 0x291   :  { %v2692_v35 = vmul.f32 %v2651_v20, %v2651_v20  ;;  %v2693_v47 = vmul.f32 %v2652_v54, %v2652_v54  ;;  %v2694_v12 = vmul.f32 %v2653_v63, %v2653_v63  ;;  %v2695_v26 = vmul.f32 %v2654_v13, %v2654_v13 }
 0x293   :  { %v2696_v59 = vadd.f32 %v2693_v47, %v2692_v35 }
 0x295   :  { %v2697_v32 = vadd.f32 %v2696_v59, %v2694_v12 }
 0x297   :  { %v2698_v31 = vadd.f32 %v2697_v32, %v2695_v26 }
 0x299   :  { %v2699_v24 = vrot.slane %v2698_v31, 4 }
 0x29b   :  { %v2700_v23 = vadd.f32 %v2699_v24, %v2698_v31 }
 0x29d   :  { %v2701_v57 = vrot.slane %v2700_v23, 2 }
 0x29f   :  { %v2702_v21 = vadd.f32 %v2701_v57, %v2700_v23 }
 0x2a1   :  { %v2703_v3 = vrot.slane %v2702_v21, 1 }
 0x2a3   :  { %v2704_v44 = vadd.f32 %v2703_v3, %v2702_v21 }
 0x2a5   :  { %3179 = vrsqrt.f32 %v2704_v44 }
 0x2af   :  { %v3180_v58 = vpop.eup %3179 }
 0x2b0   :  { %v2706_v27 = vmul.f32 %v3180_v58, %v2651_v20  ;;  %v2707_v50 = vmul.f32 %v3180_v58, %v2652_v54  ;;  %v2708_v34 = vmul.f32 %v3180_v58, %v2653_v63  ;;  %v2709_v38 = vmul.f32 %v3180_v58, %v2654_v13 }
 0x2b2   :  { %3159 = vst [vmem:[%s6163_s2 + $0xc0] sm:$0xff] %v2706_v27  ;;  %3160 = vst [vmem:[%s6163_s2 + $0xc8] sm:$0xff] %v2707_v50  ;;  %v2719_v18 = vmul.f32 %v2706_v27, %v2680_v22  ;;  %v2720_v37 = vmul.f32 %v2707_v50, %v2681_v10  ;;  %v2721_v11 = vmul.f32 %v2708_v34, %v2682_v5 }
 0x2b3   :  { %3161 = vst [vmem:[%s6163_s2 + $0xd0] sm:$0xff] %v2708_v34  ;;  %3162 = vst [vmem:[%s6163_s2 + $0xd8] sm:$0xff] %v2709_v38  ;;  %v2722_v40 = vmul.f32 %v2709_v38, %v2683_v16 }
 0x2b4   :  { %v2723_v15 = vadd.f32 %v2720_v37, %v2719_v18 }
 0x2b6   :  { %v2724_v56 = vadd.f32 %v2723_v15, %v2721_v11 }
 0x2b8   :  { %v2725_v60 = vadd.f32 %v2724_v56, %v2722_v40 }
 0x2ba   :  { %v2726_v6 = vrot.slane %v2725_v60, 4 }
 0x2bc   :  { %v2727_v36 = vadd.f32 %v2726_v6, %v2725_v60 }
 0x2be   :  { %v2728_v53 = vrot.slane %v2727_v36, 2 }
 0x2c0   :  { %v2729_v52 = vadd.f32 %v2728_v53, %v2727_v36 }
 0x2c2   :  { %v2730_v29 = vrot.slane %v2729_v52, 1 }
 0x2c4   :  { %v2731_v51 = vadd.f32 %v2730_v29, %v2729_v52 }
 0x2c6   :  { %v2732_v49 = vmul.f32 %v2731_v51, %v2706_v27  ;;  %v2733_v25 = vmul.f32 %v2731_v51, %v2707_v50  ;;  %v2734_v8 = vmul.f32 %v2731_v51, %v2708_v34  ;;  %v2735_v1 = vmul.f32 %v2731_v51, %v2709_v38 }
 0x2c8   :  { %v2736_v48 = vsub.f32 %v2680_v22, %v2732_v49  ;;  %v2737_v55 = vsub.f32 %v2681_v10, %v2733_v25  ;;  %v2738_v0 = vsub.f32 %v2682_v5, %v2734_v8  ;;  %v2739_v28 = vsub.f32 %v2683_v16, %v2735_v1 }
 0x2ca   :  { %v2748_v9 = vmul.f32 %v2736_v48, %v2736_v48  ;;  %v2749_v33 = vmul.f32 %v2737_v55, %v2737_v55  ;;  %v2750_v61 = vmul.f32 %v2738_v0, %v2738_v0  ;;  %v2751_v45 = vmul.f32 %v2739_v28, %v2739_v28 }
 0x2cc   :  { %v2752_v46 = vadd.f32 %v2749_v33, %v2748_v9 }
 0x2ce   :  { %v2753_v30 = vadd.f32 %v2752_v46, %v2750_v61 }
 0x2d0   :  { %v2754_v41 = vadd.f32 %v2753_v30, %v2751_v45 }
 0x2d2   :  { %v2755_v39 = vrot.slane %v2754_v41, 4 }
 0x2d4   :  { %v2756_v2 = vadd.f32 %v2755_v39, %v2754_v41 }
 0x2d6   :  { %v2757_v7 = vrot.slane %v2756_v2, 2 }
 0x2d8   :  { %v2758_v42 = vadd.f32 %v2757_v7, %v2756_v2 }
 0x2da   :  { %v2759_v4 = vrot.slane %v2758_v42, 1 }
 0x2dc   :  { %v2760_v62 = vadd.f32 %v2759_v4, %v2758_v42 }
 0x2de   :  { %3181 = vrsqrt.f32 %v2760_v62 }
 0x2e8   :  { %v3182_v17 = vpop.eup %3181 }
 0x2e9   :  { %v2762_v14 = vmul.f32 %v3182_v17, %v2736_v48  ;;  %v2763_v19 = vmul.f32 %v3182_v17, %v2737_v55  ;;  %v2764_v43 = vmul.f32 %v3182_v17, %v2738_v0  ;;  %v2765_v20 = vmul.f32 %v3182_v17, %v2739_v28 }
 0x2eb   :  { %3163 = vst [vmem:[%s6163_s2 + $0xe0] sm:$0xff] %v2762_v14  ;;  %3164 = vst [vmem:[%s6163_s2 + $0xe8] sm:$0xff] %v2763_v19 }
 0x2ec   :  { %3165 = vst [vmem:[%s6163_s2 + $0xf0] sm:$0xff] %v2764_v43  ;;  %3166 = vst [vmem:[%s6163_s2 + $0xf8] sm:$0xff] %v2765_v20 }

</bundles_post_ra>
